<compile_context>
chip_gen: v6e
topology: v6e:2x2x1
jax: 0.10.0
libtpu: 0.0.40
codegen_flags: <defaults>
</compile_context>

<pallas_src>
import jax
import jax.numpy as jnp
from jax.experimental import pallas as pl
from jax.experimental.pallas import tpu as pltpu


# ----------------------------------------------------------------------------
# Fused kernel: conv3x3+BN+ReLU -> conv3x3+BN+ReLU -> 1x1 conv (+bias)
# ----------------------------------------------------------------------------
def _pick_row_block(h, w, target_rows=64):
    th = 1
    for cand in range(1, h + 1):
        if h % cand == 0 and cand * w <= target_rows:
            th = cand
    return th


def _make_fused_decoder_kernel(H, W, KC1, C, CP, TH):
    n_rb = H // TH
    C3 = 3 * C

    def kernel(p_ref, w1_ref, s1_ref, b1_ref, w2_ref, s2_ref, b2_ref,
               w3_ref, b3_ref, o_ref, ykx_ref):
        # p_ref : (H, W, 9*Cin) bf16  im2col patches of the layer-1 input
        # w1_ref: (9*Cin, C)    bf16  conv1 weights, (ky,kx,cin) x cout
        # s1/b1 : (1, C)        f32   folded BN1 scale / bias
        # w2_ref: (3, 3*C, C)   bf16  conv2 weights, ky x (kx,cin) x cout
        # s2/b2 : (1, C)        f32   folded BN2 scale / bias
        # w3_ref: (C, CP)       bf16  1x1 classifier weights (lane padded)
        # b3_ref: (1, CP)       f32   classifier bias (lane padded)
        # o_ref : (H, W, CP)    f32   logits (lane-dense stores)
        # ykx   : (H+2, W, 3*C) bf16  kx-expanded, zero-haloed layer-1 output:
        #         ykx[i, w, kx*C:(kx+1)*C] == y1pad[i, w+kx, :]
        #         (y1pad = layer-1 output zero-padded by 1 in H and W)
        s1 = s1_ref[...]
        b1 = b1_ref[...]
        s2 = s2_ref[...]
        b2 = b2_ref[...]
        w1 = w1_ref[...]
        w3 = w3_ref[...]
        b3 = b3_ref[...]

        # ---- layer 1: im2col matmul + BN + ReLU (Dropout(0.5) = id in eval).
        # Result is written straight into the centre (kx = 1) lane block of
        # ykx -> no HBM round trip and no extra VMEM copy of the intermediate.
        for rb in range(n_rb):
            r0 = rb * TH
            p = p_ref[r0:r0 + TH, :, :].reshape(TH * W, KC1)
            acc = jnp.dot(p, w1, preferred_element_type=jnp.float32)
            y1 = jnp.maximum(acc * s1 + b1, 0.0)
            ykx_ref[1 + r0:1 + r0 + TH, :, C:2 * C] = (
                y1.reshape(TH, W, C).astype(jnp.bfloat16))

        # ---- build the kx-shifted lane blocks + zero halo.  All lane offsets
        # are multiples of 128; the W shifts only touch the sublane axis.
        zrow = jnp.zeros((1, W, C3), jnp.bfloat16)
        zcol = jnp.zeros((H, 1, C), jnp.bfloat16)
        ykx_ref[0:1, :, :] = zrow                          # top halo row
        ykx_ref[H + 1:H + 2, :, :] = zrow                  # bottom halo row
        y1_all = ykx_ref[1:H + 1, :, C:2 * C]              # (H, W, C) bf16
        ykx_ref[1:H + 1, 0:1, 0:C] = zcol                  # y1[h, w-1] at w=0
        ykx_ref[1:H + 1, W - 1:W, 2 * C:C3] = zcol         # y1[h, w+1] at w=W-1
        if W > 1:
            ykx_ref[1:H + 1, 1:W, 0:C] = y1_all[:, :W - 1, :]
            ykx_ref[1:H + 1, 0:W - 1, 2 * C:C3] = y1_all[:, 1:, :]

        # ---- layer 2 + classifier: conv3x3 (3 matmuls, K = 3*C) + BN + ReLU
        # + 1x1 conv (+bias).  Dropout(0.1) = id in eval.  All before HBM.
        for rb in range(n_rb):
            r0 = rb * TH
            acc = jnp.zeros((TH * W, C), jnp.float32)
            for ky in range(3):
                patch = ykx_ref[ky + r0:ky + r0 + TH, :, :].reshape(TH * W, C3)
                acc = acc + jnp.dot(patch, w2_ref[ky],
                                    preferred_element_type=jnp.float32)
            y2 = jnp.maximum(acc * s2 + b2, 0.0)
            y3 = jnp.dot(y2.astype(jnp.bfloat16), w3,
                         preferred_element_type=jnp.float32) + b3
            o_ref[r0:r0 + TH, :, :] = y3.reshape(TH, W, CP)

    return kernel


def _fused_decoder(patches, w1, s1, b1, w2_ky, s2, b2, w3p, b3p):
    n, h, w, kc1 = patches.shape
    c = w1.shape[1]
    cp = w3p.shape[1]
    th = _pick_row_block(h, w)
    kernel = _make_fused_decoder_kernel(h, w, kc1, c, cp, th)
    # TODO(synk): for large resolutions (e.g. 129x129x256 on v7x's 64 MiB VMEM)
    # add a halo'd spatial row-block grid axis instead of whole-image blocks.
    return pl.pallas_call(
        kernel,
        out_shape=jax.ShapeDtypeStruct((n, h, w, cp), jnp.float32),
        grid_spec=pltpu.PrefetchScalarGridSpec(
            num_scalar_prefetch=0,
            grid=(n,),
            in_specs=[
                pl.BlockSpec((pl.Squeezed(), h, w, kc1), lambda i: (i, 0, 0, 0)),
                pl.BlockSpec((kc1, c), lambda i: (0, 0)),
                pl.BlockSpec((1, c), lambda i: (0, 0)),
                pl.BlockSpec((1, c), lambda i: (0, 0)),
                pl.BlockSpec((3, 3 * c, c), lambda i: (0, 0, 0)),
                pl.BlockSpec((1, c), lambda i: (0, 0)),
                pl.BlockSpec((1, c), lambda i: (0, 0)),
                pl.BlockSpec((c, cp), lambda i: (0, 0)),
                pl.BlockSpec((1, cp), lambda i: (0, 0)),
            ],
            out_specs=pl.BlockSpec((pl.Squeezed(), h, w, cp),
                                   lambda i: (i, 0, 0, 0)),
            scratch_shapes=[pltpu.VMEM((h + 2, w, 3 * c), jnp.bfloat16)],
        ),
        compiler_params=pltpu.CompilerParams(dimension_semantics=("parallel",)),
    )(patches, w1, s1, b1, w2_ky, s2, b2, w3p, b3p)


# ----------------------------------------------------------------------------
# Parameters (matching Decoder_coarse_v2._init_weight, BN folded for eval)
# ----------------------------------------------------------------------------
def init_params(key, in_ch, num_classes):
    k1, k2, k3, k4 = jax.random.split(key, 4)

    def kaiming_conv(k, K, cin, cout):
        # torch.nn.init.kaiming_normal_ (fan_in, gain=sqrt(2)) on (cout,cin,K,K)
        # rearranged to the (K*K*cin, cout) matmul layout, (ky,kx,cin) ordering.
        fan_in = cin * K * K
        std = (2.0 / fan_in) ** 0.5
        w = jax.random.normal(k, (cout, cin, K, K), jnp.float32) * std
        return jnp.transpose(w, (2, 3, 1, 0)).reshape(K * K * cin, cout)

    w1 = kaiming_conv(k1, 3, in_ch, 256).astype(jnp.bfloat16)
    w2 = kaiming_conv(k2, 3, 256, 256).astype(jnp.bfloat16)
    w3 = kaiming_conv(k3, 1, 256, num_classes)                 # (256, nc) f32
    bound = 1.0 / (256.0 ** 0.5)                               # torch bias init
    b3 = jax.random.uniform(k4, (num_classes,), jnp.float32, -bound, bound)

    # BN folded for eval: scale = gamma/sqrt(var+eps) = 1/sqrt(1+1e-5), bias = 0.
    # Two distinct BN layers -> two distinct (scale, bias) pairs.
    eps = 1e-5
    bn1_scale = jnp.full((256,), 1.0 / (1.0 + eps) ** 0.5, jnp.float32)
    bn1_bias = jnp.zeros((256,), jnp.float32)
    bn2_scale = jnp.full((256,), 1.0 / (1.0 + eps) ** 0.5, jnp.float32)
    bn2_bias = jnp.zeros((256,), jnp.float32)
    return (w1, w2, w3, b3, bn1_scale, bn1_bias, bn2_scale, bn2_bias)


# ----------------------------------------------------------------------------
# Forward
# ----------------------------------------------------------------------------
def _im2col_3x3(x_nchw):
    # (N, Cin, H, W) -> (N, H, W, 9*Cin), column order (ky, kx, cin).
    n, cin, h, w = x_nchw.shape
    x = jnp.transpose(x_nchw, (0, 2, 3, 1))
    xp = jnp.pad(x, ((0, 0), (1, 1), (1, 1), (0, 0)))
    cols = [xp[:, ky:ky + h, kx:kx + w, :] for ky in range(3) for kx in range(3)]
    return jnp.concatenate(cols, axis=-1)


@jax.jit
def decoder_coarse_v2(x_nchw, params):
    """x_nchw: (N, in_ch, H, W) f32 -> (N, num_classes, H, W) f32 (eval mode)."""
    w1, w2, w3, b3, bn1_s, bn1_b, bn2_s, bn2_b = params
    n, _, h, w = x_nchw.shape
    c = w1.shape[1]                      # 256
    nc = w3.shape[1]

    # Layer-1 im2col on the host side (tiny Cin => cheap); everything else is
    # fused in a single Pallas kernel.  Both Dropouts are identity in eval.
    # TODO(synk): training-mode dropout (Bernoulli masks) not implemented.
    patches = _im2col_3x3(x_nchw).astype(jnp.bfloat16)          # (N,H,W,9*Cin)
    w2_ky = w2.reshape(3, 3 * c, c)                             # ky x (kx,cin) x cout

    cp = ((nc + 127) // 128) * 128                              # lane-dense out
    w3p = jnp.zeros((c, cp), jnp.bfloat16).at[:, :nc].set(w3.astype(jnp.bfloat16))
    b3p = jnp.zeros((1, cp), jnp.float32).at[0, :nc].set(b3)

    out = _fused_decoder(patches, w1, bn1_s.reshape(1, c), bn1_b.reshape(1, c),
                         w2_ky, bn2_s.reshape(1, c), bn2_b.reshape(1, c),
                         w3p, b3p)                              # (N,H,W,CP) f32

    out = out[..., :nc]                                         # drop lane pad
    return jnp.transpose(out, (0, 3, 1, 2))                     # NHWC -> NCHW


# ----------------------------------------------------------------------------
# Pure-JAX reference (f32) for a correctness cross-check
# ----------------------------------------------------------------------------
def _reference(x_nchw, params):
    w1, w2, w3, b3, s1, bb1, s2, bb2 = params
    x = jnp.transpose(x_nchw, (0, 2, 3, 1)).astype(jnp.float32)

    def conv3(xx, wflat, cout):
        cin = xx.shape[-1]
        wk = wflat.astype(jnp.float32).reshape(3, 3, cin, cout)   # HWIO
        return jax.lax.conv_general_dilated(
            xx, wk, window_strides=(1, 1), padding="SAME",
            dimension_numbers=("NHWC", "HWIO", "NHWC"))

    y = jnp.maximum(conv3(x, w1, 256) * s1 + bb1, 0.0)
    y = jnp.maximum(conv3(y, w2, 256) * s2 + bb2, 0.0)
    y = jnp.einsum("nhwc,ck->nhwk", y, w3) + b3
    return jnp.transpose(y, (0, 3, 1, 2))


if __name__ == "__main__":
    N, in_ch, H, W = 2, 4, 16, 16
    num_classes = 8

    key = jax.random.PRNGKey(0)
    kx_, kp = jax.random.split(key)
    x = jax.random.normal(kx_, (N, in_ch, H, W), jnp.float32)
    params = init_params(kp, in_ch, num_classes)

    out = jax.block_until_ready(decoder_coarse_v2(x, params))
    assert out.shape == (N, num_classes, H, W), out.shape
    assert bool(jnp.all(jnp.isfinite(out)))

    ref = _reference(x, params)
    max_err = float(jnp.max(jnp.abs(out - ref)))
    assert jnp.allclose(out, ref, rtol=5e-2, atol=5e-2), max_err  # bf16 drift

    print("KERNEL_OK")
</pallas_src>

<mosaic_0001>
module attributes {stable_mosaic.version = 11 : i64} {
  func.func @kernel(%arg0: i32, %arg1: memref<1x16x16x36xbf16, #tpu.memory_space<vmem>>, %arg2: memref<36x256xbf16, #tpu.memory_space<vmem>>, %arg3: memref<1x256xf32, #tpu.memory_space<vmem>>, %arg4: memref<1x256xf32, #tpu.memory_space<vmem>>, %arg5: memref<3x768x256xbf16, #tpu.memory_space<vmem>>, %arg6: memref<1x256xf32, #tpu.memory_space<vmem>>, %arg7: memref<1x256xf32, #tpu.memory_space<vmem>>, %arg8: memref<256x128xbf16, #tpu.memory_space<vmem>>, %arg9: memref<1x128xf32, #tpu.memory_space<vmem>>, %arg10: memref<1x16x16x128xf32, #tpu.memory_space<vmem>>, %arg11: memref<18x16x768xbf16, #tpu.memory_space<vmem>>) attributes {dimension_semantics = [#tpu.dimension_semantics<parallel>], iteration_bounds = array<i64: 2>, scalar_prefetch = 0 : i64, scratch_operands = 1 : i64, tpu.core_type = #tpu.core_type<tc>, window_params = [{transform_indices = @transform_0, window_bounds = array<i64: 1, 16, 16, 36>}, {pipeline_mode = #tpu.pipeline_mode<synchronous>, transform_indices = @transform_1, window_bounds = array<i64: 36, 256>}, {pipeline_mode = #tpu.pipeline_mode<synchronous>, transform_indices = @transform_2, window_bounds = array<i64: 1, 256>}, {pipeline_mode = #tpu.pipeline_mode<synchronous>, transform_indices = @transform_3, window_bounds = array<i64: 1, 256>}, {pipeline_mode = #tpu.pipeline_mode<synchronous>, transform_indices = @transform_4, window_bounds = array<i64: 3, 768, 256>}, {pipeline_mode = #tpu.pipeline_mode<synchronous>, transform_indices = @transform_5, window_bounds = array<i64: 1, 256>}, {pipeline_mode = #tpu.pipeline_mode<synchronous>, transform_indices = @transform_6, window_bounds = array<i64: 1, 256>}, {pipeline_mode = #tpu.pipeline_mode<synchronous>, transform_indices = @transform_7, window_bounds = array<i64: 256, 128>}, {pipeline_mode = #tpu.pipeline_mode<synchronous>, transform_indices = @transform_8, window_bounds = array<i64: 1, 128>}, {transform_indices = @transform_9, window_bounds = array<i64: 1, 16, 16, 128>}]} {
    %c0 = arith.constant 0 : index
    %c0_0 = arith.constant 0 : index
    %0 = vector.load %arg3[%c0, %c0_0] : memref<1x256xf32, #tpu.memory_space<vmem>>, vector<1x256xf32>
    %c0_1 = arith.constant 0 : index
    %c0_2 = arith.constant 0 : index
    %1 = vector.load %arg4[%c0_1, %c0_2] : memref<1x256xf32, #tpu.memory_space<vmem>>, vector<1x256xf32>
    %c0_3 = arith.constant 0 : index
    %c0_4 = arith.constant 0 : index
    %2 = vector.load %arg6[%c0_3, %c0_4] : memref<1x256xf32, #tpu.memory_space<vmem>>, vector<1x256xf32>
    %c0_5 = arith.constant 0 : index
    %c0_6 = arith.constant 0 : index
    %3 = vector.load %arg7[%c0_5, %c0_6] : memref<1x256xf32, #tpu.memory_space<vmem>>, vector<1x256xf32>
    %c0_7 = arith.constant 0 : index
    %c0_8 = arith.constant 0 : index
    %4 = vector.load %arg2[%c0_7, %c0_8] : memref<36x256xbf16, #tpu.memory_space<vmem>>, vector<36x256xbf16>
    %c0_9 = arith.constant 0 : index
    %c0_10 = arith.constant 0 : index
    %5 = vector.load %arg8[%c0_9, %c0_10] : memref<256x128xbf16, #tpu.memory_space<vmem>>, vector<256x128xbf16>
    %c0_11 = arith.constant 0 : index
    %c0_12 = arith.constant 0 : index
    %6 = vector.load %arg9[%c0_11, %c0_12] : memref<1x128xf32, #tpu.memory_space<vmem>>, vector<1x128xf32>
    %c0_13 = arith.constant 0 : index
    %c0_14 = arith.constant 0 : index
    %c0_15 = arith.constant 0 : index
    %c0_16 = arith.constant 0 : index
    %7 = vector.load %arg1[%c0_13, %c0_14, %c0_15, %c0_16] : memref<1x16x16x36xbf16, #tpu.memory_space<vmem>>, vector<1x4x16x36xbf16>
    %8 = vector.shape_cast %7 : vector<1x4x16x36xbf16> to vector<4x16x36xbf16>
    %9 = vector.shape_cast %8 : vector<4x16x36xbf16> to vector<64x36xbf16>
    %cst = arith.constant dense<0.000000e+00> : vector<64x256xf32>
    %10 = tpu.matmul %9, %4, %cst {dimension_numbers = #tpu.dot_dimension_numbers<[1], [0], [0], [1], [0, 0, 1, 1], [], []>} : vector<64x36xbf16>, vector<36x256xbf16>, vector<64x256xf32> -> vector<64x256xf32>
    %11 = vector.broadcast %0 : vector<1x256xf32> to vector<64x256xf32>
    %12 = arith.mulf %10, %11 : vector<64x256xf32>
    %13 = vector.broadcast %1 : vector<1x256xf32> to vector<64x256xf32>
    %14 = arith.addf %12, %13 : vector<64x256xf32>
    %cst_17 = arith.constant 0.000000e+00 : f32
    %15 = vector.broadcast %cst_17 : f32 to vector<64x256xf32>
    %16 = arith.maximumf %14, %15 : vector<64x256xf32>
    %17 = vector.shape_cast %16 : vector<64x256xf32> to vector<4x16x256xf32>
    %18 = arith.truncf %17 : vector<4x16x256xf32> to vector<4x16x256xbf16>
    %c1 = arith.constant 1 : index
    %c0_18 = arith.constant 0 : index
    %c256 = arith.constant 256 : index
    %19 = vector.load %arg11[%c1, %c0_18, %c256] : memref<18x16x768xbf16, #tpu.memory_space<vmem>>, vector<4x16x256xbf16>
    tpu.vector_store %arg11[%c1, %c0_18, %c256], %18 {strides = array<i32>} : memref<18x16x768xbf16, #tpu.memory_space<vmem>>, vector<4x16x256xbf16>,
    %c0_19 = arith.constant 0 : index
    %c4 = arith.constant 4 : index
    %c0_20 = arith.constant 0 : index
    %c0_21 = arith.constant 0 : index
    %20 = vector.load %arg1[%c0_19, %c4, %c0_20, %c0_21] : memref<1x16x16x36xbf16, #tpu.memory_space<vmem>>, vector<1x4x16x36xbf16>
    %21 = vector.shape_cast %20 : vector<1x4x16x36xbf16> to vector<4x16x36xbf16>
    %22 = vector.shape_cast %21 : vector<4x16x36xbf16> to vector<64x36xbf16>
    %cst_22 = arith.constant dense<0.000000e+00> : vector<64x256xf32>
    %23 = tpu.matmul %22, %4, %cst_22 {dimension_numbers = #tpu.dot_dimension_numbers<[1], [0], [0], [1], [0, 0, 1, 1], [], []>} : vector<64x36xbf16>, vector<36x256xbf16>, vector<64x256xf32> -> vector<64x256xf32>
    %24 = vector.broadcast %0 : vector<1x256xf32> to vector<64x256xf32>
    %25 = arith.mulf %23, %24 : vector<64x256xf32>
    %26 = vector.broadcast %1 : vector<1x256xf32> to vector<64x256xf32>
    %27 = arith.addf %25, %26 : vector<64x256xf32>
    %cst_23 = arith.constant 0.000000e+00 : f32
    %28 = vector.broadcast %cst_23 : f32 to vector<64x256xf32>
    %29 = arith.maximumf %27, %28 : vector<64x256xf32>
    %30 = vector.shape_cast %29 : vector<64x256xf32> to vector<4x16x256xf32>
    %31 = arith.truncf %30 : vector<4x16x256xf32> to vector<4x16x256xbf16>
    %c5 = arith.constant 5 : index
    %c0_24 = arith.constant 0 : index
    %c256_25 = arith.constant 256 : index
    %32 = vector.load %arg11[%c5, %c0_24, %c256_25] : memref<18x16x768xbf16, #tpu.memory_space<vmem>>, vector<4x16x256xbf16>
    tpu.vector_store %arg11[%c5, %c0_24, %c256_25], %31 {strides = array<i32>} : memref<18x16x768xbf16, #tpu.memory_space<vmem>>, vector<4x16x256xbf16>,
    %c0_26 = arith.constant 0 : index
    %c8 = arith.constant 8 : index
    %c0_27 = arith.constant 0 : index
    %c0_28 = arith.constant 0 : index
    %33 = vector.load %arg1[%c0_26, %c8, %c0_27, %c0_28] : memref<1x16x16x36xbf16, #tpu.memory_space<vmem>>, vector<1x4x16x36xbf16>
    %34 = vector.shape_cast %33 : vector<1x4x16x36xbf16> to vector<4x16x36xbf16>
    %35 = vector.shape_cast %34 : vector<4x16x36xbf16> to vector<64x36xbf16>
    %cst_29 = arith.constant dense<0.000000e+00> : vector<64x256xf32>
    %36 = tpu.matmul %35, %4, %cst_29 {dimension_numbers = #tpu.dot_dimension_numbers<[1], [0], [0], [1], [0, 0, 1, 1], [], []>} : vector<64x36xbf16>, vector<36x256xbf16>, vector<64x256xf32> -> vector<64x256xf32>
    %37 = vector.broadcast %0 : vector<1x256xf32> to vector<64x256xf32>
    %38 = arith.mulf %36, %37 : vector<64x256xf32>
    %39 = vector.broadcast %1 : vector<1x256xf32> to vector<64x256xf32>
    %40 = arith.addf %38, %39 : vector<64x256xf32>
    %cst_30 = arith.constant 0.000000e+00 : f32
    %41 = vector.broadcast %cst_30 : f32 to vector<64x256xf32>
    %42 = arith.maximumf %40, %41 : vector<64x256xf32>
    %43 = vector.shape_cast %42 : vector<64x256xf32> to vector<4x16x256xf32>
    %44 = arith.truncf %43 : vector<4x16x256xf32> to vector<4x16x256xbf16>
    %c9 = arith.constant 9 : index
    %c0_31 = arith.constant 0 : index
    %c256_32 = arith.constant 256 : index
    %45 = vector.load %arg11[%c9, %c0_31, %c256_32] : memref<18x16x768xbf16, #tpu.memory_space<vmem>>, vector<4x16x256xbf16>
    tpu.vector_store %arg11[%c9, %c0_31, %c256_32], %44 {strides = array<i32>} : memref<18x16x768xbf16, #tpu.memory_space<vmem>>, vector<4x16x256xbf16>,
    %c0_33 = arith.constant 0 : index
    %c12 = arith.constant 12 : index
    %c0_34 = arith.constant 0 : index
    %c0_35 = arith.constant 0 : index
    %46 = vector.load %arg1[%c0_33, %c12, %c0_34, %c0_35] : memref<1x16x16x36xbf16, #tpu.memory_space<vmem>>, vector<1x4x16x36xbf16>
    %47 = vector.shape_cast %46 : vector<1x4x16x36xbf16> to vector<4x16x36xbf16>
    %48 = vector.shape_cast %47 : vector<4x16x36xbf16> to vector<64x36xbf16>
    %cst_36 = arith.constant dense<0.000000e+00> : vector<64x256xf32>
    %49 = tpu.matmul %48, %4, %cst_36 {dimension_numbers = #tpu.dot_dimension_numbers<[1], [0], [0], [1], [0, 0, 1, 1], [], []>} : vector<64x36xbf16>, vector<36x256xbf16>, vector<64x256xf32> -> vector<64x256xf32>
    %50 = vector.broadcast %0 : vector<1x256xf32> to vector<64x256xf32>
    %51 = arith.mulf %49, %50 : vector<64x256xf32>
    %52 = vector.broadcast %1 : vector<1x256xf32> to vector<64x256xf32>
    %53 = arith.addf %51, %52 : vector<64x256xf32>
    %cst_37 = arith.constant 0.000000e+00 : f32
    %54 = vector.broadcast %cst_37 : f32 to vector<64x256xf32>
    %55 = arith.maximumf %53, %54 : vector<64x256xf32>
    %56 = vector.shape_cast %55 : vector<64x256xf32> to vector<4x16x256xf32>
    %57 = arith.truncf %56 : vector<4x16x256xf32> to vector<4x16x256xbf16>
    %c13 = arith.constant 13 : index
    %c0_38 = arith.constant 0 : index
    %c256_39 = arith.constant 256 : index
    %58 = vector.load %arg11[%c13, %c0_38, %c256_39] : memref<18x16x768xbf16, #tpu.memory_space<vmem>>, vector<4x16x256xbf16>
    tpu.vector_store %arg11[%c13, %c0_38, %c256_39], %57 {strides = array<i32>} : memref<18x16x768xbf16, #tpu.memory_space<vmem>>, vector<4x16x256xbf16>,
    %cst_40 = arith.constant 0.000000e+00 : bf16
    %59 = vector.broadcast %cst_40 : bf16 to vector<1x16x768xbf16>
    %cst_41 = arith.constant 0.000000e+00 : bf16
    %60 = vector.broadcast %cst_41 : bf16 to vector<16x1x256xbf16>
    %c0_42 = arith.constant 0 : index
    %c0_43 = arith.constant 0 : index
    %c0_44 = arith.constant 0 : index
    %61 = vector.load %arg11[%c0_42, %c0_43, %c0_44] : memref<18x16x768xbf16, #tpu.memory_space<vmem>>, vector<1x16x768xbf16>
    tpu.vector_store %arg11[%c0_42, %c0_43, %c0_44], %59 {strides = array<i32>} : memref<18x16x768xbf16, #tpu.memory_space<vmem>>, vector<1x16x768xbf16>,
    %c17 = arith.constant 17 : index
    %c0_45 = arith.constant 0 : index
    %c0_46 = arith.constant 0 : index
    %62 = vector.load %arg11[%c17, %c0_45, %c0_46] : memref<18x16x768xbf16, #tpu.memory_space<vmem>>, vector<1x16x768xbf16>
    tpu.vector_store %arg11[%c17, %c0_45, %c0_46], %59 {strides = array<i32>} : memref<18x16x768xbf16, #tpu.memory_space<vmem>>, vector<1x16x768xbf16>,
    %c1_47 = arith.constant 1 : index
    %c0_48 = arith.constant 0 : index
    %c256_49 = arith.constant 256 : index
    %63 = vector.load %arg11[%c1_47, %c0_48, %c256_49] : memref<18x16x768xbf16, #tpu.memory_space<vmem>>, vector<16x16x256xbf16>
    %c1_50 = arith.constant 1 : index
    %c0_51 = arith.constant 0 : index
    %c0_52 = arith.constant 0 : index
    %64 = vector.load %arg11[%c1_50, %c0_51, %c0_52] : memref<18x16x768xbf16, #tpu.memory_space<vmem>>, vector<16x1x256xbf16>
    tpu.vector_store %arg11[%c1_50, %c0_51, %c0_52], %60 {strides = array<i32>} : memref<18x16x768xbf16, #tpu.memory_space<vmem>>, vector<16x1x256xbf16>,
    %c1_53 = arith.constant 1 : index
    %c15 = arith.constant 15 : index
    %c512 = arith.constant 512 : index
    %65 = vector.load %arg11[%c1_53, %c15, %c512] : memref<18x16x768xbf16, #tpu.memory_space<vmem>>, vector<16x1x256xbf16>
    tpu.vector_store %arg11[%c1_53, %c15, %c512], %60 {strides = array<i32>} : memref<18x16x768xbf16, #tpu.memory_space<vmem>>, vector<16x1x256xbf16>,
    %66 = vector.extract_strided_slice %63 {offsets = [0, 0, 0], sizes = [16, 15, 256], strides = [1, 1, 1]} : vector<16x16x256xbf16> to vector<16x15x256xbf16>
    %c1_54 = arith.constant 1 : index
    %c1_55 = arith.constant 1 : index
    %c0_56 = arith.constant 0 : index
    %67 = vector.load %arg11[%c1_54, %c1_55, %c0_56] : memref<18x16x768xbf16, #tpu.memory_space<vmem>>, vector<16x15x256xbf16>
    tpu.vector_store %arg11[%c1_54, %c1_55, %c0_56], %66 {strides = array<i32>} : memref<18x16x768xbf16, #tpu.memory_space<vmem>>, vector<16x15x256xbf16>,
    %68 = vector.extract_strided_slice %63 {offsets = [0, 1, 0], sizes = [16, 15, 256], strides = [1, 1, 1]} : vector<16x16x256xbf16> to vector<16x15x256xbf16>
    %c1_57 = arith.constant 1 : index
    %c0_58 = arith.constant 0 : index
    %c512_59 = arith.constant 512 : index
    %69 = vector.load %arg11[%c1_57, %c0_58, %c512_59] : memref<18x16x768xbf16, #tpu.memory_space<vmem>>, vector<16x15x256xbf16>
    tpu.vector_store %arg11[%c1_57, %c0_58, %c512_59], %68 {strides = array<i32>} : memref<18x16x768xbf16, #tpu.memory_space<vmem>>, vector<16x15x256xbf16>,
    %cst_60 = arith.constant 0.000000e+00 : f32
    %70 = vector.broadcast %cst_60 : f32 to vector<64x256xf32>
    %c0_61 = arith.constant 0 : index
    %c0_62 = arith.constant 0 : index
    %c0_63 = arith.constant 0 : index
    %71 = vector.load %arg11[%c0_61, %c0_62, %c0_63] : memref<18x16x768xbf16, #tpu.memory_space<vmem>>, vector<4x16x768xbf16>
    %72 = vector.shape_cast %71 : vector<4x16x768xbf16> to vector<64x768xbf16>
    %c0_64 = arith.constant 0 : index
    %c0_65 = arith.constant 0 : index
    %c0_66 = arith.constant 0 : index
    %73 = vector.load %arg5[%c0_64, %c0_65, %c0_66] : memref<3x768x256xbf16, #tpu.memory_space<vmem>>, vector<1x768x256xbf16>
    %74 = vector.shape_cast %73 : vector<1x768x256xbf16> to vector<768x256xbf16>
    %cst_67 = arith.constant dense<0.000000e+00> : vector<64x256xf32>
    %75 = tpu.matmul %72, %74, %cst_67 {dimension_numbers = #tpu.dot_dimension_numbers<[1], [0], [0], [1], [0, 0, 1, 1], [], []>} : vector<64x768xbf16>, vector<768x256xbf16>, vector<64x256xf32> -> vector<64x256xf32>
    %76 = arith.addf %70, %75 : vector<64x256xf32>
    %c1_68 = arith.constant 1 : index
    %c0_69 = arith.constant 0 : index
    %c0_70 = arith.constant 0 : index
    %77 = vector.load %arg11[%c1_68, %c0_69, %c0_70] : memref<18x16x768xbf16, #tpu.memory_space<vmem>>, vector<4x16x768xbf16>
    %78 = vector.shape_cast %77 : vector<4x16x768xbf16> to vector<64x768xbf16>
    %c1_71 = arith.constant 1 : index
    %c0_72 = arith.constant 0 : index
    %c0_73 = arith.constant 0 : index
    %79 = vector.load %arg5[%c1_71, %c0_72, %c0_73] : memref<3x768x256xbf16, #tpu.memory_space<vmem>>, vector<1x768x256xbf16>
    %80 = vector.shape_cast %79 : vector<1x768x256xbf16> to vector<768x256xbf16>
    %cst_74 = arith.constant dense<0.000000e+00> : vector<64x256xf32>
    %81 = tpu.matmul %78, %80, %cst_74 {dimension_numbers = #tpu.dot_dimension_numbers<[1], [0], [0], [1], [0, 0, 1, 1], [], []>} : vector<64x768xbf16>, vector<768x256xbf16>, vector<64x256xf32> -> vector<64x256xf32>
    %82 = arith.addf %76, %81 : vector<64x256xf32>
    %c2 = arith.constant 2 : index
    %c0_75 = arith.constant 0 : index
    %c0_76 = arith.constant 0 : index
    %83 = vector.load %arg11[%c2, %c0_75, %c0_76] : memref<18x16x768xbf16, #tpu.memory_space<vmem>>, vector<4x16x768xbf16>
    %84 = vector.shape_cast %83 : vector<4x16x768xbf16> to vector<64x768xbf16>
    %c2_77 = arith.constant 2 : index
    %c0_78 = arith.constant 0 : index
    %c0_79 = arith.constant 0 : index
    %85 = vector.load %arg5[%c2_77, %c0_78, %c0_79] : memref<3x768x256xbf16, #tpu.memory_space<vmem>>, vector<1x768x256xbf16>
    %86 = vector.shape_cast %85 : vector<1x768x256xbf16> to vector<768x256xbf16>
    %cst_80 = arith.constant dense<0.000000e+00> : vector<64x256xf32>
    %87 = tpu.matmul %84, %86, %cst_80 {dimension_numbers = #tpu.dot_dimension_numbers<[1], [0], [0], [1], [0, 0, 1, 1], [], []>} : vector<64x768xbf16>, vector<768x256xbf16>, vector<64x256xf32> -> vector<64x256xf32>
    %88 = arith.addf %82, %87 : vector<64x256xf32>
    %89 = vector.broadcast %2 : vector<1x256xf32> to vector<64x256xf32>
    %90 = arith.mulf %88, %89 : vector<64x256xf32>
    %91 = vector.broadcast %3 : vector<1x256xf32> to vector<64x256xf32>
    %92 = arith.addf %90, %91 : vector<64x256xf32>
    %cst_81 = arith.constant 0.000000e+00 : f32
    %93 = vector.broadcast %cst_81 : f32 to vector<64x256xf32>
    %94 = arith.maximumf %92, %93 : vector<64x256xf32>
    %95 = arith.truncf %94 : vector<64x256xf32> to vector<64x256xbf16>
    %cst_82 = arith.constant dense<0.000000e+00> : vector<64x128xf32>
    %96 = tpu.matmul %95, %5, %cst_82 {dimension_numbers = #tpu.dot_dimension_numbers<[1], [0], [0], [1], [0, 0, 1, 1], [], []>} : vector<64x256xbf16>, vector<256x128xbf16>, vector<64x128xf32> -> vector<64x128xf32>
    %97 = vector.broadcast %6 : vector<1x128xf32> to vector<64x128xf32>
    %98 = arith.addf %96, %97 : vector<64x128xf32>
    %99 = vector.shape_cast %98 : vector<64x128xf32> to vector<4x16x128xf32>
    %c0_83 = arith.constant 0 : index
    %c0_84 = arith.constant 0 : index
    %c0_85 = arith.constant 0 : index
    %c0_86 = arith.constant 0 : index
    %100 = vector.load %arg10[%c0_83, %c0_84, %c0_85, %c0_86] : memref<1x16x16x128xf32, #tpu.memory_space<vmem>>, vector<1x4x16x128xf32>
    %101 = vector.shape_cast %100 : vector<1x4x16x128xf32> to vector<4x16x128xf32>
    %102 = vector.shape_cast %99 : vector<4x16x128xf32> to vector<1x4x16x128xf32>
    tpu.vector_store %arg10[%c0_83, %c0_84, %c0_85, %c0_86], %102 {strides = array<i32>} : memref<1x16x16x128xf32, #tpu.memory_space<vmem>>, vector<1x4x16x128xf32>,
    %cst_87 = arith.constant 0.000000e+00 : f32
    %103 = vector.broadcast %cst_87 : f32 to vector<64x256xf32>
    %c4_88 = arith.constant 4 : index
    %c0_89 = arith.constant 0 : index
    %c0_90 = arith.constant 0 : index
    %104 = vector.load %arg11[%c4_88, %c0_89, %c0_90] : memref<18x16x768xbf16, #tpu.memory_space<vmem>>, vector<4x16x768xbf16>
    %105 = vector.shape_cast %104 : vector<4x16x768xbf16> to vector<64x768xbf16>
    %c0_91 = arith.constant 0 : index
    %c0_92 = arith.constant 0 : index
    %c0_93 = arith.constant 0 : index
    %106 = vector.load %arg5[%c0_91, %c0_92, %c0_93] : memref<3x768x256xbf16, #tpu.memory_space<vmem>>, vector<1x768x256xbf16>
    %107 = vector.shape_cast %106 : vector<1x768x256xbf16> to vector<768x256xbf16>
    %cst_94 = arith.constant dense<0.000000e+00> : vector<64x256xf32>
    %108 = tpu.matmul %105, %107, %cst_94 {dimension_numbers = #tpu.dot_dimension_numbers<[1], [0], [0], [1], [0, 0, 1, 1], [], []>} : vector<64x768xbf16>, vector<768x256xbf16>, vector<64x256xf32> -> vector<64x256xf32>
    %109 = arith.addf %103, %108 : vector<64x256xf32>
    %c5_95 = arith.constant 5 : index
    %c0_96 = arith.constant 0 : index
    %c0_97 = arith.constant 0 : index
    %110 = vector.load %arg11[%c5_95, %c0_96, %c0_97] : memref<18x16x768xbf16, #tpu.memory_space<vmem>>, vector<4x16x768xbf16>
    %111 = vector.shape_cast %110 : vector<4x16x768xbf16> to vector<64x768xbf16>
    %c1_98 = arith.constant 1 : index
    %c0_99 = arith.constant 0 : index
    %c0_100 = arith.constant 0 : index
    %112 = vector.load %arg5[%c1_98, %c0_99, %c0_100] : memref<3x768x256xbf16, #tpu.memory_space<vmem>>, vector<1x768x256xbf16>
    %113 = vector.shape_cast %112 : vector<1x768x256xbf16> to vector<768x256xbf16>
    %cst_101 = arith.constant dense<0.000000e+00> : vector<64x256xf32>
    %114 = tpu.matmul %111, %113, %cst_101 {dimension_numbers = #tpu.dot_dimension_numbers<[1], [0], [0], [1], [0, 0, 1, 1], [], []>} : vector<64x768xbf16>, vector<768x256xbf16>, vector<64x256xf32> -> vector<64x256xf32>
    %115 = arith.addf %109, %114 : vector<64x256xf32>
    %c6 = arith.constant 6 : index
    %c0_102 = arith.constant 0 : index
    %c0_103 = arith.constant 0 : index
    %116 = vector.load %arg11[%c6, %c0_102, %c0_103] : memref<18x16x768xbf16, #tpu.memory_space<vmem>>, vector<4x16x768xbf16>
    %117 = vector.shape_cast %116 : vector<4x16x768xbf16> to vector<64x768xbf16>
    %c2_104 = arith.constant 2 : index
    %c0_105 = arith.constant 0 : index
    %c0_106 = arith.constant 0 : index
    %118 = vector.load %arg5[%c2_104, %c0_105, %c0_106] : memref<3x768x256xbf16, #tpu.memory_space<vmem>>, vector<1x768x256xbf16>
    %119 = vector.shape_cast %118 : vector<1x768x256xbf16> to vector<768x256xbf16>
    %cst_107 = arith.constant dense<0.000000e+00> : vector<64x256xf32>
    %120 = tpu.matmul %117, %119, %cst_107 {dimension_numbers = #tpu.dot_dimension_numbers<[1], [0], [0], [1], [0, 0, 1, 1], [], []>} : vector<64x768xbf16>, vector<768x256xbf16>, vector<64x256xf32> -> vector<64x256xf32>
    %121 = arith.addf %115, %120 : vector<64x256xf32>
    %122 = vector.broadcast %2 : vector<1x256xf32> to vector<64x256xf32>
    %123 = arith.mulf %121, %122 : vector<64x256xf32>
    %124 = vector.broadcast %3 : vector<1x256xf32> to vector<64x256xf32>
    %125 = arith.addf %123, %124 : vector<64x256xf32>
    %cst_108 = arith.constant 0.000000e+00 : f32
    %126 = vector.broadcast %cst_108 : f32 to vector<64x256xf32>
    %127 = arith.maximumf %125, %126 : vector<64x256xf32>
    %128 = arith.truncf %127 : vector<64x256xf32> to vector<64x256xbf16>
    %cst_109 = arith.constant dense<0.000000e+00> : vector<64x128xf32>
    %129 = tpu.matmul %128, %5, %cst_109 {dimension_numbers = #tpu.dot_dimension_numbers<[1], [0], [0], [1], [0, 0, 1, 1], [], []>} : vector<64x256xbf16>, vector<256x128xbf16>, vector<64x128xf32> -> vector<64x128xf32>
    %130 = vector.broadcast %6 : vector<1x128xf32> to vector<64x128xf32>
    %131 = arith.addf %129, %130 : vector<64x128xf32>
    %132 = vector.shape_cast %131 : vector<64x128xf32> to vector<4x16x128xf32>
    %c0_110 = arith.constant 0 : index
    %c4_111 = arith.constant 4 : index
    %c0_112 = arith.constant 0 : index
    %c0_113 = arith.constant 0 : index
    %133 = vector.load %arg10[%c0_110, %c4_111, %c0_112, %c0_113] : memref<1x16x16x128xf32, #tpu.memory_space<vmem>>, vector<1x4x16x128xf32>
    %134 = vector.shape_cast %133 : vector<1x4x16x128xf32> to vector<4x16x128xf32>
    %135 = vector.shape_cast %132 : vector<4x16x128xf32> to vector<1x4x16x128xf32>
    tpu.vector_store %arg10[%c0_110, %c4_111, %c0_112, %c0_113], %135 {strides = array<i32>} : memref<1x16x16x128xf32, #tpu.memory_space<vmem>>, vector<1x4x16x128xf32>,
    %cst_114 = arith.constant 0.000000e+00 : f32
    %136 = vector.broadcast %cst_114 : f32 to vector<64x256xf32>
    %c8_115 = arith.constant 8 : index
    %c0_116 = arith.constant 0 : index
    %c0_117 = arith.constant 0 : index
    %137 = vector.load %arg11[%c8_115, %c0_116, %c0_117] : memref<18x16x768xbf16, #tpu.memory_space<vmem>>, vector<4x16x768xbf16>
    %138 = vector.shape_cast %137 : vector<4x16x768xbf16> to vector<64x768xbf16>
    %c0_118 = arith.constant 0 : index
    %c0_119 = arith.constant 0 : index
    %c0_120 = arith.constant 0 : index
    %139 = vector.load %arg5[%c0_118, %c0_119, %c0_120] : memref<3x768x256xbf16, #tpu.memory_space<vmem>>, vector<1x768x256xbf16>
    %140 = vector.shape_cast %139 : vector<1x768x256xbf16> to vector<768x256xbf16>
    %cst_121 = arith.constant dense<0.000000e+00> : vector<64x256xf32>
    %141 = tpu.matmul %138, %140, %cst_121 {dimension_numbers = #tpu.dot_dimension_numbers<[1], [0], [0], [1], [0, 0, 1, 1], [], []>} : vector<64x768xbf16>, vector<768x256xbf16>, vector<64x256xf32> -> vector<64x256xf32>
    %142 = arith.addf %136, %141 : vector<64x256xf32>
    %c9_122 = arith.constant 9 : index
    %c0_123 = arith.constant 0 : index
    %c0_124 = arith.constant 0 : index
    %143 = vector.load %arg11[%c9_122, %c0_123, %c0_124] : memref<18x16x768xbf16, #tpu.memory_space<vmem>>, vector<4x16x768xbf16>
    %144 = vector.shape_cast %143 : vector<4x16x768xbf16> to vector<64x768xbf16>
    %c1_125 = arith.constant 1 : index
    %c0_126 = arith.constant 0 : index
    %c0_127 = arith.constant 0 : index
    %145 = vector.load %arg5[%c1_125, %c0_126, %c0_127] : memref<3x768x256xbf16, #tpu.memory_space<vmem>>, vector<1x768x256xbf16>
    %146 = vector.shape_cast %145 : vector<1x768x256xbf16> to vector<768x256xbf16>
    %cst_128 = arith.constant dense<0.000000e+00> : vector<64x256xf32>
    %147 = tpu.matmul %144, %146, %cst_128 {dimension_numbers = #tpu.dot_dimension_numbers<[1], [0], [0], [1], [0, 0, 1, 1], [], []>} : vector<64x768xbf16>, vector<768x256xbf16>, vector<64x256xf32> -> vector<64x256xf32>
    %148 = arith.addf %142, %147 : vector<64x256xf32>
    %c10 = arith.constant 10 : index
    %c0_129 = arith.constant 0 : index
    %c0_130 = arith.constant 0 : index
    %149 = vector.load %arg11[%c10, %c0_129, %c0_130] : memref<18x16x768xbf16, #tpu.memory_space<vmem>>, vector<4x16x768xbf16>
    %150 = vector.shape_cast %149 : vector<4x16x768xbf16> to vector<64x768xbf16>
    %c2_131 = arith.constant 2 : index
    %c0_132 = arith.constant 0 : index
    %c0_133 = arith.constant 0 : index
    %151 = vector.load %arg5[%c2_131, %c0_132, %c0_133] : memref<3x768x256xbf16, #tpu.memory_space<vmem>>, vector<1x768x256xbf16>
    %152 = vector.shape_cast %151 : vector<1x768x256xbf16> to vector<768x256xbf16>
    %cst_134 = arith.constant dense<0.000000e+00> : vector<64x256xf32>
    %153 = tpu.matmul %150, %152, %cst_134 {dimension_numbers = #tpu.dot_dimension_numbers<[1], [0], [0], [1], [0, 0, 1, 1], [], []>} : vector<64x768xbf16>, vector<768x256xbf16>, vector<64x256xf32> -> vector<64x256xf32>
    %154 = arith.addf %148, %153 : vector<64x256xf32>
    %155 = vector.broadcast %2 : vector<1x256xf32> to vector<64x256xf32>
    %156 = arith.mulf %154, %155 : vector<64x256xf32>
    %157 = vector.broadcast %3 : vector<1x256xf32> to vector<64x256xf32>
    %158 = arith.addf %156, %157 : vector<64x256xf32>
    %cst_135 = arith.constant 0.000000e+00 : f32
    %159 = vector.broadcast %cst_135 : f32 to vector<64x256xf32>
    %160 = arith.maximumf %158, %159 : vector<64x256xf32>
    %161 = arith.truncf %160 : vector<64x256xf32> to vector<64x256xbf16>
    %cst_136 = arith.constant dense<0.000000e+00> : vector<64x128xf32>
    %162 = tpu.matmul %161, %5, %cst_136 {dimension_numbers = #tpu.dot_dimension_numbers<[1], [0], [0], [1], [0, 0, 1, 1], [], []>} : vector<64x256xbf16>, vector<256x128xbf16>, vector<64x128xf32> -> vector<64x128xf32>
    %163 = vector.broadcast %6 : vector<1x128xf32> to vector<64x128xf32>
    %164 = arith.addf %162, %163 : vector<64x128xf32>
    %165 = vector.shape_cast %164 : vector<64x128xf32> to vector<4x16x128xf32>
    %c0_137 = arith.constant 0 : index
    %c8_138 = arith.constant 8 : index
    %c0_139 = arith.constant 0 : index
    %c0_140 = arith.constant 0 : index
    %166 = vector.load %arg10[%c0_137, %c8_138, %c0_139, %c0_140] : memref<1x16x16x128xf32, #tpu.memory_space<vmem>>, vector<1x4x16x128xf32>
    %167 = vector.shape_cast %166 : vector<1x4x16x128xf32> to vector<4x16x128xf32>
    %168 = vector.shape_cast %165 : vector<4x16x128xf32> to vector<1x4x16x128xf32>
    tpu.vector_store %arg10[%c0_137, %c8_138, %c0_139, %c0_140], %168 {strides = array<i32>} : memref<1x16x16x128xf32, #tpu.memory_space<vmem>>, vector<1x4x16x128xf32>,
    %cst_141 = arith.constant 0.000000e+00 : f32
    %169 = vector.broadcast %cst_141 : f32 to vector<64x256xf32>
    %c12_142 = arith.constant 12 : index
    %c0_143 = arith.constant 0 : index
    %c0_144 = arith.constant 0 : index
    %170 = vector.load %arg11[%c12_142, %c0_143, %c0_144] : memref<18x16x768xbf16, #tpu.memory_space<vmem>>, vector<4x16x768xbf16>
    %171 = vector.shape_cast %170 : vector<4x16x768xbf16> to vector<64x768xbf16>
    %c0_145 = arith.constant 0 : index
    %c0_146 = arith.constant 0 : index
    %c0_147 = arith.constant 0 : index
    %172 = vector.load %arg5[%c0_145, %c0_146, %c0_147] : memref<3x768x256xbf16, #tpu.memory_space<vmem>>, vector<1x768x256xbf16>
    %173 = vector.shape_cast %172 : vector<1x768x256xbf16> to vector<768x256xbf16>
    %cst_148 = arith.constant dense<0.000000e+00> : vector<64x256xf32>
    %174 = tpu.matmul %171, %173, %cst_148 {dimension_numbers = #tpu.dot_dimension_numbers<[1], [0], [0], [1], [0, 0, 1, 1], [], []>} : vector<64x768xbf16>, vector<768x256xbf16>, vector<64x256xf32> -> vector<64x256xf32>
    %175 = arith.addf %169, %174 : vector<64x256xf32>
    %c13_149 = arith.constant 13 : index
    %c0_150 = arith.constant 0 : index
    %c0_151 = arith.constant 0 : index
    %176 = vector.load %arg11[%c13_149, %c0_150, %c0_151] : memref<18x16x768xbf16, #tpu.memory_space<vmem>>, vector<4x16x768xbf16>
    %177 = vector.shape_cast %176 : vector<4x16x768xbf16> to vector<64x768xbf16>
    %c1_152 = arith.constant 1 : index
    %c0_153 = arith.constant 0 : index
    %c0_154 = arith.constant 0 : index
    %178 = vector.load %arg5[%c1_152, %c0_153, %c0_154] : memref<3x768x256xbf16, #tpu.memory_space<vmem>>, vector<1x768x256xbf16>
    %179 = vector.shape_cast %178 : vector<1x768x256xbf16> to vector<768x256xbf16>
    %cst_155 = arith.constant dense<0.000000e+00> : vector<64x256xf32>
    %180 = tpu.matmul %177, %179, %cst_155 {dimension_numbers = #tpu.dot_dimension_numbers<[1], [0], [0], [1], [0, 0, 1, 1], [], []>} : vector<64x768xbf16>, vector<768x256xbf16>, vector<64x256xf32> -> vector<64x256xf32>
    %181 = arith.addf %175, %180 : vector<64x256xf32>
    %c14 = arith.constant 14 : index
    %c0_156 = arith.constant 0 : index
    %c0_157 = arith.constant 0 : index
    %182 = vector.load %arg11[%c14, %c0_156, %c0_157] : memref<18x16x768xbf16, #tpu.memory_space<vmem>>, vector<4x16x768xbf16>
    %183 = vector.shape_cast %182 : vector<4x16x768xbf16> to vector<64x768xbf16>
    %c2_158 = arith.constant 2 : index
    %c0_159 = arith.constant 0 : index
    %c0_160 = arith.constant 0 : index
    %184 = vector.load %arg5[%c2_158, %c0_159, %c0_160] : memref<3x768x256xbf16, #tpu.memory_space<vmem>>, vector<1x768x256xbf16>
    %185 = vector.shape_cast %184 : vector<1x768x256xbf16> to vector<768x256xbf16>
    %cst_161 = arith.constant dense<0.000000e+00> : vector<64x256xf32>
    %186 = tpu.matmul %183, %185, %cst_161 {dimension_numbers = #tpu.dot_dimension_numbers<[1], [0], [0], [1], [0, 0, 1, 1], [], []>} : vector<64x768xbf16>, vector<768x256xbf16>, vector<64x256xf32> -> vector<64x256xf32>
    %187 = arith.addf %181, %186 : vector<64x256xf32>
    %188 = vector.broadcast %2 : vector<1x256xf32> to vector<64x256xf32>
    %189 = arith.mulf %187, %188 : vector<64x256xf32>
    %190 = vector.broadcast %3 : vector<1x256xf32> to vector<64x256xf32>
    %191 = arith.addf %189, %190 : vector<64x256xf32>
    %cst_162 = arith.constant 0.000000e+00 : f32
    %192 = vector.broadcast %cst_162 : f32 to vector<64x256xf32>
    %193 = arith.maximumf %191, %192 : vector<64x256xf32>
    %194 = arith.truncf %193 : vector<64x256xf32> to vector<64x256xbf16>
    %cst_163 = arith.constant dense<0.000000e+00> : vector<64x128xf32>
    %195 = tpu.matmul %194, %5, %cst_163 {dimension_numbers = #tpu.dot_dimension_numbers<[1], [0], [0], [1], [0, 0, 1, 1], [], []>} : vector<64x256xbf16>, vector<256x128xbf16>, vector<64x128xf32> -> vector<64x128xf32>
    %196 = vector.broadcast %6 : vector<1x128xf32> to vector<64x128xf32>
    %197 = arith.addf %195, %196 : vector<64x128xf32>
    %198 = vector.shape_cast %197 : vector<64x128xf32> to vector<4x16x128xf32>
    %c0_164 = arith.constant 0 : index
    %c12_165 = arith.constant 12 : index
    %c0_166 = arith.constant 0 : index
    %c0_167 = arith.constant 0 : index
    %199 = vector.load %arg10[%c0_164, %c12_165, %c0_166, %c0_167] : memref<1x16x16x128xf32, #tpu.memory_space<vmem>>, vector<1x4x16x128xf32>
    %200 = vector.shape_cast %199 : vector<1x4x16x128xf32> to vector<4x16x128xf32>
    %201 = vector.shape_cast %198 : vector<4x16x128xf32> to vector<1x4x16x128xf32>
    tpu.vector_store %arg10[%c0_164, %c12_165, %c0_166, %c0_167], %201 {strides = array<i32>} : memref<1x16x16x128xf32, #tpu.memory_space<vmem>>, vector<1x4x16x128xf32>,
    return
  }
  func.func @transform_0(%arg0: i32) -> (i32, i32, i32, i32) {
    %c0_i32 = arith.constant 0 : i32
    %c0_i32_0 = arith.constant 0 : i32
    %c0_i32_1 = arith.constant 0 : i32
    %c0_i32_2 = arith.constant 0 : i32
    return %arg0, %c0_i32, %c0_i32_0, %c0_i32_1 : i32, i32, i32, i32
  }
  func.func @transform_1(%arg0: i32) -> (i32, i32) {
    %c0_i32 = arith.constant 0 : i32
    %c0_i32_0 = arith.constant 0 : i32
    %c0_i32_1 = arith.constant 0 : i32
    return %c0_i32, %c0_i32_0 : i32, i32
  }
  func.func @transform_2(%arg0: i32) -> (i32, i32) {
    %c0_i32 = arith.constant 0 : i32
    %c0_i32_0 = arith.constant 0 : i32
    %c0_i32_1 = arith.constant 0 : i32
    return %c0_i32, %c0_i32_0 : i32, i32
  }
  func.func @transform_3(%arg0: i32) -> (i32, i32) {
    %c0_i32 = arith.constant 0 : i32
    %c0_i32_0 = arith.constant 0 : i32
    %c0_i32_1 = arith.constant 0 : i32
    return %c0_i32, %c0_i32_0 : i32, i32
  }
  func.func @transform_4(%arg0: i32) -> (i32, i32, i32) {
    %c0_i32 = arith.constant 0 : i32
    %c0_i32_0 = arith.constant 0 : i32
    %c0_i32_1 = arith.constant 0 : i32
    %c0_i32_2 = arith.constant 0 : i32
    return %c0_i32, %c0_i32_0, %c0_i32_1 : i32, i32, i32
  }
  func.func @transform_5(%arg0: i32) -> (i32, i32) {
    %c0_i32 = arith.constant 0 : i32
    %c0_i32_0 = arith.constant 0 : i32
    %c0_i32_1 = arith.constant 0 : i32
    return %c0_i32, %c0_i32_0 : i32, i32
  }
  func.func @transform_6(%arg0: i32) -> (i32, i32) {
    %c0_i32 = arith.constant 0 : i32
    %c0_i32_0 = arith.constant 0 : i32
    %c0_i32_1 = arith.constant 0 : i32
    return %c0_i32, %c0_i32_0 : i32, i32
  }
  func.func @transform_7(%arg0: i32) -> (i32, i32) {
    %c0_i32 = arith.constant 0 : i32
    %c0_i32_0 = arith.constant 0 : i32
    %c0_i32_1 = arith.constant 0 : i32
    return %c0_i32, %c0_i32_0 : i32, i32
  }
  func.func @transform_8(%arg0: i32) -> (i32, i32) {
    %c0_i32 = arith.constant 0 : i32
    %c0_i32_0 = arith.constant 0 : i32
    %c0_i32_1 = arith.constant 0 : i32
    return %c0_i32, %c0_i32_0 : i32, i32
  }
  func.func @transform_9(%arg0: i32) -> (i32, i32, i32, i32) {
    %c0_i32 = arith.constant 0 : i32
    %c0_i32_0 = arith.constant 0 : i32
    %c0_i32_1 = arith.constant 0 : i32
    %c0_i32_2 = arith.constant 0 : i32
    return %arg0, %c0_i32, %c0_i32_0, %c0_i32_1 : i32, i32, i32, i32
  }
}

</mosaic_0001>

<bundles_post_ra>
// kernel: decoder_coarse_v2.1
= control target key start
LH: loop header
LB: loop body
LE: loop exit
PB: predicated region body
PF: predicated region fallthrough
CT: control target
= control target key end

     0   :  { %s18755_s30 = smov 0   ;;  %s25345_s0 = inlined_call_operand.vmem [shape: bf16[2,16,16,36], index: 0, kind: input, shape index: {}]   ;;  %s25346_s1 = inlined_call_operand.vmem [shape: bf16[36,256], index: 1, kind: input, shape index: {}]   ;;  %s25347_s2 = inlined_call_operand.vmem [shape: f32[1,256], index: 2, kind: input, shape index: {}]   ;;  %s25348_s3 = inlined_call_operand.vmem [shape: f32[1,256], index: 3, kind: input, shape index: {}]   ;;  %s25349_s4 = inlined_call_operand.vmem [shape: bf16[3,768,256], index: 4, kind: input, shape index: {}]   ;;  %s25350_s5 = inlined_call_operand.vmem [shape: f32[1,256], index: 5, kind: input, shape index: {}]   ;;  %s25351_s6 = inlined_call_operand.vmem [shape: f32[1,256], index: 6, kind: input, shape index: {}]   ;;  %s25352_s7 = inlined_call_operand.vmem [shape: bf16[256,128], index: 7, kind: input, shape index: {}]   ;;  %s25353_s8 = inlined_call_operand.vmem [shape: f32[1,128], index: 8, kind: input, shape index: {}]   ;;  %s25354_s9 = inlined_call_operand.vmem [shape: f32[2,16,16,128], index: 9, kind: output, shape index: {}]  }
   0x1 LB: > { %s14108_s10 = sadd.s32 4294967295, %s18702_s30   ;;  %p14112_p0 = scmp.ge.s32.totalorder %s18702_s30, 1  ;;  %s18702_s30 = sphi %s18755_s30, %s19_s30  }
   0x2   : > { %p287_p1 = scmp.lt.s32.totalorder %s18702_s30, 3 }
   0x4   : > { %p288_p2 = pnand %p14112_p0, %p287_p1 }
   0x6   : > { %291 = sbr.rel (%p288_p2) target bundleno = 2544 (0x9f0), region = 56 }
   0xb   : > { %v342_v0 = vld [vmem:[%s25346_s1 + $0x20] sm:$0x33]  ;;  %vm442_vm0 = vcmask 1041408   ;;  %v16671_v3 = vld [vmem:[%s25346_s1 + $0x14] ss:$8 sps:$4 sm:$0xff]   ;;  %v18704_v4 = vmov 0  }
   0xc   : > { %v14126_v1 = vcombine.high %v342_v0, %v342_v0  ;;  %v14125_v2 = vcombine.low %v342_v0, %v342_v0  ;;  %481 = vmatprep.mubr.bf16.mxu0 %v18704_v4  ;;  %1306 = vst [vmem:[#allocation2 + $0x358] sm:$0xff] %v18704_v4  ;;  %p323_p3 = scmp.lt.s32.totalorder %s14108_s10, 1  ;;  %722 = vmatprep.mubr.bf16.mxu1 %v18704_v4  ;;  %v16673_v6 = vld [vmem:[%s25346_s1 + $0x10] ss:$8 sps:$4 sm:$0xff]   ;;  %v16674_v7 = vld [vmem:[%s25346_s1 + $0x4] ss:$8 sps:$4 sm:$0xff]  }
   0xd   : > { %v16676_v8 = vld [vmem:[%s25346_s1] ss:$8 sps:$4 sm:$0xff]   ;;  %vm429_vm1 = vcmask 293888   ;;  %v16687_v13 = vld [vmem:[%s25349_s4 + $0x474] ss:$8 sps:$4 sm:$0xff]   ;;  %vm1351_vm2 = vcmask 1040384  }
   0xe   : > { %14127 = vmatprep.subr.msk.bf16.mxu0 %vm442_vm0, %v14126_v1  ;;  %v444_v5 = vsel %vm442_vm0, %v14125_v2, 0  ;;  %s25719_s10 = smov (!%p323_p3, %s14108_s10), 1  ;;  %14152 = vmatprep.subr.msk.bf16.mxu1 %vm442_vm0, %v14126_v1  ;;  %v16701_v14 = vld [vmem:[%s25349_s4 + $0x374] ss:$8 sps:$4 sm:$0xff]   ;;  %v16685_v21 = vld [vmem:[%s25349_s4 + $0x470] ss:$8 sps:$4 sm:$0xff]  }
   0xf   : > { %460 = vmatpush1.bf16.msra.mxu0 %v444_v5  ;;  %701 = vmatpush1.bf16.msra.mxu1 %v444_v5  ;;  %s16466_s19 = sshll.u32 %s25719_s10, 7  ;;  %v16699_v22 = vld [vmem:[%s25349_s4 + $0x370] ss:$8 sps:$4 sm:$0xff]   ;;  %v16691_v23 = vld [vmem:[%s25349_s4 + $0x464] ss:$8 sps:$4 sm:$0xff]   ;;  %vm1354_vm3 = vcmask 1044484  }
  0x10   : > { %461 = vmatprep.subr.bf16.mxu0 %v16671_v3  ;;  %702 = vmatprep.subr.bf16.mxu1 %v16671_v3  ;;  %s18787_s22 = scalar_lea.vmem %s25345_s0, %s16466_s19  ;;  %v16707_v24 = vld [vmem:[%s25349_s4 + $0x364] ss:$8 sps:$4 sm:$0xff]   ;;  %v16689_v25 = vld [vmem:[%s25349_s4 + $0x460] ss:$8 sps:$4 sm:$0xff]   ;;  %v16695_v27 = vld [vmem:[%s25349_s4 + $0x454] ss:$8 sps:$4 sm:$0xff]  }
  0x11   : > { %v16677_v9 = vld [vmem:[%s18787_s22] sm:$0xff]   ;;  %v16678_v11 = vld [vmem:[%s18787_s22 + $0x8] sm:$0xff]   ;;  %v16679_v15 = vld [vmem:[%s18787_s22 + $0x10] sm:$0xff]   ;;  %vm1352_vm4 = vsmask.f32 256  ;;  %vm1406_vm9 = vcmask 1043459  }
  0x12   : > { %v16681_v10 = vld [vmem:[%s18787_s22 + $0x20] sm:$0xff]   ;;  %v16682_v12 = vld [vmem:[%s18787_s22 + $0x28] sm:$0xff]   ;;  %v16683_v16 = vld [vmem:[%s18787_s22 + $0x30] sm:$0xff]   ;;  %vm1355_vm5 = vsmask.f32 4352  ;;  %vm1409_vm11 = vcmask 1047559  }
  0x13   : > { %462 = vmatpush1.bf16.msra.mxu0 %v16673_v6  ;;  %703 = vmatpush1.bf16.msra.mxu1 %v16673_v6  ;;  %v16680_v17 = vld [vmem:[%s18787_s22 + $0x18] sm:$0xff]   ;;  %v16688_v19 = vld [vmem:[%s18787_s22 + $0x60] sm:$0xff]   ;;  %v16748_v47 = vld [vmem:[%s18787_s22 + $0x48] sm:$0xff]   ;;  %vm1407_vm10 = vsmask.f32 7950  ;;  %s16467_s11 = sshll.u32 %s25719_s10, 8 }
  0x14   : > { %463 = vmatprep.subr.bf16.mxu0 %v16674_v7  ;;  %704 = vmatprep.subr.bf16.mxu1 %v16674_v7  ;;  %v16684_v18 = vld [vmem:[%s18787_s22 + $0x38] sm:$0xff]   ;;  %v16692_v20 = vld [vmem:[%s18787_s22 + $0x40] sm:$0xff]   ;;  %v16741_v52 = vld [vmem:[%s18787_s22 + $0x68] sm:$0xff]   ;;  %vm1410_vm12 = vsmask.f32 7966  ;;  %s22198_s10 = scalar_lea.vmem %s25354_s9, %s16467_s11 }
  0x15   : > { %v16705_v26 = vld [vmem:[%s25349_s4 + $0x360] ss:$8 sps:$4 sm:$0xff]   ;;  %v16713_v28 = vld [vmem:[%s25349_s4 + $0x354] ss:$8 sps:$4 sm:$0xff]   ;;  %v16693_v29 = vld [vmem:[%s25349_s4 + $0x450] ss:$8 sps:$4 sm:$0xff]  }
  0x16   : > { %v16711_v30 = vld [vmem:[%s25349_s4 + $0x350] ss:$8 sps:$4 sm:$0xff]   ;;  %v16698_v31 = vld [vmem:[%s25349_s4 + $0x444] ss:$8 sps:$4 sm:$0xff]   ;;  %v16696_v33 = vld [vmem:[%s25349_s4 + $0x440] ss:$8 sps:$4 sm:$0xff]  }
  0x17   : > { %464 = vmatpush1.bf16.msra.mxu0 %v16676_v8  ;;  %705 = vmatpush1.bf16.msra.mxu1 %v16676_v8  ;;  %v16719_v32 = vld [vmem:[%s25349_s4 + $0x344] ss:$8 sps:$4 sm:$0xff]   ;;  %v16717_v34 = vld [vmem:[%s25349_s4 + $0x340] ss:$8 sps:$4 sm:$0xff]   ;;  %v16704_v35 = vld [vmem:[%s25349_s4 + $0x434] ss:$8 sps:$4 sm:$0xff]  }
  0x18   : > { %14177 = vmatprep.subr.msk.bf16.mxu0 %vm442_vm0, %v14126_v1  ;;  %14202 = vmatprep.subr.msk.bf16.mxu1 %vm442_vm0, %v14126_v1  ;;  %v16725_v36 = vld [vmem:[%s25349_s4 + $0x334] ss:$8 sps:$4 sm:$0xff]   ;;  %v16702_v37 = vld [vmem:[%s25349_s4 + $0x430] ss:$8 sps:$4 sm:$0xff]   ;;  %v16710_v39 = vld [vmem:[%s25349_s4 + $0x424] ss:$8 sps:$4 sm:$0xff]  }
  0x19   : > { %v16723_v38 = vld [vmem:[%s25349_s4 + $0x330] ss:$8 sps:$4 sm:$0xff]   ;;  %v16731_v40 = vld [vmem:[%s25349_s4 + $0x324] ss:$8 sps:$4 sm:$0xff]   ;;  %v16708_v41 = vld [vmem:[%s25349_s4 + $0x420] ss:$8 sps:$4 sm:$0xff]  }
  0x1a   : > { %14128 = vmatmul.mubr.msk.bf16.vlgmr.msra.gmra.mxu0 %vm429_vm1, %v16677_v9  ;;  %14153 = vmatmul.mubr.msk.bf16.vlgmr.msra.gmra.mxu1 %vm429_vm1, %v16681_v10  ;;  %v16729_v42 = vld [vmem:[%s25349_s4 + $0x320] ss:$8 sps:$4 sm:$0xff]   ;;  %v16716_v43 = vld [vmem:[%s25349_s4 + $0x414] ss:$8 sps:$4 sm:$0xff]   ;;  %v16714_v45 = vld [vmem:[%s25349_s4 + $0x410] ss:$8 sps:$4 sm:$0xff]  }
  0x1b   : > { %491 = vmatprep.mubr.bf16.mxu0 %v18704_v4  ;;  %732 = vmatprep.mubr.bf16.mxu1 %v18704_v4  ;;  %v16737_v44 = vld [vmem:[%s25349_s4 + $0x314] ss:$8 sps:$4 sm:$0xff]   ;;  %v16735_v46 = vld [vmem:[%s25349_s4 + $0x310] ss:$8 sps:$4 sm:$0xff]   ;;  %v16722_v48 = vld [vmem:[%s25349_s4 + $0x404] ss:$8 sps:$4 sm:$0xff]  }
  0x1c   : > { %920 = vmatpush1.bf16.msra.mxu0 %v444_v5  ;;  %1139 = vmatpush1.bf16.msra.mxu1 %v444_v5  ;;  %v16720_v49 = vld [vmem:[%s25349_s4 + $0x400] ss:$8 sps:$4 sm:$0xff]   ;;  %v16744_v50 = vld [vmem:[%s25349_s4 + $0x304] ss:$8 sps:$4 sm:$0xff]   ;;  %v16728_v51 = vld [vmem:[%s25349_s4 + $0x4f4] ss:$8 sps:$4 sm:$0xff]  }
  0x1d   : > { %1140 = vmatprep.subr.bf16.mxu1 %v16671_v3  ;;  %921 = vmatprep.subr.bf16.mxu0 %v16671_v3  ;;  %v16742_v53 = vld [vmem:[%s25349_s4 + $0x300] ss:$8 sps:$4 sm:$0xff]   ;;  %v16751_v54 = vld [vmem:[%s25349_s4 + $0x3f4] ss:$8 sps:$4 sm:$0xff]   ;;  %v16726_v55 = vld [vmem:[%s25349_s4 + $0x4f0] ss:$8 sps:$4 sm:$0xff]  }
  0x1e   : > { %v16749_v56 = vld [vmem:[%s25349_s4 + $0x3f0] ss:$8 sps:$4 sm:$0xff]   ;;  %v16734_v58 = vld [vmem:[%s25349_s4 + $0x4e4] ss:$8 sps:$4 sm:$0xff]   ;;  %v16732_v59 = vld [vmem:[%s25349_s4 + $0x4e0] ss:$8 sps:$4 sm:$0xff]  }
  0x1f   : > { %v16762_v57 = vld [vmem:[%s18787_s22 + $0x50] sm:$0xff]   ;;  %v16758_v60 = vld [vmem:[%s25349_s4 + $0x3e4] ss:$8 sps:$4 sm:$0xff]   ;;  %v16756_v63 = vld [vmem:[%s25349_s4 + $0x3e0] ss:$8 sps:$4 sm:$0xff]   ;;  %vm1751_vm0 = vcmask 1043456  }
  0x20   : > { %1141 = vmatpush1.bf16.msra.mxu1 %v16673_v6  ;;  %922 = vmatpush1.bf16.msra.mxu0 %v16673_v6  ;;  %v16740_v61 = vld [vmem:[%s25349_s4 + $0x4d4] ss:$8 sps:$4 sm:$0xff]   ;;  %v16738_v1 = vld [vmem:[%s25349_s4 + $0x4d0] ss:$8 sps:$4 sm:$0xff]   ;;  %v16747_v2 = vld [vmem:[%s25349_s4 + $0x4c4] ss:$8 sps:$4 sm:$0xff]  }
  0x21   : > { %1142 = vmatprep.subr.bf16.mxu1 %v16674_v7  ;;  %923 = vmatprep.subr.bf16.mxu0 %v16674_v7  ;;  %v16755_v62 = vld [vmem:[%s18787_s22 + $0x70] sm:$0xff]   ;;  %v16776_v5 = vld [vmem:[%s18787_s22 + $0x58] sm:$0xff]   ;;  %v16745_v6 = vld [vmem:[%s25349_s4 + $0x4c0] ss:$8 sps:$4 sm:$0xff]  }
  0x22   : > { %14129 = vmatmul.mubr.msk.bf16.gmra.mxu0 %vm429_vm1, %v16678_v11  ;;  %14154 = vmatmul.mubr.msk.bf16.gmra.mxu1 %vm429_vm1, %v16682_v12  ;;  %v16765_v0 = vld [vmem:[%s25349_s4 + $0x3d4] ss:$8 sps:$4 sm:$0xff]   ;;  %v16763_v3 = vld [vmem:[%s25349_s4 + $0x3d0] ss:$8 sps:$4 sm:$0xff]   ;;  %v16770_v9 = vld [vmem:[%s25349_s4 + $0x3c0] ss:$8 sps:$4 sm:$0xff]  }
  0x23   : > { %501 = vmatprep.mubr.bf16.mxu0 %v18704_v4  ;;  %742 = vmatprep.mubr.bf16.mxu1 %v18704_v4  ;;  %v16754_v7 = vld [vmem:[%s25349_s4 + $0x4b4] ss:$8 sps:$4 sm:$0xff]   ;;  %v1358_v11 = vld [vmem:[#allocation2 + $0x2a0] sm:$0x11]  ;;  %vm1353_vm6 = vmand %vm1351_vm2, %vm1352_vm4  ;;  %vm1754_vm2 = vcmask 1047556  }
  0x24   : > { %1143 = vmatpush1.bf16.msra.mxu1 %v16676_v8  ;;  %924 = vmatpush1.bf16.msra.mxu0 %v16676_v8  ;;  %v16769_v8 = vld [vmem:[%s18787_s22 + $0x78] sm:$0xff]   ;;  %vm1356_vm7 = vmand %vm1354_vm3, %vm1355_vm5  ;;  %vm1755_vm5 = vsmask.f32 7954 }
  0x25   : > { %2983 = vmatprep.subr.bf16.mxu1 %v16687_v13  ;;  %2910 = vmatprep.subr.bf16.mxu0 %v16701_v14  ;;  %v16779_v10 = vld [vmem:[%s25349_s4 + $0x3b4] ss:$8 sps:$4 sm:$0xff]   ;;  %v16752_v12 = vld [vmem:[%s25349_s4 + $0x4b0] ss:$8 sps:$4 sm:$0xff]   ;;  %v16761_v13 = vld [vmem:[%s25349_s4 + $0x4a4] ss:$8 sps:$4 sm:$0xff]  }
  0x26   : > { %v16777_v14 = vld [vmem:[%s25349_s4 + $0x3b0] ss:$8 sps:$4 sm:$0xff]   ;;  %vm19000_vm8 = vmor %vm1356_vm7, %vm1353_vm6  ;;  %vm1461_vm7 = vsmask.f32 4368 }
  0x27   : > { %vm1408_vm13 = vmand %vm1406_vm9, %vm1407_vm10 }
  0x28   : > { %vm1411_vm14 = vmand %vm1409_vm11, %vm1410_vm12  ;;  %vm2003_vm11 = vsmask.f32 7424  ;;  %vm1823_vm12 = vsmask.f32 7440 }
  0x29   : > { %vm19015_vm15 = vmor %vm1411_vm14, %vm1408_vm13 }
  0x2a   : > { %14130 = vmatmul.mubr.msk.bf16.gmra.mxu0 %vm429_vm1, %v16679_v15  ;;  %14155 = vmatmul.mubr.msk.bf16.gmra.mxu1 %vm429_vm1, %v16683_v16  ;;  %v16785_v16 = vld [vmem:[%s25349_s4 + $0x3a4] ss:$8 sps:$4 sm:$0xff]   ;;  %vm19104_vm6 = vmand %vm1754_vm2, %vm1755_vm5 }
  0x2b   : > { %511 = vmatprep.mubr.bf16.mxu0 %v18704_v4  ;;  %752 = vmatprep.mubr.bf16.mxu1 %v18704_v4  ;;  %vm19156_vm10 = vmor %vm1352_vm4, %vm1461_vm7  ;;  %vm1822_vm4 = vsmask.f32 3328 }
  0x2c   : > { %vm19313_vm13 = vmand %vm1751_vm0, %vm1822_vm4 }
  0x2d   : > { %vm19335_vm14 = vmand %vm1754_vm2, %vm2003_vm11 }
  0x32   : > { %14131 = vmatmul.mubr.msk.bf16.gmra.mxu0 %vm429_vm1, %v16680_v17  ;;  %14156 = vmatmul.mubr.msk.bf16.gmra.mxu1 %vm429_vm1, %v16684_v18  ;;  %v1359_v17 = vsel %vm19000_vm8, 0, %v1358_v11  ;;  %v16759_v18 = vld [vmem:[%s25349_s4 + $0x4a0] ss:$8 sps:$4 sm:$0xff]  }
  0x33   : > { %1160 = vmatprep.mubr.bf16.mxu1 %v18704_v4  ;;  %941 = vmatprep.mubr.bf16.mxu0 %v18704_v4  ;;  %1360 = vst [vmem:[#allocation2 + $0x2a0] sm:$0x11] %v1359_v17 }
  0x3a   : > { %14203 = vmatmul.mubr.msk.bf16.vlgmr.msra.gmra.mxu1 %vm429_vm1, %v16688_v19  ;;  %14178 = vmatmul.mubr.msk.bf16.vlgmr.msra.gmra.mxu0 %vm429_vm1, %v16692_v20  ;;  %v16783_v19 = vld [vmem:[%s25349_s4 + $0x3a0] ss:$8 sps:$4 sm:$0xff]  }
  0x3b   : > { %2984 = vmatpush1.bf16.msra.mxu1 %v16685_v21  ;;  %2911 = vmatpush1.bf16.msra.mxu0 %v16699_v22  ;;  %v16768_v21 = vld [vmem:[%s25349_s4 + $0x494] ss:$8 sps:$4 sm:$0xff]   ;;  %v17289_v20 = vld [vmem:[%s25349_s4 + $0x2a0] ss:$8 sps:$4 sm:$0xff]  }
  0x3c   : > { %2985 = vmatprep.subr.bf16.mxu1 %v16691_v23  ;;  %2912 = vmatprep.subr.bf16.mxu0 %v16707_v24  ;;  %v16791_v22 = vld [vmem:[%s25349_s4 + $0x394] ss:$8 sps:$4 sm:$0xff]   ;;  %v1413_v23 = vld [vmem:[#allocation2 + $0x260] sm:$0x88] }
  0x3d   : > { %1170 = vmatprep.mubr.bf16.mxu1 %v18704_v4  ;;  %951 = vmatprep.mubr.bf16.mxu0 %v18704_v4  ;;  %v1414_v24 = vsel %vm19015_vm15, 0, %v1413_v23  ;;  %v1758_v23 = vld [vmem:[#allocation2 + $0x2a0] sm:$0xff] }
  0x3e   : > { %1415 = vst [vmem:[#allocation2 + $0x260] sm:$0x88] %v1414_v24 }
  0x3f   : > { %2986 = vmatpush1.bf16.msra.mxu1 %v16689_v25  ;;  %2913 = vmatpush1.bf16.msra.mxu0 %v16705_v26  ;;  %v16766_v25 = vld [vmem:[%s25349_s4 + $0x490] ss:$8 sps:$4 sm:$0xff]  }
  0x40   : > { %2987 = vmatprep.subr.bf16.mxu1 %v16695_v27  ;;  %2914 = vmatprep.subr.bf16.mxu0 %v16713_v28  ;;  %v16789_v26 = vld [vmem:[%s25349_s4 + $0x390] ss:$8 sps:$4 sm:$0xff]   ;;  %v16775_v27 = vld [vmem:[%s25349_s4 + $0x484] ss:$8 sps:$4 sm:$0xff]  }
  0x41   : > { %v16797_v28 = vld [vmem:[%s25349_s4 + $0x384] ss:$8 sps:$4 sm:$0xff]  }
  0x42   : > { %14179 = vmatmul.mubr.msk.bf16.gmra.mxu0 %vm429_vm1, %v16748_v47  ;;  %14204 = vmatmul.mubr.msk.bf16.gmra.mxu1 %vm429_vm1, %v16741_v52  ;;  %v334_v47 = vld [vmem:[%s25347_s2] sm:$0x3] }
  0x43   : > { %2988 = vmatpush1.bf16.msra.mxu1 %v16693_v29  ;;  %2915 = vmatpush1.bf16.msra.mxu0 %v16711_v30  ;;  %v1361_v29 = vld [vmem:[#allocation2 + $0x270] sm:$0x11] }
  0x44   : > { %2989 = vmatprep.subr.bf16.mxu1 %v16698_v31  ;;  %2916 = vmatprep.subr.bf16.mxu0 %v16719_v32  ;;  %v1362_v30 = vsel %vm19000_vm8, 0, %v1361_v29  ;;  %v16773_v31 = vld [vmem:[%s25349_s4 + $0x480] ss:$8 sps:$4 sm:$0xff]  }
  0x45   : > { %961 = vmatprep.mubr.bf16.mxu0 %v18704_v4  ;;  %1180 = vmatprep.mubr.bf16.mxu1 %v18704_v4  ;;  %v16795_v32 = vld [vmem:[%s25349_s4 + $0x380] ss:$8 sps:$4 sm:$0xff]   ;;  %1363 = vst [vmem:[#allocation2 + $0x270] sm:$0x11] %v1362_v30 }
  0x47   : > { %2990 = vmatpush1.bf16.msra.mxu1 %v16696_v33  ;;  %2917 = vmatpush1.bf16.msra.mxu0 %v16717_v34  ;;  %v16782_v33 = vld [vmem:[%s25349_s4 + $0x74] ss:$8 sps:$4 sm:$0xff]  }
  0x48   : > { %2991 = vmatprep.subr.bf16.mxu1 %v16704_v35  ;;  %2918 = vmatprep.subr.bf16.mxu0 %v16725_v36  ;;  %v16803_v34 = vld [vmem:[%s25349_s4 + $0x574] ss:$8 sps:$4 sm:$0xff]  }
  0x49   : > { %v1364_v35 = vld [vmem:[#allocation2 + $0x198] sm:$0x11] }
  0x4a   : > { %14180 = vmatmul.mubr.msk.bf16.gmra.mxu0 %vm429_vm1, %v16762_v57  ;;  %14205 = vmatmul.mubr.msk.bf16.gmra.mxu1 %vm429_vm1, %v16755_v62  ;;  %v1365_v36 = vsel %vm19000_vm8, 0, %v1364_v35 }
  0x4b   : > { %2992 = vmatpush1.bf16.msra.mxu1 %v16702_v37  ;;  %2919 = vmatpush1.bf16.msra.mxu0 %v16723_v38  ;;  %1366 = vst [vmem:[#allocation2 + $0x198] sm:$0x11] %v1365_v36  ;;  %v1367_v37 = vld [vmem:[#allocation2 + $0x160] sm:$0x11] }
  0x4c   : > { %2993 = vmatprep.subr.bf16.mxu1 %v16710_v39  ;;  %2920 = vmatprep.subr.bf16.mxu0 %v16731_v40  ;;  %v1368_v38 = vsel %vm19000_vm8, 0, %v1367_v37  ;;  %v1416_v39 = vld [vmem:[#allocation2 + $0x30] sm:$0x88] }
  0x4d   : > { %971 = vmatprep.mubr.bf16.mxu0 %v18704_v4  ;;  %1190 = vmatprep.mubr.bf16.mxu1 %v18704_v4  ;;  %v16772_v4 = vld [vmem:[%s25349_s4 + $0x3c4] ss:$8 sps:$4 sm:$0xff]   ;;  %1369 = vst [vmem:[#allocation2 + $0x160] sm:$0x11] %v1368_v38  ;;  %v1417_v40 = vsel %vm19015_vm15, 0, %v1416_v39 }
  0x4e   : > { %1418 = vst [vmem:[#allocation2 + $0x30] sm:$0x88] %v1417_v40  ;;  %v16780_v38 = vld [vmem:[%s25349_s4 + $0x70] ss:$8 sps:$4 sm:$0xff]   ;;  %v16788_v39 = vld [vmem:[%s25349_s4 + $0x64] ss:$8 sps:$4 sm:$0xff]  }
  0x4f   : > { %2994 = vmatpush1.bf16.msra.mxu1 %v16708_v41  ;;  %2921 = vmatpush1.bf16.msra.mxu0 %v16729_v42  ;;  %v1419_v41 = vld [vmem:[#allocation2 + $0x340] sm:$0x88] }
  0x50   : > { %2995 = vmatprep.subr.bf16.mxu1 %v16716_v43  ;;  %2922 = vmatprep.subr.bf16.mxu0 %v16737_v44  ;;  %v1420_v42 = vsel %vm19015_vm15, 0, %v1419_v41  ;;  %v1422_v43 = vld [vmem:[#allocation2 + $0x328] sm:$0x88] }
  0x51   : > { %1421 = vst [vmem:[#allocation2 + $0x340] sm:$0x88] %v1420_v42  ;;  %v1423_v44 = vsel %vm19015_vm15, 0, %v1422_v43 }
  0x52   : > { %14181 = vmatmul.mubr.msk.bf16.gmra.mxu0 %vm429_vm1, %v16776_v5  ;;  %14206 = vmatmul.mubr.msk.bf16.gmra.mxu1 %vm429_vm1, %v16769_v8  ;;  %1424 = vst [vmem:[#allocation2 + $0x328] sm:$0x88] %v1423_v44  ;;  %vm1752_vm1 = vsmask.f32 7938 }
  0x53   : > { %2996 = vmatpush1.bf16.msra.mxu1 %v16714_v45  ;;  %2923 = vmatpush1.bf16.msra.mxu0 %v16735_v46  ;;  %v523_v45 = vlaneseq  ;;  %vm19095_vm3 = vmand %vm1751_vm0, %vm1752_vm1 }
  0x54   : > { %2997 = vmatprep.subr.bf16.mxu1 %v16722_v48  ;;  %2924 = vmatprep.subr.bf16.mxu0 %v16744_v50  ;;  %v335_v50 = vld [vmem:[%s25348_s3] sm:$0x3]  ;;  %vm19122_vm9 = vmor %vm19104_vm6, %vm19095_vm3 }
  0x55   : > { %v524_v46 = vshrl.u32 %v523_v45, 7  ;;  %vm19349_vm0 = vmor %vm1822_vm4, %vm1823_vm12 }
  0x56   : > { %vm19382_vm1 = vmor %vm19335_vm14, %vm19313_vm13 }
  0x57   : > { %2998 = vmatpush1.bf16.msra.mxu1 %v16720_v49  ;;  %2925 = vmatpush1.bf16.msra.mxu0 %v16742_v53  ;;  %v19066_v48 = vsub.s32 0, %v524_v46  ;;  %v19068_v49 = vsub.s32 1, %v524_v46 }
  0x58   : > { %2999 = vmatprep.subr.bf16.mxu1 %v16728_v51  ;;  %2926 = vmatprep.subr.bf16.mxu0 %v16751_v54 }
  0x59   : > { %25404 = vst [vmem:[#allocation3_spill] sm:$0xff] %v19066_v48  ;;  %25405 = vst [vmem:[#allocation4_spill] sm:$0xff] %v19068_v49  ;;  %v19074_v51 = vrot.slane %v334_v47, %v19066_v48  ;;  %v19077_v52 = vrot.slane %v335_v50, %v19066_v48  ;;  %v19080_v53 = vrot.slane %v334_v47, %v19068_v49 }
  0x5b   : > { %3000 = vmatpush2.bf16.msra.mxu1 %v16726_v55  ;;  %2927 = vmatpush2.bf16.msra.mxu0 %v16749_v56  ;;  %v19084_v56 = vrot.slane %v335_v50, %v19068_v49 }
  0x5c   : > { %3001 = vmatprep.subr.bf16.mxu1 %v16734_v58  ;;  %2928 = vmatprep.subr.bf16.mxu0 %v16758_v60 }
  0x5f   : > { %3002 = vmatpush2.bf16.msra.mxu1 %v16732_v59  ;;  %2929 = vmatpush2.bf16.msra.mxu0 %v16756_v63 }
  0x60   : > { %3003 = vmatprep.subr.bf16.mxu1 %v16740_v61  ;;  %2930 = vmatprep.subr.bf16.mxu0 %v16765_v0 }
  0x63   : > { %3004 = vmatpush2.bf16.msra.mxu1 %v16738_v1  ;;  %2931 = vmatpush2.bf16.msra.mxu0 %v16763_v3 }
  0x64   : > { %3005 = vmatprep.subr.bf16.mxu1 %v16747_v2  ;;  %2932 = vmatprep.subr.bf16.mxu0 %v16772_v4 }
  0x67   : > { %3006 = vmatpush2.bf16.msra.mxu1 %v16745_v6  ;;  %2933 = vmatpush2.bf16.msra.mxu0 %v16770_v9 }
  0x68   : > { %3007 = vmatprep.subr.bf16.mxu1 %v16754_v7  ;;  %2934 = vmatprep.subr.bf16.mxu0 %v16779_v10 }
  0x6b   : > { %3008 = vmatpush2.bf16.msra.mxu1 %v16752_v12  ;;  %2935 = vmatpush2.bf16.msra.mxu0 %v16777_v14 }
  0x6c   : > { %3009 = vmatprep.subr.bf16.mxu1 %v16761_v13  ;;  %2936 = vmatprep.subr.bf16.mxu0 %v16785_v16 }
  0x6f   : > { %3010 = vmatpush2.bf16.msra.mxu1 %v16759_v18  ;;  %2937 = vmatpush2.bf16.msra.mxu0 %v16783_v19 }
  0x70   : > { %3011 = vmatprep.subr.bf16.mxu1 %v16768_v21  ;;  %2938 = vmatprep.subr.bf16.mxu0 %v16791_v22 }
  0x73   : > { %3012 = vmatpush2.bf16.msra.mxu1 %v16766_v25  ;;  %2939 = vmatpush2.bf16.msra.mxu0 %v16789_v26 }
  0x74   : > { %3013 = vmatprep.subr.bf16.mxu1 %v16775_v27  ;;  %2940 = vmatprep.subr.bf16.mxu0 %v16797_v28 }
  0x77   : > { %3014 = vmatpush2.bf16.msra.mxu1 %v16773_v31  ;;  %2941 = vmatpush2.bf16.msra.mxu0 %v16795_v32 }
  0x78   : > { %3729 = vmatprep.subr.bf16.mxu1 %v16782_v33  ;;  %3056 = vmatprep.subr.bf16.mxu0 %v16803_v34 }
  0xda   : > { %v483_v54 = vpop.f32.mrf.mxu0 }
  0xdb   : > { %v533_v55 = vmul.f32 %v19074_v51, %v483_v54 }
  0xdc   : > { %v485_v57 = vpop.f32.mrf.mxu0 }
  0xdd   : > { %v560_v58 = vadd.f32 %v19077_v52, %v533_v55  ;;  %v534_v59 = vmul.f32 %v19080_v53, %v485_v57 }
  0xde   : > { %v487_v60 = vpop.f32.mrf.mxu0 }
  0xdf   : > { %v561_v61 = vadd.f32 %v19084_v56, %v534_v59  ;;  %v535_v62 = vmul.f32 %v19074_v51, %v487_v60  ;;  %v576_v0 = vmax.f32 %v560_v58, 0.0  ;;  %v19160_v60 = vpop.f32.mrf.mxu1  ;;  %v17302_v58 = vld [vmem:[%s25352_s7 + $0x60] sm:$0xff]  }
  0xe0   : > { %v489_v63 = vpop.f32.mrf.mxu0 }
  0xe1   : > { %v577_v1 = vmax.f32 %v561_v61, 0.0  ;;  %v562_v2 = vadd.f32 %v19077_v52, %v535_v62  ;;  %v536_v3 = vmul.f32 %v19080_v53, %v489_v63  ;;  %v19181_v8 = vpop.f32.mrf.mxu1 }
  0xe2   : > { %v493_v5 = vpop.f32.mrf.mxu0 }
  0xe3   : > { %v16468_v6 = vpack.c.bf16 %v577_v1, %v576_v0  ;;  %v563_v4 = vadd.f32 %v19084_v56, %v536_v3  ;;  %v537_v7 = vmul.f32 %v19074_v51, %v493_v5  ;;  %v578_v9 = vmax.f32 %v562_v2, 0.0 }
  0xe4   : > { %v495_v10 = vpop.f32.mrf.mxu0 }
  0xe5   : > { %641 = vst [vmem:[#allocation2 + $0x228] sm:$0xff] %v16468_v6  ;;  %v1464_v11 = vshrl.u32 %v16468_v6, 16  ;;  %v1467_v12 = vshll.u32 %v16468_v6, 16  ;;  %v579_v13 = vmax.f32 %v563_v4, 0.0  ;;  %v19100_v14 = vadd.f32 %v19077_v52, %v537_v7  ;;  %v16794_v7 = vld [vmem:[%s25349_s4 + $0x54] ss:$8 sps:$4 sm:$0xff]  }
  0xe6   : > { %v538_v16 = vmul.f32 %v19080_v53, %v495_v10  ;;  %v497_v17 = vpop.f32.mrf.mxu0  ;;  %v18688_v36 = vpack.c.bf16 %v578_v9, %v576_v0  ;;  %v16786_v0 = vld [vmem:[%s25349_s4 + $0x60] ss:$8 sps:$4 sm:$0xff]  }
  0xe7   : > { %v1466_v19 = vrot.slane %v1464_v11, 7  ;;  %v19108_v21 = vrot.slane %v1464_v11, 4  ;;  %v16469_v22 = vpack.c.bf16 %v579_v13, %v578_v9  ;;  %v580_v24 = vmax.f32 %v19100_v14, 0.0 }
  0xe8   : > { %v19112_v25 = vadd.f32 %v19084_v56, %v538_v16  ;;  %v539_v26 = vmul.f32 %v19074_v51, %v497_v17  ;;  %v499_v27 = vpop.f32.mrf.mxu0  ;;  %v19115_v29 = vrot.slane %v1467_v12, 5  ;;  %v18689_v37 = vpack.c.bf16 %v579_v13, %v577_v1  ;;  %v16801_v16 = vld [vmem:[%s25349_s4 + $0x570] ss:$8 sps:$4 sm:$0xff]  }
  0xe9   : > { %v1469_v28 = vor.u32 %v1467_v12, %v1466_v19  ;;  %642 = vst [vmem:[#allocation2 + $0x2a8] sm:$0xff] %v16469_v22  ;;  %v1472_v30 = vshrl.u32 %v16469_v22, 16  ;;  %v540_v31 = vmul.f32 %v19080_v53, %v499_v27  ;;  %v1475_v41 = vshll.u32 %v16469_v22, 16  ;;  %v16792_v12 = vld [vmem:[%s25349_s4 + $0x50] ss:$8 sps:$4 sm:$0xff]   ;;  %v19204_v27 = vpop.f32.mrf.mxu1 }
  0xea   : > { %v581_v33 = vmax.f32 %v19112_v25, 0.0  ;;  %v19128_v34 = vadd.f32 %v19077_v52, %v539_v26  ;;  %v503_v35 = vpop.f32.mrf.mxu0  ;;  %3015 = vmatprep.mubr.bf16.mxu1 %v18689_v37  ;;  %v1470_v1 = vrot.slane %v1466_v19, 4  ;;  %v1762_v17 = vld [vmem:[#allocation2 + $0x270] sm:$0xff] }
  0xeb   : > { %v1474_v40 = vrot.slane %v1472_v30, 7  ;;  %v19137_v42 = vadd.f32 %v19084_v56, %v540_v31  ;;  %v541_v43 = vmul.f32 %v19074_v51, %v503_v35  ;;  %v19140_v44 = vrot.slane %v1472_v30, 4  ;;  %3016 = vmatmul.mubr.bf16.vlgmr.msra.gmra.mxu1 %v18688_v36  ;;  %v16800_v35 = vld [vmem:[%s25349_s4 + $0x44] ss:$8 sps:$4 sm:$0xff]   ;;  %v16806_v25 = vld [vmem:[%s25349_s4 + $0x34] ss:$8 sps:$4 sm:$0xff]  }
  0xec   : > { %v16470_v45 = vpack.c.bf16 %v581_v33, %v580_v24  ;;  %v582_v46 = vmax.f32 %v19128_v34, 0.0  ;;  %v505_v47 = vpop.f32.mrf.mxu0  ;;  %v1759_v50 = vsel %vm19122_vm9, %v1469_v28, %v1758_v23  ;;  %3730 = vmatpush1.bf16.msra.mxu1 %v16780_v38  ;;  %v19195_v18 = vrot.slane %v1475_v41, 5  ;;  %v16809_v38 = vld [vmem:[%s25349_s4 + $0x564] ss:$8 sps:$4 sm:$0xff]  }
  0xed   : > { %v583_v54 = vmax.f32 %v19137_v42, 0.0  ;;  %v19151_v55 = vadd.f32 %v19077_v52, %v541_v43  ;;  %v542_v57 = vmul.f32 %v19080_v53, %v505_v47  ;;  %v1477_v59 = vor.u32 %v1475_v41, %v1474_v40  ;;  %1760 = vst [vmem:[#allocation2 + $0x2a0] sm:$0xff] %v1759_v50  ;;  %3731 = vmatprep.subr.bf16.mxu1 %v16788_v39 }
  0xee   : > { %643 = vst [vmem:[#allocation2 + $0x68] sm:$0xff] %v16470_v45  ;;  %v1480_v61 = vshrl.u32 %v16470_v45, 16  ;;  %v1483_v62 = vshll.u32 %v16470_v45, 16  ;;  %v507_v63 = vpop.f32.mrf.mxu0  ;;  %v19225_v45 = vpop.f32.mrf.mxu1 }
  0xef   : > { %v19171_v3 = vpack.c.bf16 %v583_v54, %v582_v46  ;;  %v584_v5 = vmax.f32 %v19151_v55, 0.0  ;;  %v19175_v6 = vadd.f32 %v19084_v56, %v542_v57  ;;  %v543_v4 = vmul.f32 %v19074_v51, %v507_v63  ;;  %v16818_v55 = vld [vmem:[%s25349_s4 + $0x14] ss:$8 sps:$4 sm:$0xff]  }
  0xf0   : > { %v19183_v9 = vrot.slane %v1480_v61, 7  ;;  %v19185_v10 = vrot.slane %v1480_v61, 4  ;;  %v509_v11 = vpop.f32.mrf.mxu0  ;;  %v1478_v13 = vsel %vm19156_vm10, %v1470_v1, %v1477_v59  ;;  %3732 = vmatpush1.bf16.msra.mxu1 %v16786_v0  ;;  %v19218_v39 = vrot.slane %v1483_v62, 5  ;;  %v16798_v1 = vld [vmem:[%s25349_s4 + $0x40] ss:$8 sps:$4 sm:$0xff]  }
  0xf1   : > { %644 = vst [vmem:[#allocation2 + $0x110] sm:$0xff] %v19171_v3  ;;  %v1488_v19 = vshrl.u32 %v19171_v3, 16  ;;  %v25355_v22 = vshll.u32 %v19171_v3, 16  ;;  %v585_v23 = vmax.f32 %v19175_v6, 0.0  ;;  %v19202_v26 = vadd.f32 %v19077_v52, %v543_v4  ;;  %3733 = vmatprep.subr.bf16.mxu1 %v16794_v7  ;;  %v19242_v7 = vpop.f32.mrf.mxu1 }
  0xf2   : > { %v1485_v28 = vor.u32 %v1483_v62, %v19183_v9  ;;  %v544_v30 = vmul.f32 %v19080_v53, %v509_v11  ;;  %v513_v31 = vpop.f32.mrf.mxu0  ;;  %v19211_v36 = vcombine.low %v1759_v50, %v1478_v13  ;;  %v19213_v37 = vcombine.high %v1759_v50, %v1478_v13 }
  0xf3   : > { %v1490_v40 = vrot.slane %v1488_v19, 7  ;;  %v16472_v41 = vpack.c.bf16 %v585_v23, %v584_v5  ;;  %v586_v43 = vmax.f32 %v19202_v26, 0.0  ;;  %v545_v50 = vmul.f32 %v19074_v51, %v513_v31 }
  0xf4   : > { %v19228_v47 = vadd.f32 %v19084_v56, %v544_v30  ;;  %v515_v57 = vpop.f32.mrf.mxu0  ;;  %2942 = vmatprep.mubr.bf16.mxu0 %v19213_v37  ;;  %v1486_v59 = vrot.slane %v19183_v9, 4  ;;  %v1763_v61 = vsel %vm19122_vm9, %v1485_v28, %v1762_v17  ;;  %3734 = vmatpush1.bf16.msra.mxu1 %v16792_v12  ;;  %v16807_v17 = vld [vmem:[%s25349_s4 + $0x560] ss:$8 sps:$4 sm:$0xff]   ;;  %v16815_v28 = vld [vmem:[%s25349_s4 + $0x554] ss:$8 sps:$4 sm:$0xff]   ;;  %v18690_v30 = vpack.c.bf16 %v583_v54, %v581_v33  ;;  %v19274_v33 = vpop.f32.mrf.mxu1 }
  0xf5   : > { %645 = vst [vmem:[#allocation2 + $0x1c0] sm:$0xff] %v16472_v41  ;;  %v1496_v62 = vshrl.u32 %v16472_v41, 16  ;;  %v1499_v63 = vshll.u32 %v16472_v41, 16  ;;  %v546_v0 = vmul.f32 %v19080_v53, %v515_v57  ;;  %2943 = vmatmul.mubr.bf16.vlgmr.msra.gmra.mxu0 %v19211_v36  ;;  %v1493_v4 = vor.u32 %v25355_v22, %v1490_v40  ;;  %1764 = vst [vmem:[#allocation2 + $0x270] sm:$0xff] %v1763_v61  ;;  %v16813_v54 = vld [vmem:[%s25349_s4 + $0x550] ss:$8 sps:$4 sm:$0xff]  }
  0xf6   : > { %v587_v9 = vmax.f32 %v19228_v47, 0.0  ;;  %v19246_v11 = vadd.f32 %v19077_v52, %v545_v50  ;;  %v517_v13 = vpop.f32.mrf.mxu0  ;;  %3057 = vmatpush1.bf16.msra.mxu0 %v16801_v16  ;;  %v18691_v31 = vpack.c.bf16 %v582_v46, %v580_v24  ;;  %v19262_v12 = vrot.slane %v1488_v19, 4  ;;  %3735 = vmatprep.subr.bf16.mxu1 %v16800_v35  ;;  %v1766_v19 = vld [vmem:[#allocation2 + $0x198] sm:$0xff] }
  0xf7   : > { %v19264_v16 = vrot.slane %v1496_v62, 7  ;;  %v19266_v40 = vrot.slane %v1496_v62, 4  ;;  %v19269_v41 = vadd.f32 %v19084_v56, %v546_v0  ;;  %3058 = vmatprep.subr.bf16.mxu0 %v16809_v38  ;;  %v547_v34 = vmul.f32 %v19074_v51, %v517_v13  ;;  %3025 = vmatprep.mubr.bf16.mxu1 %v18690_v30  ;;  %v16804_v50 = vld [vmem:[%s25349_s4 + $0x30] ss:$8 sps:$4 sm:$0xff]   ;;  %v16812_v13 = vld [vmem:[%s25349_s4 + $0x24] ss:$8 sps:$4 sm:$0xff]  }
  0xf8   : > { %v19278_v14 = vpack.c.bf16 %v587_v9, %v586_v43  ;;  %v25356_v24 = vmax.f32 %v19246_v11, 0.0  ;;  %v519_v42 = vpop.f32.mrf.mxu0  ;;  %v1494_v46 = vsel %vm19156_vm10, %v1486_v59, %v1493_v4  ;;  %3026 = vmatmul.mubr.bf16.gmra.mxu1 %v18691_v31  ;;  %v19295_v59 = vpop.f32.mrf.mxu1  ;;  %v16821_v31 = vld [vmem:[%s25349_s4 + $0x544] ss:$8 sps:$4 sm:$0xff]   ;;  %v18693_v6 = vpack.c.bf16 %v586_v43, %v584_v5 }
  0xf9   : > { %v1501_v35 = vor.u32 %v1499_v63, %v19264_v16  ;;  %v25357_v38 = vmax.f32 %v19269_v41, 0.0  ;;  %v548_v47 = vmul.f32 %v19080_v53, %v519_v42  ;;  %1765 = vst [vmem:[#allocation2 + $0x40] sm:$0xff] %v1494_v46  ;;  %v19293_v57 = vcombine.high %v1763_v61, %v1494_v46  ;;  %3736 = vmatpush1.bf16.msra.mxu1 %v16798_v1 }
  0xfa   : > { %646 = vst [vmem:[#allocation2 + $0xe0] sm:$0xff] %v19278_v14  ;;  %v1504_v62 = vshrl.u32 %v19278_v14, 16  ;;  %v25360_v0 = vshll.u32 %v19278_v14, 16  ;;  %v19301_v4 = vadd.f32 %v19077_v52, %v547_v34  ;;  %3059 = vmatpush1.bf16.msra.mxu0 %v16807_v17  ;;  %v19306_v30 = vcombine.low %v1763_v61, %v1494_v46  ;;  %3737 = vmatprep.subr.bf16.mxu1 %v16806_v25  ;;  %v19327_v46 = vpop.f32.mrf.mxu1 }
  0xfb   : > { %v19317_v34 = vrot.slane %v1499_v63, 5  ;;  %v16474_v1 = vpack.c.bf16 %v25357_v38, %v25356_v24  ;;  %v575_v61 = vadd.f32 %v19084_v56, %v548_v47  ;;  %2952 = vmatprep.mubr.bf16.mxu0 %v19293_v57  ;;  %v1767_v17 = vsel %vm19122_vm9, %v1501_v35, %v1766_v19  ;;  %3060 = vmatprep.subr.bf16.mxu0 %v16815_v28  ;;  %v16819_v28 = vld [vmem:[%s25349_s4 + $0x540] ss:$8 sps:$4 sm:$0xff]  }
  0xfc   : > { %v1506_v22 = vrot.slane %v1504_v62, 7  ;;  %v25361_v2 = vmax.f32 %v19301_v4, 0.0  ;;  %v1502_v63 = vrot.slane %v19264_v16, 4  ;;  %1768 = vst [vmem:[#allocation2 + $0x198] sm:$0xff] %v1767_v17  ;;  %v18692_v24 = vpack.c.bf16 %v587_v9, %v585_v23  ;;  %v19353_v9 = vpop.f32.mrf.mxu1  ;;  %v16810_v16 = vld [vmem:[%s25349_s4 + $0x20] ss:$8 sps:$4 sm:$0xff]  }
  0xfd   : > { %647 = vst [vmem:[#allocation2 + $0x320] sm:$0xff] %v16474_v1  ;;  %v1512_v19 = vshrl.u32 %v16474_v1, 16  ;;  %v1515_v35 = vshll.u32 %v16474_v1, 16  ;;  %v591_v47 = vmax.f32 %v575_v61, 0.0  ;;  %2953 = vmatmul.mubr.bf16.gmra.mxu0 %v19306_v30  ;;  %3738 = vmatpush1.bf16.msra.mxu1 %v16804_v50  ;;  %v25420_v26 = vor.u32 %v19115_v29, %v19108_v21  ;;  %v2006_v29 = vld [vmem:[#allocation2 + $0x260] sm:$0xff]  ;;  %v17316_v23 = vld [vmem:[%s25352_s7 + $0x10] sm:$0xff]  }
  0xfe   : > { %3061 = vmatpush1.bf16.msra.mxu0 %v16813_v54  ;;  %v1509_v5 = vor.u32 %v25360_v0, %v1506_v22  ;;  %v1832_v1 = vor.u32 %v19140_v44, %v19195_v18  ;;  %v1836_v50 = vor.u32 %v19218_v39, %v19185_v10  ;;  %v19370_v61 = vrot.slane %v1504_v62, 4  ;;  %3739 = vmatprep.subr.bf16.mxu1 %v16812_v13  ;;  %v19386_v44 = vpop.f32.mrf.mxu1  ;;  %v16816_v22 = vld [vmem:[%s25349_s4 + $0x10] ss:$8 sps:$4 sm:$0xff]   ;;  %v16827_v62 = vld [vmem:[%s25349_s4 + $0x534] ss:$8 sps:$4 sm:$0xff]   ;;  %v1770_v13 = vld [vmem:[#allocation2 + $0x160] sm:$0xff] }
  0xff   : > { %v1828_v43 = vrot.slane %v25420_v26, 4  ;;  %v19372_v54 = vrot.slane %v1512_v19, 7  ;;  %v19374_v38 = vrot.slane %v1512_v19, 4  ;;  %v16475_v49 = vpack.c.bf16 %v591_v47, %v25361_v2  ;;  %3062 = vmatprep.subr.bf16.mxu0 %v16821_v31  ;;  %3035 = vmatprep.mubr.bf16.mxu1 %v18692_v24 }
 0x100   : > { %v19388_v10 = vrot.slane %v1515_v35, 5  ;;  %v1510_v39 = vsel %vm19156_vm10, %v1502_v63, %v1509_v5  ;;  %v1833_v42 = vrot.slane %v1832_v1, 4  ;;  %v16825_v63 = vld [vmem:[%s25349_s4 + $0x530] ss:$8 sps:$4 sm:$0xff]   ;;  %3036 = vmatmul.mubr.bf16.gmra.mxu1 %v18693_v6  ;;  %v19409_v24 = vpop.f32.mrf.mxu1  ;;  %v25423_v6 = vmax.f32 %v19269_v41, 0.0 }
 0x101   : > { %v19401_v31 = vsel %vm19349_vm0, %v1828_v43, %v19195_v18  ;;  %v1517_v25 = vor.u32 %v1515_v35, %v19372_v54  ;;  %648 = vst [vmem:[#allocation2] sm:$0xff] %v16475_v49  ;;  %v1520_v19 = vshrl.u32 %v16475_v49, 16  ;;  %v1523_v26 = vshll.u32 %v16475_v49, 16  ;;  %1769 = vst [vmem:[#allocation2 + $0x88] sm:$0xff] %v1510_v39  ;;  %3740 = vmatpush1.bf16.msra.mxu1 %v16810_v16  ;;  %v16824_v18 = vld [vmem:[%s25349_s4 + $0x4] ss:$8 sps:$4 sm:$0xff]   ;;  %v19425_v16 = vpop.f32.mrf.mxu0 }
 0x102   : > { %v19404_v0 = vcombine.high %v1767_v17, %v1510_v39  ;;  %3063 = vmatpush1.bf16.msra.mxu0 %v16819_v28  ;;  %v19414_v35 = vcombine.low %v1767_v17, %v1510_v39  ;;  %v16833_v49 = vld [vmem:[%s25349_s4 + $0x524] ss:$8 sps:$4 sm:$0xff]   ;;  %v19421_v5 = vsel %vm19382_vm1, %v1833_v42, %v2006_v29  ;;  %v18694_v43 = vpack.c.bf16 %v591_v47, %v25423_v6  ;;  %v19434_v29 = vpop.f32.mrf.mxu1 }
 0x103   : > { %v1837_v1 = vrot.slane %v1836_v50, 4  ;;  %v1522_v28 = vrot.slane %v1520_v19, 7  ;;  %v1858_v2 = vrot.slane %v1520_v19, 4  ;;  %3741 = vmatprep.subr.bf16.mxu1 %v16818_v55  ;;  %v1518_v17 = vrot.slane %v19372_v54, 4  ;;  %2008 = vst [vmem:[#allocation2 + $0x260] sm:$0xff] %v19421_v5  ;;  %3064 = vmatprep.subr.bf16.mxu0 %v16827_v62  ;;  %v19441_v50 = vld [vmem:[#allocation2 + $0x358] sm:$0xff] }
 0x104   : > { %2962 = vmatprep.mubr.bf16.mxu0 %v19404_v0  ;;  %v19431_v39 = vsel %vm19122_vm9, %v1517_v25, %v1770_v13  ;;  %3045 = vmatprep.mubr.bf16.mxu1 %v18694_v43  ;;  %v25424_v41 = vmax.f32 %v19246_v11, 0.0  ;;  %v25425_v47 = vmax.f32 %v19301_v4, 0.0  ;;  %v19445_v54 = vcombine.high %v19441_v50, %v19441_v50  ;;  %v19456_v43 = vpop.f32.mrf.mxu1 }
 0x105   : > { %1772 = vst [vmem:[#allocation2 + $0x160] sm:$0xff] %v19431_v39  ;;  %v25426_v13 = vshll.u32 %v19171_v3, 16  ;;  %v1845_v62 = vor.u32 %v19317_v34, %v19266_v40  ;;  %2963 = vmatmul.mubr.bf16.gmra.mxu0 %v19414_v35  ;;  %v1525_v25 = vor.u32 %v1523_v26, %v1522_v28  ;;  %v25427_v11 = vshll.u32 %v19278_v14, 16  ;;  %3742 = vmatpush1.bf16.msra.mxu1 %v16816_v22  ;;  %v16822_v3 = vld [vmem:[%s25349_s4] ss:$8 sps:$4 sm:$0xff]   ;;  %v945_v22 = vpop.f32.mrf.mxu0 }
 0x106   : > { %v18695_v55 = vpack.c.bf16 %v25425_v47, %v25424_v41  ;;  %v1854_v4 = vor.u32 %v19388_v10, %v19374_v38  ;;  %v1856_v6 = vrot.slane %v1523_v26, 5  ;;  %3065 = vmatpush1.bf16.msra.mxu0 %v16825_v63  ;;  %v16831_v40 = vld [vmem:[%s25349_s4 + $0x520] ss:$8 sps:$4 sm:$0xff]   ;;  %v763_v10 = vmul.f32 %v19160_v60, %v19074_v51  ;;  %3743 = vmatprep.subr.bf16.mxu1 %v16824_v18  ;;  %v16830_v26 = vld [vmem:[%s25349_s4 + $0xf4] ss:$8 sps:$4 sm:$0xff]   ;;  %v19478_v47 = vpop.f32.mrf.mxu1 }
 0x107   : > { %v1838_v42 = vrot.slane %v25426_v13, 5  ;;  %v1847_v19 = vrot.slane %v25427_v11, 5  ;;  %v1846_v38 = vrot.slane %v1845_v62, 4  ;;  %3066 = vmatprep.subr.bf16.mxu0 %v16833_v49  ;;  %v1526_v63 = vsel %vm19156_vm10, %v1518_v17, %v1525_v25  ;;  %v16839_v18 = vld [vmem:[%s25349_s4 + $0x514] ss:$8 sps:$4 sm:$0xff]   ;;  %v2018_v25 = vld [vmem:[#allocation2 + $0x328] sm:$0xff] }
 0x108   : > { %v1859_v41 = vor.u32 %v1858_v2, %v1856_v6  ;;  %1773 = vst [vmem:[#allocation2 + $0x2e0] sm:$0xff] %v1526_v63  ;;  %v14330_v60 = vcombine.high %v19431_v39, %v1526_v63  ;;  %v14329_v49 = vcombine.low %v19431_v39, %v1526_v63  ;;  %3046 = vmatmul.mubr.bf16.gmra.mxu1 %v18695_v55  ;;  %v16828_v39 = vld [vmem:[%s25349_s4 + $0xf0] ss:$8 sps:$4 sm:$0xff]   ;;  %v16836_v55 = vld [vmem:[%s25349_s4 + $0xe4] ss:$8 sps:$4 sm:$0xff]  }
 0x109   : > { %v19466_v14 = vsel %vm19349_vm0, %v1837_v1, %v1838_v42  ;;  %v1841_v34 = vor.u32 %v19262_v12, %v1838_v42  ;;  %v2010_v1 = vld [vmem:[#allocation2 + $0x30] sm:$0xff]  ;;  %v1850_v28 = vor.u32 %v19370_v61, %v1847_v19  ;;  %v1855_v12 = vrot.slane %v1854_v4, 4  ;;  %v2014_v42 = vld [vmem:[#allocation2 + $0x340] sm:$0xff]  ;;  %v19495_v4 = vpop.f32.mrf.mxu1  ;;  %3744 = vmatpush1.bf16.msra.mxu1 %v16822_v3  ;;  %3761 = vmatprep.mubr.bf16.mxu1 %v19445_v54 }
 0x10a   : > { %2009 = vst [vmem:[#allocation2 + $0xb0] sm:$0xff] %v19466_v14  ;;  %v19487_v17 = vsel %vm19349_vm0, %v1846_v38, %v1847_v19  ;;  %v1860_v62 = vrot.slane %v1859_v41, 4  ;;  %v779_v11 = vadd.f32 %v763_v10, %v19077_v52  ;;  %3067 = vmatpush1.bf16.msra.mxu0 %v16831_v40  ;;  %v16837_v19 = vld [vmem:[%s25349_s4 + $0x510] ss:$8 sps:$4 sm:$0xff]   ;;  %v764_v3 = vmul.f32 %v19181_v8, %v19080_v53  ;;  %v16845_v38 = vld [vmem:[%s25349_s4 + $0x504] ss:$8 sps:$4 sm:$0xff]  }
 0x10b   : > { %v1842_v13 = vrot.slane %v1841_v34, 4  ;;  %v1851_v61 = vrot.slane %v1850_v28, 4  ;;  %2013 = vst [vmem:[#allocation2 + $0x1c8] sm:$0xff] %v19487_v17  ;;  %v19492_v2 = vsel %vm19349_vm0, %v1855_v12, %v1856_v6  ;;  %v765_v40 = vmul.f32 %v19204_v27, %v19074_v51  ;;  %v947_v34 = vpop.f32.mrf.mxu0  ;;  %3745 = vmatprep.subr.bf16.mxu1 %v16830_v26  ;;  %2972 = vmatprep.mubr.bf16.mxu0 %v14330_v60  ;;  %v16834_v60 = vld [vmem:[%s25349_s4 + $0xe0] ss:$8 sps:$4 sm:$0xff]  }
 0x10c   : > { %2017 = vst [vmem:[#allocation2 + $0xd8] sm:$0xff] %v19492_v2  ;;  %v795_v63 = vmax.f32 %v779_v11, 0.0  ;;  %3068 = vmatprep.subr.bf16.mxu0 %v16839_v18  ;;  %v19529_v8 = vsel %vm19382_vm1, %v1860_v62, %v2018_v25  ;;  %v19533_v27 = vcombine.high %v19401_v31, %v19421_v5  ;;  %v780_v28 = vadd.f32 %v764_v3, %v19084_v56  ;;  %v16843_v18 = vld [vmem:[%s25349_s4 + $0x500] ss:$8 sps:$4 sm:$0xff]   ;;  %v16842_v62 = vld [vmem:[%s25349_s4 + $0xd4] ss:$8 sps:$4 sm:$0xff]  }
 0x10d   : > { %v19508_v6 = vsel %vm19382_vm1, %v1842_v13, %v2010_v1  ;;  %v19521_v10 = vsel %vm19382_vm1, %v1851_v61, %v2014_v42  ;;  %v19523_v1 = vpop.f32.mrf.mxu1  ;;  %2973 = vmatmul.mubr.bf16.gmra.mxu0 %v14329_v49  ;;  %2020 = vst [vmem:[#allocation2 + $0x328] sm:$0xff] %v19529_v8  ;;  %v781_v12 = vadd.f32 %v765_v40, %v19077_v52  ;;  %v949_v61 = vpop.f32.mrf.mxu0  ;;  %v16851_v25 = vld [vmem:[%s25349_s4 + $0x5f4] ss:$8 sps:$4 sm:$0xff]  }
 0x10e   : > { %2012 = vst [vmem:[#allocation2 + $0x30] sm:$0xff] %v19508_v6  ;;  %2016 = vst [vmem:[#allocation2 + $0x340] sm:$0xff] %v19521_v10  ;;  %3746 = vmatpush2.bf16.msra.mxu1 %v16828_v39  ;;  %3069 = vmatpush1.bf16.msra.mxu0 %v16837_v19  ;;  %v982_v49 = vmul.f32 %v19425_v16, %v19074_v51  ;;  %v766_v13 = vmul.f32 %v19225_v45, %v19080_v53  ;;  %v796_v11 = vmax.f32 %v780_v28, 0.0 }
 0x10f   : > { %v19540_v41 = vpop.f32.mrf.mxu1  ;;  %v983_v42 = vmul.f32 %v945_v22, %v19080_v53  ;;  %3747 = vmatprep.subr.bf16.mxu1 %v16836_v55  ;;  %3088 = vmatprep.mubr.bf16.mxu0 %v19533_v27  ;;  %v797_v39 = vmax.f32 %v781_v12, 0.0  ;;  %v767_v16 = vmul.f32 %v19242_v7, %v19074_v51  ;;  %v984_v45 = vmul.f32 %v947_v34, %v19074_v51  ;;  %v16840_v22 = vld [vmem:[%s25349_s4 + $0xd0] ss:$8 sps:$4 sm:$0xff]  }
 0x110   : > { %3070 = vmatprep.subr.bf16.mxu0 %v16845_v38  ;;  %v998_v55 = vadd.f32 %v982_v49, %v19077_v52  ;;  %v782_v19 = vadd.f32 %v766_v13, %v19084_v56  ;;  %v768_v40 = vmul.f32 %v19274_v33, %v19080_v53  ;;  %v19571_v28 = vpack.c.bf16 %v796_v11, %v795_v63  ;;  %v16849_v38 = vld [vmem:[%s25349_s4 + $0x5f0] ss:$8 sps:$4 sm:$0xff]   ;;  %v16848_v63 = vld [vmem:[%s25349_s4 + $0xc4] ss:$8 sps:$4 sm:$0xff]  }
 0x111   : > { %v999_v3 = vadd.f32 %v983_v42, %v19084_v56  ;;  %v783_v7 = vadd.f32 %v767_v16, %v19077_v52  ;;  %v1000_v34 = vadd.f32 %v984_v45, %v19077_v52  ;;  %v985_v12 = vmul.f32 %v949_v61, %v19080_v53  ;;  %v19576_v26 = vpop.f32.mrf.mxu1 }
 0x112   : > { %3748 = vmatpush2.bf16.msra.mxu1 %v16834_v60  ;;  %3071 = vmatpush1.bf16.msra.mxu0 %v16843_v18  ;;  %v1014_v49 = vmax.f32 %v998_v55, 0.0  ;;  %v798_v13 = vmax.f32 %v782_v19, 0.0  ;;  %v784_v33 = vadd.f32 %v768_v40, %v19084_v56  ;;  %v16857_v60 = vld [vmem:[%s25349_s4 + $0x5e4] ss:$8 sps:$4 sm:$0xff]   ;;  %860 = vst [vmem:[#allocation2 + $0x1b8] sm:$0xff] %v19571_v28  ;;  %v769_v55 = vmul.f32 %v19295_v59, %v19074_v51 }
 0x113   : > { %v1015_v42 = vmax.f32 %v999_v3, 0.0  ;;  %3749 = vmatprep.subr.bf16.mxu1 %v16842_v62  ;;  %3072 = vmatprep.subr.bf16.mxu0 %v16851_v25  ;;  %v799_v18 = vmax.f32 %v783_v7, 0.0  ;;  %v1001_v45 = vadd.f32 %v985_v12, %v19084_v56  ;;  %v1016_v62 = vmax.f32 %v1000_v34, 0.0  ;;  %v19596_v19 = vpop.f32.mrf.mxu1  ;;  %v16846_v25 = vld [vmem:[%s25349_s4 + $0xc0] ss:$8 sps:$4 sm:$0xff]  }
 0x114   : > { %v19589_v61 = vpack.c.bf16 %v798_v13, %v797_v39  ;;  %v800_v16 = vmax.f32 %v784_v33, 0.0  ;;  %v16855_v39 = vld [vmem:[%s25349_s4 + $0x5e0] ss:$8 sps:$4 sm:$0xff]   ;;  %v16854_v59 = vld [vmem:[%s25349_s4 + $0xb4] ss:$8 sps:$4 sm:$0xff]   ;;  %v785_v7 = vadd.f32 %v769_v55, %v19077_v52  ;;  %v770_v13 = vmul.f32 %v19327_v46, %v19080_v53 }
 0x115   : > { %v19591_v11 = vpack.c.bf16 %v1015_v42, %v1014_v49  ;;  %v1017_v40 = vmax.f32 %v1001_v45, 0.0  ;;  %v19618_v12 = vpop.f32.mrf.mxu1  ;;  %v16861_v49 = vld [vmem:[%s25349_s4 + $0x5d0] ss:$8 sps:$4 sm:$0xff]   ;;  %v16860_v42 = vld [vmem:[%s25349_s4 + $0xa4] ss:$8 sps:$4 sm:$0xff]   ;;  %v772_v46 = vmul.f32 %v19386_v44, %v19080_v53 }
 0x116   : > { %3750 = vmatpush2.bf16.msra.mxu1 %v16840_v22  ;;  %3073 = vmatpush2.bf16.msra.mxu0 %v16849_v38  ;;  %861 = vst [vmem:[#allocation2 + $0x130] sm:$0xff] %v19589_v61  ;;  %v16863_v22 = vld [vmem:[%s25349_s4 + $0x5d4] ss:$8 sps:$4 sm:$0xff]   ;;  %v19612_v3 = vpack.c.bf16 %v800_v16, %v799_v18  ;;  %v16852_v38 = vld [vmem:[%s25349_s4 + $0xb0] ss:$8 sps:$4 sm:$0xff]   ;;  %v771_v18 = vmul.f32 %v19353_v9, %v19074_v51 }
 0x117   : > { %1079 = vst [vmem:[#allocation2 + $0x288] sm:$0xff] %v19591_v11  ;;  %3751 = vmatprep.subr.bf16.mxu1 %v16848_v63  ;;  %3074 = vmatprep.subr.bf16.mxu0 %v16857_v60  ;;  %v19616_v34 = vpack.c.bf16 %v1017_v40, %v1016_v62  ;;  %v16869_v33 = vld [vmem:[%s25349_s4 + $0x5c4] ss:$8 sps:$4 sm:$0xff]   ;;  %v801_v63 = vmax.f32 %v785_v7, 0.0  ;;  %v786_v60 = vadd.f32 %v770_v13, %v19084_v56  ;;  %v19642_v45 = vpop.f32.mrf.mxu1  ;;  %v16858_v62 = vld [vmem:[%s25349_s4 + $0xa0] ss:$8 sps:$4 sm:$0xff]  }
 0x118   : > { %862 = vst [vmem:[#allocation2 + $0x338] sm:$0xff] %v19612_v3  ;;  %v773_v16 = vmul.f32 %v19409_v24, %v19074_v51  ;;  %v16867_v55 = vld [vmem:[%s25349_s4 + $0x5c0] ss:$8 sps:$4 sm:$0xff]   ;;  %v787_v9 = vadd.f32 %v771_v18, %v19077_v52  ;;  %v788_v44 = vadd.f32 %v772_v46, %v19084_v56  ;;  %v774_v24 = vmul.f32 %v19434_v29, %v19080_v53 }
 0x119   : > { %1080 = vst [vmem:[#allocation2 + $0x120] sm:$0xff] %v19616_v34  ;;  %v775_v7 = vmul.f32 %v19456_v43, %v19074_v51  ;;  %v777_v18 = vmul.f32 %v19495_v4, %v19074_v51  ;;  %v19673_v46 = vpop.f32.mrf.mxu1  ;;  %v16864_v43 = vld [vmem:[%s25349_s4 + $0x90] ss:$8 sps:$4 sm:$0xff]   ;;  %v16872_v4 = vld [vmem:[%s25349_s4 + $0x84] ss:$8 sps:$4 sm:$0xff]  }
 0x11a   : > { %3752 = vmatpush2.bf16.msra.mxu1 %v16846_v25  ;;  %3075 = vmatpush2.bf16.msra.mxu0 %v16855_v39  ;;  %v802_v25 = vmax.f32 %v786_v60, 0.0  ;;  %v19654_v39 = vpop.f32.mrf.mxu0  ;;  %v789_v40 = vadd.f32 %v773_v16, %v19077_v52  ;;  %v803_v29 = vmax.f32 %v787_v9, 0.0  ;;  %v790_v13 = vadd.f32 %v774_v24, %v19084_v56 }
 0x11b   : > { %3753 = vmatprep.subr.bf16.mxu1 %v16854_v59  ;;  %3076 = vmatprep.subr.bf16.mxu0 %v16863_v22  ;;  %v16866_v59 = vld [vmem:[%s25349_s4 + $0x94] ss:$8 sps:$4 sm:$0xff]   ;;  %v791_v60 = vadd.f32 %v775_v7, %v19077_v52  ;;  %v778_v24 = vmul.f32 %v19523_v1, %v19080_v53 }
 0x11c   : > { %v16875_v22 = vld [vmem:[%s25349_s4 + $0x5b4] ss:$8 sps:$4 sm:$0xff]  }
 0x11d   : > { %v794_v7 = vadd.f32 %v778_v24, %v19084_v56 }
 0x11e   : > { %3754 = vmatpush2.bf16.msra.mxu1 %v16852_v38  ;;  %3077 = vmatpush2.bf16.msra.mxu0 %v16861_v49  ;;  %v19665_v38 = vpack.c.bf16 %v802_v25, %v801_v63  ;;  %v804_v49 = vmax.f32 %v788_v44, 0.0  ;;  %v16873_v63 = vld [vmem:[%s25349_s4 + $0x5b0] ss:$8 sps:$4 sm:$0xff]   ;;  %v19684_v25 = vpop.f32.mrf.mxu0  ;;  %v793_v44 = vadd.f32 %v777_v18, %v19077_v52 }
 0x11f   : > { %3755 = vmatprep.subr.bf16.mxu1 %v16860_v42  ;;  %3078 = vmatprep.subr.bf16.mxu0 %v16869_v33  ;;  %v805_v42 = vmax.f32 %v789_v40, 0.0  ;;  %v776_v33 = vmul.f32 %v19478_v47, %v19080_v53  ;;  %v806_v47 = vmax.f32 %v790_v13, 0.0  ;;  %v810_v18 = vmax.f32 %v794_v7, 0.0  ;;  %v16893_v7 = vld [vmem:[%s25349_s4 + $0x584] ss:$8 sps:$4 sm:$0xff]  }
 0x120   : > { %863 = vst [vmem:[#allocation2 + $0x308] sm:$0xff] %v19665_v38  ;;  %v19682_v16 = vpack.c.bf16 %v804_v49, %v803_v29  ;;  %v16870_v29 = vld [vmem:[%s25349_s4 + $0x80] ss:$8 sps:$4 sm:$0xff]   ;;  %v809_v13 = vmax.f32 %v793_v44, 0.0  ;;  %v19706_v1 = vpop.f32.mrf.mxu0 }
 0x121   : > { %v792_v9 = vadd.f32 %v776_v33, %v19084_v56  ;;  %v16879_v49 = vld [vmem:[%s25349_s4 + $0x5a0] ss:$8 sps:$4 sm:$0xff]  }
 0x122   : > { %3756 = vmatpush2.bf16.msra.mxu1 %v16858_v62  ;;  %3079 = vmatpush2.bf16.msra.mxu0 %v16867_v55  ;;  %v16881_v62 = vld [vmem:[%s25349_s4 + $0x5a4] ss:$8 sps:$4 sm:$0xff]   ;;  %v807_v55 = vmax.f32 %v791_v60, 0.0  ;;  %864 = vst [vmem:[#allocation2 + $0x80] sm:$0xff] %v19682_v16  ;;  %v16887_v60 = vld [vmem:[%s25349_s4 + $0x594] ss:$8 sps:$4 sm:$0xff]   ;;  %v19741_v44 = vpop.f32.mrf.mxu0 }
 0x123   : > { %3757 = vmatprep.subr.bf16.mxu1 %v16866_v59  ;;  %3080 = vmatprep.subr.bf16.mxu0 %v16875_v22  ;;  %v19697_v59 = vpack.c.bf16 %v806_v47, %v805_v42  ;;  %v808_v40 = vmax.f32 %v792_v9, 0.0  ;;  %v1176_v22 = vpop.f32.mrf.mxu1  ;;  %v16878_v42 = vld [vmem:[%s25349_s4 + $0x274] ss:$8 sps:$4 sm:$0xff]   ;;  %v1203_v47 = vmul.f32 %v19596_v19, %v19074_v51  ;;  %v19737_v19 = vpack.c.bf16 %v810_v18, %v809_v13 }
 0x124   : > { %v16890_v13 = vld [vmem:[%s25349_s4 + $0x254] ss:$8 sps:$4 sm:$0xff]  }
 0x125   : > { %865 = vst [vmem:[#allocation2 + $0x2b8] sm:$0xff] %v19697_v59  ;;  %v19715_v33 = vpack.c.bf16 %v808_v40, %v807_v55  ;;  %v1178_v55 = vpop.f32.mrf.mxu1  ;;  %v1219_v24 = vadd.f32 %v1203_v47, %v19077_v52  ;;  %v16882_v40 = vld [vmem:[%s25349_s4 + $0x260] ss:$8 sps:$4 sm:$0xff]   ;;  %867 = vst [vmem:[#allocation2 + $0x98] sm:$0xff] %v19737_v19 }
 0x126   : > { %3758 = vmatpush2.bf16.msra.mxu1 %v16864_v43  ;;  %3081 = vmatpush2.bf16.msra.mxu0 %v16873_v63  ;;  %v1201_v43 = vmul.f32 %v19540_v41, %v19074_v51  ;;  %v1202_v63 = vmul.f32 %v19576_v26, %v19080_v53  ;;  %v16884_v26 = vld [vmem:[%s25349_s4 + $0x264] ss:$8 sps:$4 sm:$0xff]   ;;  %v16885_v41 = vld [vmem:[%s25349_s4 + $0x590] ss:$8 sps:$4 sm:$0xff]   ;;  %v16891_v47 = vld [vmem:[%s25349_s4 + $0x580] ss:$8 sps:$4 sm:$0xff]  }
 0x127   : > { %3759 = vmatprep.subr.bf16.mxu1 %v16872_v4  ;;  %3082 = vmatprep.subr.bf16.mxu0 %v16881_v62  ;;  %v19725_v4 = vcombine.low %v19441_v50, %v19441_v50  ;;  %v16876_v62 = vld [vmem:[%s25349_s4 + $0x270] ss:$8 sps:$4 sm:$0xff]   ;;  %866 = vst [vmem:[#allocation2 + $0x190] sm:$0xff] %v19715_v33 }
 0x128   : > { %v1217_v50 = vadd.f32 %v1201_v43, %v19077_v52  ;;  %v1218_v9 = vadd.f32 %v1202_v63, %v19084_v56  ;;  %v1205_v43 = vmul.f32 %v19642_v45, %v19074_v51  ;;  %v19760_v63 = vpop.f32.mrf.mxu0  ;;  %v1207_v45 = vmul.f32 %v1176_v22, %v19074_v51  ;;  %v16896_v22 = vld [vmem:[%s25349_s4 + $0x244] ss:$8 sps:$4 sm:$0xff]  }
 0x12a   : > { %3760 = vmatpush2.bf16.msra.mxu1 %v16870_v29  ;;  %3083 = vmatpush2.bf16.msra.mxu0 %v16879_v49  ;;  %v1233_v29 = vmax.f32 %v1217_v50, 0.0  ;;  %v1234_v49 = vmax.f32 %v1218_v9, 0.0  ;;  %v1235_v50 = vmax.f32 %v1219_v24, 0.0  ;;  %v986_v9 = vmul.f32 %v19654_v39, %v19074_v51  ;;  %v16897_v39 = vld [vmem:[%s25349_s4 + $0x170] ss:$8 sps:$4 sm:$0xff]  }
 0x12b   : > { %3875 = vmatprep.subr.bf16.mxu1 %v16878_v42  ;;  %3084 = vmatprep.subr.bf16.mxu0 %v16887_v60  ;;  %v1204_v42 = vmul.f32 %v19618_v12, %v19080_v53  ;;  %v1182_v60 = vpop.f32.mrf.mxu1  ;;  %v16899_v12 = vld [vmem:[%s25349_s4 + $0x174] ss:$8 sps:$4 sm:$0xff]  }
 0x12c   : > { %v16492_v18 = vpack.c.bf16 %v1234_v49, %v1233_v29  ;;  %v1223_v49 = vadd.f32 %v1207_v45, %v19077_v52 }
 0x12d   : > { %3762 = vmatmul.mubr.bf16.vlgmr.msra.gmra.mxu1 %v19725_v4 }
 0x12e   : > { %3771 = vmatprep.mubr.bf16.mxu1 %v19213_v37  ;;  %3876 = vmatpush1.bf16.msra.mxu1 %v16876_v62  ;;  %v1220_v37 = vadd.f32 %v1204_v42, %v19084_v56  ;;  %v1206_v62 = vmul.f32 %v19673_v46, %v19080_v53  ;;  %1298 = vst [vmem:[#allocation2 + $0x150] sm:$0xff] %v16492_v18  ;;  %v1184_v42 = vpop.f32.mrf.mxu1  ;;  %v19784_v18 = vpop.f32.mrf.mxu0 }
 0x12f   : > { %3877 = vmatprep.subr.bf16.mxu1 %v16884_v26  ;;  %3085 = vmatpush2.bf16.msra.mxu0 %v16885_v41  ;;  %v16888_v26 = vld [vmem:[%s25349_s4 + $0x250] ss:$8 sps:$4 sm:$0xff]   ;;  %v1221_v41 = vadd.f32 %v1205_v43, %v19077_v52  ;;  %v1208_v46 = vmul.f32 %v1178_v55, %v19080_v53  ;;  %v16905_v43 = vld [vmem:[%s25349_s4 + $0x164] ss:$8 sps:$4 sm:$0xff]  }
 0x130   : > { %3086 = vmatprep.subr.bf16.mxu0 %v16893_v7  ;;  %v1236_v29 = vmax.f32 %v1220_v37, 0.0  ;;  %v1222_v24 = vadd.f32 %v1206_v62, %v19084_v56  ;;  %v1239_v62 = vmax.f32 %v1223_v49, 0.0  ;;  %v16911_v49 = vld [vmem:[%s25349_s4 + $0x154] ss:$8 sps:$4 sm:$0xff]  }
 0x131   : > { %v1237_v7 = vmax.f32 %v1221_v41, 0.0  ;;  %v1224_v45 = vadd.f32 %v1208_v46, %v19084_v56  ;;  %v19799_v41 = vcombine.low %v19401_v31, %v19421_v5  ;;  %v19813_v5 = vpop.f32.mrf.mxu0 }
 0x132   : > { %3878 = vmatpush1.bf16.msra.mxu1 %v16882_v40  ;;  %v16493_v55 = vpack.c.bf16 %v1236_v29, %v1235_v50  ;;  %v1238_v37 = vmax.f32 %v1222_v24, 0.0  ;;  %v1002_v40 = vadd.f32 %v986_v9, %v19077_v52  ;;  %v19804_v50 = vcombine.high %v19466_v14, %v19508_v6  ;;  %v1186_v9 = vpop.f32.mrf.mxu1 }
 0x133   : > { %3879 = vmatprep.subr.bf16.mxu1 %v16890_v13  ;;  %3087 = vmatpush2.bf16.msra.mxu0 %v16891_v47  ;;  %v987_v13 = vmul.f32 %v19684_v25, %v19080_v53  ;;  %v1209_v47 = vmul.f32 %v1182_v60, %v19074_v51  ;;  %25428 = vst [vmem:[#allocation5_spill] sm:$0xff] %v19799_v41  ;;  %v16894_v25 = vld [vmem:[%s25349_s4 + $0x240] ss:$8 sps:$4 sm:$0xff]   ;;  %v1240_v29 = vmax.f32 %v1224_v45, 0.0  ;;  %v19837_v45 = vpop.f32.mrf.mxu0 }
 0x134   : > { %3802 = vmatprep.subr.bf16.mxu0 %v16899_v12  ;;  %25429 = vst [vmem:[#allocation6_spill] sm:$0xff] %v19804_v50  ;;  %1299 = vst [vmem:[#allocation2 + $0x2f8] sm:$0xff] %v16493_v55  ;;  %v16494_v12 = vpack.c.bf16 %v1238_v37, %v1237_v7  ;;  %v1018_v60 = vmax.f32 %v1002_v40, 0.0  ;;  %v16908_v55 = vld [vmem:[%s25349_s4 + $0x224] ss:$8 sps:$4 sm:$0xff]   ;;  %v1210_v37 = vmul.f32 %v1184_v42, %v19080_v53 }
 0x135   : > { %3772 = vmatmul.mubr.bf16.gmra.mxu1 %v19211_v36  ;;  %v1003_v31 = vadd.f32 %v987_v13, %v19084_v56  ;;  %v988_v36 = vmul.f32 %v19706_v1, %v19074_v51  ;;  %v1225_v24 = vadd.f32 %v1209_v47, %v19077_v52  ;;  %v16900_v1 = vld [vmem:[%s25349_s4 + $0x230] ss:$8 sps:$4 sm:$0xff]   ;;  %v16495_v46 = vpack.c.bf16 %v1240_v29, %v1239_v62 }
 0x136   : > { %3781 = vmatprep.mubr.bf16.mxu1 %v19293_v57  ;;  %3880 = vmatpush1.bf16.msra.mxu1 %v16888_v26  ;;  %v16902_v57 = vld [vmem:[%s25349_s4 + $0x234] ss:$8 sps:$4 sm:$0xff]   ;;  %v16903_v26 = vld [vmem:[%s25349_s4 + $0x160] ss:$8 sps:$4 sm:$0xff]   ;;  %1300 = vst [vmem:[#allocation2 + $0x50] sm:$0xff] %v16494_v12  ;;  %v1226_v62 = vadd.f32 %v1210_v37, %v19084_v56  ;;  %v1211_v47 = vmul.f32 %v1186_v9, %v19074_v51 }
 0x137   : > { %3881 = vmatprep.subr.bf16.mxu1 %v16896_v22  ;;  %3089 = vmatmul.mubr.bf16.vlgmr.msra.gmra.mxu0 %v19799_v41  ;;  %v1019_v22 = vmax.f32 %v1003_v31, 0.0  ;;  %v1004_v7 = vadd.f32 %v988_v36, %v19077_v52  ;;  %1301 = vst [vmem:[#allocation2 + $0x20] sm:$0xff] %v16495_v46  ;;  %v1241_v13 = vmax.f32 %v1225_v24, 0.0  ;;  %v19845_v42 = vcombine.low %v19466_v14, %v19508_v6  ;;  %v16909_v12 = vld [vmem:[%s25349_s4 + $0x150] ss:$8 sps:$4 sm:$0xff]   ;;  %v19874_v24 = vpop.f32.mrf.mxu0 }
 0x138   : > { %3098 = vmatprep.mubr.bf16.mxu0 %v19804_v50  ;;  %3803 = vmatpush1.bf16.msra.mxu0 %v16897_v39  ;;  %v1188_v39 = vpop.f32.mrf.mxu1  ;;  %v1242_v9 = vmax.f32 %v1226_v62, 0.0  ;;  %v1227_v6 = vadd.f32 %v1211_v47, %v19077_v52  ;;  %v990_v29 = vmul.f32 %v19760_v63, %v19074_v51  ;;  %v19866_v36 = vcombine.high %v19487_v17, %v19521_v10 }
 0x139   : > { %3804 = vmatprep.subr.bf16.mxu0 %v16905_v43  ;;  %v19835_v40 = vpack.c.bf16 %v1019_v22, %v1018_v60  ;;  %v989_v43 = vmul.f32 %v19741_v44, %v19080_v53  ;;  %25430 = vst [vmem:[#allocation7_spill] sm:$0xff] %v19845_v42  ;;  %v1020_v60 = vmax.f32 %v1004_v7, 0.0  ;;  %v16917_v44 = vld [vmem:[%s25349_s4 + $0x144] ss:$8 sps:$4 sm:$0xff]   ;;  %v1212_v63 = vmul.f32 %v1188_v39, %v19080_v53  ;;  %v16915_v22 = vld [vmem:[%s25349_s4 + $0x140] ss:$8 sps:$4 sm:$0xff]  }
 0x13a   : > { %3882 = vmatpush1.bf16.msra.mxu1 %v16894_v25  ;;  %v1192_v31 = vpop.f32.mrf.mxu1  ;;  %25431 = vst [vmem:[#allocation8_spill] sm:$0xff] %v19866_v36  ;;  %v1006_v46 = vadd.f32 %v990_v29, %v19077_v52  ;;  %v16923_v7 = vld [vmem:[%s25349_s4 + $0x134] ss:$8 sps:$4 sm:$0xff]   ;;  %v1243_v37 = vmax.f32 %v1227_v6, 0.0  ;;  %v1528_v62 = vshrl.u32 %v19571_v28, 16 }
 0x13b   : > { %3883 = vmatprep.subr.bf16.mxu1 %v16902_v57  ;;  %1081 = vst [vmem:[#allocation2 + $0x180] sm:$0xff] %v19835_v40  ;;  %v25363_v25 = vshrl.u32 %v19835_v40, 16  ;;  %v1005_v14 = vadd.f32 %v989_v43, %v19084_v56  ;;  %v1228_v39 = vadd.f32 %v1212_v63, %v19084_v56  ;;  %v25364_v43 = vshll.u32 %v19571_v28, 16  ;;  %v19907_v63 = vpop.f32.mrf.mxu0 }
 0x13c   : > { %3805 = vmatpush1.bf16.msra.mxu0 %v16903_v26  ;;  %v25362_v26 = vshll.u32 %v19835_v40, 16 }
 0x13d   : > { %3782 = vmatmul.mubr.bf16.gmra.mxu1 %v19306_v30  ;;  %3806 = vmatprep.subr.bf16.mxu0 %v16911_v49  ;;  %v16906_v30 = vld [vmem:[%s25349_s4 + $0x220] ss:$8 sps:$4 sm:$0xff]   ;;  %v19870_v57 = vrot.slane %v25363_v25, 7  ;;  %v1021_v49 = vmax.f32 %v1005_v14, 0.0  ;;  %v16912_v14 = vld [vmem:[%s25349_s4 + $0x210] ss:$8 sps:$4 sm:$0xff]  }
 0x13e   : > { %3791 = vmatprep.mubr.bf16.mxu1 %v19404_v0  ;;  %3884 = vmatpush1.bf16.msra.mxu1 %v16900_v1  ;;  %v16914_v0 = vld [vmem:[%s25349_s4 + $0x214] ss:$8 sps:$4 sm:$0xff]   ;;  %v16496_v1 = vpack.c.bf16 %v1242_v9, %v1241_v13  ;;  %v991_v13 = vmul.f32 %v19784_v18, %v19080_v53  ;;  %v1194_v9 = vpop.f32.mrf.mxu1  ;;  %v1244_v6 = vmax.f32 %v1228_v39, 0.0  ;;  %v1213_v18 = vmul.f32 %v1192_v31, %v19074_v51  ;;  %v16921_v31 = vld [vmem:[%s25349_s4 + $0x130] ss:$8 sps:$4 sm:$0xff]  }
 0x13f   : > { %3885 = vmatprep.subr.bf16.mxu1 %v16908_v55  ;;  %3099 = vmatmul.mubr.bf16.gmra.mxu0 %v19845_v42  ;;  %v19891_v55 = vor.u32 %v25362_v26, %v19870_v57  ;;  %v19898_v47 = vpack.c.bf16 %v1021_v49, %v1020_v60  ;;  %v16920_v60 = vld [vmem:[%s25349_s4 + $0x204] ss:$8 sps:$4 sm:$0xff]   ;;  %v1536_v49 = vshrl.u32 %v19589_v61, 16  ;;  %v19935_v39 = vrot.slane %v1528_v62, 4 }
 0x140   : > { %3108 = vmatprep.mubr.bf16.mxu0 %v19866_v36  ;;  %3807 = vmatpush1.bf16.msra.mxu0 %v16909_v12  ;;  %1302 = vst [vmem:[#allocation2 + $0x300] sm:$0xff] %v16496_v1  ;;  %v1022_v12 = vmax.f32 %v1006_v46, 0.0  ;;  %v1007_v29 = vadd.f32 %v991_v13, %v19084_v56  ;;  %v14334_v1 = vcombine.high %v19492_v2, %v19529_v8  ;;  %v19939_v13 = vrot.slane %v25364_v43, 5 }
 0x141   : > { %25432 = vst [vmem:[#allocation9_spill] sm:$0xff] %v19891_v55  ;;  %3808 = vmatprep.subr.bf16.mxu0 %v16917_v44  ;;  %v992_v44 = vmul.f32 %v19813_v5, %v19074_v51  ;;  %1082 = vst [vmem:[#allocation2 + $0x348] sm:$0xff] %v19898_v47  ;;  %v16918_v5 = vld [vmem:[%s25349_s4 + $0x200] ss:$8 sps:$4 sm:$0xff]   ;;  %v19929_v46 = vadd.f32 %v1213_v18, %v19077_v52  ;;  %v977_v18 = vpop.f32.mrf.mxu0  ;;  %v1214_v25 = vmul.f32 %v1194_v9, %v19080_v53 }
 0x142   : > { %3886 = vmatpush1.bf16.msra.mxu1 %v16906_v30  ;;  %v19914_v30 = vcombine.low %v19487_v17, %v19521_v10  ;;  %v16497_v17 = vpack.c.bf16 %v1244_v6, %v1243_v37  ;;  %v1023_v10 = vmax.f32 %v1007_v29, 0.0  ;;  %v1196_v6 = vpop.f32.mrf.mxu1  ;;  %v993_v43 = vmul.f32 %v19837_v45, %v19080_v53 }
 0x143   : > { %3887 = vmatprep.subr.bf16.mxu1 %v16914_v0  ;;  %v19926_v0 = vrot.slane %v1528_v62, 7  ;;  %v1008_v37 = vadd.f32 %v992_v44, %v19077_v52  ;;  %v16926_v44 = vld [vmem:[%s25349_s4 + $0x2f4] ss:$8 sps:$4 sm:$0xff]   ;;  %v1215_v26 = vmul.f32 %v1196_v6, %v19074_v51  ;;  %v1245_v45 = vmax.f32 %v19929_v46, 0.0 }
 0x144   : > { %25433 = vst [vmem:[#allocation10_spill] sm:$0xff] %v19914_v30  ;;  %3809 = vmatpush1.bf16.msra.mxu0 %v16915_v22  ;;  %v16929_v22 = vld [vmem:[%s25349_s4 + $0x124] ss:$8 sps:$4 sm:$0xff]   ;;  %1303 = vst [vmem:[#allocation2 + $0x2c8] sm:$0xff] %v16497_v17  ;;  %v19948_v62 = vpack.c.bf16 %v1023_v10, %v1022_v12  ;;  %v16924_v12 = vld [vmem:[%s25349_s4 + $0x2f0] ss:$8 sps:$4 sm:$0xff]   ;;  %v1230_v10 = vadd.f32 %v1214_v25, %v19084_v56  ;;  %v1009_v6 = vadd.f32 %v993_v43, %v19084_v56  ;;  %v1198_v46 = vpop.f32.mrf.mxu1 }
 0x145   : > { %3792 = vmatmul.mubr.bf16.gmra.mxu1 %v19414_v35  ;;  %3810 = vmatprep.subr.bf16.mxu0 %v16923_v7  ;;  %v19944_v35 = vrot.slane %v1536_v49, 7  ;;  %v1592_v7 = vshrl.u32 %v19591_v11, 16  ;;  %v1024_v17 = vmax.f32 %v1008_v37, 0.0  ;;  %v1231_v29 = vadd.f32 %v1215_v26, %v19077_v52  ;;  %v979_v26 = vpop.f32.mrf.mxu0 }
 0x146   : > { %3888 = vmatpush1.bf16.msra.mxu1 %v16912_v14  ;;  %3907 = vmatprep.mubr.bf16.mxu1 %v19445_v54  ;;  %v19954_v14 = vrot.slane %v1536_v49, 4  ;;  %v1544_v49 = vshrl.u32 %v19612_v3, 16  ;;  %1083 = vst [vmem:[#allocation2 + $0x2e8] sm:$0xff] %v19948_v62  ;;  %v994_v9 = vmul.f32 %v19874_v24, %v19074_v51  ;;  %v25434_v48 = vshrl.u32 %v19948_v62, 16  ;;  %v16941_v24 = vld [vmem:[%s25349_s4 + $0x104] ss:$8 sps:$4 sm:$0xff]  }
 0x147   : > { %3889 = vmatprep.subr.bf16.mxu1 %v16920_v60  ;;  %3109 = vmatmul.mubr.bf16.gmra.mxu0 %v19914_v30  ;;  %v16927_v60 = vld [vmem:[%s25349_s4 + $0x120] ss:$8 sps:$4 sm:$0xff]   ;;  %v25372_v25 = vshll.u32 %v19948_v62, 16  ;;  %v1216_v43 = vmul.f32 %v1198_v46, %v19080_v53  ;;  %v1025_v30 = vmax.f32 %v1009_v6, 0.0  ;;  %v1247_v36 = vmax.f32 %v1231_v29, 0.0 }
 0x148   : > { %3118 = vmatprep.mubr.bf16.mxu0 %v14334_v1  ;;  %3811 = vmatpush1.bf16.msra.mxu0 %v16921_v31  ;;  %v16932_v1 = vld [vmem:[%s25349_s4 + $0x2e4] ss:$8 sps:$4 sm:$0xff]   ;;  %v16935_v31 = vld [vmem:[%s25349_s4 + $0x114] ss:$8 sps:$4 sm:$0xff]   ;;  %v19987_v55 = vrot.slane %v25434_v48, 7  ;;  %v1010_v42 = vadd.f32 %v994_v9, %v19077_v52  ;;  %v995_v37 = vmul.f32 %v19907_v63, %v19080_v53  ;;  %v1600_v29 = vshrl.u32 %v19616_v34, 16 }
 0x149   : > { %3812 = vmatprep.subr.bf16.mxu0 %v16929_v22  ;;  %v16933_v22 = vld [vmem:[%s25349_s4 + $0x110] ss:$8 sps:$4 sm:$0xff]   ;;  %v16930_v48 = vld [vmem:[%s25349_s4 + $0x2e0] ss:$8 sps:$4 sm:$0xff]   ;;  %v20008_v9 = vpack.c.bf16 %v1025_v30, %v1024_v17  ;;  %v997_v6 = vmul.f32 %v979_v26, %v19080_v53  ;;  %v25435_v63 = vcombine.low %v19492_v2, %v19529_v8  ;;  %v20019_v30 = vrot.slane %v1592_v7, 7 }
 0x14a   : > { %3890 = vmatpush1.bf16.msra.mxu1 %v16918_v5  ;;  %v1246_v5 = vmax.f32 %v1230_v10, 0.0  ;;  %v20001_v46 = vor.u32 %v25372_v25, %v19987_v55  ;;  %v996_v10 = vmul.f32 %v977_v18, %v19074_v51  ;;  %v1026_v50 = vmax.f32 %v1010_v42, 0.0  ;;  %v16938_v51 = vld [vmem:[%s25349_s4 + $0x2d4] ss:$8 sps:$4 sm:$0xff]   ;;  %v16939_v2 = vld [vmem:[%s25349_s4 + $0x100] ss:$8 sps:$4 sm:$0xff]  }
 0x14b   : > { %3891 = vmatprep.subr.bf16.mxu1 %v16926_v44  ;;  %v1232_v44 = vadd.f32 %v1216_v43, %v19084_v56  ;;  %v1011_v25 = vadd.f32 %v995_v37, %v19084_v56  ;;  %v20021_v18 = vrot.slane %v1592_v7, 4  ;;  %v25436_v53 = vshll.u32 %v19591_v11, 16  ;;  %1084 = vst [vmem:[#allocation2 + $0x78] sm:$0xff] %v20008_v9  ;;  %v16947_v8 = vld [vmem:[%s25349_s4 + $0x1f4] ss:$8 sps:$4 sm:$0xff]  }
 0x14c   : > { %3813 = vmatpush1.bf16.msra.mxu0 %v16927_v60  ;;  %v16498_v60 = vpack.c.bf16 %v1246_v5, %v1245_v45  ;;  %v1012_v43 = vadd.f32 %v996_v10, %v19077_v52  ;;  %v16936_v52 = vld [vmem:[%s25349_s4 + $0x2d0] ss:$8 sps:$4 sm:$0xff]   ;;  %v1552_v7 = vshrl.u32 %v19665_v38, 16  ;;  %v25437_v37 = vshll.u32 %v19612_v3, 16 }
 0x14d   : > { %3814 = vmatprep.subr.bf16.mxu0 %v16935_v31  ;;  %v1248_v41 = vmax.f32 %v1232_v44, 0.0  ;;  %v20025_v42 = vrot.slane %v25436_v53, 5  ;;  %v1027_v17 = vmax.f32 %v1011_v25, 0.0  ;;  %v16944_v31 = vld [vmem:[%s25349_s4 + $0x2c4] ss:$8 sps:$4 sm:$0xff]   ;;  %v1603_v5 = vshll.u32 %v19616_v34, 16 }
 0x14e   : > { %3892 = vmatpush2.bf16.msra.mxu1 %v16924_v12  ;;  %v20027_v12 = vrot.slane %v1544_v49, 7  ;;  %1304 = vst [vmem:[#allocation2 + $0x108] sm:$0xff] %v16498_v60  ;;  %v20049_v26 = vrot.slane %v25437_v37, 5  ;;  %v1370_v44 = vld [vmem:[#allocation2 + $0x258] sm:$0x11]  ;;  %v1560_v25 = vshrl.u32 %v19682_v16, 16 }
 0x14f   : > { %3893 = vmatprep.subr.bf16.mxu1 %v16932_v1  ;;  %3119 = vmatmul.mubr.bf16.gmra.mxu0 %v25435_v63  ;;  %v16499_v45 = vpack.c.bf16 %v1248_v41, %v1247_v36  ;;  %v1013_v1 = vadd.f32 %v997_v6, %v19084_v56  ;;  %v16945_v56 = vld [vmem:[%s25349_s4 + $0x1f0] ss:$8 sps:$4 sm:$0xff]   ;;  %v1602_v41 = vrot.slane %v1600_v29, 7  ;;  %v20055_v36 = vrot.slane %v1600_v29, 4  ;;  %v16942_v60 = vld [vmem:[%s25349_s4 + $0x2c0] ss:$8 sps:$4 sm:$0xff]  }
 0x150   : > { %3815 = vmatpush1.bf16.msra.mxu0 %v16933_v22  ;;  %3834 = vmatprep.mubr.bf16.mxu0 %v19445_v54  ;;  %v20045_v22 = vrot.slane %v1544_v49, 4  ;;  %v1028_v54 = vmax.f32 %v1012_v43, 0.0  ;;  %v20058_v49 = vpack.c.bf16 %v1027_v17, %v1026_v50  ;;  %v1563_v10 = vshll.u32 %v19682_v16, 16  ;;  %v16953_v29 = vld [vmem:[%s25349_s4 + $0x1e4] ss:$8 sps:$4 sm:$0xff]  }
 0x151   : > { %3816 = vmatprep.subr.bf16.mxu0 %v16941_v24  ;;  %1305 = vst [vmem:[#allocation2 + $0x48] sm:$0xff] %v16499_v45  ;;  %v20060_v24 = vrot.slane %v1552_v7, 7  ;;  %v20070_v6 = vrot.slane %v1552_v7, 4  ;;  %v20072_v50 = vrot.slane %v1560_v25, 7  ;;  %v1568_v43 = vshrl.u32 %v19697_v59, 16 }
 0x152   : > { %3894 = vmatpush2.bf16.msra.mxu1 %v16930_v48  ;;  %v1029_v48 = vmax.f32 %v1013_v1, 0.0  ;;  %1085 = vst [vmem:[#allocation2 + $0x280] sm:$0xff] %v20058_v49  ;;  %v25373_v16 = vshrl.u32 %v20058_v49, 16  ;;  %v16950_v63 = vld [vmem:[%s25349_s4 + $0x2b4] ss:$8 sps:$4 sm:$0xff]   ;;  %v1371_v53 = vsel %vm19000_vm8, 0, %v1370_v44 }
 0x153   : > { %3895 = vmatprep.subr.bf16.mxu1 %v16938_v51  ;;  %v1425_v7 = vld [vmem:[#allocation2 + $0x1e8] sm:$0x88]  ;;  %v20085_v45 = vrot.slane %v1560_v25, 4  ;;  %1372 = vst [vmem:[#allocation2 + $0x258] sm:$0x11] %v1371_v53  ;;  %v25438_v1 = vshll.u32 %v19589_v61, 16 }
 0x154   : > { %3817 = vmatpush1.bf16.msra.mxu0 %v16939_v2  ;;  %v20080_v51 = vpack.c.bf16 %v1029_v48, %v1028_v54  ;;  %v1534_v2 = vrot.slane %v19926_v0, 4  ;;  %v20089_v17 = vrot.slane %v25373_v16, 7  ;;  %v25439_v54 = vshll.u32 %v19571_v28, 16  ;;  %v16948_v53 = vld [vmem:[%s25349_s4 + $0x2b0] ss:$8 sps:$4 sm:$0xff]  }
 0x155   : > { %3818 = vmatprep.subr.bf16.mxu0 %v16947_v8  ;;  %v25374_v8 = vshll.u32 %v20058_v49, 16  ;;  %v1541_v37 = vor.u32 %v25438_v1, %v19944_v35  ;;  %v20098_v48 = vrot.slane %v1563_v10, 5  ;;  %v1598_v25 = vrot.slane %v20019_v30, 4  ;;  %v16951_v35 = vld [vmem:[%s25349_s4 + $0x1e0] ss:$8 sps:$4 sm:$0xff]  }
 0x156   : > { %3896 = vmatpush2.bf16.msra.mxu1 %v16936_v52  ;;  %v1533_v44 = vor.u32 %v25439_v54, %v19926_v0  ;;  %1086 = vst [vmem:[#allocation2 + $0x10] sm:$0xff] %v20080_v51  ;;  %v16959_v28 = vld [vmem:[%s25349_s4 + $0x1d4] ss:$8 sps:$4 sm:$0xff]   ;;  %v1865_v54 = vrot.slane %v25438_v1, 5  ;;  %v16956_v16 = vld [vmem:[%s25349_s4 + $0x2a4] ss:$8 sps:$4 sm:$0xff]   ;;  %v1899_v1 = vor.u32 %v20025_v42, %v20021_v18 }
 0x157   : > { %3897 = vmatprep.subr.bf16.mxu1 %v16944_v31  ;;  %v20115_v0 = vor.u32 %v25374_v8, %v20089_v17  ;;  %v1542_v31 = vsel %vm19156_vm10, %v1534_v2, %v1541_v37  ;;  %v20126_v52 = vrot.slane %v1568_v43, 7  ;;  %v20128_v34 = vrot.slane %v1568_v43, 4  ;;  %v16957_v61 = vld [vmem:[%s25349_s4 + $0x1d0] ss:$8 sps:$4 sm:$0xff]   ;;  %v1428_v8 = vld [vmem:[#allocation2 + $0x1a0] sm:$0x88] }
 0x158   : > { %3819 = vmatpush2.bf16.msra.mxu0 %v16945_v56  ;;  %v1426_v56 = vsel %vm19015_vm15, 0, %v1425_v7  ;;  %1777 = vst [vmem:[#allocation2 + $0x188] sm:$0xff] %v1542_v31  ;;  %v1863_v2 = vor.u32 %v19939_v13, %v19935_v39  ;;  %v1605_v37 = vor.u32 %v1603_v5, %v1602_v41  ;;  %v1868_v7 = vor.u32 %v19954_v14, %v1865_v54  ;;  %v16954_v18 = vld [vmem:[%s25349_s4 + $0x2a0] ss:$8 sps:$4 sm:$0xff]  }
 0x159   : > { %25440 = vst [vmem:[#allocation11_spill] sm:$0xff] %v20115_v0  ;;  %3820 = vmatprep.subr.bf16.mxu0 %v16953_v29  ;;  %1427 = vst [vmem:[#allocation2 + $0x1e8] sm:$0x88] %v1426_v56  ;;  %v1576_v29 = vshrl.u32 %v19715_v33, 16  ;;  %v20139_v43 = vrot.slane %v1603_v5, 5  ;;  %v25441_v56 = vshll.u32 %v19612_v3, 16  ;;  %v20147_v13 = vor.u32 %v1563_v10, %v20072_v50 }
 0x15a   : > { %3898 = vmatpush2.bf16.msra.mxu1 %v16942_v60  ;;  %v1864_v41 = vrot.slane %v1863_v2, 4  ;;  %v1373_v60 = vld [vmem:[#allocation2 + $0x208] sm:$0x11]  ;;  %v20151_v14 = vsel %vm19156_vm10, %v1598_v25, %v1605_v37  ;;  %v1616_v42 = vshrl.u32 %v19898_v47, 16  ;;  %v16962_v25 = vld [vmem:[%s25349_s4 + $0x294] ss:$8 sps:$4 sm:$0xff]  }
 0x15b   : > { %3899 = vmatprep.subr.bf16.mxu1 %v16950_v63  ;;  %v20144_v39 = vor.u32 %v25441_v56, %v20027_v12  ;;  %v16965_v3 = vld [vmem:[%s25349_s4 + $0x1c4] ss:$8 sps:$4 sm:$0xff]   ;;  %v1374_v10 = vsel %vm19000_vm8, 0, %v1373_v60  ;;  %1793 = vst [vmem:[#allocation2 + $0x100] sm:$0xff] %v20151_v14  ;;  %v1869_v37 = vrot.slane %v1868_v7, 4  ;;  %v1429_v56 = vsel %vm19015_vm15, 0, %v1428_v8 }
 0x15c   : > { %3821 = vmatpush2.bf16.msra.mxu0 %v16951_v35  ;;  %v1774_v35 = vld [vmem:[#allocation2 + $0x258] sm:$0xff]  ;;  %v20171_v2 = vsel %vm19349_vm0, %v1864_v41, %v1865_v54  ;;  %1375 = vst [vmem:[#allocation2 + $0x208] sm:$0x11] %v1374_v10  ;;  %v1900_v60 = vrot.slane %v1899_v1, 4  ;;  %v20178_v63 = vrot.slane %v1576_v29, 7  ;;  %v20181_v0 = vrot.slane %v1576_v29, 4 }
 0x15d   : > { %3822 = vmatprep.subr.bf16.mxu0 %v16959_v28  ;;  %v16963_v28 = vld [vmem:[%s25349_s4 + $0x1c0] ss:$8 sps:$4 sm:$0xff]   ;;  %v1775_v54 = vsel %vm19122_vm9, %v1533_v44, %v1774_v35  ;;  %2021 = vst [vmem:[#allocation2 + $0x2f0] sm:$0xff] %v20171_v2  ;;  %1430 = vst [vmem:[#allocation2 + $0x1a0] sm:$0x88] %v1429_v56  ;;  %v25444_v1 = vshll.u32 %v19665_v38, 16 }
 0x15e   : > { %3900 = vmatpush2.bf16.msra.mxu1 %v16948_v53  ;;  %v16971_v8 = vld [vmem:[%s25349_s4 + $0x1b4] ss:$8 sps:$4 sm:$0xff]   ;;  %1776 = vst [vmem:[#allocation2 + $0x258] sm:$0xff] %v1775_v54  ;;  %v20189_v53 = vcombine.high %v1775_v54, %v1542_v31  ;;  %v20191_v7 = vcombine.low %v1775_v54, %v1542_v31  ;;  %v1902_v44 = vsel %vm19349_vm0, %v1900_v60, %v20139_v43  ;;  %v25445_v10 = vshrl.u32 %v19835_v40, 16 }
 0x15f   : > { %3901 = vmatprep.subr.bf16.mxu1 %v16956_v16  ;;  %v1874_v29 = vrot.slane %v25444_v1, 5  ;;  %v16960_v16 = vld [vmem:[%s25349_s4 + $0x290] ss:$8 sps:$4 sm:$0xff]   ;;  %v25446_v31 = vshll.u32 %v19835_v40, 16  ;;  %v20210_v54 = vrot.slane %v1616_v42, 4  ;;  %2037 = vst [vmem:[#allocation2 + $0xa0] sm:$0xff] %v1902_v44 }
 0x160   : > { %25442 = vst [vmem:[#allocation12_spill] sm:$0xff] %v20189_v53  ;;  %25443 = vst [vmem:[#allocation13_spill] sm:$0xff] %v20191_v7  ;;  %3823 = vmatpush2.bf16.msra.mxu0 %v16957_v61  ;;  %v20204_v35 = vrot.slane %v25445_v10, 4  ;;  %v2022_v1 = vld [vmem:[#allocation2 + $0x1e8] sm:$0xff]  ;;  %v1872_v10 = vor.u32 %v20049_v26, %v20045_v22  ;;  %v1618_v44 = vrot.slane %v1616_v42, 7  ;;  %v1632_v5 = vshrl.u32 %v20008_v9, 16 }
 0x161   : > { %v20208_v56 = vrot.slane %v25446_v31, 5  ;;  %3824 = vmatprep.subr.bf16.mxu0 %v16965_v3  ;;  %v16968_v61 = vld [vmem:[%s25349_s4 + $0x284] ss:$8 sps:$4 sm:$0xff]   ;;  %v20217_v60 = vsel %vm19382_vm1, %v1869_v37, %v2022_v1  ;;  %v1877_v40 = vor.u32 %v20070_v6, %v1874_v29  ;;  %v25447_v31 = vshll.u32 %v19898_v47, 16  ;;  %v16969_v3 = vld [vmem:[%s25349_s4 + $0x1b0] ss:$8 sps:$4 sm:$0xff]  }
 0x162   : > { %3902 = vmatpush2.bf16.msra.mxu1 %v16954_v18  ;;  %2024 = vst [vmem:[#allocation2 + $0x1e8] sm:$0xff] %v20217_v60  ;;  %v1550_v26 = vrot.slane %v20027_v12, 4  ;;  %v25448_v6 = vshll.u32 %v19665_v38, 16  ;;  %v1376_v1 = vld [vmem:[#allocation2 + $0xc0] sm:$0x11]  ;;  %v1635_v37 = vshll.u32 %v20008_v9, 16 }
 0x163   : > { %v20224_v41 = vrot.slane %v25447_v31, 5  ;;  %3903 = vmatprep.subr.bf16.mxu1 %v16962_v25  ;;  %v1873_v31 = vrot.slane %v1872_v10, 4  ;;  %v1878_v42 = vrot.slane %v1877_v40, 4  ;;  %v16977_v7 = vld [vmem:[%s25349_s4 + $0x1a4] ss:$8 sps:$4 sm:$0xff]   ;;  %v1377_v25 = vsel %vm19000_vm8, 0, %v1376_v1 }
 0x164   : > { %v1557_v18 = vor.u32 %v25448_v6, %v20060_v24  ;;  %3825 = vmatpush2.bf16.msra.mxu0 %v16963_v28  ;;  %v1778_v53 = vld [vmem:[#allocation2 + $0x208] sm:$0xff]  ;;  %v1908_v12 = vor.u32 %v20208_v56, %v20204_v35  ;;  %1378 = vst [vmem:[#allocation2 + $0xc0] sm:$0x11] %v1377_v25  ;;  %v2026_v40 = vld [vmem:[#allocation2 + $0x1a0] sm:$0xff]  ;;  %v1614_v35 = vrot.slane %v19870_v57, 4  ;;  %v1634_v22 = vrot.slane %v1632_v5, 7 }
 0x165   : > { %3826 = vmatprep.subr.bf16.mxu0 %v16971_v8  ;;  %v20256_v28 = vsel %vm19122_vm9, %v20144_v39, %v1778_v53  ;;  %v1875_v10 = vsel %vm19349_vm0, %v1873_v31, %v1874_v29  ;;  %v1431_v6 = vld [vmem:[#allocation2 + $0x1a8] sm:$0x88]  ;;  %v16974_v56 = vld [vmem:[%s25349_s4 + $0x774] ss:$8 sps:$4 sm:$0xff]   ;;  %v2027_v57 = vsel %vm19382_vm1, %v1878_v42, %v2026_v40  ;;  %v25452_v31 = vshll.u32 %v19898_v47, 16 }
 0x166   : > { %v20251_v24 = vsel %vm19156_vm10, %v1550_v26, %v1557_v18  ;;  %3904 = vmatpush2.bf16.msra.mxu1 %v16960_v16  ;;  %v16966_v8 = vld [vmem:[%s25349_s4 + $0x280] ss:$8 sps:$4 sm:$0xff]   ;;  %1780 = vst [vmem:[#allocation2 + $0x208] sm:$0xff] %v20256_v28  ;;  %2025 = vst [vmem:[#allocation2 + $0x298] sm:$0xff] %v1875_v10  ;;  %v1432_v29 = vsel %vm19015_vm15, 0, %v1431_v6  ;;  %v20277_v16 = vcombine.low %v1875_v10, %v2027_v57  ;;  %v25451_v18 = vshll.u32 %v19697_v59, 16 }
 0x167   : > { %1781 = vst [vmem:[#allocation2 + $0x170] sm:$0xff] %v20251_v24  ;;  %3905 = vmatprep.subr.bf16.mxu1 %v16968_v61  ;;  %2028 = vst [vmem:[#allocation2 + $0x1a0] sm:$0xff] %v2027_v57  ;;  %v20279_v26 = vcombine.high %v1875_v10, %v2027_v57  ;;  %v1621_v25 = vor.u32 %v25452_v31, %v1618_v44  ;;  %v16972_v42 = vld [vmem:[%s25349_s4 + $0x770] ss:$8 sps:$4 sm:$0xff]   ;;  %v16975_v61 = vld [vmem:[%s25349_s4 + $0x1a0] ss:$8 sps:$4 sm:$0xff]   ;;  %v1881_v31 = vor.u32 %v20098_v48, %v20085_v45 }
 0x168   : > { %25449 = vst [vmem:[#allocation14_spill] sm:$0xff] %v20277_v16  ;;  %1433 = vst [vmem:[#allocation2 + $0x1a8] sm:$0x88] %v1432_v29  ;;  %v1883_v1 = vrot.slane %v25451_v18, 5  ;;  %3827 = vmatpush2.bf16.msra.mxu0 %v16969_v3  ;;  %v25453_v40 = vshll.u32 %v19715_v33, 16  ;;  %v25454_v6 = vshrl.u32 %v19948_v62, 16 }
 0x169   : > { %25450 = vst [vmem:[#allocation15_spill] sm:$0xff] %v20279_v26  ;;  %v25455_v47 = vshll.u32 %v19948_v62, 16  ;;  %v20303_v3 = vrot.slane %v1632_v5, 4  ;;  %3828 = vmatprep.subr.bf16.mxu0 %v16977_v7  ;;  %v16980_v29 = vld [vmem:[%s25349_s4 + $0x764] ss:$8 sps:$4 sm:$0xff]   ;;  %v1622_v62 = vsel %vm19156_vm10, %v1614_v35, %v1621_v25  ;;  %v25456_v39 = vshrl.u32 %v19737_v19, 16 }
 0x16a   : > { %v20293_v10 = vrot.slane %v25453_v40, 5  ;;  %v20297_v57 = vrot.slane %v25454_v6, 4  ;;  %v16983_v18 = vld [vmem:[%s25349_s4 + $0x194] ss:$8 sps:$4 sm:$0xff]   ;;  %v1886_v40 = vor.u32 %v20128_v34, %v1883_v1  ;;  %v1909_v6 = vrot.slane %v1908_v12, 4  ;;  %3906 = vmatpush2.bf16.msra.mxu1 %v16966_v8  ;;  %1797 = vst [vmem:[#allocation2 + $0x220] sm:$0xff] %v1622_v62 }
 0x16b   : > { %v20301_v44 = vrot.slane %v25455_v47, 5  ;;  %v20316_v47 = vld [vmem:[#allocation2 + $0x98] sm:$0xff]  ;;  %v20321_v53 = vrot.slane %v25456_v39, 4  ;;  %v20325_v45 = vrot.slane %v1635_v37, 5  ;;  %4743 = vmatprep.subr.bf16.mxu1 %v16974_v56  ;;  %v1566_v34 = vrot.slane %v20072_v50, 4  ;;  %v1782_v39 = vld [vmem:[#allocation2 + $0xc0] sm:$0xff] }
 0x16c   : > { %v1587_v7 = vshll.u32 %v20316_v47, 16  ;;  %v25457_v48 = vshll.u32 %v19697_v59, 16  ;;  %v1882_v35 = vrot.slane %v1881_v31, 4  ;;  %v1887_v8 = vrot.slane %v1886_v40, 4  ;;  %v1379_v25 = vld [vmem:[#allocation2 + $0x118] sm:$0x11]  ;;  %3829 = vmatpush2.bf16.msra.mxu0 %v16975_v61 }
 0x16d   : > { %v16981_v5 = vld [vmem:[%s25349_s4 + $0x190] ss:$8 sps:$4 sm:$0xff]   ;;  %v1380_v62 = vsel %vm19000_vm8, 0, %v1379_v25  ;;  %v1911_v50 = vsel %vm19349_vm0, %v1909_v6, %v20224_v41  ;;  %v1917_v59 = vor.u32 %v20301_v44, %v20297_v57  ;;  %3908 = vmatmul.mubr.bf16.vlgmr.msra.gmra.mxu1 %v19725_v4  ;;  %3830 = vmatprep.subr.bf16.mxu0 %v16983_v18  ;;  %v16989_v56 = vld [vmem:[%s25349_s4 + $0x184] ss:$8 sps:$4 sm:$0xff]   ;;  %v20354_v31 = vsel %vm19122_vm9, %v20147_v13, %v1782_v39 }
 0x16e   : > { %v1573_v12 = vor.u32 %v25457_v48, %v20126_v52  ;;  %v1434_v38 = vld [vmem:[#allocation2 + $0x250] sm:$0x88]  ;;  %v1884_v57 = vsel %vm19349_vm0, %v1882_v35, %v1883_v1  ;;  %1381 = vst [vmem:[#allocation2 + $0x118] sm:$0x11] %v1380_v62  ;;  %2041 = vst [vmem:[#allocation2 + $0x1d0] sm:$0xff] %v1911_v50  ;;  %3917 = vmatprep.mubr.bf16.mxu1 %v19533_v27  ;;  %4744 = vmatpush1.bf16.msra.mxu1 %v16972_v42  ;;  %v1630_v27 = vrot.slane %v19987_v55, 4 }
 0x16f   : > { %v1435_v44 = vsel %vm19015_vm15, 0, %v1434_v38  ;;  %v16978_v18 = vld [vmem:[%s25349_s4 + $0x760] ss:$8 sps:$4 sm:$0xff]   ;;  %1784 = vst [vmem:[#allocation2 + $0xc0] sm:$0xff] %v20354_v31  ;;  %2029 = vst [vmem:[#allocation2 + $0x210] sm:$0xff] %v1884_v57  ;;  %v1637_v42 = vor.u32 %v1635_v37, %v1634_v22  ;;  %4745 = vmatprep.subr.bf16.mxu1 %v16980_v29  ;;  %v25459_v6 = vshrl.u32 %v19737_v19, 16  ;;  %v1890_v25 = vor.u32 %v20293_v10, %v20181_v0 }
 0x170   : > { %v20349_v61 = vsel %vm19156_vm10, %v1566_v34, %v1573_v12  ;;  %v2030_v38 = vld [vmem:[#allocation2 + $0x1a8] sm:$0xff]  ;;  %1436 = vst [vmem:[#allocation2 + $0x250] sm:$0x88] %v1435_v44  ;;  %v16986_v40 = vld [vmem:[%s25349_s4 + $0x754] ss:$8 sps:$4 sm:$0xff]   ;;  %v1892_v12 = vrot.slane %v1587_v7, 5  ;;  %3831 = vmatpush2.bf16.msra.mxu0 %v16981_v5 }
 0x171   : > { %25458 = vst [vmem:[#allocation16_spill] sm:$0xff] %v20349_v61  ;;  %1785 = vst [vmem:[#allocation2 + $0x128] sm:$0xff] %v20349_v61  ;;  %v1586_v34 = vrot.slane %v25459_v6, 7  ;;  %v2031_v48 = vsel %vm19382_vm1, %v1887_v8, %v2030_v38  ;;  %v16984_v55 = vld [vmem:[%s25349_s4 + $0x750] ss:$8 sps:$4 sm:$0xff]   ;;  %v1638_v22 = vsel %vm19156_vm10, %v1630_v27, %v1637_v42  ;;  %3832 = vmatprep.subr.bf16.mxu0 %v16989_v56  ;;  %v25462_v35 = vshll.u32 %v19715_v33, 16 }
 0x172   : > { %v16987_v9 = vld [vmem:[%s25349_s4 + $0x180] ss:$8 sps:$4 sm:$0xff]   ;;  %2032 = vst [vmem:[#allocation2 + $0x1a8] sm:$0xff] %v2031_v48  ;;  %v20388_v37 = vcombine.low %v1884_v57, %v2031_v48  ;;  %v20390_v19 = vcombine.high %v1884_v57, %v2031_v48  ;;  %v16995_v29 = vld [vmem:[%s25349_s4 + $0x674] ss:$8 sps:$4 sm:$0xff]   ;;  %v1895_v5 = vor.u32 %v20321_v53, %v1892_v12  ;;  %1801 = vst [vmem:[#allocation2 + $0x350] sm:$0xff] %v1638_v22  ;;  %4746 = vmatpush1.bf16.msra.mxu1 %v16978_v18 }
 0x173   : > { %v1581_v8 = vor.u32 %v25462_v35, %v20178_v63  ;;  %v1918_v39 = vrot.slane %v1917_v59, 4  ;;  %4747 = vmatprep.subr.bf16.mxu1 %v16986_v40  ;;  %v16992_v62 = vld [vmem:[%s25349_s4 + $0x744] ss:$8 sps:$4 sm:$0xff]   ;;  %v1582_v56 = vrot.slane %v20178_v63, 4  ;;  %v1589_v33 = vor.u32 %v1587_v7, %v1586_v34  ;;  %v16993_v53 = vld [vmem:[%s25349_s4 + $0x670] ss:$8 sps:$4 sm:$0xff]  }
 0x174   : > { %25460 = vst [vmem:[#allocation17_spill] sm:$0xff] %v20388_v37  ;;  %25461 = vst [vmem:[#allocation18_spill] sm:$0xff] %v20390_v19  ;;  %v2079_v50 = vld [vmem:[#allocation2 + $0x2a8] sm:$0xff]  ;;  %v1891_v57 = vrot.slane %v1890_v25, 4  ;;  %3833 = vmatpush2.bf16.msra.mxu0 %v16987_v9  ;;  %v1896_v44 = vrot.slane %v1895_v5, 4  ;;  %v25463_v18 = vld [vmem:[#allocation5_spill] sm:$0xff] }
 0x175   : > { %v1920_v0 = vsel %vm19349_vm0, %v1918_v39, %v20325_v45  ;;  %v2076_v10 = vld [vmem:[#allocation2 + $0x228] sm:$0xff]  ;;  %v1786_v59 = vld [vmem:[#allocation2 + $0x118] sm:$0xff]  ;;  %3918 = vmatmul.mubr.bf16.gmra.mxu1 %v25463_v18  ;;  %4670 = vmatprep.subr.bf16.mxu0 %v16995_v29  ;;  %v1590_v47 = vsel %vm19156_vm10, %v1582_v56, %v1589_v33  ;;  %v25469_v56 = vld [vmem:[#allocation7_spill] sm:$0xff] }
 0x176   : > { %2045 = vst [vmem:[#allocation2 + $0x138] sm:$0xff] %v1920_v0  ;;  %v17001_v63 = vld [vmem:[%s25349_s4 + $0x664] ss:$8 sps:$4 sm:$0xff]   ;;  %v1787_v7 = vsel %vm19122_vm9, %v1581_v8, %v1786_v59  ;;  %v1893_v38 = vsel %vm19349_vm0, %v1891_v57, %v1892_v12  ;;  %v25464_v27 = vld [vmem:[#allocation6_spill] sm:$0xff]  ;;  %4748 = vmatpush1.bf16.msra.mxu1 %v16984_v55  ;;  %v16990_v42 = vld [vmem:[%s25349_s4 + $0x740] ss:$8 sps:$4 sm:$0xff]   ;;  %v14440_v40 = vcombine.high %v2076_v10, %v2079_v50 }
 0x177   : > { %3927 = vmatprep.mubr.bf16.mxu1 %v25464_v27  ;;  %1788 = vst [vmem:[#allocation2 + $0x118] sm:$0xff] %v1787_v7  ;;  %1789 = vst [vmem:[#allocation2 + $0xc8] sm:$0xff] %v1590_v47  ;;  %v20429_v6 = vcombine.low %v1787_v7, %v1590_v47  ;;  %v20431_v34 = vcombine.high %v1787_v7, %v1590_v47  ;;  %v2034_v48 = vld [vmem:[#allocation2 + $0x250] sm:$0xff]  ;;  %4749 = vmatprep.subr.bf16.mxu1 %v16992_v62  ;;  %v16999_v22 = vld [vmem:[%s25349_s4 + $0x660] ss:$8 sps:$4 sm:$0xff]  }
 0x178   : > { %2033 = vst [vmem:[#allocation2 + $0x90] sm:$0xff] %v1893_v38  ;;  %3835 = vmatmul.mubr.bf16.vlgmr.msra.gmra.mxu0 %v19725_v4  ;;  %v16998_v12 = vld [vmem:[%s25349_s4 + $0x734] ss:$8 sps:$4 sm:$0xff]   ;;  %v2035_v55 = vsel %vm19382_vm1, %v1896_v44, %v2034_v48  ;;  %v16996_v9 = vld [vmem:[%s25349_s4 + $0x730] ss:$8 sps:$4 sm:$0xff]   ;;  %v14439_v33 = vcombine.low %v2076_v10, %v2079_v50  ;;  %v25470_v0 = vld [vmem:[#allocation8_spill] sm:$0xff] }
 0x179   : > { %25465 = vst [vmem:[#allocation5_spill] sm:$0xff] %v20429_v6  ;;  %25466 = vst [vmem:[#allocation6_spill] sm:$0xff] %v20431_v34  ;;  %3844 = vmatprep.mubr.bf16.mxu0 %v14440_v40  ;;  %4671 = vmatpush1.bf16.msra.mxu0 %v16993_v53  ;;  %v20445_v29 = vcombine.low %v1893_v38, %v2035_v55  ;;  %v20447_v4 = vcombine.high %v1893_v38, %v2035_v55  ;;  %v17004_v35 = vld [vmem:[%s25349_s4 + $0x724] ss:$8 sps:$4 sm:$0xff]   ;;  %v17007_v8 = vld [vmem:[%s25349_s4 + $0x654] ss:$8 sps:$4 sm:$0xff]  }
 0x17a   : > { %2036 = vst [vmem:[#allocation2 + $0x250] sm:$0xff] %v2035_v55  ;;  %4672 = vmatprep.subr.bf16.mxu0 %v17001_v63  ;;  %4750 = vmatpush1.bf16.msra.mxu1 %v16990_v42  ;;  %v17005_v25 = vld [vmem:[%s25349_s4 + $0x650] ss:$8 sps:$4 sm:$0xff]   ;;  %v17016_v5 = vld [vmem:[%s25349_s4 + $0x644] ss:$8 sps:$4 sm:$0xff]   ;;  %v1648_v63 = vshrl.u32 %v20080_v51, 16 }
 0x17b   : > { %25467 = vst [vmem:[#allocation19_spill] sm:$0xff] %v20445_v29  ;;  %25468 = vst [vmem:[#allocation20_spill] sm:$0xff] %v20447_v4  ;;  %4751 = vmatprep.subr.bf16.mxu1 %v16998_v12  ;;  %v17002_v39 = vld [vmem:[%s25349_s4 + $0x720] ss:$8 sps:$4 sm:$0xff]   ;;  %v17008_v62 = vld [vmem:[#allocation2 + $0x6c] ss:$168 sps:$4 sm:$0xff]  }
 0x17c   : > { %v17012_v57 = vld [vmem:[%s25349_s4 + $0x714] ss:$8 sps:$4 sm:$0xff]   ;;  %v17014_v53 = vld [vmem:[%s25349_s4 + $0x640] ss:$8 sps:$4 sm:$0xff]   ;;  %v17010_v50 = vld [vmem:[%s25349_s4 + $0x710] ss:$8 sps:$4 sm:$0xff]  }
 0x17d   : > { %4673 = vmatpush1.bf16.msra.mxu0 %v16999_v22  ;;  %3928 = vmatmul.mubr.bf16.gmra.mxu1 %v25469_v56  ;;  %v17022_v59 = vld [vmem:[%s25349_s4 + $0x634] ss:$8 sps:$4 sm:$0xff]   ;;  %v17019_v10 = vld [vmem:[%s25349_s4 + $0x704] ss:$8 sps:$4 sm:$0xff]   ;;  %v20482_v47 = vld [vmem:[#allocation2 + $0x68] ss:$168 sps:$4 sm:$0xff]  }
 0x17e   : > { %4674 = vmatprep.subr.bf16.mxu0 %v17007_v8  ;;  %3937 = vmatprep.mubr.bf16.mxu1 %v25470_v0  ;;  %v2088_v44 = vld [vmem:[#allocation2 + $0x1c0] sm:$0xff]  ;;  %v17020_v7 = vld [vmem:[%s25349_s4 + $0x630] ss:$8 sps:$4 sm:$0xff]   ;;  %v1650_v42 = vrot.slane %v1648_v63, 7  ;;  %v1651_v12 = vshll.u32 %v20080_v51, 16  ;;  %v1646_v8 = vrot.slane %v20089_v17, 4 }
 0x17f   : > { %4752 = vmatpush1.bf16.msra.mxu1 %v16996_v9  ;;  %v2091_v18 = vld [vmem:[#allocation2 + $0xe0] sm:$0xff]  ;;  %v25471_v40 = vld [vmem:[#allocation10_spill] sm:$0xff]  ;;  %v1382_v55 = vld [vmem:[#allocation2 + $0x70] sm:$0x11]  ;;  %v25472_v56 = vshll.u32 %v19591_v11, 16 }
 0x180   : > { %4753 = vmatprep.subr.bf16.mxu1 %v17004_v35  ;;  %3845 = vmatmul.mubr.bf16.gmra.mxu0 %v14439_v33  ;;  %v17028_v38 = vld [vmem:[%s25349_s4 + $0x624] ss:$8 sps:$4 sm:$0xff]   ;;  %v17017_v27 = vld [vmem:[%s25349_s4 + $0x700] ss:$8 sps:$4 sm:$0xff]   ;;  %v20496_v48 = vcombine.high %v2088_v44, %v2091_v18  ;;  %v17025_v9 = vld [vmem:[%s25349_s4 + $0x7f4] ss:$8 sps:$4 sm:$0xff]  }
 0x181   : > { %3854 = vmatprep.mubr.bf16.mxu0 %v17008_v62  ;;  %4675 = vmatpush1.bf16.msra.mxu0 %v17005_v25  ;;  %v17026_v22 = vld [vmem:[%s25349_s4 + $0x620] ss:$8 sps:$4 sm:$0xff]   ;;  %v1383_v35 = vsel %vm19000_vm8, 0, %v1382_v55  ;;  %v1653_v25 = vor.u32 %v1651_v12, %v1650_v42  ;;  %v17031_v17 = vld [vmem:[%s25349_s4 + $0x7e4] ss:$8 sps:$4 sm:$0xff]   ;;  %v1597_v33 = vor.u32 %v25472_v56, %v20019_v30  ;;  %v25481_v52 = vld [vmem:[#allocation9_spill] sm:$0xff] }
 0x182   : > { %4676 = vmatprep.subr.bf16.mxu0 %v17016_v5  ;;  %1384 = vst [vmem:[#allocation2 + $0x70] sm:$0x11] %v1383_v35  ;;  %v17034_v5 = vld [vmem:[%s25349_s4 + $0x614] ss:$8 sps:$4 sm:$0xff]   ;;  %v17032_v0 = vld [vmem:[%s25349_s4 + $0x610] ss:$8 sps:$4 sm:$0xff]  }
 0x183   : > { %4754 = vmatpush1.bf16.msra.mxu1 %v17002_v39  ;;  %v17023_v39 = vld [vmem:[%s25349_s4 + $0x7f0] ss:$8 sps:$4 sm:$0xff]   ;;  %v17040_v11 = vld [vmem:[%s25349_s4 + $0x7d4] ss:$8 sps:$4 sm:$0xff]   ;;  %v17055_v55 = vld [vmem:[%s25349_s4 + $0x6e4] ss:$8 sps:$4 sm:$0xff]  }
 0x184   : > { %4755 = vmatprep.subr.bf16.mxu1 %v17012_v57  ;;  %v17029_v57 = vld [vmem:[%s25349_s4 + $0x7e0] ss:$8 sps:$4 sm:$0xff]  }
 0x185   : > { %4677 = vmatpush1.bf16.msra.mxu0 %v17014_v53  ;;  %3938 = vmatmul.mubr.bf16.gmra.mxu1 %v25471_v40  ;;  %v17037_v53 = vld [vmem:[#allocation2 + $0x274] ss:$-560 sps:$4 sm:$0xff]   ;;  %v17047_v40 = vld [vmem:[%s25349_s4 + $0x6f0] ss:$8 sps:$4 sm:$0xff]   ;;  %v17053_v35 = vld [vmem:[%s25349_s4 + $0x6e0] ss:$8 sps:$4 sm:$0xff]  }
 0x186   : > { %4678 = vmatprep.subr.bf16.mxu0 %v17022_v59  ;;  %4775 = vmatprep.mubr.bf16.mxu1 %v17008_v62  ;;  %v1654_v62 = vsel %vm19156_vm10, %v1646_v8, %v1653_v25  ;;  %v17043_v59 = vld [vmem:[%s25349_s4 + $0x604] ss:$8 sps:$4 sm:$0xff]   ;;  %v17061_v8 = vld [vmem:[%s25349_s4 + $0x6d4] ss:$8 sps:$4 sm:$0xff]   ;;  %v17065_v51 = vld [vmem:[%s25349_s4 + $0x6c0] ss:$8 sps:$4 sm:$0xff]  }
 0x187   : > { %4756 = vmatpush1.bf16.msra.mxu1 %v17010_v50  ;;  %1805 = vst [vmem:[#allocation2 + $0x2b0] sm:$0xff] %v1654_v62  ;;  %v20535_v50 = vcombine.low %v2088_v44, %v2091_v18  ;;  %v17041_v44 = vld [vmem:[%s25349_s4 + $0x600] ss:$8 sps:$4 sm:$0xff]   ;;  %v17049_v18 = vld [vmem:[%s25349_s4 + $0x6f4] ss:$8 sps:$4 sm:$0xff]   ;;  %v25476_v62 = vshll.u32 %v20058_v49, 16 }
 0x188   : > { %4757 = vmatprep.subr.bf16.mxu1 %v17019_v10  ;;  %3855 = vmatmul.mubr.bf16.gmra.mxu0 %v20482_v47  ;;  %v17038_v10 = vld [vmem:[%s25349_s4 + $0x7d0] ss:$8 sps:$4 sm:$0xff]  }
 0x189   : > { %3864 = vmatprep.mubr.bf16.mxu0 %v20496_v48  ;;  %4679 = vmatpush1.bf16.msra.mxu0 %v17020_v7  ;;  %v1790_v30 = vld [vmem:[#allocation2 + $0x70] sm:$0xff] }
 0x18a   : > { %4680 = vmatprep.subr.bf16.mxu0 %v17028_v38  ;;  %v1791_v7 = vsel %vm19122_vm9, %v1597_v33, %v1790_v30  ;;  %v17046_v38 = vld [vmem:[%s25349_s4 + $0x7c4] ss:$8 sps:$4 sm:$0xff]   ;;  %v1437_v25 = vld [vmem:[#allocation2 + $0x310] sm:$0x88]  ;;  %v25477_v30 = vor.u32 %v20055_v36, %v20139_v43 }
 0x18b   : > { %4758 = vmatpush1.bf16.msra.mxu1 %v17017_v27  ;;  %1792 = vst [vmem:[#allocation2 + $0x70] sm:$0xff] %v1791_v7  ;;  %v20556_v27 = vcombine.low %v1791_v7, %v20151_v14  ;;  %v20559_v42 = vcombine.high %v1791_v7, %v20151_v14  ;;  %v17052_v14 = vld [vmem:[%s25349_s4 + $0x7b4] ss:$8 sps:$4 sm:$0xff]   ;;  %v1438_v56 = vsel %vm19015_vm15, 0, %v1437_v25  ;;  %v17058_v33 = vld [vmem:[%s25349_s4 + $0x7a4] ss:$8 sps:$4 sm:$0xff]  }
 0x18c   : > { %4759 = vmatprep.subr.bf16.mxu1 %v17025_v9  ;;  %v17044_v9 = vld [vmem:[%s25349_s4 + $0x7c0] ss:$8 sps:$4 sm:$0xff]   ;;  %1439 = vst [vmem:[#allocation2 + $0x310] sm:$0x88] %v1438_v56  ;;  %v17070_v36 = vld [vmem:[%s25349_s4 + $0x784] ss:$8 sps:$4 sm:$0xff]  }
 0x18d   : > { %4681 = vmatpush1.bf16.msra.mxu0 %v17026_v22  ;;  %25473 = vst [vmem:[#allocation7_spill] sm:$0xff] %v20556_v27  ;;  %25474 = vst [vmem:[#allocation8_spill] sm:$0xff] %v20559_v42  ;;  %v17050_v22 = vld [vmem:[%s25349_s4 + $0x7b0] ss:$8 sps:$4 sm:$0xff]   ;;  %v17082_v25 = vld [vmem:[%s25349_s4 + $0x684] ss:$8 sps:$4 sm:$0xff]  }
 0x18e   : > { %4682 = vmatprep.subr.bf16.mxu0 %v17034_v5  ;;  %v25475_v5 = vshrl.u32 %v20058_v49, 16  ;;  %v17059_v49 = vld [vmem:[%s25349_s4 + $0x6d0] ss:$8 sps:$4 sm:$0xff]   ;;  %v17080_v56 = vld [vmem:[%s25349_s4 + $0x680] ss:$8 sps:$4 sm:$0xff]  }
 0x18f   : > { %4760 = vmatpush2.bf16.msra.mxu1 %v17023_v39 }
 0x190   : > { %4761 = vmatprep.subr.bf16.mxu1 %v17031_v17  ;;  %3865 = vmatmul.mubr.bf16.gmra.mxu0 %v20535_v50  ;;  %v1924_v39 = vrot.slane %v25475_v5, 4  ;;  %v1925_v17 = vrot.slane %v25476_v62, 5  ;;  %v3962_v62 = vld [vmem:[#allocation2 + $0x320] sm:$0xff] }
 0x191   : > { %4683 = vmatpush1.bf16.msra.mxu0 %v17032_v0  ;;  %4702 = vmatprep.mubr.bf16.mxu0 %v17037_v53  ;;  %v17056_v0 = vld [vmem:[%s25349_s4 + $0x7a0] ss:$8 sps:$4 sm:$0xff]   ;;  %v17067_v53 = vld [vmem:[%s25349_s4 + $0x6c4] ss:$8 sps:$4 sm:$0xff]  }
 0x192   : > { %4684 = vmatprep.subr.bf16.mxu0 %v17043_v59  ;;  %v20609_v59 = vrot.slane %v1651_v12, 5  ;;  %v17073_v12 = vld [vmem:[%s25349_s4 + $0x6b4] ss:$8 sps:$4 sm:$0xff]  }
 0x193   : > { %4762 = vmatpush2.bf16.msra.mxu1 %v17029_v57  ;;  %v20593_v57 = vrot.slane %v1648_v63, 4  ;;  %v17064_v63 = vld [vmem:[%s25349_s4 + $0x794] ss:$8 sps:$4 sm:$0xff]  }
 0x194   : > { %4763 = vmatprep.subr.bf16.mxu1 %v17040_v11  ;;  %v1926_v11 = vor.u32 %v1925_v17, %v1924_v39  ;;  %v2038_v43 = vld [vmem:[#allocation2 + $0x310] sm:$0xff]  ;;  %v3965_v17 = vld [vmem:[#allocation2] sm:$0xff] }
 0x195   : > { %4685 = vmatpush1.bf16.msra.mxu0 %v17041_v44 }
 0x196   : > { %4686 = vmatprep.subr.bf16.mxu0 %v17049_v18  ;;  %v17062_v18 = vld [vmem:[%s25349_s4 + $0x790] ss:$8 sps:$4 sm:$0xff]   ;;  %v1927_v7 = vrot.slane %v1926_v11, 4 }
 0x197   : > { %4764 = vmatpush2.bf16.msra.mxu1 %v17038_v10  ;;  %v1905_v10 = vrot.slane %v25477_v30, 4 }
 0x198   : > { %4765 = vmatprep.subr.bf16.mxu1 %v17046_v38  ;;  %v1929_v38 = vsel %vm19349_vm0, %v1927_v7, %v20609_v59  ;;  %v1385_v7 = vld [vmem:[#allocation2 + $0x148] sm:$0x11] }
 0x199   : > { %4687 = vmatpush2.bf16.msra.mxu0 %v17047_v40  ;;  %v2039_v40 = vsel %vm19382_vm1, %v1905_v10, %v2038_v43  ;;  %2049 = vst [vmem:[#allocation2 + $0x60] sm:$0xff] %v1929_v38 }
 0x19a   : > { %4688 = vmatprep.subr.bf16.mxu0 %v17055_v55  ;;  %v17071_v55 = vld [vmem:[%s25349_s4 + $0x6b0] ss:$8 sps:$4 sm:$0xff]   ;;  %2040 = vst [vmem:[#allocation2 + $0x310] sm:$0xff] %v2039_v40  ;;  %v3961_v40 = vld [vmem:[#allocation2 + $0x160] sm:$0xff] }
 0x19b   : > { %4766 = vmatpush2.bf16.msra.mxu1 %v17044_v9  ;;  %v17076_v9 = vld [vmem:[%s25349_s4 + $0x6a4] ss:$8 sps:$4 sm:$0xff]  }
 0x19c   : > { %4767 = vmatprep.subr.bf16.mxu1 %v17052_v14  ;;  %v17068_v14 = vld [vmem:[%s25349_s4 + $0x780] ss:$8 sps:$4 sm:$0xff]  }
 0x19d   : > { %4689 = vmatpush2.bf16.msra.mxu0 %v17053_v35  ;;  %v17079_v35 = vld [vmem:[%s25349_s4 + $0x694] ss:$8 sps:$4 sm:$0xff]  }
 0x19e   : > { %4690 = vmatprep.subr.bf16.mxu0 %v17061_v8  ;;  %v17077_v8 = vld [vmem:[%s25349_s4 + $0x690] ss:$8 sps:$4 sm:$0xff]  }
 0x19f   : > { %4768 = vmatpush2.bf16.msra.mxu1 %v17050_v22  ;;  %v17074_v22 = vld [vmem:[%s25349_s4 + $0x6a0] ss:$8 sps:$4 sm:$0xff]  }
 0x1a0   : > { %4769 = vmatprep.subr.bf16.mxu1 %v17058_v33  ;;  %v17085_v33 = vld [vmem:[%s25349_s4 + $0x874] ss:$8 sps:$4 sm:$0xff]  }
 0x1a1   : > { %4691 = vmatpush2.bf16.msra.mxu0 %v17059_v49 }
 0x1a2   : > { %4692 = vmatprep.subr.bf16.mxu0 %v17067_v53  ;;  %v14662_v53 = vcombine.high %v3962_v62, %v3965_v17 }
 0x1a3   : > { %4770 = vmatpush2.bf16.msra.mxu1 %v17056_v0  ;;  %v17035_v0 = vld [vmem:[#allocation2 + $0x270] ss:$-560 sps:$4 sm:$0xff]  }
 0x1a4   : > { %4771 = vmatprep.subr.bf16.mxu1 %v17064_v63  ;;  %v17086_v63 = vld [vmem:[#allocation2 + $0x19c] ss:$-272 sps:$4 sm:$0xff]  }
 0x1a5   : > { %4693 = vmatpush2.bf16.msra.mxu0 %v17065_v51  ;;  %v17090_v51 = vld [vmem:[%s25349_s4 + $0x860] ss:$8 sps:$4 sm:$0xff]  }
 0x1a6   : > { %4694 = vmatprep.subr.bf16.mxu0 %v17073_v12  ;;  %v17096_v12 = vld [vmem:[%s25349_s4 + $0x854] ss:$8 sps:$4 sm:$0xff]  }
 0x1a7   : > { %4772 = vmatpush2.bf16.msra.mxu1 %v17062_v18 }
 0x1a8   : > { %4773 = vmatprep.subr.bf16.mxu1 %v17070_v36  ;;  %v20681_v36 = vld [vmem:[#allocation2 + $0x150] sm:$0xff] }
 0x1a9   : > { %4695 = vmatpush2.bf16.msra.mxu0 %v17071_v55  ;;  %v1656_v43 = vshrl.u32 %v20681_v36, 16 }
 0x1aa   : > { %4696 = vmatprep.subr.bf16.mxu0 %v17076_v9  ;;  %v1386_v9 = vsel %vm19000_vm8, 0, %v1385_v7 }
 0x1ab   : > { %4774 = vmatpush2.bf16.msra.mxu1 %v17068_v14  ;;  %v3017_v5 = vpop.f32.mrf.mxu1  ;;  %v25377_v14 = vshll.u32 %v20681_v36, 16  ;;  %1387 = vst [vmem:[#allocation2 + $0x148] sm:$0x11] %v1386_v9 }
 0x1ad   : > { %4697 = vmatpush2.bf16.msra.mxu0 %v17074_v22  ;;  %v3019_v39 = vpop.f32.mrf.mxu1  ;;  %v18596_v22 = vld [vmem:[#allocation2 + $0x2f8] sm:$0xff] }
 0x1ae   : > { %4776 = vmatmul.mubr.bf16.vlgmr.msra.gmra.mxu1 %v20482_v47  ;;  %4698 = vmatprep.subr.bf16.mxu0 %v17079_v35  ;;  %v17083_v47 = vld [vmem:[%s25349_s4 + $0x870] ss:$8 sps:$4 sm:$0xff]   ;;  %v1664_v35 = vshrl.u32 %v18596_v22, 16 }
 0x1af   : > { %4785 = vmatprep.mubr.bf16.mxu1 %v20496_v48  ;;  %v3021_v49 = vpop.f32.mrf.mxu1  ;;  %v17092_v48 = vld [vmem:[%s25349_s4 + $0x864] ss:$8 sps:$4 sm:$0xff]  }
 0x1b0   : > { %v20703_v7 = vrot.slane %v1664_v35, 4 }
 0x1b1   : > { %4699 = vmatpush2.bf16.msra.mxu0 %v17077_v8  ;;  %v20671_v10 = vpop.f32.mrf.mxu1 }
 0x1b2   : > { %4700 = vmatprep.subr.bf16.mxu0 %v17082_v25  ;;  %25478 = vst [vmem:[#allocation10_spill] sm:$0xff] %v20671_v10  ;;  %v1388_v25 = vld [vmem:[#allocation2 + $0xd0] sm:$0x11] }
 0x1b5   : > { %4701 = vmatpush2.bf16.msra.mxu0 %v17080_v56  ;;  %v2944_v11 = vpop.f32.mrf.mxu0 }
 0x1b6   : > { %4786 = vmatmul.mubr.bf16.gmra.mxu1 %v20535_v50  ;;  %4816 = vmatprep.subr.bf16.mxu0 %v17085_v33  ;;  %v20669_v30 = vadd.f32 %v3017_v5, %v2944_v11  ;;  %v14661_v5 = vcombine.low %v3962_v62, %v3965_v17  ;;  %v17093_v33 = vld [vmem:[#allocation2 + $0x198] ss:$-272 sps:$4 sm:$0xff]   ;;  %v17100_v62 = vld [vmem:[%s25349_s4 + $0x844] ss:$8 sps:$4 sm:$0xff]  }
 0x1b7   : > { %4795 = vmatprep.mubr.bf16.mxu1 %v14662_v53  ;;  %v2946_v18 = vpop.f32.mrf.mxu0  ;;  %v1667_v53 = vshll.u32 %v18596_v22, 16  ;;  %v17103_v22 = vld [vmem:[%s25349_s4 + $0x834] ss:$8 sps:$4 sm:$0xff]  }
 0x1b8   : > { %4703 = vmatmul.mubr.bf16.vlgmr.msra.gmra.mxu0 %v17035_v0  ;;  %v20679_v50 = vadd.f32 %v3019_v39, %v2946_v18  ;;  %v3027_v55 = vpop.f32.mrf.mxu1  ;;  %v20689_v39 = vld [vmem:[#allocation2 + $0x1bc] ss:$-136 sps:$4 sm:$0xff]   ;;  %v3964_v0 = vld [vmem:[#allocation2 + $0x2e0] sm:$0xff]  ;;  %v1934_v18 = vrot.slane %v25377_v14, 5  ;;  %v1794_v14 = vld [vmem:[#allocation2 + $0x148] sm:$0xff] }
 0x1b9   : > { %4712 = vmatprep.mubr.bf16.mxu0 %v17086_v63  ;;  %4817 = vmatpush1.bf16.msra.mxu0 %v17083_v47  ;;  %v2948_v38 = vpop.f32.mrf.mxu0  ;;  %v1933_v63 = vrot.slane %v1656_v43, 4 }
 0x1ba   : > { %4818 = vmatprep.subr.bf16.mxu0 %v17092_v48  ;;  %v20687_v8 = vadd.f32 %v3021_v49, %v2948_v38  ;;  %v3029_v47 = vpop.f32.mrf.mxu1  ;;  %v1389_v48 = vsel %vm19000_vm8, 0, %v1388_v25  ;;  %v17094_v49 = vld [vmem:[%s25349_s4 + $0x850] ss:$8 sps:$4 sm:$0xff]  }
 0x1bb   : > { %v20691_v56 = vpop.f32.mrf.mxu0  ;;  %1390 = vst [vmem:[#allocation2 + $0xd0] sm:$0x11] %v1389_v48  ;;  %v1666_v48 = vrot.slane %v1664_v35, 7  ;;  %v1935_v27 = vor.u32 %v1934_v18, %v1933_v63  ;;  %v20744_v18 = vcombine.low %v3961_v40, %v3964_v0 }
 0x1bc   : > { %25479 = vst [vmem:[#allocation21_spill] sm:$0xff] %v20691_v56  ;;  %v3031_v11 = vpop.f32.mrf.mxu1 }
 0x1bd   : > { %4819 = vmatpush1.bf16.msra.mxu0 %v17090_v51  ;;  %v2954_v17 = vpop.f32.mrf.mxu0  ;;  %v20706_v51 = vcombine.high %v3961_v40, %v3964_v0  ;;  %v1669_v63 = vor.u32 %v1667_v53, %v1666_v48  ;;  %v1936_v42 = vrot.slane %v1935_v27, 4  ;;  %v17109_v40 = vld [vmem:[%s25349_s4 + $0x814] ss:$8 sps:$4 sm:$0xff]   ;;  %v25484_v27 = vld [vmem:[#allocation12_spill] sm:$0xff]  ;;  %v1440_v48 = vld [vmem:[#allocation2 + $0x140] sm:$0x88] }
 0x1be   : > { %4796 = vmatmul.mubr.bf16.gmra.mxu1 %v14661_v5  ;;  %4820 = vmatprep.subr.bf16.mxu0 %v17096_v12  ;;  %v20708_v38 = vadd.f32 %v3027_v55, %v2954_v17  ;;  %v17098_v12 = vld [vmem:[%s25349_s4 + $0x840] ss:$8 sps:$4 sm:$0xff]   ;;  %v20716_v25 = vpop.f32.mrf.mxu1  ;;  %v20718_v5 = vrot.slane %v1656_v43, 7  ;;  %v17097_v17 = vld [vmem:[#allocation2 + $0x1b8] ss:$-136 sps:$4 sm:$0xff]   ;;  %v1795_v43 = vsel %vm19122_vm9, %v25481_v52, %v1794_v14 }
 0x1bf   : > { %4805 = vmatprep.mubr.bf16.mxu1 %v20689_v39  ;;  %v2956_v9 = vpop.f32.mrf.mxu0  ;;  %25480 = vst [vmem:[#allocation22_spill] sm:$0xff] %v20716_v25  ;;  %1796 = vst [vmem:[#allocation2 + $0x148] sm:$0xff] %v1795_v43  ;;  %v20765_v43 = vld [vmem:[#allocation2 + $0xb0] sm:$0xff] }
 0x1c0   : > { %4713 = vmatmul.mubr.bf16.gmra.mxu0 %v17093_v33  ;;  %v20721_v55 = vadd.f32 %v3029_v47, %v2956_v9  ;;  %v20723_v33 = vrot.slane %v1667_v53, 5  ;;  %v3037_v1 = vpop.f32.mrf.mxu1  ;;  %v17101_v47 = vld [vmem:[%s25349_s4 + $0x830] ss:$8 sps:$4 sm:$0xff]   ;;  %v1662_v14 = vrot.slane %v20718_v5, 4 }
 0x1c1   : > { %4722 = vmatprep.mubr.bf16.mxu0 %v20706_v51  ;;  %4821 = vmatpush1.bf16.msra.mxu0 %v17094_v49  ;;  %v2958_v13 = vpop.f32.mrf.mxu0 }
 0x1c2   : > { %4822 = vmatprep.subr.bf16.mxu0 %v17100_v62  ;;  %v20725_v44 = vadd.f32 %v3031_v11, %v2958_v13  ;;  %v17106_v62 = vld [vmem:[%s25349_s4 + $0x824] ss:$8 sps:$4 sm:$0xff]   ;;  %v3039_v13 = vpop.f32.mrf.mxu1  ;;  %v1798_v11 = vld [vmem:[#allocation2 + $0xd0] sm:$0xff] }
 0x1c3   : > { %v20735_v49 = vpop.f32.mrf.mxu0  ;;  %v1799_v52 = vsel %vm19122_vm9, %v20001_v46, %v1798_v11  ;;  %v17104_v46 = vld [vmem:[%s25349_s4 + $0x820] ss:$8 sps:$4 sm:$0xff]   ;;  %v20767_v11 = vld [vmem:[#allocation2 + $0x30] sm:$0xff] }
 0x1c4   : > { %25482 = vst [vmem:[#allocation9_spill] sm:$0xff] %v20735_v49  ;;  %v3041_v35 = vpop.f32.mrf.mxu1  ;;  %1800 = vst [vmem:[#allocation2 + $0xd0] sm:$0xff] %v1799_v52 }
 0x1c5   : > { %4823 = vmatpush1.bf16.msra.mxu0 %v17098_v12  ;;  %v2964_v9 = vpop.f32.mrf.mxu0  ;;  %v1670_v12 = vsel %vm19156_vm10, %v1662_v14, %v1669_v63  ;;  %v1441_v14 = vsel %vm19015_vm15, 0, %v1440_v48  ;;  %v1443_v63 = vld [vmem:[#allocation2 + $0xe8] sm:$0x88] }
 0x1c6   : > { %4806 = vmatmul.mubr.bf16.gmra.mxu1 %v17097_v17  ;;  %4824 = vmatprep.subr.bf16.mxu0 %v17103_v22  ;;  %v20746_v29 = vadd.f32 %v3037_v1, %v2964_v9  ;;  %v20757_v0 = vpop.f32.mrf.mxu1  ;;  %1809 = vst [vmem:[#allocation2 + $0xf8] sm:$0xff] %v1670_v12  ;;  %v1938_v1 = vsel %vm19349_vm0, %v1936_v42, %v20723_v33  ;;  %1442 = vst [vmem:[#allocation2 + $0x140] sm:$0x88] %v1441_v14  ;;  %v1444_v42 = vsel %vm19015_vm15, 0, %v1443_v63  ;;  %v25487_v63 = vld [vmem:[#allocation13_spill] sm:$0xff] }
 0x1c7   : > { %v2966_v53 = vpop.f32.mrf.mxu0  ;;  %25483 = vst [vmem:[#allocation23_spill] sm:$0xff] %v20757_v0  ;;  %2053 = vst [vmem:[#allocation2 + $0xb8] sm:$0xff] %v1938_v1  ;;  %v17110_v1 = vld [vmem:[%s25349_s4 + $0x800] ss:$8 sps:$4 sm:$0xff]  }
 0x1c8   : > { %4723 = vmatmul.mubr.bf16.gmra.mxu0 %v20744_v18  ;;  %v20763_v22 = vadd.f32 %v3039_v13, %v2966_v53  ;;  %v3047_v52 = vpop.f32.mrf.mxu1  ;;  %v17112_v13 = vld [vmem:[%s25349_s4 + $0x804] ss:$8 sps:$4 sm:$0xff]   ;;  %1445 = vst [vmem:[#allocation2 + $0xe8] sm:$0x88] %v1444_v42  ;;  %v14652_v53 = vcombine.high %v20765_v43, %v20767_v11 }
 0x1c9   : > { %4732 = vmatprep.mubr.bf16.mxu0 %v25484_v27  ;;  %4825 = vmatpush1.bf16.msra.mxu0 %v17101_v47  ;;  %v2968_v17 = vpop.f32.mrf.mxu0  ;;  %v17107_v47 = vld [vmem:[%s25349_s4 + $0x810] ss:$8 sps:$4 sm:$0xff]  }
 0x1ca   : > { %4826 = vmatprep.subr.bf16.mxu0 %v17106_v62  ;;  %v20771_v9 = vadd.f32 %v3041_v35, %v2968_v17  ;;  %v3049_v35 = vpop.f32.mrf.mxu1  ;;  %v25486_v17 = vor.u32 %v20210_v54, %v20224_v41  ;;  %v17113_v54 = vld [vmem:[%s25349_s4 + $0x8f0] ss:$8 sps:$4 sm:$0xff]  }
 0x1cb   : > { %v20778_v62 = vpop.f32.mrf.mxu0 }
 0x1cc   : > { %25485 = vst [vmem:[#allocation12_spill] sm:$0xff] %v20778_v62  ;;  %v1914_v14 = vrot.slane %v25486_v17, 4 }
 0x1cd   : > { %4827 = vmatpush1.bf16.msra.mxu0 %v17104_v46  ;;  %v2974_v12 = vpop.f32.mrf.mxu0  ;;  %v17115_v46 = vld [vmem:[%s25349_s4 + $0x8f4] ss:$8 sps:$4 sm:$0xff]   ;;  %v2042_v41 = vld [vmem:[#allocation2 + $0x140] sm:$0xff] }
 0x1ce   : > { %4828 = vmatprep.subr.bf16.mxu0 %v17109_v40  ;;  %v20788_v48 = vadd.f32 %v3047_v52, %v2974_v12  ;;  %v25488_v40 = vor.u32 %v20303_v3, %v20325_v45  ;;  %v3051_v12 = vpop.f32.mrf.mxu1  ;;  %v2043_v34 = vsel %vm19382_vm1, %v1914_v14, %v2042_v41  ;;  %v17118_v3 = vld [vmem:[%s25349_s4 + $0x8e4] ss:$8 sps:$4 sm:$0xff]   ;;  %v20838_v14 = vld [vmem:[#allocation2 + $0x50] sm:$0xff] }
 0x1cf   : > { %v2976_v42 = vpop.f32.mrf.mxu0  ;;  %v2046_v37 = vld [vmem:[#allocation2 + $0xe8] sm:$0xff]  ;;  %2044 = vst [vmem:[#allocation2 + $0x140] sm:$0xff] %v2043_v34  ;;  %v17119_v34 = vld [vmem:[%s25349_s4 + $0x8d0] ss:$8 sps:$4 sm:$0xff]  }
 0x1d0   : > { %4733 = vmatmul.mubr.bf16.gmra.mxu0 %v25487_v63  ;;  %v1923_v4 = vrot.slane %v25488_v40, 4  ;;  %v20800_v6 = vadd.f32 %v3049_v35, %v2976_v42  ;;  %v17127_v35 = vld [vmem:[%s25349_s4 + $0x8b4] ss:$8 sps:$4 sm:$0xff]   ;;  %v25386_v42 = vshrl.u32 %v20838_v14, 16 }
 0x1d1   : > { %4829 = vmatpush1.bf16.msra.mxu0 %v17107_v47  ;;  %4848 = vmatprep.mubr.bf16.mxu0 %v14652_v53  ;;  %v2978_v52 = vpop.f32.mrf.mxu0  ;;  %v17116_v47 = vld [vmem:[%s25349_s4 + $0x8e0] ss:$8 sps:$4 sm:$0xff]   ;;  %v17125_v53 = vld [vmem:[%s25349_s4 + $0x8b0] ss:$8 sps:$4 sm:$0xff]  }
 0x1d2   : > { %4830 = vmatprep.subr.bf16.mxu0 %v17112_v13  ;;  %v20805_v17 = vadd.f32 %v3051_v12, %v2978_v52  ;;  %v2047_v45 = vsel %vm19382_vm1, %v1923_v4, %v2046_v37  ;;  %v17121_v13 = vld [vmem:[%s25349_s4 + $0x8d4] ss:$8 sps:$4 sm:$0xff]   ;;  %v17124_v37 = vld [vmem:[%s25349_s4 + $0x8c4] ss:$8 sps:$4 sm:$0xff]   ;;  %v17122_v4 = vld [vmem:[%s25349_s4 + $0x8c0] ss:$8 sps:$4 sm:$0xff]  }
 0x1d3   : > { %2048 = vst [vmem:[#allocation2 + $0xe8] sm:$0xff] %v2047_v45  ;;  %v17128_v52 = vld [vmem:[%s25349_s4 + $0x8a0] ss:$8 sps:$4 sm:$0xff]   ;;  %v20849_v12 = vrot.slane %v25386_v42, 7  ;;  %v20857_v45 = vpop.f32.mrf.mxu1 }
 0x1d4   : > { %25489 = vst [vmem:[#allocation13_spill] sm:$0xff] %v20857_v45  ;;  %v17139_v45 = vld [vmem:[%s25349_s4 + $0x474] ss:$8 sps:$4 sm:$0xff]  }
 0x1d5   : > { %4831 = vmatpush1.bf16.msra.mxu0 %v17110_v1  ;;  %v17130_v1 = vld [vmem:[%s25349_s4 + $0x8a4] ss:$8 sps:$4 sm:$0xff]  }
 0x1d6   : > { %4832 = vmatprep.subr.bf16.mxu0 %v17115_v46  ;;  %v20841_v46 = vld [vmem:[#allocation2 + $0x20] sm:$0xff] }
 0x1d7   : > { %v25385_v40 = vshrl.u32 %v20841_v46, 16 }
 0x1d9   : > { %4833 = vmatpush2.bf16.msra.mxu0 %v17113_v54  ;;  %v1682_v41 = vrot.slane %v25385_v40, 7  ;;  %v17133_v54 = vld [vmem:[%s25349_s4 + $0x894] ss:$8 sps:$4 sm:$0xff]  }
 0x1da   : > { %4834 = vmatprep.subr.bf16.mxu0 %v17118_v3  ;;  %v25388_v3 = vshll.u32 %v20841_v46, 16 }
 0x1dd   : > { %4835 = vmatpush2.bf16.msra.mxu0 %v17116_v47  ;;  %v17131_v47 = vld [vmem:[%s25349_s4 + $0x890] ss:$8 sps:$4 sm:$0xff]  }
 0x1de   : > { %4836 = vmatprep.subr.bf16.mxu0 %v17121_v13 }
 0x1e1   : > { %4837 = vmatpush2.bf16.msra.mxu0 %v17119_v34  ;;  %v17136_v34 = vld [vmem:[%s25349_s4 + $0x884] ss:$8 sps:$4 sm:$0xff]  }
 0x1e2   : > { %4838 = vmatprep.subr.bf16.mxu0 %v17124_v37  ;;  %v1678_v37 = vrot.slane %v20849_v12, 4 }
 0x1e5   : > { %4839 = vmatpush2.bf16.msra.mxu0 %v17122_v4  ;;  %v1685_v4 = vor.u32 %v25388_v3, %v1682_v41 }
 0x1e6   : > { %4840 = vmatprep.subr.bf16.mxu0 %v17127_v35  ;;  %v1391_v35 = vld [vmem:[#allocation2 + $0x230] sm:$0x11] }
 0x1e7   : > { %v1392_v19 = vsel %vm19000_vm8, 0, %v1391_v35  ;;  %v1686_v41 = vsel %vm19156_vm10, %v1678_v37, %v1685_v4  ;;  %v17140_v37 = vld [vmem:[#allocation2 + $0x1cc] ss:$376 sps:$4 sm:$0xff]   ;;  %v20901_v4 = vpop.f32.mrf.mxu0 }
 0x1e8   : > { %1393 = vst [vmem:[#allocation2 + $0x230] sm:$0x11] %v1392_v19  ;;  %1813 = vst [vmem:[#allocation2 + $0x240] sm:$0xff] %v1686_v41  ;;  %v17137_v19 = vld [vmem:[%s25349_s4 + $0x470] ss:$8 sps:$4 sm:$0xff]  }
 0x1e9   : > { %4841 = vmatpush2.bf16.msra.mxu0 %v17125_v53  ;;  %v20868_v53 = vld [vmem:[#allocation2 + $0x300] sm:$0xff]  ;;  %25491 = vst [vmem:[#allocation25_spill] sm:$0xff] %v20901_v4 }
 0x1ea   : > { %4842 = vmatprep.subr.bf16.mxu0 %v17130_v1  ;;  %v25392_v1 = vshrl.u32 %v20868_v53, 16 }
 0x1ec   : > { %v20883_v3 = vrot.slane %v25392_v1, 7 }
 0x1ed   : > { %4843 = vmatpush2.bf16.msra.mxu0 %v17128_v52  ;;  %v3763_v13 = vpop.f32.mrf.mxu1  ;;  %v20871_v52 = vld [vmem:[#allocation2 + $0x2c8] sm:$0xff] }
 0x1ee   : > { %4844 = vmatprep.subr.bf16.mxu0 %v17133_v54  ;;  %v25391_v40 = vshrl.u32 %v20871_v52, 16  ;;  %v17134_v54 = vld [vmem:[%s25349_s4 + $0x880] ss:$8 sps:$4 sm:$0xff]   ;;  %v25393_v35 = vshll.u32 %v20871_v52, 16 }
 0x1ef   : > { %v3765_v42 = vpop.f32.mrf.mxu1 }
 0x1f0   : > { %v1698_v16 = vrot.slane %v25391_v40, 7  ;;  %v1694_v40 = vrot.slane %v20883_v3, 4 }
 0x1f1   : > { %4845 = vmatpush2.bf16.msra.mxu0 %v17131_v47  ;;  %v3767_v26 = vpop.f32.mrf.mxu1  ;;  %v17144_v47 = vld [vmem:[%s25349_s4 + $0x464] ss:$8 sps:$4 sm:$0xff]  }
 0x1f2   : > { %4846 = vmatprep.subr.bf16.mxu0 %v17136_v34  ;;  %v14651_v34 = vcombine.low %v20765_v43, %v20767_v11  ;;  %v1701_v1 = vor.u32 %v25393_v35, %v1698_v16  ;;  %v17148_v43 = vld [vmem:[%s25349_s4 + $0x454] ss:$8 sps:$4 sm:$0xff]   ;;  %v25492_v16 = vld [vmem:[#allocation11_spill] sm:$0xff]  ;;  %v25394_v35 = vshll.u32 %v20838_v14, 16 }
 0x1f3   : > { %v20891_v0 = vpop.f32.mrf.mxu1  ;;  %v1802_v11 = vld [vmem:[#allocation2 + $0x230] sm:$0xff] }
 0x1f4   : > { %25490 = vst [vmem:[#allocation24_spill] sm:$0xff] %v20891_v0 }
 0x1f5   : > { %4847 = vmatpush2.bf16.msra.mxu0 %v17134_v54  ;;  %v3773_v41 = vpop.f32.mrf.mxu1  ;;  %v17142_v54 = vld [vmem:[%s25349_s4 + $0x460] ss:$8 sps:$4 sm:$0xff]  }
 0x1f6   : > { %6072 = vmatprep.subr.bf16.mxu0 %v17139_v45  ;;  %v1702_v45 = vsel %vm19156_vm10, %v1694_v40, %v1701_v1  ;;  %v17146_v1 = vld [vmem:[%s25349_s4 + $0x450] ss:$8 sps:$4 sm:$0xff]  }
 0x1f7   : > { %v3775_v0 = vpop.f32.mrf.mxu1  ;;  %v3090_v62 = vpop.f32.mrf.mxu0  ;;  %1817 = vst [vmem:[#allocation2 + $0x1b0] sm:$0xff] %v1702_v45 }
 0x1f8   : > { %4849 = vmatmul.mubr.bf16.vlgmr.msra.gmra.mxu0 %v14651_v34  ;;  %v3091_v4 = vadd.f32 %v3090_v62, %v20669_v30  ;;  %v1803_v34 = vsel %vm19122_vm9, %v25492_v16, %v1802_v11  ;;  %v17145_v62 = vld [vmem:[#allocation2 + $0x1c8] ss:$376 sps:$4 sm:$0xff]   ;;  %v25496_v16 = vshrl.u32 %v20841_v46, 16 }
 0x1f9   : > { %4858 = vmatprep.mubr.bf16.mxu0 %v17140_v37  ;;  %6073 = vmatpush1.bf16.msra.mxu0 %v17137_v19  ;;  %v3777_v25 = vpop.f32.mrf.mxu1  ;;  %v3092_v49 = vpop.f32.mrf.mxu0  ;;  %1804 = vst [vmem:[#allocation2 + $0x230] sm:$0xff] %v1803_v34  ;;  %v17153_v19 = vld [vmem:[%s25349_s4 + $0x444] ss:$8 sps:$4 sm:$0xff]  }
 0x1fa   : > { %6074 = vmatprep.subr.bf16.mxu0 %v17144_v47  ;;  %v3093_v10 = vadd.f32 %v3092_v49, %v20679_v50  ;;  %v20920_v56 = vadd.f32 %v3763_v13, %v3091_v4  ;;  %v17149_v47 = vld [vmem:[#allocation2 + $0xdc] ss:$592 sps:$4 sm:$0xff]   ;;  %v25494_v50 = vshrl.u32 %v20838_v14, 16  ;;  %v1943_v13 = vrot.slane %v25394_v35, 5 }
 0x1fb   : > { %v20922_v40 = vpop.f32.mrf.mxu1  ;;  %v3094_v30 = vpop.f32.mrf.mxu0  ;;  %v20941_v34 = vrot.slane %v25496_v16, 4  ;;  %v17157_v16 = vld [vmem:[%s25349_s4 + $0x434] ss:$8 sps:$4 sm:$0xff]  }
 0x1fc   : > { %25493 = vst [vmem:[#allocation11_spill] sm:$0xff] %v20922_v40  ;;  %v3095_v37 = vadd.f32 %v3094_v30, %v20687_v8  ;;  %v20931_v11 = vadd.f32 %v3765_v42, %v3093_v10  ;;  %v1942_v49 = vrot.slane %v25494_v50, 4  ;;  %v1446_v8 = vld [vmem:[#allocation2 + $0x1f8] sm:$0x88]  ;;  %v17151_v10 = vld [vmem:[%s25349_s4 + $0x440] ss:$8 sps:$4 sm:$0xff]  }
 0x1fd   : > { %6075 = vmatpush1.bf16.msra.mxu0 %v17142_v54  ;;  %v3783_v4 = vpop.f32.mrf.mxu1  ;;  %v20937_v45 = vpop.f32.mrf.mxu0  ;;  %v1447_v42 = vsel %vm19015_vm15, 0, %v1446_v8 }
 0x1fe   : > { %25495 = vst [vmem:[#allocation26_spill] sm:$0xff] %v20937_v45  ;;  %6076 = vmatprep.subr.bf16.mxu0 %v17148_v43  ;;  %v20943_v40 = vadd.f32 %v3767_v26, %v3095_v37  ;;  %1448 = vst [vmem:[#allocation2 + $0x1f8] sm:$0x88] %v1447_v42  ;;  %v25497_v43 = vshll.u32 %v20841_v46, 16  ;;  %v1691_v26 = vshll.u32 %v20868_v53, 16  ;;  %v1944_v35 = vor.u32 %v1943_v13, %v1942_v49 }
 0x1ff   : > { %v3100_v54 = vpop.f32.mrf.mxu0  ;;  %v3785_v37 = vpop.f32.mrf.mxu1 }
 0x200   : > { %4859 = vmatmul.mubr.bf16.gmra.mxu0 %v17145_v62  ;;  %v3101_v30 = vadd.f32 %v3100_v54, %v20708_v38  ;;  %v20953_v50 = vrot.slane %v25497_v43, 5  ;;  %v17155_v54 = vld [vmem:[%s25349_s4 + $0x430] ss:$8 sps:$4 sm:$0xff]   ;;  %v1945_v42 = vrot.slane %v1944_v35, 4 }
 0x201   : > { %4868 = vmatprep.mubr.bf16.mxu0 %v17149_v47  ;;  %6077 = vmatpush1.bf16.msra.mxu0 %v17146_v1  ;;  %v3102_v62 = vpop.f32.mrf.mxu0  ;;  %v17154_v47 = vld [vmem:[#allocation2 + $0xd8] ss:$592 sps:$4 sm:$0xff]   ;;  %v25500_v1 = vshrl.u32 %v20871_v52, 16  ;;  %v3787_v35 = vpop.f32.mrf.mxu1 }
 0x202   : > { %6078 = vmatprep.subr.bf16.mxu0 %v17153_v19  ;;  %v3103_v8 = vadd.f32 %v3102_v62, %v20721_v55  ;;  %v20960_v38 = vadd.f32 %v3773_v41, %v3101_v30  ;;  %v17160_v19 = vld [vmem:[%s25349_s4 + $0x424] ss:$8 sps:$4 sm:$0xff]   ;;  %v25498_v41 = vor.u32 %v20593_v57, %v20609_v59  ;;  %v25499_v30 = vshrl.u32 %v20868_v53, 16 }
 0x203   : > { %v3104_v46 = vpop.f32.mrf.mxu0  ;;  %v1952_v62 = vrot.slane %v1691_v26, 5  ;;  %v20982_v45 = vrot.slane %v25500_v1, 4  ;;  %v17241_v53 = vld [vmem:[%s25349_s4 + $0xa4] ss:$8 sps:$4 sm:$0xff]  }
 0x204   : > { %v3105_v49 = vadd.f32 %v3104_v46, %v20725_v44  ;;  %v20971_v55 = vadd.f32 %v3775_v0, %v3103_v8  ;;  %v1932_v13 = vrot.slane %v25498_v41, 4  ;;  %v1951_v43 = vrot.slane %v25499_v30, 4  ;;  %v17158_v0 = vld [vmem:[%s25349_s4 + $0x420] ss:$8 sps:$4 sm:$0xff]  }
 0x205   : > { %6079 = vmatpush1.bf16.msra.mxu0 %v17151_v10  ;;  %v20984_v61 = vpop.f32.mrf.mxu0  ;;  %v1947_v44 = vsel %vm19349_vm0, %v1945_v42, %v20953_v50  ;;  %v17163_v10 = vld [vmem:[%s25349_s4 + $0x414] ss:$8 sps:$4 sm:$0xff]   ;;  %v21007_v42 = vpop.f32.mrf.mxu1 }
 0x206   : > { %6080 = vmatprep.subr.bf16.mxu0 %v17157_v16  ;;  %v20989_v57 = vadd.f32 %v3777_v25, %v3105_v49  ;;  %2057 = vst [vmem:[#allocation2 + $0x268] sm:$0xff] %v1947_v44  ;;  %v2050_v8 = vld [vmem:[#allocation2 + $0x1f8] sm:$0xff]  ;;  %v25501_v16 = vshll.u32 %v20871_v52, 16  ;;  %v25502_v25 = vcombine.high %v20171_v2, %v20217_v60  ;;  %v1953_v41 = vor.u32 %v1952_v62, %v1951_v43 }
 0x207   : > { %v3110_v59 = vpop.f32.mrf.mxu0  ;;  %v3793_v62 = vpop.f32.mrf.mxu1 }
 0x208   : > { %4869 = vmatmul.mubr.bf16.gmra.mxu0 %v17154_v47  ;;  %v20999_v1 = vrot.slane %v25501_v16, 5  ;;  %v3111_v46 = vadd.f32 %v3110_v59, %v20746_v29  ;;  %v2051_v47 = vsel %vm19382_vm1, %v1932_v13, %v2050_v8  ;;  %v1954_v43 = vrot.slane %v1953_v41, 4 }
 0x209   : > { %4878 = vmatprep.mubr.bf16.mxu0 %v25502_v25  ;;  %6081 = vmatpush1.bf16.msra.mxu0 %v17155_v54  ;;  %v3112_v49 = vpop.f32.mrf.mxu0  ;;  %2052 = vst [vmem:[#allocation2 + $0x1f8] sm:$0xff] %v2051_v47  ;;  %v17161_v54 = vld [vmem:[%s25349_s4 + $0x410] ss:$8 sps:$4 sm:$0xff]   ;;  %v3795_v16 = vpop.f32.mrf.mxu1  ;;  %v17172_v47 = vld [vmem:[%s25349_s4 + $0x4e4] ss:$8 sps:$4 sm:$0xff]  }
 0x20a   : > { %6082 = vmatprep.subr.bf16.mxu0 %v17160_v19  ;;  %v1958_v52 = vor.u32 %v20982_v45, %v20999_v1  ;;  %v3113_v30 = vadd.f32 %v3112_v49, %v20763_v22  ;;  %v21012_v29 = vadd.f32 %v3783_v4, %v3111_v46  ;;  %v17166_v19 = vld [vmem:[%s25349_s4 + $0x404] ss:$8 sps:$4 sm:$0xff]  }
 0x20b   : > { %v3114_v44 = vpop.f32.mrf.mxu0  ;;  %v3797_v41 = vpop.f32.mrf.mxu1 }
 0x20c   : > { %v3115_v59 = vadd.f32 %v3114_v44, %v20771_v9  ;;  %v21021_v13 = vadd.f32 %v3785_v37, %v3113_v30  ;;  %v1956_v9 = vsel %vm19349_vm0, %v1954_v43, %v20999_v1  ;;  %v17173_v44 = vld [vmem:[%s25349_s4 + $0x4d0] ss:$8 sps:$4 sm:$0xff]   ;;  %v17176_v43 = vld [vmem:[%s25349_s4 + $0x4c0] ss:$8 sps:$4 sm:$0xff]  }
 0x20d   : > { %6083 = vmatpush1.bf16.msra.mxu0 %v17158_v0  ;;  %v21023_v8 = vpop.f32.mrf.mxu0  ;;  %v25503_v0 = vcombine.low %v20171_v2, %v20217_v60  ;;  %2061 = vst [vmem:[#allocation2 + $0x330] sm:$0xff] %v1956_v9  ;;  %v25504_v9 = vshll.u32 %v20681_v36, 16 }
 0x20e   : > { %6084 = vmatprep.subr.bf16.mxu0 %v17163_v10  ;;  %v21025_v22 = vadd.f32 %v3787_v35, %v3115_v59  ;;  %v17164_v35 = vld [vmem:[%s25349_s4 + $0x400] ss:$8 sps:$4 sm:$0xff]   ;;  %v17169_v10 = vld [vmem:[%s25349_s4 + $0x4f4] ss:$8 sps:$4 sm:$0xff]   ;;  %v17178_v59 = vld [vmem:[%s25349_s4 + $0x4c4] ss:$8 sps:$4 sm:$0xff]  }
 0x20f   : > { %v3120_v4 = vpop.f32.mrf.mxu0 }
 0x210   : > { %4879 = vmatmul.mubr.bf16.gmra.mxu0 %v25503_v0  ;;  %v3121_v37 = vadd.f32 %v3120_v4, %v20788_v48  ;;  %v1661_v4 = vor.u32 %v25504_v9, %v20718_v5  ;;  %v17179_v0 = vld [vmem:[%s25349_s4 + $0x4b0] ss:$8 sps:$4 sm:$0xff]   ;;  %v17182_v5 = vld [vmem:[%s25349_s4 + $0x4a0] ss:$8 sps:$4 sm:$0xff]  }
 0x211   : > { %6085 = vmatpush1.bf16.msra.mxu0 %v17161_v54  ;;  %6104 = vmatprep.mubr.bf16.mxu0 %v20689_v39  ;;  %v3122_v46 = vpop.f32.mrf.mxu0  ;;  %v17167_v39 = vld [vmem:[%s25349_s4 + $0x4f0] ss:$8 sps:$4 sm:$0xff]   ;;  %v1394_v54 = vld [vmem:[#allocation2 + $0xa8] sm:$0x11] }
 0x212   : > { %6086 = vmatprep.subr.bf16.mxu0 %v17166_v19  ;;  %v3123_v2 = vadd.f32 %v3122_v46, %v20800_v6  ;;  %v21042_v60 = vadd.f32 %v3793_v62, %v3121_v37  ;;  %v17170_v6 = vld [vmem:[%s25349_s4 + $0x4e0] ss:$8 sps:$4 sm:$0xff]   ;;  %v1395_v19 = vsel %vm19000_vm8, 0, %v1394_v54  ;;  %v17181_v62 = vld [vmem:[%s25349_s4 + $0x4b4] ss:$8 sps:$4 sm:$0xff]  }
 0x213   : > { %v3124_v25 = vpop.f32.mrf.mxu0  ;;  %1396 = vst [vmem:[#allocation2 + $0xa8] sm:$0x11] %v1395_v19  ;;  %v17184_v37 = vld [vmem:[%s25349_s4 + $0x4a4] ss:$8 sps:$4 sm:$0xff]  }
 0x214   : > { %v3125_v48 = vadd.f32 %v3124_v25, %v20805_v17  ;;  %v21051_v49 = vadd.f32 %v3795_v16, %v3123_v2  ;;  %v17175_v17 = vld [vmem:[%s25349_s4 + $0x4d4] ss:$8 sps:$4 sm:$0xff]   ;;  %v21087_v46 = vld [vmem:[#allocation2 + $0x108] sm:$0xff] }
 0x215   : > { %6087 = vmatpush1.bf16.msra.mxu0 %v17164_v35  ;;  %v21084_v35 = vld [vmem:[#allocation2 + $0x48] sm:$0xff]  ;;  %v1704_v36 = vshrl.u32 %v21087_v46, 16  ;;  %v17287_v2 = vld [vmem:[%s25352_s7 + $0x78] sm:$0xff]  }
 0x216   : > { %6088 = vmatprep.subr.bf16.mxu0 %v17169_v10  ;;  %v21053_v30 = vadd.f32 %v3797_v41, %v3125_v48  ;;  %v1712_v10 = vshrl.u32 %v21084_v35, 16  ;;  %v17288_v25 = vld [vmem:[%s25352_s7 + $0x38] sm:$0xff]   ;;  %16500 = vmatprep.subr.bf16.mxu1 %v17287_v2  ;;  %v17190_v54 = vld [vmem:[%s25349_s4 + $0x484] ss:$8 sps:$4 sm:$0xff]  }
 0x217   : > { %v21108_v41 = vrot.slane %v1704_v36, 7  ;;  %16501 = vmatpush3.bf16.msra.mxu1 %v17288_v25  ;;  %v17297_v9 = vld [vmem:[%s25352_s7 + $0x68] sm:$0xff]   ;;  %v17191_v2 = vld [vmem:[%s25349_s4 + $0x70] ss:$8 sps:$4 sm:$0xff]   ;;  %v21148_v25 = vpop.f32.mrf.mxu0 }
 0x219   : > { %6089 = vmatpush2.bf16.msra.mxu0 %v17167_v39  ;;  %v1714_v39 = vrot.slane %v1712_v10, 7 }
 0x21a   : > { %6090 = vmatprep.subr.bf16.mxu0 %v17172_v47  ;;  %v1806_v16 = vld [vmem:[#allocation2 + $0xa8] sm:$0xff]  ;;  %v17187_v47 = vld [vmem:[%s25349_s4 + $0x494] ss:$8 sps:$4 sm:$0xff]  }
 0x21b   : > { %v1807_v48 = vsel %vm19122_vm9, %v1661_v4, %v1806_v16  ;;  %v17298_v4 = vld [vmem:[%s25352_s7 + $0x28] sm:$0xff]  }
 0x21c   : > { %1808 = vst [vmem:[#allocation2 + $0xa8] sm:$0xff] %v1807_v48  ;;  %v1449_v16 = vld [vmem:[#allocation2 + $0x8] sm:$0x88] }
 0x21d   : > { %6091 = vmatpush2.bf16.msra.mxu0 %v17170_v6  ;;  %v1715_v6 = vshll.u32 %v21084_v35, 16  ;;  %v17196_v48 = vld [vmem:[#allocation2 + $0x33c] ss:$-48 sps:$4 sm:$0xff]   ;;  %v17209_v35 = vld [vmem:[%s25349_s4 + $0x30] ss:$8 sps:$4 sm:$0xff]  }
 0x21e   : > { %6092 = vmatprep.subr.bf16.mxu0 %v17175_v17  ;;  %v17185_v17 = vld [vmem:[%s25349_s4 + $0x490] ss:$8 sps:$4 sm:$0xff]  }
 0x21f   : > { %v1717_v19 = vor.u32 %v1715_v6, %v1714_v39  ;;  %v17199_v39 = vld [vmem:[%s25349_s4 + $0x64] ss:$8 sps:$4 sm:$0xff]  }
 0x221   : > { %6093 = vmatpush2.bf16.msra.mxu0 %v17173_v44  ;;  %v17292_v44 = vld [vmem:[%s25352_s7 + $0x70] sm:$0xff]  }
 0x222   : > { %6094 = vmatprep.subr.bf16.mxu0 %v17178_v59  ;;  %v17293_v59 = vld [vmem:[%s25352_s7 + $0x30] sm:$0xff]   ;;  %16502 = vmatprep.subr.bf16.mxu1 %v17292_v44 }
 0x223   : > { %16503 = vmatpush3.bf16.msra.mxu1 %v17293_v59  ;;  %v18603_v44 = vld [vmem:[#allocation2 + $0x1b8] ss:$-136 sps:$4 sm:$0xff]   ;;  %v17202_v59 = vld [vmem:[%s25349_s4 + $0x54] ss:$8 sps:$4 sm:$0xff]  }
 0x224   : > { %16504 = vmatprep.subr.bf16.mxu1 %v17297_v9 }
 0x225   : > { %6095 = vmatpush2.bf16.msra.mxu0 %v17176_v43  ;;  %v1710_v43 = vrot.slane %v21108_v41, 4 }
 0x226   : > { %6096 = vmatprep.subr.bf16.mxu0 %v17181_v62  ;;  %v17188_v62 = vld [vmem:[%s25349_s4 + $0x480] ss:$8 sps:$4 sm:$0xff]  }
 0x227   : > { %16505 = vmatpush3.bf16.msra.mxu1 %v17298_v4  ;;  %v17200_v4 = vld [vmem:[%s25349_s4 + $0x50] ss:$8 sps:$4 sm:$0xff]  }
 0x228   : > { %16506 = vmatprep.subr.bf16.mxu1 %v17302_v58  ;;  %v1960_v58 = vrot.slane %v1704_v36, 4  ;;  %v17303_v36 = vld [vmem:[%s25352_s7 + $0x20] sm:$0xff]  }
 0x229   : > { %6097 = vmatpush2.bf16.msra.mxu0 %v17179_v0  ;;  %v1718_v0 = vsel %vm19156_vm10, %v1710_v43, %v1717_v19  ;;  %v25505_v19 = vor.u32 %v20703_v7, %v20723_v33 }
 0x22a   : > { %6098 = vmatprep.subr.bf16.mxu0 %v17184_v37  ;;  %v17193_v37 = vld [vmem:[%s25349_s4 + $0x74] ss:$8 sps:$4 sm:$0xff]   ;;  %1821 = vst [vmem:[#allocation2 + $0x290] sm:$0xff] %v1718_v0  ;;  %v1707_v0 = vshll.u32 %v21087_v46, 16 }
 0x22b   : > { %v1941_v43 = vrot.slane %v25505_v19, 4  ;;  %16507 = vmatpush3.bf16.msra.mxu1 %v17303_v36  ;;  %v17220_v36 = vld [vmem:[%s25349_s4 + $0x14] ss:$8 sps:$4 sm:$0xff]  }
 0x22c   : > { %v1709_v15 = vor.u32 %v1707_v0, %v21108_v41 }
 0x22d   : > { %6099 = vmatpush2.bf16.msra.mxu0 %v17182_v5  ;;  %v1450_v5 = vsel %vm19015_vm15, 0, %v1449_v16 }
 0x22e   : > { %6100 = vmatprep.subr.bf16.mxu0 %v17187_v47  ;;  %1451 = vst [vmem:[#allocation2 + $0x8] sm:$0x88] %v1450_v5  ;;  %v17197_v47 = vld [vmem:[%s25349_s4 + $0x60] ss:$8 sps:$4 sm:$0xff]  }
 0x231   : > { %6101 = vmatpush2.bf16.msra.mxu0 %v17185_v17 }
 0x232   : > { %6102 = vmatprep.subr.bf16.mxu0 %v17190_v54 }
 0x235   : > { %6103 = vmatpush2.bf16.msra.mxu0 %v17188_v62  ;;  %v2054_v16 = vld [vmem:[#allocation2 + $0x8] sm:$0xff] }
 0x236   : > { %6818 = vmatprep.subr.bf16.mxu0 %v17193_v37  ;;  %v17194_v37 = vld [vmem:[#allocation2 + $0x338] ss:$-48 sps:$4 sm:$0xff]   ;;  %v2055_v7 = vsel %vm19382_vm1, %v1941_v43, %v2054_v16 }
 0x237   : > { %2056 = vst [vmem:[#allocation2 + $0x8] sm:$0xff] %v2055_v7  ;;  %v17203_v43 = vld [vmem:[#allocation2 + $0x80] ss:$568 sps:$4 sm:$0xff]   ;;  %v17214_v7 = vld [vmem:[#allocation2 + $0x194] ss:$-248 sps:$4 sm:$0xff]  }
 0x238   : > { %v3836_v17 = vpop.f32.mrf.mxu0  ;;  %6105 = vmatmul.mubr.bf16.vlgmr.msra.gmra.mxu0 %v18603_v44 }
 0x239   : > { %v21160_v54 = vadd.f32 %v3836_v17, %v20920_v56  ;;  %6114 = vmatprep.mubr.bf16.mxu0 %v17196_v48  ;;  %6819 = vmatpush1.bf16.msra.mxu0 %v17191_v2  ;;  %v17205_v2 = vld [vmem:[#allocation2 + $0x84] ss:$568 sps:$4 sm:$0xff]   ;;  %v21188_v48 = vrot.slane %v1712_v10, 4  ;;  %v17206_v17 = vld [vmem:[%s25349_s4 + $0x40] ss:$8 sps:$4 sm:$0xff]  }
 0x23a   : > { %v3838_v62 = vpop.f32.mrf.mxu0  ;;  %6820 = vmatprep.subr.bf16.mxu0 %v17199_v39  ;;  %v17211_v10 = vld [vmem:[%s25349_s4 + $0x34] ss:$8 sps:$4 sm:$0xff]  }
 0x23b   : > { %v21166_v9 = vadd.f32 %v3838_v62, %v20931_v11  ;;  %v17208_v11 = vld [vmem:[%s25349_s4 + $0x44] ss:$8 sps:$4 sm:$0xff]  }
 0x23c   : > { %v3840_v56 = vpop.f32.mrf.mxu0 }
 0x23d   : > { %v21173_v5 = vadd.f32 %v3840_v56, %v20943_v40  ;;  %6821 = vmatpush1.bf16.msra.mxu0 %v17197_v47  ;;  %v1961_v40 = vrot.slane %v1707_v0, 5  ;;  %v17281_v0 = vld [vmem:[%s25349_s4 + $0x2c0] ss:$8 sps:$4 sm:$0xff]  }
 0x23e   : > { %v21177_v33 = vpop.f32.mrf.mxu0  ;;  %6822 = vmatprep.subr.bf16.mxu0 %v17202_v59  ;;  %v21207_v59 = vrot.slane %v1715_v6, 5 }
 0x240   : > { %v3846_v39 = vpop.f32.mrf.mxu0  ;;  %6115 = vmatmul.mubr.bf16.gmra.mxu0 %v17194_v37 }
 0x241   : > { %v21191_v47 = vadd.f32 %v3846_v39, %v20960_v38  ;;  %6124 = vmatprep.mubr.bf16.mxu0 %v17205_v2  ;;  %6823 = vmatpush1.bf16.msra.mxu0 %v17200_v4  ;;  %v17310_v38 = vld [vmem:[%s25352_s7 + $0x58] sm:$0xff]   ;;  %v1962_v4 = vor.u32 %v1961_v40, %v1960_v58  ;;  %v17315_v2 = vld [vmem:[%s25352_s7 + $0x50] sm:$0xff]   ;;  %v17215_v39 = vld [vmem:[%s25349_s4 + $0x20] ss:$8 sps:$4 sm:$0xff]  }
 0x242   : > { %v3848_v44 = vpop.f32.mrf.mxu0  ;;  %6824 = vmatprep.subr.bf16.mxu0 %v17208_v11  ;;  %16508 = vmatprep.subr.bf16.mxu1 %v17310_v38  ;;  %v17311_v11 = vld [vmem:[%s25352_s7 + $0x18] sm:$0xff]  }
 0x243   : > { %v21210_v19 = vadd.f32 %v3848_v44, %v20971_v55  ;;  %v17217_v55 = vld [vmem:[%s25349_s4 + $0x24] ss:$8 sps:$4 sm:$0xff]   ;;  %v1963_v16 = vrot.slane %v1962_v4, 4  ;;  %16509 = vmatpush3.bf16.msra.mxu1 %v17311_v11  ;;  %v17226_v11 = vld [vmem:[%s25349_s4 + $0xf4] ss:$8 sps:$4 sm:$0xff]  }
 0x244   : > { %v3850_v62 = vpop.f32.mrf.mxu0  ;;  %16510 = vmatprep.subr.bf16.mxu1 %v17315_v2  ;;  %v17320_v44 = vld [vmem:[%s25352_s7 + $0x48] sm:$0xff]  }
 0x245   : > { %v21215_v56 = vadd.f32 %v3850_v62, %v20989_v57  ;;  %6825 = vmatpush1.bf16.msra.mxu0 %v17206_v17  ;;  %v1965_v58 = vsel %vm19349_vm0, %v1963_v16, %v21207_v59  ;;  %v17218_v62 = vld [vmem:[%s25349_s4 + $0x10] ss:$8 sps:$4 sm:$0xff]   ;;  %v17321_v4 = vld [vmem:[%s25352_s7 + $0x8] sm:$0xff]  }
 0x246   : > { %v21220_v6 = vpop.f32.mrf.mxu0  ;;  %6826 = vmatprep.subr.bf16.mxu0 %v17211_v10  ;;  %2065 = vst [vmem:[#allocation2 + $0x178] sm:$0xff] %v1965_v58  ;;  %v17212_v10 = vld [vmem:[#allocation2 + $0x190] ss:$-248 sps:$4 sm:$0xff]  }
 0x247   : > { %16511 = vmatpush3.bf16.msra.mxu1 %v17316_v23  ;;  %v1397_v23 = vld [vmem:[#allocation2 + $0x218] sm:$0x11] }
 0x248   : > { %v3856_v57 = vpop.f32.mrf.mxu0  ;;  %6125 = vmatmul.mubr.bf16.gmra.mxu0 %v17203_v43  ;;  %16512 = vmatprep.subr.bf16.mxu1 %v17320_v44  ;;  %v1398_v44 = vsel %vm19000_vm8, 0, %v1397_v23 }
 0x249   : > { %v21235_v40 = vadd.f32 %v3856_v57, %v21012_v29  ;;  %6134 = vmatprep.mubr.bf16.mxu0 %v17214_v7  ;;  %6827 = vmatpush1.bf16.msra.mxu0 %v17209_v35  ;;  %v17326_v57 = vld [vmem:[%s25352_s7] sm:$0xff]   ;;  %1399 = vst [vmem:[#allocation2 + $0x218] sm:$0x11] %v1398_v44 }
 0x24a   : > { %v3858_v17 = vpop.f32.mrf.mxu0  ;;  %6828 = vmatprep.subr.bf16.mxu0 %v17217_v55  ;;  %v17325_v55 = vld [vmem:[%s25352_s7 + $0x40] sm:$0xff]  }
 0x24b   : > { %v21247_v29 = vadd.f32 %v3858_v17, %v21021_v13  ;;  %v17223_v13 = vld [vmem:[%s25349_s4 + $0x4] ss:$8 sps:$4 sm:$0xff]   ;;  %16513 = vmatpush3.bf16.msra.mxu1 %v17321_v4  ;;  %v17224_v17 = vld [vmem:[%s25349_s4 + $0xf0] ss:$8 sps:$4 sm:$0xff]   ;;  %v25510_v4 = vshll.u32 %v20838_v14, 16 }
 0x24c   : > { %v3860_v38 = vpop.f32.mrf.mxu0  ;;  %16514 = vmatprep.subr.bf16.mxu1 %v17325_v55 }
 0x24d   : > { %v21253_v43 = vadd.f32 %v3860_v38, %v21025_v22  ;;  %6829 = vmatpush1.bf16.msra.mxu0 %v17215_v39  ;;  %v17221_v22 = vld [vmem:[%s25349_s4] ss:$8 sps:$4 sm:$0xff]   ;;  %v17232_v38 = vld [vmem:[%s25349_s4 + $0xd4] ss:$8 sps:$4 sm:$0xff]  }
 0x24e   : > { %v21264_v35 = vpop.f32.mrf.mxu0  ;;  %6830 = vmatprep.subr.bf16.mxu0 %v17220_v36  ;;  %v17229_v36 = vld [vmem:[%s25349_s4 + $0xe4] ss:$8 sps:$4 sm:$0xff]  }
 0x24f   : > { %25506 = vst [vmem:[#allocation27_spill] sm:$0xff] %v21253_v43  ;;  %16515 = vmatpush3.bf16.msra.mxu1 %v17326_v57  ;;  %v17233_v57 = vld [vmem:[%s25349_s4 + $0xc0] ss:$8 sps:$4 sm:$0xff]  }
 0x250   : > { %v3866_v16 = vpop.f32.mrf.mxu0  ;;  %6135 = vmatmul.mubr.bf16.gmra.mxu0 %v17212_v10  ;;  %v17227_v10 = vld [vmem:[%s25349_s4 + $0xe0] ss:$8 sps:$4 sm:$0xff]  }
 0x251   : > { %v21273_v7 = vadd.f32 %v3866_v16, %v21042_v60  ;;  %6831 = vmatpush1.bf16.msra.mxu0 %v17218_v62  ;;  %6850 = vmatprep.mubr.bf16.mxu0 %v20706_v51  ;;  %v17332_v60 = vld [vmem:[%s25349_s4 + $0x374] ss:$8 sps:$4 sm:$0xff]  }
 0x252   : > { %v3868_v2 = vpop.f32.mrf.mxu0  ;;  %6832 = vmatprep.subr.bf16.mxu0 %v17223_v13  ;;  %5999 = vmatprep.subr.bf16.mxu1 %v17332_v60  ;;  %v1400_v62 = vld [vmem:[#allocation2 + $0x2d8] sm:$0x11] }
 0x253   : > { %25507 = vst [vmem:[#allocation28_spill] sm:$0xff] %v21273_v7  ;;  %v21283_v58 = vadd.f32 %v3868_v2, %v21051_v49  ;;  %v21297_v49 = vpop.f32.mrf.mxu1  ;;  %v17230_v13 = vld [vmem:[%s25349_s4 + $0xd0] ss:$8 sps:$4 sm:$0xff]   ;;  %v1401_v16 = vsel %vm19000_vm8, 0, %v1400_v62 }
 0x254   : > { %v3870_v51 = vpop.f32.mrf.mxu0  ;;  %1402 = vst [vmem:[#allocation2 + $0x2d8] sm:$0x11] %v1401_v16  ;;  %v1810_v2 = vld [vmem:[#allocation2 + $0x218] sm:$0xff] }
 0x255   : > { %25508 = vst [vmem:[#allocation29_spill] sm:$0xff] %v21283_v58  ;;  %v21289_v39 = vadd.f32 %v3870_v51, %v21053_v30  ;;  %6833 = vmatpush1.bf16.msra.mxu0 %v17221_v22  ;;  %v21301_v30 = vpop.f32.mrf.mxu1  ;;  %v1677_v22 = vor.u32 %v25510_v4, %v20849_v12  ;;  %v1693_v12 = vor.u32 %v1691_v26, %v20883_v3  ;;  %v17238_v51 = vld [vmem:[%s25349_s4 + $0xb4] ss:$8 sps:$4 sm:$0xff]   ;;  %v17239_v26 = vld [vmem:[%s25349_s4 + $0xa0] ss:$8 sps:$4 sm:$0xff]  }
 0x256   : > { %6834 = vmatprep.subr.bf16.mxu0 %v17226_v11  ;;  %v17235_v11 = vld [vmem:[%s25349_s4 + $0xc4] ss:$8 sps:$4 sm:$0xff]  }
 0x257   : > { %25509 = vst [vmem:[#allocation30_spill] sm:$0xff] %v21289_v39  ;;  %v21315_v55 = vpop.f32.mrf.mxu1  ;;  %v1811_v14 = vsel %vm19122_vm9, %v1677_v22, %v1810_v2  ;;  %v17247_v4 = vld [vmem:[%s25349_s4 + $0x84] ss:$8 sps:$4 sm:$0xff]   ;;  %v17245_v22 = vld [vmem:[%s25349_s4 + $0x80] ss:$8 sps:$4 sm:$0xff]  }
 0x258   : > { %1812 = vst [vmem:[#allocation2 + $0x218] sm:$0xff] %v1811_v14  ;;  %v17250_v14 = vld [vmem:[%s25349_s4 + $0x274] ss:$8 sps:$4 sm:$0xff]   ;;  %v25538_v58 = vld [vmem:[#allocation23_spill] sm:$0xff] }
 0x259   : > { %6835 = vmatpush2.bf16.msra.mxu0 %v17224_v17  ;;  %v21325_v60 = vpop.f32.mrf.mxu1  ;;  %v17236_v17 = vld [vmem:[%s25349_s4 + $0xb0] ss:$8 sps:$4 sm:$0xff]  }
 0x25a   : > { %6836 = vmatprep.subr.bf16.mxu0 %v17229_v36 }
 0x25b   : > { %v21338_v36 = vpop.f32.mrf.mxu1  ;;  %v1814_v23 = vld [vmem:[#allocation2 + $0x2d8] sm:$0xff] }
 0x25c   : > { %v1815_v3 = vsel %vm19122_vm9, %v1693_v12, %v1814_v23  ;;  %v25511_v12 = vor.u32 %v20941_v34, %v20953_v50  ;;  %v17248_v23 = vld [vmem:[%s25349_s4 + $0x270] ss:$8 sps:$4 sm:$0xff]   ;;  %v17251_v34 = vld [vmem:[%s25349_s4 + $0x260] ss:$8 sps:$4 sm:$0xff]  }
 0x25d   : > { %6837 = vmatpush2.bf16.msra.mxu0 %v17227_v10  ;;  %1816 = vst [vmem:[#allocation2 + $0x2d8] sm:$0xff] %v1815_v3  ;;  %v21348_v44 = vpop.f32.mrf.mxu1  ;;  %v17244_v10 = vld [vmem:[%s25349_s4 + $0x94] ss:$8 sps:$4 sm:$0xff]   ;;  %v1959_v3 = vrot.slane %v1958_v52, 4 }
 0x25e   : > { %6838 = vmatprep.subr.bf16.mxu0 %v17232_v38  ;;  %v17242_v38 = vld [vmem:[%s25349_s4 + $0x90] ss:$8 sps:$4 sm:$0xff]   ;;  %v17256_v52 = vld [vmem:[%s25349_s4 + $0x254] ss:$8 sps:$4 sm:$0xff]  }
 0x25f   : > { %v21356_v62 = vpop.f32.mrf.mxu1 }
 0x261   : > { %6839 = vmatpush2.bf16.msra.mxu0 %v17230_v13  ;;  %v1452_v13 = vld [vmem:[#allocation2 + $0x28] sm:$0x88] }
 0x262   : > { %6840 = vmatprep.subr.bf16.mxu0 %v17235_v11  ;;  %v1453_v16 = vsel %vm19015_vm15, 0, %v1452_v13  ;;  %v1455_v11 = vld [vmem:[#allocation2 + $0x18] sm:$0x88] }
 0x263   : > { %1454 = vst [vmem:[#allocation2 + $0x28] sm:$0x88] %v1453_v16  ;;  %v1456_v2 = vsel %vm19015_vm15, 0, %v1455_v11  ;;  %v17254_v13 = vld [vmem:[%s25349_s4 + $0x250] ss:$8 sps:$4 sm:$0xff]  }
 0x264   : > { %1457 = vst [vmem:[#allocation2 + $0x18] sm:$0x88] %v1456_v2  ;;  %v17257_v16 = vld [vmem:[%s25349_s4 + $0x240] ss:$8 sps:$4 sm:$0xff]   ;;  %v25514_v2 = vcombine.high %v20256_v28, %v20251_v24 }
 0x265   : > { %6841 = vmatpush2.bf16.msra.mxu0 %v17233_v57  ;;  %v21366_v57 = vpop.f32.mrf.mxu1 }
 0x266   : > { %6842 = vmatprep.subr.bf16.mxu0 %v17238_v51  ;;  %v1950_v51 = vrot.slane %v25511_v12, 4  ;;  %v17262_v12 = vld [vmem:[%s25349_s4 + $0x234] ss:$8 sps:$4 sm:$0xff]  }
 0x269   : > { %6843 = vmatpush2.bf16.msra.mxu0 %v17236_v17  ;;  %v21376_v17 = vpop.f32.mrf.mxu1 }
 0x26a   : > { %6844 = vmatprep.subr.bf16.mxu0 %v17241_v53  ;;  %v17253_v53 = vld [vmem:[%s25349_s4 + $0x264] ss:$8 sps:$4 sm:$0xff]  }
 0x26b   : > { %v2058_v50 = vld [vmem:[#allocation2 + $0x28] sm:$0xff]  ;;  %v2062_v45 = vld [vmem:[#allocation2 + $0x18] sm:$0xff] }
 0x26d   : > { %6845 = vmatpush2.bf16.msra.mxu0 %v17239_v26  ;;  %v21390_v26 = vpop.f32.mrf.mxu0 }
 0x26e   : > { %6846 = vmatprep.subr.bf16.mxu0 %v17244_v10  ;;  %25512 = vst [vmem:[#allocation31_spill] sm:$0xff] %v21390_v26  ;;  %v2059_v10 = vsel %vm19382_vm1, %v1950_v51, %v2058_v50  ;;  %v25518_v50 = vld [vmem:[#allocation16_spill] sm:$0xff]  ;;  %v25530_v26 = vld [vmem:[#allocation21_spill] sm:$0xff] }
 0x26f   : > { %2060 = vst [vmem:[#allocation2 + $0x28] sm:$0xff] %v2059_v10  ;;  %v25519_v10 = vcombine.high %v20354_v31, %v25518_v50 }
 0x271   : > { %6847 = vmatpush2.bf16.msra.mxu0 %v17242_v38  ;;  %v21395_v38 = vpop.f32.mrf.mxu1 }
 0x272   : > { %6848 = vmatprep.subr.bf16.mxu0 %v17247_v4 }
 0x273   : > { %v21408_v4 = vpop.f32.mrf.mxu1 }
 0x275   : > { %6849 = vmatpush2.bf16.msra.mxu0 %v17245_v22  ;;  %v17259_v22 = vld [vmem:[%s25349_s4 + $0x244] ss:$8 sps:$4 sm:$0xff]   ;;  %v21419_v11 = vpop.f32.mrf.mxu1 }
 0x276   : > { %6964 = vmatprep.subr.bf16.mxu0 %v17250_v14  ;;  %25513 = vst [vmem:[#allocation32_spill] sm:$0xff] %v21419_v11 }
 0x277   : > { %v21432_v51 = vpop.f32.mrf.mxu1 }
 0x278   : > { %6851 = vmatmul.mubr.bf16.vlgmr.msra.gmra.mxu0 %v20744_v18  ;;  %v21398_v1 = vpop.f32.mrf.mxu0  ;;  %v2063_v18 = vsel %vm19382_vm1, %v1959_v3, %v2062_v45  ;;  %25515 = vst [vmem:[#allocation33_spill] sm:$0xff] %v21432_v51  ;;  %v25516_v3 = vcombine.low %v20256_v28, %v20251_v24  ;;  %v17263_v45 = vld [vmem:[%s25349_s4 + $0x220] ss:$8 sps:$4 sm:$0xff]   ;;  %v17266_v28 = vld [vmem:[%s25349_s4 + $0x210] ss:$8 sps:$4 sm:$0xff]  }
 0x279   : > { %6860 = vmatprep.mubr.bf16.mxu0 %v25484_v27  ;;  %6965 = vmatpush1.bf16.msra.mxu0 %v17248_v23  ;;  %2064 = vst [vmem:[#allocation2 + $0x18] sm:$0xff] %v2063_v18  ;;  %v18605_v51 = vld [vmem:[#allocation2 + $0xd8] ss:$592 sps:$4 sm:$0xff]  }
 0x27a   : > { %6966 = vmatprep.subr.bf16.mxu0 %v17253_v53  ;;  %v21410_v27 = vpop.f32.mrf.mxu0  ;;  %v17265_v53 = vld [vmem:[%s25349_s4 + $0x224] ss:$8 sps:$4 sm:$0xff]  }
 0x27c   : > { %v21424_v14 = vpop.f32.mrf.mxu0 }
 0x27d   : > { %6967 = vmatpush1.bf16.msra.mxu0 %v17251_v34  ;;  %v21442_v34 = vpop.f32.mrf.mxu1 }
 0x27e   : > { %6968 = vmatprep.subr.bf16.mxu0 %v17256_v52  ;;  %v21434_v23 = vpop.f32.mrf.mxu0  ;;  %25517 = vst [vmem:[#allocation34_spill] sm:$0xff] %v21442_v34  ;;  %v17268_v52 = vld [vmem:[%s25349_s4 + $0x214] ss:$8 sps:$4 sm:$0xff]  }
 0x27f   : > { %v21455_v24 = vpop.f32.mrf.mxu1 }
 0x280   : > { %6861 = vmatmul.mubr.bf16.gmra.mxu0 %v25487_v63  ;;  %v17260_v63 = vld [vmem:[%s25349_s4 + $0x230] ss:$8 sps:$4 sm:$0xff]   ;;  %v21453_v18 = vpop.f32.mrf.mxu0  ;;  %25520 = vst [vmem:[#allocation16_spill] sm:$0xff] %v21455_v24 }
 0x281   : > { %6870 = vmatprep.mubr.bf16.mxu0 %v25514_v2  ;;  %6969 = vmatpush1.bf16.msra.mxu0 %v17254_v13  ;;  %v17269_v2 = vld [vmem:[%s25349_s4 + $0x200] ss:$8 sps:$4 sm:$0xff]   ;;  %v25534_v24 = vld [vmem:[#allocation9_spill] sm:$0xff] }
 0x282   : > { %6970 = vmatprep.subr.bf16.mxu0 %v17259_v22  ;;  %v21460_v13 = vpop.f32.mrf.mxu0  ;;  %v17271_v22 = vld [vmem:[%s25349_s4 + $0x204] ss:$8 sps:$4 sm:$0xff]  }
 0x285   : > { %6971 = vmatpush1.bf16.msra.mxu0 %v17257_v16  ;;  %v25521_v16 = vcombine.low %v20354_v31, %v25518_v50  ;;  %v17272_v31 = vld [vmem:[%s25349_s4 + $0x2f0] ss:$8 sps:$4 sm:$0xff]  }
 0x286   : > { %6972 = vmatprep.subr.bf16.mxu0 %v17262_v12  ;;  %v21471_v12 = vpop.f32.mrf.mxu1 }
 0x287   : > { %25522 = vst [vmem:[#allocation35_spill] sm:$0xff] %v21471_v12  ;;  %v17294_v12 = vld [vmem:[%s25349_s4 + $0x290] ss:$8 sps:$4 sm:$0xff]  }
 0x288   : > { %6871 = vmatmul.mubr.bf16.gmra.mxu0 %v25516_v3  ;;  %v17274_v3 = vld [vmem:[%s25349_s4 + $0x2f4] ss:$8 sps:$4 sm:$0xff]  }
 0x289   : > { %6880 = vmatprep.mubr.bf16.mxu0 %v25519_v10  ;;  %6973 = vmatpush1.bf16.msra.mxu0 %v17260_v63  ;;  %v18604_v63 = vld [vmem:[#allocation2 + $0xdc] ss:$592 sps:$4 sm:$0xff]  }
 0x28a   : > { %6974 = vmatprep.subr.bf16.mxu0 %v17265_v53  ;;  %v21473_v53 = vpop.f32.mrf.mxu0  ;;  %v1403_v10 = vld [vmem:[#allocation2 + $0x38] sm:$0x11] }
 0x28b   : > { %v1404_v50 = vsel %vm19000_vm8, 0, %v1403_v10  ;;  %v17278_v10 = vld [vmem:[%s25349_s4 + $0x2d0] ss:$8 sps:$4 sm:$0xff]  }
 0x28c   : > { %1405 = vst [vmem:[#allocation2 + $0x38] sm:$0x11] %v1404_v50 }
 0x28d   : > { %6975 = vmatpush1.bf16.msra.mxu0 %v17263_v45  ;;  %v21478_v45 = vpop.f32.mrf.mxu1 }
 0x28e   : > { %6976 = vmatprep.subr.bf16.mxu0 %v17268_v52  ;;  %25523 = vst [vmem:[#allocation36_spill] sm:$0xff] %v21478_v45  ;;  %v21485_v52 = vpop.f32.mrf.mxu0  ;;  %v1458_v45 = vld [vmem:[#allocation2 + $0x200] sm:$0x88] }
 0x28f   : > { %v1459_v32 = vsel %vm19015_vm15, 0, %v1458_v45  ;;  %v25527_v45 = vor.u32 %v21188_v48, %v21207_v59  ;;  %v17301_v59 = vld [vmem:[%s25349_s4 + $0x284] ss:$8 sps:$4 sm:$0xff]  }
 0x290   : > { %6881 = vmatmul.mubr.bf16.gmra.mxu0 %v25521_v16  ;;  %v17275_v16 = vld [vmem:[%s25349_s4 + $0x2e0] ss:$8 sps:$4 sm:$0xff]   ;;  %1460 = vst [vmem:[#allocation2 + $0x200] sm:$0x88] %v1459_v32 }
 0x291   : > { %6977 = vmatpush1.bf16.msra.mxu0 %v17266_v28  ;;  %6996 = vmatprep.mubr.bf16.mxu0 %v18604_v63  ;;  %v17277_v28 = vld [vmem:[%s25349_s4 + $0x2e4] ss:$8 sps:$4 sm:$0xff]   ;;  %v21501_v63 = vpop.f32.mrf.mxu0 }
 0x292   : > { %6978 = vmatprep.subr.bf16.mxu0 %v17271_v22  ;;  %v21490_v22 = vpop.f32.mrf.mxu1 }
 0x293   : > { %v1818_v50 = vld [vmem:[#allocation2 + $0x38] sm:$0xff]  ;;  %v21508_v37 = vpop.f32.mrf.mxu0 }
 0x294   : > { %25524 = vst [vmem:[#allocation37_spill] sm:$0xff] %v21508_v37  ;;  %v1819_v46 = vsel %vm19122_vm9, %v1709_v15, %v1818_v50  ;;  %v17284_v15 = vld [vmem:[%s25349_s4 + $0x2b0] ss:$8 sps:$4 sm:$0xff]   ;;  %v25543_v37 = vld [vmem:[#allocation3_spill] sm:$0xff] }
 0x295   : > { %6979 = vmatpush1.bf16.msra.mxu0 %v17269_v2  ;;  %v17280_v2 = vld [vmem:[%s25349_s4 + $0x2d4] ss:$8 sps:$4 sm:$0xff]   ;;  %1820 = vst [vmem:[#allocation2 + $0x38] sm:$0xff] %v1819_v46  ;;  %v1968_v46 = vrot.slane %v25527_v45, 4  ;;  %v17299_v45 = vld [vmem:[%s25349_s4 + $0x280] ss:$8 sps:$4 sm:$0xff]  }
 0x296   : > { %6980 = vmatprep.subr.bf16.mxu0 %v17274_v3  ;;  %v21503_v3 = vpop.f32.mrf.mxu1 }
 0x297   : > { %v2066_v39 = vld [vmem:[#allocation2 + $0x200] sm:$0xff]  ;;  %v4780_v11 = vadd.f32 %v21503_v3, %v21410_v27  ;;  %v3912_v27 = vadd.f32 %v21315_v55, %v21166_v9  ;;  %v25545_v9 = vld [vmem:[#allocation4_spill] sm:$0xff] }
 0x298   : > { %v21515_v41 = vpop.f32.mrf.mxu1 }
 0x299   : > { %6981 = vmatpush2.bf16.msra.mxu0 %v17272_v31  ;;  %v17283_v31 = vld [vmem:[%s25349_s4 + $0x2c4] ss:$8 sps:$4 sm:$0xff]  }
 0x29a   : > { %6982 = vmatprep.subr.bf16.mxu0 %v17277_v28  ;;  %v17286_v28 = vld [vmem:[%s25349_s4 + $0x2b4] ss:$8 sps:$4 sm:$0xff]  }
 0x29d   : > { %6983 = vmatpush2.bf16.msra.mxu0 %v17275_v16  ;;  %v21523_v16 = vpop.f32.mrf.mxu0 }
 0x29e   : > { %6984 = vmatprep.subr.bf16.mxu0 %v17280_v2  ;;  %25525 = vst [vmem:[#allocation38_spill] sm:$0xff] %v21523_v16  ;;  %v21525_v2 = vpop.f32.mrf.mxu1 }
 0x29f   : > { %v21532_v50 = vpop.f32.mrf.mxu0 }
 0x2a0   : > { %25526 = vst [vmem:[#allocation39_spill] sm:$0xff] %v21532_v50 }
 0x2a1   : > { %6985 = vmatpush2.bf16.msra.mxu0 %v17278_v10  ;;  %v17291_v10 = vld [vmem:[%s25349_s4 + $0x2a4] ss:$8 sps:$4 sm:$0xff]  }
 0x2a2   : > { %6986 = vmatprep.subr.bf16.mxu0 %v17283_v31  ;;  %v21537_v31 = vpop.f32.mrf.mxu1 }
 0x2a4   : > { %v21550_v32 = vpop.f32.mrf.mxu1 }
 0x2a5   : > { %6987 = vmatpush2.bf16.msra.mxu0 %v17281_v0  ;;  %v21545_v0 = vpop.f32.mrf.mxu0 }
 0x2a6   : > { %6988 = vmatprep.subr.bf16.mxu0 %v17286_v28  ;;  %25528 = vst [vmem:[#allocation40_spill] sm:$0xff] %v21545_v0  ;;  %v17296_v28 = vld [vmem:[%s25349_s4 + $0x294] ss:$8 sps:$4 sm:$0xff]  }
 0x2a7   : > { %v21557_v48 = vpop.f32.mrf.mxu0 }
 0x2a8   : > { %25529 = vst [vmem:[#allocation41_spill] sm:$0xff] %v21557_v48  ;;  %v21580_v48 = vld [vmem:[#allocation2 + $0x2f4] ss:$-264 sps:$4 sm:$0xff]  }
 0x2a9   : > { %6989 = vmatpush2.bf16.msra.mxu0 %v17284_v15  ;;  %v2067_v15 = vsel %vm19382_vm1, %v1968_v46, %v2066_v39  ;;  %v21569_v21 = vpop.f32.mrf.mxu0  ;;  %v17306_v39 = vld [vmem:[%s25349_s4 + $0x774] ss:$8 sps:$4 sm:$0xff]  }
 0x2aa   : > { %6990 = vmatprep.subr.bf16.mxu0 %v17291_v10  ;;  %2068 = vst [vmem:[#allocation2 + $0x200] sm:$0xff] %v2067_v15  ;;  %v21562_v10 = vpop.f32.mrf.mxu1  ;;  %25532 = vst [vmem:[#allocation21_spill] sm:$0xff] %v21569_v21 }
 0x2ab   : > { %v21584_v21 = vpop.f32.mrf.mxu0 }
 0x2ac   : > { %v21574_v46 = vpop.f32.mrf.mxu1 }
 0x2ad   : > { %6991 = vmatpush2.bf16.msra.mxu0 %v17289_v20  ;;  %v25531_v20 = vld [vmem:[#allocation10_spill] sm:$0xff] }
 0x2ae   : > { %6992 = vmatprep.subr.bf16.mxu0 %v17296_v28  ;;  %v3024_v0 = vadd.f32 %v25531_v20, %v25530_v26  ;;  %v25533_v28 = vld [vmem:[#allocation26_spill] sm:$0xff]  ;;  %25536 = vst [vmem:[#allocation10_spill] sm:$0xff] %v21584_v21  ;;  %v21596_v34 = vpop.f32.mrf.mxu1  ;;  %v25541_v21 = vld [vmem:[#allocation13_spill] sm:$0xff] }
 0x2af   : > { %v25535_v26 = vld [vmem:[#allocation22_spill] sm:$0xff]  ;;  %25539 = vst [vmem:[#allocation26_spill] sm:$0xff] %v21596_v34 }
 0x2b0   : > { %v3097_v15 = vadd.f32 %v25533_v28, %v3024_v0  ;;  %v3034_v20 = vadd.f32 %v25535_v26, %v25534_v24  ;;  %v17314_v0 = vld [vmem:[%s25349_s4 + $0x764] ss:$8 sps:$4 sm:$0xff]   ;;  %v337_v24 = vld [vmem:[%s25351_s6] sm:$0x3]  ;;  %v25540_v26 = vld [vmem:[#allocation25_spill] sm:$0xff]  ;;  %v21624_v3 = vpop.f32.mrf.mxu1 }
 0x2b1   : > { %6993 = vmatpush2.bf16.msra.mxu0 %v17294_v12  ;;  %v17304_v12 = vld [vmem:[%s25349_s4 + $0x770] ss:$8 sps:$4 sm:$0xff]   ;;  %v25537_v28 = vld [vmem:[#allocation12_spill] sm:$0xff]  ;;  %v3054_v7 = vadd.f32 %v25541_v21, %v25540_v26  ;;  %v4790_v26 = vadd.f32 %v21550_v32, %v21460_v13  ;;  %v3922_v13 = vadd.f32 %v21356_v62, %v21210_v19  ;;  %v3924_v32 = vadd.f32 %v21366_v57, %v21215_v56 }
 0x2b2   : > { %6994 = vmatprep.subr.bf16.mxu0 %v17301_v59  ;;  %v336_v59 = vld [vmem:[%s25350_s5] sm:$0x3]  ;;  %v3044_v50 = vadd.f32 %v25538_v58, %v25537_v28  ;;  %v3107_v16 = vadd.f32 %v20984_v61, %v3034_v20  ;;  %v3910_v58 = vadd.f32 %v21301_v30, %v21160_v54  ;;  %v25542_v28 = vld [vmem:[#allocation24_spill] sm:$0xff]  ;;  %v21635_v20 = vrot.slane %v337_v24, %v25543_v37 }
 0x2b3   : > { %v21613_v34 = vrot.slane %v336_v59, %v25543_v37  ;;  %v3127_v21 = vadd.f32 %v21148_v25, %v3054_v7  ;;  %v17317_v25 = vld [vmem:[%s25349_s4 + $0x750] ss:$8 sps:$4 sm:$0xff]   ;;  %v25544_v7 = vld [vmem:[#allocation11_spill] sm:$0xff]  ;;  %v21638_v55 = vrot.slane %v336_v59, %v25545_v9  ;;  %v3930_v56 = vadd.f32 %v21395_v38, %v21235_v40 }
 0x2b4   : > { %v3117_v61 = vadd.f32 %v21023_v8, %v3044_v50  ;;  %v3780_v50 = vadd.f32 %v25544_v7, %v3107_v16  ;;  %v21649_v16 = vld [vmem:[#allocation2 + $0x2f0] ss:$-264 sps:$4 sm:$0xff]   ;;  %v4794_v57 = vadd.f32 %v21574_v46, %v21485_v52  ;;  %v3932_v40 = vadd.f32 %v21408_v4, %v21247_v29 }
 0x2b5   : > { %6995 = vmatpush2.bf16.msra.mxu0 %v17299_v45  ;;  %v4778_v45 = vadd.f32 %v21490_v22, %v21398_v1  ;;  %v3770_v1 = vadd.f32 %v25542_v28, %v3097_v15  ;;  %v4782_v15 = vadd.f32 %v21515_v41, %v21424_v14  ;;  %v21647_v37 = vadd.f32 %v21297_v49, %v3127_v21  ;;  %v17322_v49 = vld [vmem:[%s25349_s4 + $0x740] ss:$8 sps:$4 sm:$0xff]  }
 0x2b6   : > { %7831 = vmatprep.subr.bf16.mxu0 %v17306_v39  ;;  %v17312_v39 = vld [vmem:[%s25349_s4 + $0x760] ss:$8 sps:$4 sm:$0xff]   ;;  %v4792_v21 = vadd.f32 %v21562_v10, %v21473_v53  ;;  %v25548_v52 = vld [vmem:[#allocation26_spill] sm:$0xff] }
 0x2b7   : > { %v3843_v54 = vadd.f32 %v21177_v33, %v3770_v1  ;;  %v3914_v33 = vadd.f32 %v21325_v60, %v21173_v5  ;;  %v3853_v5 = vadd.f32 %v21220_v6, %v3780_v50  ;;  %v3790_v60 = vadd.f32 %v21007_v42, %v3117_v61 }
 0x2b8   : > { %v4850_v22 = vpop.f32.mrf.mxu0  ;;  %6997 = vmatmul.mubr.bf16.vlgmr.msra.gmra.mxu0 %v18605_v51  ;;  %v17319_v51 = vld [vmem:[%s25349_s4 + $0x754] ss:$8 sps:$4 sm:$0xff]   ;;  %v4788_v6 = vadd.f32 %v21537_v31, %v21453_v18  ;;  %v4798_v46 = vadd.f32 %v25548_v52, %v21501_v63 }
 0x2b9   : > { %v4851_v43 = vadd.f32 %v4850_v22, %v4778_v45  ;;  %7006 = vmatprep.mubr.bf16.mxu0 %v21580_v48  ;;  %7832 = vmatpush1.bf16.msra.mxu0 %v17304_v12  ;;  %v3916_v45 = vadd.f32 %v21338_v36, %v3843_v54  ;;  %v25547_v22 = vld [vmem:[#allocation15_spill] sm:$0xff]  ;;  %v3926_v61 = vadd.f32 %v21376_v17, %v3853_v5  ;;  %v17329_v54 = vld [vmem:[%s25349_s4 + $0x734] ss:$8 sps:$4 sm:$0xff]  }
 0x2ba   : > { %v4852_v30 = vpop.f32.mrf.mxu0  ;;  %7833 = vmatprep.subr.bf16.mxu0 %v17314_v0  ;;  %v3863_v38 = vadd.f32 %v21264_v35, %v3790_v60  ;;  %v17333_v35 = vld [vmem:[%s25349_s4 + $0x720] ss:$8 sps:$4 sm:$0xff]  }
 0x2bb   : > { %v4889_v12 = vadd.f32 %v4851_v43, %v3910_v58  ;;  %v4853_v8 = vadd.f32 %v4852_v30, %v4780_v11  ;;  %v4784_v43 = vadd.f32 %v21525_v2, %v21434_v23  ;;  %v17324_v23 = vld [vmem:[%s25349_s4 + $0x744] ss:$8 sps:$4 sm:$0xff]   ;;  %v3920_v2 = vadd.f32 %v21348_v44, %v21191_v47 }
 0x2bc   : > { %v4854_v0 = vpop.f32.mrf.mxu0  ;;  %v21669_v47 = vrot.slane %v337_v24, %v25545_v9  ;;  %v17335_v9 = vld [vmem:[%s25349_s4 + $0x724] ss:$8 sps:$4 sm:$0xff]  }
 0x2bd   : > { %v4916_v11 = vmul.f32 %v21613_v34, %v4889_v12  ;;  %v4890_v14 = vadd.f32 %v4853_v8, %v3912_v27  ;;  %v4855_v41 = vadd.f32 %v4854_v0, %v4782_v15  ;;  %7834 = vmatpush1.bf16.msra.mxu0 %v17312_v39  ;;  %v21656_v39 = vpop.f32.mrf.mxu1 }
 0x2be   : > { %v4856_v59 = vpop.f32.mrf.mxu0  ;;  %7835 = vmatprep.subr.bf16.mxu0 %v17319_v51  ;;  %25546 = vst [vmem:[#allocation9_spill] sm:$0xff] %v21669_v47 }
 0x2bf   : > { %v4891_v42 = vadd.f32 %v4855_v41, %v3914_v33  ;;  %v4857_v36 = vadd.f32 %v4856_v59, %v4784_v43  ;;  %v4943_v58 = vadd.f32 %v21635_v20, %v4916_v11  ;;  %v4917_v28 = vmul.f32 %v21638_v55, %v4890_v14  ;;  %v4803_v30 = vpop.f32.mrf.mxu1  ;;  %v17327_v33 = vld [vmem:[%s25349_s4 + $0x730] ss:$8 sps:$4 sm:$0xff]  }
 0x2c0   : > { %v4860_v1 = vpop.f32.mrf.mxu0  ;;  %7007 = vmatmul.mubr.bf16.gmra.mxu0 %v21649_v16  ;;  %v25549_v43 = vld [vmem:[#allocation37_spill] sm:$0xff] }
 0x2c1   : > { %v4918_v44 = vmul.f32 %v21613_v34, %v4891_v42  ;;  %v4892_v18 = vadd.f32 %v4857_v36, %v3916_v45  ;;  %v4861_v31 = vadd.f32 %v4860_v1, %v4788_v6  ;;  %7016 = vmatprep.mubr.bf16.mxu0 %v25547_v22  ;;  %7836 = vmatpush1.bf16.msra.mxu0 %v17317_v25  ;;  %v4959_v17 = vmax.f32 %v4943_v58, 0.0  ;;  %v4807_v0 = vpop.f32.mrf.mxu1  ;;  %v25550_v45 = vld [vmem:[#allocation14_spill] sm:$0xff]  ;;  %v25553_v58 = vld [vmem:[#allocation32_spill] sm:$0xff]  ;;  %v25554_v1 = vld [vmem:[#allocation33_spill] sm:$0xff] }
 0x2c2   : > { %v4862_v24 = vpop.f32.mrf.mxu0  ;;  %7837 = vmatprep.subr.bf16.mxu0 %v17324_v23  ;;  %v4944_v10 = vadd.f32 %v21669_v47, %v4917_v28  ;;  %v4800_v11 = vadd.f32 %v21624_v3, %v25549_v43  ;;  %v17330_v59 = vld [vmem:[%s25349_s4 + $0x370] ss:$8 sps:$4 sm:$0xff]   ;;  %v17341_v3 = vld [vmem:[%s25349_s4 + $0x714] ss:$8 sps:$4 sm:$0xff]  }
 0x2c3   : > { %v4945_v51 = vadd.f32 %v21635_v20, %v4918_v44  ;;  %v4919_v27 = vmul.f32 %v21638_v55, %v4892_v18  ;;  %v4893_v19 = vadd.f32 %v4861_v31, %v3920_v2  ;;  %v4863_v62 = vadd.f32 %v4862_v24, %v4790_v26  ;;  %v25551_v36 = vld [vmem:[#allocation18_spill] sm:$0xff]  ;;  %v25552_v26 = vld [vmem:[#allocation27_spill] sm:$0xff] }
 0x2c4   : > { %v4864_v53 = vpop.f32.mrf.mxu0  ;;  %v4960_v5 = vmax.f32 %v4944_v10, 0.0  ;;  %v3934_v28 = vadd.f32 %v25553_v58, %v25552_v26  ;;  %v3936_v44 = vadd.f32 %v25554_v1, %v3863_v38  ;;  %v25555_v18 = vld [vmem:[#allocation38_spill] sm:$0xff]  ;;  %v25560_v38 = vld [vmem:[#allocation16_spill] sm:$0xff]  ;;  %v25564_v26 = vld [vmem:[#allocation31_spill] sm:$0xff] }
 0x2c5   : > { %v4961_v15 = vmax.f32 %v4945_v51, 0.0  ;;  %v4920_v12 = vmul.f32 %v21613_v34, %v4893_v19  ;;  %v4894_v8 = vadd.f32 %v4863_v62, %v3922_v13  ;;  %v4865_v25 = vadd.f32 %v4864_v53, %v4792_v21  ;;  %7838 = vmatpush1.bf16.msra.mxu0 %v17322_v49  ;;  %v17338_v49 = vld [vmem:[%s25349_s4 + $0x364] ss:$8 sps:$4 sm:$0xff]   ;;  %v25557_v19 = vld [vmem:[#allocation34_spill] sm:$0xff] }
 0x2c6   : > { %v4866_v7 = vpop.f32.mrf.mxu0  ;;  %7839 = vmatprep.subr.bf16.mxu0 %v17329_v54  ;;  %v4946_v50 = vadd.f32 %v21669_v47, %v4919_v27  ;;  %v4802_v31 = vadd.f32 %v21656_v39, %v25555_v18  ;;  %v25556_v27 = vld [vmem:[#allocation28_spill] sm:$0xff]  ;;  %v3873_v58 = vadd.f32 %v25564_v26, %v21647_v37 }
 0x2c7   : > { %v4975_v14 = vpack.c.bf16 %v4961_v15, %v4959_v17  ;;  %v4895_v41 = vadd.f32 %v4865_v25, %v3924_v32  ;;  %v4867_v29 = vadd.f32 %v4866_v7, %v4794_v57  ;;  %v4921_v4 = vmul.f32 %v21638_v55, %v4894_v8  ;;  %v25558_v57 = vld [vmem:[#allocation39_spill] sm:$0xff] }
 0x2c8   : > { %v4870_v63 = vpop.f32.mrf.mxu0  ;;  %7017 = vmatmul.mubr.bf16.gmra.mxu0 %v25550_v45  ;;  %v4962_v60 = vmax.f32 %v4946_v50, 0.0  ;;  %v4947_v23 = vadd.f32 %v21635_v20, %v4920_v12  ;;  %v3940_v62 = vadd.f32 %v25557_v19, %v25556_v27  ;;  %v4804_v17 = vadd.f32 %v4803_v30, %v25558_v57  ;;  %v25561_v30 = vld [vmem:[#allocation40_spill] sm:$0xff]  ;;  %v25567_v27 = vld [vmem:[#allocation35_spill] sm:$0xff]  ;;  %v25568_v57 = vld [vmem:[#allocation10_spill] sm:$0xff] }
 0x2c9   : > { %v4922_v2 = vmul.f32 %v21613_v34, %v4895_v41  ;;  %v4896_v6 = vadd.f32 %v4867_v29, %v3926_v61  ;;  %v4871_v42 = vadd.f32 %v4870_v63, %v4798_v46  ;;  %7026 = vmatprep.mubr.bf16.mxu0 %v25551_v36  ;;  %7840 = vmatpush1.bf16.msra.mxu0 %v17327_v33  ;;  %v4809_v61 = vpop.f32.mrf.mxu1  ;;  %v25559_v33 = vld [vmem:[#allocation29_spill] sm:$0xff]  ;;  %v17336_v50 = vld [vmem:[%s25349_s4 + $0x360] ss:$8 sps:$4 sm:$0xff]   ;;  %v17353_v37 = vld [vmem:[%s25349_s4 + $0x344] ss:$8 sps:$4 sm:$0xff]  }
 0x2ca   : > { %v4872_v13 = vpop.f32.mrf.mxu0  ;;  %v4976_v32 = vpack.c.bf16 %v4962_v60, %v4960_v5  ;;  %7841 = vmatprep.subr.bf16.mxu0 %v17335_v9  ;;  %v4948_v10 = vadd.f32 %v21669_v47, %v4921_v4  ;;  %v4963_v39 = vmax.f32 %v4947_v23, 0.0  ;;  %v3942_v52 = vadd.f32 %v25560_v38, %v25559_v33  ;;  %v17350_v9 = vld [vmem:[%s25349_s4 + $0x704] ss:$8 sps:$4 sm:$0xff]   ;;  %v25563_v60 = vld [vmem:[#allocation17_spill] sm:$0xff] }
 0x2cb   : > { %v4923_v21 = vmul.f32 %v21638_v55, %v4896_v6  ;;  %v4897_v24 = vadd.f32 %v4871_v42, %v3930_v56  ;;  %v4873_v54 = vadd.f32 %v4872_v13, %v4800_v11  ;;  %v4949_v51 = vadd.f32 %v21635_v20, %v4922_v2  ;;  %v17339_v56 = vld [vmem:[%s25349_s4 + $0x710] ss:$8 sps:$4 sm:$0xff]   ;;  %v4811_v43 = vpop.f32.mrf.mxu1 }
 0x2cc   : > { %5117 = vmatprep.mubr.bf16.mxu1 %v4976_v32  ;;  %v4874_v53 = vpop.f32.mrf.mxu0  ;;  %v4808_v46 = vadd.f32 %v4807_v0, %v25561_v30  ;;  %v25562_v11 = vld [vmem:[#allocation41_spill] sm:$0xff]  ;;  %v17344_v0 = vld [vmem:[#allocation2 + $0x33c] ss:$-48 sps:$4 sm:$0xff]   ;;  %v17351_v30 = vld [vmem:[%s25349_s4 + $0x340] ss:$8 sps:$4 sm:$0xff]  }
 0x2cd   : > { %v4924_v15 = vmul.f32 %v21613_v34, %v4897_v24  ;;  %v4898_v12 = vadd.f32 %v4873_v54, %v3932_v40  ;;  %v4875_v8 = vadd.f32 %v4874_v53, %v4802_v31  ;;  %5118 = vmatmul.mubr.bf16.vlgmr.msra.gmra.mxu1 %v4975_v14  ;;  %7842 = vmatpush1.bf16.msra.mxu0 %v17333_v35  ;;  %v4965_v25 = vmax.f32 %v4949_v51, 0.0  ;;  %v17347_v35 = vld [vmem:[%s25349_s4 + $0x354] ss:$8 sps:$4 sm:$0xff]   ;;  %v17345_v13 = vld [vmem:[%s25349_s4 + $0x350] ss:$8 sps:$4 sm:$0xff]   ;;  %v4813_v32 = vpop.f32.mrf.mxu1 }
 0x2ce   : > { %6000 = vmatpush1.bf16.msra.mxu1 %v17330_v59  ;;  %v4876_v7 = vpop.f32.mrf.mxu0  ;;  %7843 = vmatprep.subr.bf16.mxu0 %v17341_v3  ;;  %v4950_v40 = vadd.f32 %v21669_v47, %v4923_v21  ;;  %v4810_v14 = vadd.f32 %v4809_v61, %v25562_v11  ;;  %v4964_v59 = vmax.f32 %v4948_v10, 0.0  ;;  %v25566_v51 = vld [vmem:[#allocation30_spill] sm:$0xff] }
 0x2cf   : > { %v4899_v41 = vadd.f32 %v4875_v8, %v3934_v28  ;;  %v4877_v29 = vadd.f32 %v4876_v7, %v4804_v17  ;;  %6001 = vmatprep.subr.bf16.mxu1 %v17338_v49  ;;  %v4977_v4 = vpack.c.bf16 %v4965_v25, %v4963_v39  ;;  %v4925_v63 = vmul.f32 %v21638_v55, %v4898_v12  ;;  %v17348_v49 = vld [vmem:[%s25349_s4 + $0x700] ss:$8 sps:$4 sm:$0xff]   ;;  %v25565_v28 = vld [vmem:[#allocation21_spill] sm:$0xff] }
 0x2d0   : > { %v4880_v5 = vpop.f32.mrf.mxu0  ;;  %7027 = vmatmul.mubr.bf16.gmra.mxu0 %v25563_v60  ;;  %v4966_v3 = vmax.f32 %v4950_v40, 0.0  ;;  %v4951_v23 = vadd.f32 %v21635_v20, %v4924_v15  ;;  %v4812_v1 = vadd.f32 %v4811_v43, %v25565_v28  ;;  %v3944_v19 = vadd.f32 %v25567_v27, %v25566_v51  ;;  %v17354_v8 = vld [vmem:[%s25349_s4 + $0x7f0] ss:$8 sps:$4 sm:$0xff]   ;;  %v25569_v25 = vld [vmem:[#allocation36_spill] sm:$0xff] }
 0x2d1   : > { %v4926_v2 = vmul.f32 %v21613_v34, %v4899_v41  ;;  %v4900_v6 = vadd.f32 %v4877_v29, %v3936_v44  ;;  %v4881_v42 = vadd.f32 %v4880_v5, %v4808_v46  ;;  %7844 = vmatpush1.bf16.msra.mxu0 %v17339_v56  ;;  %7863 = vmatprep.mubr.bf16.mxu0 %v17344_v0  ;;  %v17356_v44 = vld [vmem:[%s25349_s4 + $0x7f4] ss:$8 sps:$4 sm:$0xff]   ;;  %v17360_v0 = vld [vmem:[%s25349_s4 + $0x7e0] ss:$8 sps:$4 sm:$0xff]   ;;  %v17374_v28 = vld [vmem:[%s25349_s4 + $0x7c4] ss:$8 sps:$4 sm:$0xff]  }
 0x2d2   : > { %6002 = vmatpush1.bf16.msra.mxu1 %v17336_v50  ;;  %v4882_v18 = vpop.f32.mrf.mxu0  ;;  %v4978_v31 = vpack.c.bf16 %v4966_v3, %v4964_v59  ;;  %7845 = vmatprep.subr.bf16.mxu0 %v17350_v9  ;;  %v4814_v17 = vadd.f32 %v4813_v32, %v25568_v57  ;;  %v4952_v10 = vadd.f32 %v21669_v47, %v4925_v63  ;;  %v4967_v39 = vmax.f32 %v4951_v23, 0.0  ;;  %v17359_v9 = vld [vmem:[%s25349_s4 + $0x334] ss:$8 sps:$4 sm:$0xff]   ;;  %v17357_v63 = vld [vmem:[%s25349_s4 + $0x330] ss:$8 sps:$4 sm:$0xff]  }
 0x2d3   : > { %v4927_v61 = vmul.f32 %v21638_v55, %v4900_v6  ;;  %v4901_v21 = vadd.f32 %v4881_v42, %v3940_v62  ;;  %v4883_v24 = vadd.f32 %v4882_v18, %v4810_v14  ;;  %6003 = vmatprep.subr.bf16.mxu1 %v17347_v35  ;;  %v4953_v54 = vadd.f32 %v21635_v20, %v4926_v2  ;;  %v17368_v5 = vld [vmem:[%s25349_s4 + $0x7d4] ss:$8 sps:$4 sm:$0xff]   ;;  %v17365_v3 = vld [vmem:[%s25349_s4 + $0x324] ss:$8 sps:$4 sm:$0xff]   ;;  %v17366_v6 = vld [vmem:[%s25349_s4 + $0x7d0] ss:$8 sps:$4 sm:$0xff]  }
 0x2d4   : > { %5125 = vmatprep.mubr.bf16.mxu1 %v4978_v31  ;;  %v4884_v53 = vpop.f32.mrf.mxu0  ;;  %v3946_v33 = vadd.f32 %v25569_v25, %v3873_v58  ;;  %v4968_v11 = vmax.f32 %v4952_v10, 0.0  ;;  %v17363_v58 = vld [vmem:[%s25349_s4 + $0x320] ss:$8 sps:$4 sm:$0xff]   ;;  %v17371_v31 = vld [vmem:[%s25349_s4 + $0x314] ss:$8 sps:$4 sm:$0xff]  }
 0x2d5   : > { %v4928_v62 = vmul.f32 %v21613_v34, %v4901_v21  ;;  %v4902_v15 = vadd.f32 %v4883_v24, %v3942_v52  ;;  %v4885_v12 = vadd.f32 %v4884_v53, %v4812_v1  ;;  %5126 = vmatmul.mubr.bf16.gmra.mxu1 %v4977_v4  ;;  %7846 = vmatpush1.bf16.msra.mxu0 %v17348_v49  ;;  %v4969_v56 = vmax.f32 %v4953_v54, 0.0  ;;  %v17362_v52 = vld [vmem:[%s25349_s4 + $0x7e4] ss:$8 sps:$4 sm:$0xff]   ;;  %v17372_v32 = vld [vmem:[%s25349_s4 + $0x7c0] ss:$8 sps:$4 sm:$0xff]  }
 0x2d6   : > { %6004 = vmatpush1.bf16.msra.mxu1 %v17345_v13  ;;  %v4886_v38 = vpop.f32.mrf.mxu0  ;;  %7847 = vmatprep.subr.bf16.mxu0 %v17356_v44  ;;  %v4954_v46 = vadd.f32 %v21669_v47, %v4927_v61  ;;  %v17369_v61 = vld [vmem:[%s25349_s4 + $0x310] ss:$8 sps:$4 sm:$0xff]   ;;  %v17380_v21 = vld [vmem:[%s25349_s4 + $0x304] ss:$8 sps:$4 sm:$0xff]   ;;  %v17383_v24 = vld [vmem:[%s25349_s4 + $0x7b4] ss:$8 sps:$4 sm:$0xff]  }
 0x2d7   : > { %v4929_v7 = vmul.f32 %v21638_v55, %v4902_v15  ;;  %v4903_v50 = vadd.f32 %v4885_v12, %v3944_v19  ;;  %v4887_v40 = vadd.f32 %v4886_v38, %v4814_v17  ;;  %6005 = vmatprep.subr.bf16.mxu1 %v17353_v37  ;;  %v4979_v43 = vpack.c.bf16 %v4969_v56, %v4967_v39  ;;  %v17377_v37 = vld [vmem:[#allocation2 + $0x25c] ss:$-208 sps:$4 sm:$0xff]   ;;  %v17381_v54 = vld [vmem:[%s25349_s4 + $0x7b0] ss:$8 sps:$4 sm:$0xff]   ;;  %v17378_v51 = vld [vmem:[%s25349_s4 + $0x300] ss:$8 sps:$4 sm:$0xff]  }
 0x2d8   : > { %v4970_v14 = vmax.f32 %v4954_v46, 0.0  ;;  %v4955_v35 = vadd.f32 %v21635_v20, %v4928_v62  ;;  %v17389_v27 = vld [vmem:[%s25349_s4 + $0x7a4] ss:$8 sps:$4 sm:$0xff]   ;;  %v17386_v19 = vld [vmem:[%s25349_s4 + $0x3f4] ss:$8 sps:$4 sm:$0xff]  }
 0x2d9   : > { %v4930_v41 = vmul.f32 %v21613_v34, %v4903_v50  ;;  %v4904_v29 = vadd.f32 %v4887_v40, %v3946_v33  ;;  %7848 = vmatpush2.bf16.msra.mxu0 %v17354_v8  ;;  %v4956_v23 = vadd.f32 %v21669_v47, %v4929_v7  ;;  %v17387_v57 = vld [vmem:[%s25349_s4 + $0x7a0] ss:$8 sps:$4 sm:$0xff]   ;;  %v17384_v17 = vld [vmem:[%s25349_s4 + $0x3f0] ss:$8 sps:$4 sm:$0xff]   ;;  %v17395_v53 = vld [vmem:[%s25349_s4 + $0x794] ss:$8 sps:$4 sm:$0xff]  }
 0x2da   : > { %6006 = vmatpush1.bf16.msra.mxu1 %v17351_v30  ;;  %v4980_v4 = vpack.c.bf16 %v4970_v14, %v4968_v11  ;;  %7849 = vmatprep.subr.bf16.mxu0 %v17362_v52  ;;  %v4971_v49 = vmax.f32 %v4955_v35, 0.0  ;;  %v17392_v10 = vld [vmem:[%s25349_s4 + $0x3e4] ss:$8 sps:$4 sm:$0xff]   ;;  %v17393_v39 = vld [vmem:[%s25349_s4 + $0x790] ss:$8 sps:$4 sm:$0xff]  }
 0x2db   : > { %v4931_v59 = vmul.f32 %v21638_v55, %v4904_v29  ;;  %6007 = vmatprep.subr.bf16.mxu1 %v17359_v9  ;;  %v4957_v2 = vadd.f32 %v21635_v20, %v4930_v41  ;;  %v4972_v1 = vmax.f32 %v4956_v23, 0.0  ;;  %v17390_v62 = vld [vmem:[%s25349_s4 + $0x3e0] ss:$8 sps:$4 sm:$0xff]   ;;  %v17401_v15 = vld [vmem:[%s25349_s4 + $0x784] ss:$8 sps:$4 sm:$0xff]   ;;  %v18606_v30 = vld [vmem:[%s25352_s7 + $0x78] sm:$0xff]  }
 0x2dc   : > { %5133 = vmatprep.mubr.bf16.mxu1 %v4980_v4  ;;  %v17398_v12 = vld [vmem:[%s25349_s4 + $0x3d4] ss:$8 sps:$4 sm:$0xff]   ;;  %v17399_v8 = vld [vmem:[%s25349_s4 + $0x780] ss:$8 sps:$4 sm:$0xff]   ;;  %v17396_v56 = vld [vmem:[%s25349_s4 + $0x3d0] ss:$8 sps:$4 sm:$0xff]  }
 0x2dd   : > { %5134 = vmatmul.mubr.bf16.gmra.mxu1 %v4979_v43  ;;  %7850 = vmatpush2.bf16.msra.mxu0 %v17360_v0  ;;  %v4958_v42 = vadd.f32 %v21669_v47, %v4931_v59  ;;  %v4973_v26 = vmax.f32 %v4957_v2, 0.0  ;;  %v17404_v25 = vld [vmem:[%s25349_s4 + $0x3c4] ss:$8 sps:$4 sm:$0xff]   ;;  %v17342_v33 = vld [vmem:[#allocation2 + $0x338] ss:$-48 sps:$4 sm:$0xff]   ;;  %v18608_v40 = vld [vmem:[%s25352_s7 + $0x70] sm:$0xff]  }
 0x2de   : > { %6008 = vmatpush1.bf16.msra.mxu1 %v17357_v63  ;;  %7851 = vmatprep.subr.bf16.mxu0 %v17368_v5  ;;  %v17402_v38 = vld [vmem:[%s25349_s4 + $0x3c0] ss:$8 sps:$4 sm:$0xff]   ;;  %v21885_v46 = vld [vmem:[#allocation2 + $0x84] ss:$568 sps:$4 sm:$0xff]   ;;  %v17408_v50 = vld [vmem:[%s25349_s4 + $0x3b0] ss:$8 sps:$4 sm:$0xff]  }
 0x2df   : > { %6009 = vmatprep.subr.bf16.mxu1 %v17365_v3  ;;  %v4974_v18 = vmax.f32 %v4958_v42, 0.0  ;;  %v4981_v13 = vpack.c.bf16 %v4973_v26, %v4971_v49  ;;  %v17410_v52 = vld [vmem:[%s25349_s4 + $0x3b4] ss:$8 sps:$4 sm:$0xff]   ;;  %v17413_v9 = vld [vmem:[%s25349_s4 + $0x3a4] ss:$8 sps:$4 sm:$0xff]  }
 0x2e0   : > { %v18607_v7 = vld [vmem:[%s25352_s7 + $0x38] sm:$0xff]   ;;  %v18609_v43 = vld [vmem:[%s25352_s7 + $0x30] sm:$0xff]   ;;  %v17411_v14 = vld [vmem:[%s25349_s4 + $0x3a0] ss:$8 sps:$4 sm:$0xff]  }
 0x2e1   : > { %7852 = vmatpush2.bf16.msra.mxu0 %v17366_v6  ;;  %v4982_v44 = vpack.c.bf16 %v4974_v18, %v4972_v1  ;;  %v21906_v11 = vld [vmem:[#allocation2 + $0x80] ss:$568 sps:$4 sm:$0xff]   ;;  %v18610_v41 = vld [vmem:[%s25352_s7 + $0x68] sm:$0xff]   ;;  %v17416_v29 = vld [vmem:[#allocation2 + $0x194] ss:$-248 sps:$4 sm:$0xff]  }
 0x2e2   : > { %6010 = vmatpush1.bf16.msra.mxu1 %v17363_v58  ;;  %7853 = vmatprep.subr.bf16.mxu0 %v17374_v28  ;;  %v17419_v0 = vld [vmem:[%s25349_s4 + $0x394] ss:$8 sps:$4 sm:$0xff]   ;;  %v18611_v35 = vld [vmem:[%s25352_s7 + $0x28] sm:$0xff]   ;;  %v17417_v4 = vld [vmem:[%s25349_s4 + $0x390] ss:$8 sps:$4 sm:$0xff]  }
 0x2e3   : > { %5141 = vmatprep.mubr.bf16.mxu1 %v4982_v44  ;;  %6011 = vmatprep.subr.bf16.mxu1 %v17371_v31  ;;  %v18612_v63 = vld [vmem:[%s25352_s7 + $0x60] sm:$0xff]   ;;  %v17414_v3 = vld [vmem:[#allocation2 + $0x190] ss:$-248 sps:$4 sm:$0xff]   ;;  %v17428_v42 = vld [vmem:[%s25349_s4 + $0x574] ss:$8 sps:$4 sm:$0xff]  }
 0x2e4   : > { %v17422_v5 = vld [vmem:[%s25349_s4 + $0x384] ss:$8 sps:$4 sm:$0xff]   ;;  %v17420_v23 = vld [vmem:[%s25349_s4 + $0x380] ss:$8 sps:$4 sm:$0xff]   ;;  %v18614_v2 = vld [vmem:[%s25352_s7 + $0x58] sm:$0xff]  }
 0x2e5   : > { %5142 = vmatmul.mubr.bf16.gmra.mxu1 %v4981_v13  ;;  %7854 = vmatpush2.bf16.msra.mxu0 %v17372_v32  ;;  %v18613_v59 = vld [vmem:[%s25352_s7 + $0x20] sm:$0xff]   ;;  %v18615_v49 = vld [vmem:[%s25352_s7 + $0x18] sm:$0xff]   ;;  %v18616_v58 = vld [vmem:[%s25352_s7 + $0x50] sm:$0xff]  }
 0x2e6   : > { %6012 = vmatpush1.bf16.msra.mxu1 %v17369_v61  ;;  %6031 = vmatprep.mubr.bf16.mxu1 %v17377_v37  ;;  %v17425_v6 = vld [vmem:[#allocation2 + $0x28c] ss:$-360 sps:$4 sm:$0xff]   ;;  %v17426_v26 = vld [vmem:[%s25349_s4 + $0x570] ss:$8 sps:$4 sm:$0xff]   ;;  %v17423_v13 = vld [vmem:[#allocation2 + $0x288] ss:$-360 sps:$4 sm:$0xff]  }
 0x2e7   : > { %6013 = vmatprep.subr.bf16.mxu1 %v17380_v21  ;;  %7855 = vmatprep.subr.bf16.mxu0 %v17383_v24  ;;  %v17375_v28 = vld [vmem:[#allocation2 + $0x258] ss:$-208 sps:$4 sm:$0xff]   ;;  %v17434_v1 = vld [vmem:[%s25349_s4 + $0x564] ss:$8 sps:$4 sm:$0xff]   ;;  %v18617_v31 = vld [vmem:[%s25352_s7 + $0x10] sm:$0xff]  }
 0x2e8   : > { %v21954_v18 = vld [vmem:[#allocation2 + $0x20c] ss:$-152 sps:$4 sm:$0xff]   ;;  %v17432_v44 = vld [vmem:[%s25349_s4 + $0x560] ss:$8 sps:$4 sm:$0xff]   ;;  %v17435_v24 = vld [vmem:[%s25349_s4 + $0x550] ss:$8 sps:$4 sm:$0xff]  }
 0x2e9   : > { %7856 = vmatpush2.bf16.msra.mxu0 %v17381_v54  ;;  %v17437_v32 = vld [vmem:[%s25349_s4 + $0x554] ss:$8 sps:$4 sm:$0xff]   ;;  %v18618_v61 = vld [vmem:[%s25352_s7 + $0x48] sm:$0xff]   ;;  %v18620_v37 = vld [vmem:[%s25352_s7 + $0x40] sm:$0xff]  }
 0x2ea   : > { %6014 = vmatpush1.bf16.msra.mxu1 %v17378_v51  ;;  %7857 = vmatprep.subr.bf16.mxu0 %v17389_v27  ;;  %v18619_v21 = vld [vmem:[%s25352_s7 + $0x8] sm:$0xff]  }
 0x2eb   : > { %6015 = vmatprep.subr.bf16.mxu1 %v17386_v19  ;;  %v21978_v54 = vld [vmem:[#allocation2 + $0x208] ss:$-152 sps:$4 sm:$0xff]   ;;  %v17443_v51 = vld [vmem:[%s25349_s4 + $0x544] ss:$8 sps:$4 sm:$0xff]  }
 0x2ec   : > { %v21983_v27 = vld [vmem:[#allocation2 + $0xc4] ss:$104 sps:$4 sm:$0xff]  }
 0x2ed   : > { %7858 = vmatpush2.bf16.msra.mxu0 %v17387_v57  ;;  %v18621_v19 = vld [vmem:[%s25352_s7] sm:$0xff]  }
 0x2ee   : > { %6016 = vmatpush2.bf16.msra.mxu1 %v17384_v17  ;;  %7859 = vmatprep.subr.bf16.mxu0 %v17395_v53  ;;  %v17441_v57 = vld [vmem:[%s25349_s4 + $0x540] ss:$8 sps:$4 sm:$0xff]   ;;  %v17446_v17 = vld [vmem:[%s25349_s4 + $0x534] ss:$8 sps:$4 sm:$0xff]   ;;  %v17444_v53 = vld [vmem:[%s25349_s4 + $0x530] ss:$8 sps:$4 sm:$0xff]  }
 0x2ef   : > { %6017 = vmatprep.subr.bf16.mxu1 %v17392_v10  ;;  %v21999_v10 = vld [vmem:[#allocation2 + $0xc0] ss:$104 sps:$4 sm:$0xff]  }
 0x2f1   : > { %7860 = vmatpush2.bf16.msra.mxu0 %v17393_v39  ;;  %v17449_v39 = vld [vmem:[%s25349_s4 + $0x524] ss:$8 sps:$4 sm:$0xff]  }
 0x2f2   : > { %6018 = vmatpush2.bf16.msra.mxu1 %v17390_v62  ;;  %7861 = vmatprep.subr.bf16.mxu0 %v17401_v15  ;;  %v25570_v62 = vld [vmem:[#allocation6_spill] sm:$0xff]  ;;  %v17447_v15 = vld [vmem:[%s25349_s4 + $0x520] ss:$8 sps:$4 sm:$0xff]  }
 0x2f3   : > { %6019 = vmatprep.subr.bf16.mxu1 %v17398_v12  ;;  %v17452_v12 = vld [vmem:[%s25349_s4 + $0x514] ss:$8 sps:$4 sm:$0xff]  }
 0x2f5   : > { %7862 = vmatpush2.bf16.msra.mxu0 %v17399_v8  ;;  %v17450_v8 = vld [vmem:[%s25349_s4 + $0x510] ss:$8 sps:$4 sm:$0xff]  }
 0x2f6   : > { %6020 = vmatpush2.bf16.msra.mxu1 %v17396_v56  ;;  %16540 = vmatprep.subr.bf16.mxu0 %v18606_v30  ;;  %v17455_v56 = vld [vmem:[%s25349_s4 + $0x504] ss:$8 sps:$4 sm:$0xff]   ;;  %v17456_v30 = vld [vmem:[%s25349_s4 + $0x5f0] ss:$8 sps:$4 sm:$0xff]  }
 0x2f7   : > { %6021 = vmatprep.subr.bf16.mxu1 %v17404_v25  ;;  %v25571_v25 = vld [vmem:[#allocation5_spill] sm:$0xff] }
 0x2f8   : > { %7864 = vmatmul.mubr.bf16.vlgmr.msra.gmra.mxu0 %v17342_v33  ;;  %v17453_v33 = vld [vmem:[%s25349_s4 + $0x500] ss:$8 sps:$4 sm:$0xff]  }
 0x2f9   : > { %7873 = vmatprep.mubr.bf16.mxu0 %v21885_v46  ;;  %16541 = vmatpush3.bf16.msra.mxu0 %v18607_v7  ;;  %v17464_v7 = vld [vmem:[%s25349_s4 + $0x5d4] ss:$8 sps:$4 sm:$0xff]  }
 0x2fa   : > { %6022 = vmatpush2.bf16.msra.mxu1 %v17402_v38  ;;  %16542 = vmatprep.subr.bf16.mxu0 %v18608_v40  ;;  %v17458_v38 = vld [vmem:[%s25349_s4 + $0x5f4] ss:$8 sps:$4 sm:$0xff]   ;;  %v17467_v40 = vld [vmem:[%s25349_s4 + $0x5c4] ss:$8 sps:$4 sm:$0xff]  }
 0x2fb   : > { %6023 = vmatprep.subr.bf16.mxu1 %v17410_v52  ;;  %v17461_v52 = vld [vmem:[%s25349_s4 + $0x5e4] ss:$8 sps:$4 sm:$0xff]  }
 0x2fd   : > { %16543 = vmatpush3.bf16.msra.mxu0 %v18609_v43  ;;  %v17470_v43 = vld [vmem:[%s25349_s4 + $0x5b4] ss:$8 sps:$4 sm:$0xff]  }
 0x2fe   : > { %6024 = vmatpush2.bf16.msra.mxu1 %v17408_v50  ;;  %16544 = vmatprep.subr.bf16.mxu0 %v18610_v41  ;;  %v17462_v50 = vld [vmem:[%s25349_s4 + $0x5d0] ss:$8 sps:$4 sm:$0xff]   ;;  %v17473_v41 = vld [vmem:[%s25349_s4 + $0x5a4] ss:$8 sps:$4 sm:$0xff]  }
 0x2ff   : > { %6025 = vmatprep.subr.bf16.mxu1 %v17413_v9  ;;  %v17465_v9 = vld [vmem:[%s25349_s4 + $0x5c0] ss:$8 sps:$4 sm:$0xff]  }
 0x300   : > { %7874 = vmatmul.mubr.bf16.gmra.mxu0 %v21906_v11 }
 0x301   : > { %7883 = vmatprep.mubr.bf16.mxu0 %v17416_v29  ;;  %16545 = vmatpush3.bf16.msra.mxu0 %v18611_v35  ;;  %v17471_v29 = vld [vmem:[%s25349_s4 + $0x5a0] ss:$8 sps:$4 sm:$0xff]   ;;  %v17474_v35 = vld [vmem:[%s25349_s4 + $0x590] ss:$8 sps:$4 sm:$0xff]  }
 0x302   : > { %6026 = vmatpush2.bf16.msra.mxu1 %v17411_v14  ;;  %16546 = vmatprep.subr.bf16.mxu0 %v18612_v63  ;;  %v17468_v14 = vld [vmem:[%s25349_s4 + $0x5b0] ss:$8 sps:$4 sm:$0xff]   ;;  %v17477_v63 = vld [vmem:[%s25349_s4 + $0x580] ss:$8 sps:$4 sm:$0xff]  }
 0x303   : > { %6027 = vmatprep.subr.bf16.mxu1 %v17419_v0  ;;  %v17476_v0 = vld [vmem:[%s25349_s4 + $0x594] ss:$8 sps:$4 sm:$0xff]  }
 0x305   : > { %16547 = vmatpush3.bf16.msra.mxu0 %v18613_v59  ;;  %v17480_v59 = vld [vmem:[%s25349_s4 + $0x170] ss:$8 sps:$4 sm:$0xff]  }
 0x306   : > { %6028 = vmatpush2.bf16.msra.mxu1 %v17417_v4  ;;  %16548 = vmatprep.subr.bf16.mxu0 %v18614_v2  ;;  %v17479_v4 = vld [vmem:[%s25349_s4 + $0x584] ss:$8 sps:$4 sm:$0xff]   ;;  %v17488_v2 = vld [vmem:[%s25349_s4 + $0x154] ss:$8 sps:$4 sm:$0xff]  }
 0x307   : > { %6029 = vmatprep.subr.bf16.mxu1 %v17422_v5  ;;  %v17482_v5 = vld [vmem:[%s25349_s4 + $0x174] ss:$8 sps:$4 sm:$0xff]  }
 0x308   : > { %7884 = vmatmul.mubr.bf16.gmra.mxu0 %v17414_v3  ;;  %v17485_v3 = vld [vmem:[%s25349_s4 + $0x164] ss:$8 sps:$4 sm:$0xff]  }
 0x309   : > { %7893 = vmatprep.mubr.bf16.mxu0 %v17425_v6  ;;  %16549 = vmatpush3.bf16.msra.mxu0 %v18615_v49  ;;  %v17486_v6 = vld [vmem:[%s25349_s4 + $0x150] ss:$8 sps:$4 sm:$0xff]  }
 0x30a   : > { %6030 = vmatpush2.bf16.msra.mxu1 %v17420_v23  ;;  %16550 = vmatprep.subr.bf16.mxu0 %v18616_v58  ;;  %v17483_v23 = vld [vmem:[%s25349_s4 + $0x160] ss:$8 sps:$4 sm:$0xff]   ;;  %v17492_v49 = vld [vmem:[%s25349_s4 + $0x130] ss:$8 sps:$4 sm:$0xff]   ;;  %v17500_v58 = vld [vmem:[%s25349_s4 + $0x114] ss:$8 sps:$4 sm:$0xff]  }
 0x30b   : > { %6145 = vmatprep.subr.bf16.mxu1 %v17428_v42  ;;  %v17494_v42 = vld [vmem:[%s25349_s4 + $0x134] ss:$8 sps:$4 sm:$0xff]  }
 0x30d   : > { %6032 = vmatmul.mubr.bf16.vlgmr.msra.gmra.mxu1 %v17375_v28  ;;  %16551 = vmatpush3.bf16.msra.mxu0 %v18617_v31  ;;  %v5160_v28 = vld [vmem:[#allocation2 + $0x320] sm:$0xff]  ;;  %v17498_v31 = vld [vmem:[%s25349_s4 + $0x110] ss:$8 sps:$4 sm:$0xff]  }
 0x30e   : > { %6041 = vmatprep.mubr.bf16.mxu1 %v21954_v18  ;;  %6146 = vmatpush1.bf16.msra.mxu1 %v17426_v26  ;;  %v17495_v26 = vld [vmem:[%s25349_s4 + $0x120] ss:$8 sps:$4 sm:$0xff]  }
 0x30f   : > { %6147 = vmatprep.subr.bf16.mxu1 %v17434_v1  ;;  %16552 = vmatprep.subr.bf16.mxu0 %v18618_v61  ;;  %v5163_v1 = vld [vmem:[#allocation2] sm:$0xff]  ;;  %v17506_v61 = vld [vmem:[%s25349_s4 + $0x1f4] ss:$8 sps:$4 sm:$0xff]  }
 0x310   : > { %7894 = vmatmul.mubr.bf16.gmra.mxu0 %v17423_v13  ;;  %v15003_v13 = vcombine.high %v5160_v28, %v5163_v1 }
 0x311   : > { %16553 = vmatpush3.bf16.msra.mxu0 %v18619_v21  ;;  %v17504_v21 = vld [vmem:[%s25349_s4 + $0x1f0] ss:$8 sps:$4 sm:$0xff]  }
 0x312   : > { %6148 = vmatpush1.bf16.msra.mxu1 %v17432_v44  ;;  %16554 = vmatprep.subr.bf16.mxu0 %v18620_v37  ;;  %v25573_v44 = vld [vmem:[#allocation19_spill] sm:$0xff] }
 0x313   : > { %6149 = vmatprep.subr.bf16.mxu1 %v17437_v32  ;;  %v17501_v32 = vld [vmem:[%s25349_s4 + $0x100] ss:$8 sps:$4 sm:$0xff]  }
 0x314   : > { %v17507_v37 = vld [vmem:[%s25349_s4 + $0x1e0] ss:$8 sps:$4 sm:$0xff]  }
 0x315   : > { %6042 = vmatmul.mubr.bf16.gmra.mxu1 %v21978_v54  ;;  %16555 = vmatpush3.bf16.msra.mxu0 %v18621_v19  ;;  %v17510_v19 = vld [vmem:[%s25349_s4 + $0x1d0] ss:$8 sps:$4 sm:$0xff]  }
 0x316   : > { %6051 = vmatprep.mubr.bf16.mxu1 %v21983_v27  ;;  %6150 = vmatpush1.bf16.msra.mxu1 %v17435_v24  ;;  %v17509_v24 = vld [vmem:[%s25349_s4 + $0x1e4] ss:$8 sps:$4 sm:$0xff]  }
 0x317   : > { %6151 = vmatprep.subr.bf16.mxu1 %v17443_v51  ;;  %v17512_v51 = vld [vmem:[%s25349_s4 + $0x1d4] ss:$8 sps:$4 sm:$0xff]  }
 0x31a   : > { %6152 = vmatpush1.bf16.msra.mxu1 %v17441_v57  ;;  %v17515_v57 = vld [vmem:[%s25349_s4 + $0x1c4] ss:$8 sps:$4 sm:$0xff]  }
 0x31b   : > { %6153 = vmatprep.subr.bf16.mxu1 %v17446_v17  ;;  %v17513_v17 = vld [vmem:[%s25349_s4 + $0x1c0] ss:$8 sps:$4 sm:$0xff]  }
 0x31d   : > { %6052 = vmatmul.mubr.bf16.gmra.mxu1 %v21999_v10 }
 0x31e   : > { %6061 = vmatprep.mubr.bf16.mxu1 %v25570_v62  ;;  %6154 = vmatpush1.bf16.msra.mxu1 %v17444_v53  ;;  %v17518_v53 = vld [vmem:[%s25349_s4 + $0x1b4] ss:$8 sps:$4 sm:$0xff]  }
 0x31f   : > { %6155 = vmatprep.subr.bf16.mxu1 %v17449_v39  ;;  %v17516_v39 = vld [vmem:[%s25349_s4 + $0x1b0] ss:$8 sps:$4 sm:$0xff]  }
 0x322   : > { %6156 = vmatpush1.bf16.msra.mxu1 %v17447_v15  ;;  %v17521_v15 = vld [vmem:[%s25349_s4 + $0x1a4] ss:$8 sps:$4 sm:$0xff]  }
 0x323   : > { %6157 = vmatprep.subr.bf16.mxu1 %v17452_v12  ;;  %v17519_v12 = vld [vmem:[%s25349_s4 + $0x1a0] ss:$8 sps:$4 sm:$0xff]  }
 0x325   : > { %6062 = vmatmul.mubr.bf16.gmra.mxu1 %v25571_v25 }
 0x326   : > { %6158 = vmatpush1.bf16.msra.mxu1 %v17450_v8  ;;  %6177 = vmatprep.mubr.bf16.mxu1 %v21580_v48  ;;  %v17459_v48 = vld [vmem:[%s25349_s4 + $0x5e0] ss:$8 sps:$4 sm:$0xff]   ;;  %v17524_v8 = vld [vmem:[%s25349_s4 + $0x194] ss:$8 sps:$4 sm:$0xff]  }
 0x327   : > { %6159 = vmatprep.subr.bf16.mxu1 %v17455_v56  ;;  %v17522_v56 = vld [vmem:[%s25349_s4 + $0x190] ss:$8 sps:$4 sm:$0xff]  }
 0x32a   : > { %6160 = vmatpush1.bf16.msra.mxu1 %v17453_v33  ;;  %v17527_v33 = vld [vmem:[%s25349_s4 + $0x184] ss:$8 sps:$4 sm:$0xff]  }
 0x32b   : > { %6161 = vmatprep.subr.bf16.mxu1 %v17458_v38  ;;  %v17525_v38 = vld [vmem:[%s25349_s4 + $0x180] ss:$8 sps:$4 sm:$0xff]  }
 0x32e   : > { %6162 = vmatpush2.bf16.msra.mxu1 %v17456_v30  ;;  %v17530_v30 = vld [vmem:[%s25349_s4 + $0x674] ss:$8 sps:$4 sm:$0xff]  }
 0x32f   : > { %6163 = vmatprep.subr.bf16.mxu1 %v17461_v52  ;;  %v17528_v52 = vld [vmem:[%s25349_s4 + $0x670] ss:$8 sps:$4 sm:$0xff]  }
 0x332   : > { %6164 = vmatpush2.bf16.msra.mxu1 %v17459_v48  ;;  %v15002_v48 = vcombine.low %v5160_v28, %v5163_v1  ;;  %v17540_v28 = vld [vmem:[#allocation2 + $0x338] ss:$-48 sps:$4 sm:$0xff]  }
 0x333   : > { %6165 = vmatprep.subr.bf16.mxu1 %v17464_v7  ;;  %v17536_v7 = vld [vmem:[%s25349_s4 + $0x664] ss:$8 sps:$4 sm:$0xff]  }
 0x336   : > { %6166 = vmatpush2.bf16.msra.mxu1 %v17462_v50  ;;  %v17533_v50 = vld [vmem:[#allocation2 + $0x1bc] ss:$-136 sps:$4 sm:$0xff]  }
 0x337   : > { %6167 = vmatprep.subr.bf16.mxu1 %v17467_v40 }
 0x33a   : > { %6168 = vmatpush2.bf16.msra.mxu1 %v17465_v9  ;;  %v17534_v9 = vld [vmem:[%s25349_s4 + $0x660] ss:$8 sps:$4 sm:$0xff]  }
 0x33b   : > { %6169 = vmatprep.subr.bf16.mxu1 %v17470_v43  ;;  %v22190_v43 = vld [vmem:[%s25353_s8] ss:$0 sm:$0xff] }
 0x33e   : > { %6170 = vmatpush2.bf16.msra.mxu1 %v17468_v14 }
 0x33f   : > { %6171 = vmatprep.subr.bf16.mxu1 %v17473_v41  ;;  %v17539_v41 = vld [vmem:[%s25349_s4 + $0x654] ss:$8 sps:$4 sm:$0xff]  }
 0x342   : > { %6172 = vmatpush2.bf16.msra.mxu1 %v17471_v29 }
 0x343   : > { %6173 = vmatprep.subr.bf16.mxu1 %v17476_v0 }
 0x346   : > { %6174 = vmatpush2.bf16.msra.mxu1 %v17474_v35 }
 0x347   : > { %6175 = vmatprep.subr.bf16.mxu1 %v17479_v4  ;;  %v17537_v4 = vld [vmem:[%s25349_s4 + $0x650] ss:$8 sps:$4 sm:$0xff]  }
 0x34a   : > { %6176 = vmatpush2.bf16.msra.mxu1 %v17477_v63  ;;  %v17531_v63 = vld [vmem:[#allocation2 + $0x1b8] ss:$-136 sps:$4 sm:$0xff]  }
 0x34b   : > { %6891 = vmatprep.subr.bf16.mxu1 %v17482_v5 }
 0x34d   : > { %6178 = vmatmul.mubr.bf16.vlgmr.msra.gmra.mxu1 %v21649_v16  ;;  %v17491_v16 = vld [vmem:[%s25349_s4 + $0x144] ss:$8 sps:$4 sm:$0xff]  }
 0x34e   : > { %6187 = vmatprep.mubr.bf16.mxu1 %v25547_v22  ;;  %6892 = vmatpush1.bf16.msra.mxu1 %v17480_v59  ;;  %v17489_v22 = vld [vmem:[%s25349_s4 + $0x140] ss:$8 sps:$4 sm:$0xff]   ;;  %v17545_v59 = vld [vmem:[%s25349_s4 + $0x644] ss:$8 sps:$4 sm:$0xff]  }
 0x34f   : > { %6893 = vmatprep.subr.bf16.mxu1 %v17485_v3 }
 0x352   : > { %6894 = vmatpush1.bf16.msra.mxu1 %v17483_v23  ;;  %v17542_v23 = vld [vmem:[#allocation2 + $0x33c] ss:$-48 sps:$4 sm:$0xff]  }
 0x353   : > { %6895 = vmatprep.subr.bf16.mxu1 %v17488_v2 }
 0x355   : > { %6188 = vmatmul.mubr.bf16.gmra.mxu1 %v25550_v45  ;;  %v17497_v45 = vld [vmem:[%s25349_s4 + $0x124] ss:$8 sps:$4 sm:$0xff]  }
 0x356   : > { %6197 = vmatprep.mubr.bf16.mxu1 %v25551_v36  ;;  %6896 = vmatpush1.bf16.msra.mxu1 %v17486_v6  ;;  %v25572_v36 = vld [vmem:[#allocation20_spill] sm:$0xff] }
 0x357   : > { %6897 = vmatprep.subr.bf16.mxu1 %v17491_v16  ;;  %v17543_v16 = vld [vmem:[%s25349_s4 + $0x640] ss:$8 sps:$4 sm:$0xff]  }
 0x35a   : > { %6898 = vmatpush1.bf16.msra.mxu1 %v17489_v22 }
 0x35b   : > { %6899 = vmatprep.subr.bf16.mxu1 %v17494_v42  ;;  %v17548_v42 = vld [vmem:[%s25349_s4 + $0x634] ss:$8 sps:$4 sm:$0xff]  }
 0x35d   : > { %6198 = vmatmul.mubr.bf16.gmra.mxu1 %v25563_v60  ;;  %v17503_v60 = vld [vmem:[%s25349_s4 + $0x104] ss:$8 sps:$4 sm:$0xff]  }
 0x35e   : > { %6207 = vmatprep.mubr.bf16.mxu1 %v25572_v36  ;;  %6900 = vmatpush1.bf16.msra.mxu1 %v17492_v49 }
 0x35f   : > { %6901 = vmatprep.subr.bf16.mxu1 %v17497_v45 }
 0x362   : > { %6902 = vmatpush1.bf16.msra.mxu1 %v17495_v26 }
 0x363   : > { %6903 = vmatprep.subr.bf16.mxu1 %v17500_v58  ;;  %v17546_v58 = vld [vmem:[%s25349_s4 + $0x630] ss:$8 sps:$4 sm:$0xff]  }
 0x365   : > { %6208 = vmatmul.mubr.bf16.gmra.mxu1 %v25573_v44 }
 0x366   : > { %6904 = vmatpush1.bf16.msra.mxu1 %v17498_v31  ;;  %6923 = vmatprep.mubr.bf16.mxu1 %v15003_v13  ;;  %v17551_v31 = vld [vmem:[%s25349_s4 + $0x624] ss:$8 sps:$4 sm:$0xff]  }
 0x367   : > { %6905 = vmatprep.subr.bf16.mxu1 %v17503_v60 }
 0x36a   : > { %6906 = vmatpush1.bf16.msra.mxu1 %v17501_v32 }
 0x36b   : > { %6907 = vmatprep.subr.bf16.mxu1 %v17506_v61  ;;  %v17549_v61 = vld [vmem:[%s25349_s4 + $0x620] ss:$8 sps:$4 sm:$0xff]  }
 0x36e   : > { %6908 = vmatpush2.bf16.msra.mxu1 %v17504_v21 }
 0x36f   : > { %6909 = vmatprep.subr.bf16.mxu1 %v17509_v24  ;;  %v17554_v24 = vld [vmem:[%s25349_s4 + $0x614] ss:$8 sps:$4 sm:$0xff]  }
 0x372   : > { %6910 = vmatpush2.bf16.msra.mxu1 %v17507_v37 }
 0x373   : > { %6911 = vmatprep.subr.bf16.mxu1 %v17512_v51 }
 0x376   : > { %6912 = vmatpush2.bf16.msra.mxu1 %v17510_v19 }
 0x377   : > { %6913 = vmatprep.subr.bf16.mxu1 %v17515_v57 }
 0x37a   : > { %6914 = vmatpush2.bf16.msra.mxu1 %v17513_v17  ;;  %v17557_v17 = vld [vmem:[%s25349_s4 + $0x604] ss:$8 sps:$4 sm:$0xff]  }
 0x37b   : > { %6915 = vmatprep.subr.bf16.mxu1 %v17518_v53 }
 0x37e   : > { %6916 = vmatpush2.bf16.msra.mxu1 %v17516_v39 }
 0x37f   : > { %6917 = vmatprep.subr.bf16.mxu1 %v17521_v15 }
 0x382   : > { %6918 = vmatpush2.bf16.msra.mxu1 %v17519_v12  ;;  %v17555_v12 = vld [vmem:[%s25349_s4 + $0x600] ss:$8 sps:$4 sm:$0xff]  }
 0x383   : > { %6919 = vmatprep.subr.bf16.mxu1 %v17524_v8 }
 0x386   : > { %6920 = vmatpush2.bf16.msra.mxu1 %v17522_v56  ;;  %v17560_v56 = vld [vmem:[%s25349_s4 + $0x6f4] ss:$8 sps:$4 sm:$0xff]  }
 0x387   : > { %6921 = vmatprep.subr.bf16.mxu1 %v17527_v33 }
 0x38a   : > { %6922 = vmatpush2.bf16.msra.mxu1 %v17525_v38 }
 0x38b   : > { %7758 = vmatprep.subr.bf16.mxu1 %v17530_v30 }
 0x38d   : > { %6924 = vmatmul.mubr.bf16.vlgmr.msra.gmra.mxu1 %v15002_v48  ;;  %v16516_v40 = vpop.f32.mrf.mxu1 }
 0x38e   : > { %6933 = vmatprep.mubr.bf16.mxu1 %v17533_v50  ;;  %7759 = vmatpush1.bf16.msra.mxu1 %v17528_v52  ;;  %v17563_v52 = vld [vmem:[%s25349_s4 + $0x6e4] ss:$8 sps:$4 sm:$0xff]   ;;  %v17561_v50 = vld [vmem:[%s25349_s4 + $0x6e0] ss:$8 sps:$4 sm:$0xff]  }
 0x38f   : > { %v16517_v14 = vpop.f32.mrf.mxu1  ;;  %7760 = vmatprep.subr.bf16.mxu1 %v17536_v7 }
 0x390   : > { %v16518_v29 = vadd.f32 %v16517_v14, %v16516_v40  ;;  %v17566_v40 = vld [vmem:[%s25349_s4 + $0x6d4] ss:$8 sps:$4 sm:$0xff]   ;;  %v17567_v14 = vld [vmem:[%s25349_s4 + $0x6c0] ss:$8 sps:$4 sm:$0xff]  }
 0x391   : > { %v16519_v0 = vpop.f32.mrf.mxu1 }
 0x392   : > { %v5120_v35 = vadd.f32 %v16518_v29, %v22190_v43  ;;  %7761 = vmatpush1.bf16.msra.mxu1 %v17534_v9  ;;  %v17564_v9 = vld [vmem:[%s25349_s4 + $0x6d0] ss:$8 sps:$4 sm:$0xff]  }
 0x393   : > { %v16520_v5 = vpop.f32.mrf.mxu1  ;;  %7762 = vmatprep.subr.bf16.mxu1 %v17539_v41  ;;  %v17572_v41 = vld [vmem:[%s25349_s4 + $0x6b4] ss:$8 sps:$4 sm:$0xff]   ;;  %v17570_v29 = vld [vmem:[%s25349_s4 + $0x6b0] ss:$8 sps:$4 sm:$0xff]  }
 0x394   : > { %5150 = vst [vmem:[%s22198_s10] sm:$0xff] %v5120_v35  ;;  %v16521_v3 = vadd.f32 %v16520_v5, %v16519_v0  ;;  %v17575_v0 = vld [vmem:[%s25349_s4 + $0x6a4] ss:$8 sps:$4 sm:$0xff]   ;;  %v17573_v35 = vld [vmem:[%s25349_s4 + $0x6a0] ss:$8 sps:$4 sm:$0xff]  }
 0x395   : > { %6934 = vmatmul.mubr.bf16.gmra.mxu1 %v17531_v63  ;;  %v16522_v2 = vpop.f32.mrf.mxu1  ;;  %v17576_v63 = vld [vmem:[%s25349_s4 + $0x690] ss:$8 sps:$4 sm:$0xff]   ;;  %v17581_v5 = vld [vmem:[%s25349_s4 + $0x684] ss:$8 sps:$4 sm:$0xff]  }
 0x396   : > { %v5123_v6 = vadd.f32 %v16521_v3, %v22190_v43  ;;  %6943 = vmatprep.mubr.bf16.mxu1 %v17542_v23  ;;  %7763 = vmatpush1.bf16.msra.mxu1 %v17537_v4  ;;  %v17578_v4 = vld [vmem:[%s25349_s4 + $0x694] ss:$8 sps:$4 sm:$0xff]   ;;  %v17582_v23 = vld [vmem:[%s25349_s4 + $0x870] ss:$8 sps:$4 sm:$0xff]  }
 0x397   : > { %v16523_v22 = vpop.f32.mrf.mxu1  ;;  %7764 = vmatprep.subr.bf16.mxu1 %v17545_v59  ;;  %v17579_v59 = vld [vmem:[%s25349_s4 + $0x680] ss:$8 sps:$4 sm:$0xff]   ;;  %v17584_v3 = vld [vmem:[%s25349_s4 + $0x874] ss:$8 sps:$4 sm:$0xff]  }
 0x398   : > { %5151 = vst [vmem:[%s22198_s10 + $0x8] sm:$0xff] %v5123_v6  ;;  %v16524_v49 = vadd.f32 %v16523_v22, %v16522_v2  ;;  %v17587_v2 = vld [vmem:[%s25349_s4 + $0x864] ss:$8 sps:$4 sm:$0xff]   ;;  %v17585_v6 = vld [vmem:[%s25349_s4 + $0x860] ss:$8 sps:$4 sm:$0xff]  }
 0x399   : > { %v16525_v45 = vpop.f32.mrf.mxu1  ;;  %v17590_v22 = vld [vmem:[%s25349_s4 + $0x854] ss:$8 sps:$4 sm:$0xff]  }
 0x39a   : > { %v5128_v26 = vadd.f32 %v16524_v49, %v22190_v43  ;;  %7765 = vmatpush1.bf16.msra.mxu1 %v17543_v16  ;;  %v17591_v49 = vld [vmem:[%s25349_s4 + $0x840] ss:$8 sps:$4 sm:$0xff]  }
 0x39b   : > { %v16526_v1 = vpop.f32.mrf.mxu1  ;;  %7766 = vmatprep.subr.bf16.mxu1 %v17548_v42  ;;  %v17588_v42 = vld [vmem:[%s25349_s4 + $0x850] ss:$8 sps:$4 sm:$0xff]  }
 0x39c   : > { %5152 = vst [vmem:[%s22198_s10 + $0x10] sm:$0xff] %v5128_v26  ;;  %v16527_v60 = vadd.f32 %v16526_v1, %v16525_v45  ;;  %v17596_v26 = vld [vmem:[%s25349_s4 + $0x834] ss:$8 sps:$4 sm:$0xff]   ;;  %v17597_v1 = vld [vmem:[%s25349_s4 + $0x820] ss:$8 sps:$4 sm:$0xff]  }
 0x39d   : > { %6944 = vmatmul.mubr.bf16.gmra.mxu1 %v17540_v28  ;;  %v16528_v13 = vpop.f32.mrf.mxu1  ;;  %v25574_v28 = vld [vmem:[#allocation8_spill] sm:$0xff] }
 0x39e   : > { %v5131_v32 = vadd.f32 %v16527_v60, %v22190_v43  ;;  %6953 = vmatprep.mubr.bf16.mxu1 %v21885_v46  ;;  %7767 = vmatpush1.bf16.msra.mxu1 %v17546_v58  ;;  %v17552_v46 = vld [vmem:[%s25349_s4 + $0x610] ss:$8 sps:$4 sm:$0xff]   ;;  %v17602_v60 = vld [vmem:[%s25349_s4 + $0x814] ss:$8 sps:$4 sm:$0xff]  }
 0x39f   : > { %v16529_v21 = vpop.f32.mrf.mxu1  ;;  %7768 = vmatprep.subr.bf16.mxu1 %v17551_v31  ;;  %v17594_v58 = vld [vmem:[%s25349_s4 + $0x830] ss:$8 sps:$4 sm:$0xff]  }
 0x3a0   : > { %5153 = vst [vmem:[%s22198_s10 + $0x18] sm:$0xff] %v5131_v32  ;;  %v16530_v37 = vadd.f32 %v16529_v21, %v16528_v13  ;;  %v17600_v13 = vld [vmem:[%s25349_s4 + $0x810] ss:$8 sps:$4 sm:$0xff]   ;;  %v17608_v32 = vld [vmem:[%s25349_s4 + $0x804] ss:$8 sps:$4 sm:$0xff]  }
 0x3a1   : > { %v16531_v51 = vpop.f32.mrf.mxu1  ;;  %v25575_v21 = vld [vmem:[#allocation7_spill] sm:$0xff] }
 0x3a2   : > { %v5136_v19 = vadd.f32 %v16530_v37, %v22190_v43  ;;  %7769 = vmatpush1.bf16.msra.mxu1 %v17549_v61  ;;  %v17605_v61 = vld [vmem:[#allocation2 + $0x29c] ss:$-248 sps:$4 sm:$0xff]  }
 0x3a3   : > { %v16532_v57 = vpop.f32.mrf.mxu1  ;;  %7770 = vmatprep.subr.bf16.mxu1 %v17554_v24  ;;  %v17606_v24 = vld [vmem:[%s25349_s4 + $0x800] ss:$8 sps:$4 sm:$0xff]  }
 0x3a4   : > { %5154 = vst [vmem:[%s22198_s10 + $0x20] sm:$0xff] %v5136_v19  ;;  %v16533_v53 = vadd.f32 %v16532_v57, %v16531_v51  ;;  %v17611_v51 = vld [vmem:[%s25349_s4 + $0x8f4] ss:$8 sps:$4 sm:$0xff]   ;;  %v17609_v19 = vld [vmem:[%s25349_s4 + $0x8f0] ss:$8 sps:$4 sm:$0xff]  }
 0x3a5   : > { %6954 = vmatmul.mubr.bf16.gmra.mxu1 %v21906_v11  ;;  %v16534_v39 = vpop.f32.mrf.mxu1  ;;  %v17614_v57 = vld [vmem:[%s25349_s4 + $0x8e4] ss:$8 sps:$4 sm:$0xff]  }
 0x3a6   : > { %v5139_v15 = vadd.f32 %v16533_v53, %v22190_v43  ;;  %7771 = vmatpush1.bf16.msra.mxu1 %v17552_v46  ;;  %7790 = vmatprep.mubr.bf16.mxu1 %v21954_v18  ;;  %v17558_v18 = vld [vmem:[%s25349_s4 + $0x6f0] ss:$8 sps:$4 sm:$0xff]   ;;  %v6106_v53 = vpop.f32.mrf.mxu0 }
 0x3a7   : > { %v16535_v8 = vpop.f32.mrf.mxu1  ;;  %7772 = vmatprep.subr.bf16.mxu1 %v17557_v17  ;;  %v17612_v17 = vld [vmem:[%s25349_s4 + $0x8e0] ss:$8 sps:$4 sm:$0xff]  }
 0x3a8   : > { %5155 = vst [vmem:[%s22198_s10 + $0x28] sm:$0xff] %v5139_v15  ;;  %v16536_v11 = vadd.f32 %v16535_v8, %v16534_v39  ;;  %v17617_v15 = vld [vmem:[%s25349_s4 + $0x8d4] ss:$8 sps:$4 sm:$0xff]   ;;  %v6108_v8 = vpop.f32.mrf.mxu0 }
 0x3a9   : > { %v16537_v33 = vpop.f32.mrf.mxu1 }
 0x3aa   : > { %v5144_v38 = vadd.f32 %v16536_v11, %v22190_v43  ;;  %7773 = vmatpush1.bf16.msra.mxu1 %v17555_v12  ;;  %v17615_v12 = vld [vmem:[%s25349_s4 + $0x8d0] ss:$8 sps:$4 sm:$0xff]   ;;  %v17620_v11 = vld [vmem:[%s25349_s4 + $0x8c4] ss:$8 sps:$4 sm:$0xff]  }
 0x3ab   : > { %v16538_v30 = vpop.f32.mrf.mxu1  ;;  %7774 = vmatprep.subr.bf16.mxu1 %v17560_v56 }
 0x3ac   : > { %5156 = vst [vmem:[%s22198_s10 + $0x30] sm:$0xff] %v5144_v38  ;;  %v16539_v48 = vadd.f32 %v16538_v30, %v16537_v33  ;;  %v17618_v33 = vld [vmem:[%s25349_s4 + $0x8c0] ss:$8 sps:$4 sm:$0xff]   ;;  %v6110_v38 = vpop.f32.mrf.mxu0  ;;  %v17623_v30 = vld [vmem:[%s25349_s4 + $0x8b4] ss:$8 sps:$4 sm:$0xff]  }
 0x3ae   : > { %v5147_v7 = vadd.f32 %v16539_v48, %v22190_v43  ;;  %7775 = vmatpush2.bf16.msra.mxu1 %v17558_v18  ;;  %v17569_v43 = vld [vmem:[%s25349_s4 + $0x6c4] ss:$8 sps:$4 sm:$0xff]   ;;  %v22407_v48 = vpop.f32.mrf.mxu0 }
 0x3af   : > { %7776 = vmatprep.subr.bf16.mxu1 %v17563_v52  ;;  %v17621_v52 = vld [vmem:[%s25349_s4 + $0x8b0] ss:$8 sps:$4 sm:$0xff]  }
 0x3b0   : > { %5157 = vst [vmem:[%s22198_s10 + $0x38] sm:$0xff] %v5147_v7 }
 0x3b2   : > { %7777 = vmatpush2.bf16.msra.mxu1 %v17561_v50  ;;  %v17626_v50 = vld [vmem:[%s25349_s4 + $0x8a4] ss:$8 sps:$4 sm:$0xff]  }
 0x3b3   : > { %7778 = vmatprep.subr.bf16.mxu1 %v17566_v40  ;;  %v17624_v40 = vld [vmem:[%s25349_s4 + $0x8a0] ss:$8 sps:$4 sm:$0xff]  }
 0x3b6   : > { %7779 = vmatpush2.bf16.msra.mxu1 %v17564_v9  ;;  %v6116_v9 = vpop.f32.mrf.mxu0 }
 0x3b7   : > { %7780 = vmatprep.subr.bf16.mxu1 %v17569_v43 }
 0x3ba   : > { %7781 = vmatpush2.bf16.msra.mxu1 %v17567_v14  ;;  %v17629_v14 = vld [vmem:[%s25349_s4 + $0x894] ss:$8 sps:$4 sm:$0xff]  }
 0x3bb   : > { %7782 = vmatprep.subr.bf16.mxu1 %v17572_v41  ;;  %v17627_v41 = vld [vmem:[%s25349_s4 + $0x890] ss:$8 sps:$4 sm:$0xff]  }
 0x3be   : > { %7783 = vmatpush2.bf16.msra.mxu1 %v17570_v29  ;;  %v6118_v29 = vpop.f32.mrf.mxu0 }
 0x3bf   : > { %7784 = vmatprep.subr.bf16.mxu1 %v17575_v0 }
 0x3c2   : > { %7785 = vmatpush2.bf16.msra.mxu1 %v17573_v35  ;;  %v17632_v35 = vld [vmem:[%s25349_s4 + $0x884] ss:$8 sps:$4 sm:$0xff]  }
 0x3c3   : > { %7786 = vmatprep.subr.bf16.mxu1 %v17578_v4  ;;  %v17630_v4 = vld [vmem:[%s25349_s4 + $0x880] ss:$8 sps:$4 sm:$0xff]  }
 0x3c6   : > { %7787 = vmatpush2.bf16.msra.mxu1 %v17576_v63  ;;  %v6120_v63 = vpop.f32.mrf.mxu0 }
 0x3c7   : > { %7788 = vmatprep.subr.bf16.mxu1 %v17581_v5 }
 0x3ca   : > { %7789 = vmatpush2.bf16.msra.mxu1 %v17579_v59  ;;  %v17635_v59 = vld [vmem:[%s25349_s4 + $0x474] ss:$8 sps:$4 sm:$0xff]  }
 0x3cb   : > { %7904 = vmatprep.subr.bf16.mxu1 %v17584_v3  ;;  %v17633_v3 = vld [vmem:[%s25349_s4 + $0x470] ss:$8 sps:$4 sm:$0xff]  }
 0x3cd   : > { %7791 = vmatmul.mubr.bf16.vlgmr.msra.gmra.mxu1 %v21978_v54  ;;  %v22314_v16 = vpop.f32.mrf.mxu1 }
 0x3ce   : > { %7800 = vmatprep.mubr.bf16.mxu1 %v21983_v27  ;;  %7905 = vmatpush1.bf16.msra.mxu1 %v17582_v23  ;;  %v17593_v27 = vld [vmem:[%s25349_s4 + $0x844] ss:$8 sps:$4 sm:$0xff]   ;;  %v22441_v23 = vpop.f32.mrf.mxu0 }
 0x3cf   : > { %7906 = vmatprep.subr.bf16.mxu1 %v17587_v2  ;;  %v22322_v54 = vpop.f32.mrf.mxu1  ;;  %v17603_v2 = vld [vmem:[#allocation2 + $0x298] ss:$-248 sps:$4 sm:$0xff]  }
 0x3d1   : > { %v22332_v45 = vpop.f32.mrf.mxu1 }
 0x3d2   : > { %7907 = vmatpush1.bf16.msra.mxu1 %v17585_v6 }
 0x3d3   : > { %7908 = vmatprep.subr.bf16.mxu1 %v17590_v22  ;;  %v17641_v22 = vld [vmem:[%s25349_s4 + $0x464] ss:$8 sps:$4 sm:$0xff]  }
 0x3d5   : > { %7801 = vmatmul.mubr.bf16.gmra.mxu1 %v21999_v10  ;;  %v22340_v10 = vpop.f32.mrf.mxu1 }
 0x3d6   : > { %7810 = vmatprep.mubr.bf16.mxu1 %v25570_v62  ;;  %7909 = vmatpush1.bf16.msra.mxu1 %v17588_v42  ;;  %v17599_v62 = vld [vmem:[%s25349_s4 + $0x824] ss:$8 sps:$4 sm:$0xff]   ;;  %v6107_v42 = vadd.f32 %v6106_v53, %v22314_v16  ;;  %v17644_v16 = vld [vmem:[%s25349_s4 + $0x454] ss:$8 sps:$4 sm:$0xff]  }
 0x3d7   : > { %7910 = vmatprep.subr.bf16.mxu1 %v17593_v27  ;;  %v22350_v31 = vpop.f32.mrf.mxu1  ;;  %v17638_v27 = vld [vmem:[#allocation2 + $0x214] ss:$-104 sps:$4 sm:$0xff]  }
 0x3da   : > { %7911 = vmatpush1.bf16.msra.mxu1 %v17591_v49 }
 0x3db   : > { %7912 = vmatprep.subr.bf16.mxu1 %v17596_v26  ;;  %v6109_v26 = vadd.f32 %v6108_v8, %v22322_v54  ;;  %v17645_v8 = vld [vmem:[%s25349_s4 + $0x440] ss:$8 sps:$4 sm:$0xff]  }
 0x3dd   : > { %7811 = vmatmul.mubr.bf16.gmra.mxu1 %v25571_v25  ;;  %v22358_v25 = vpop.f32.mrf.mxu1 }
 0x3de   : > { %7820 = vmatprep.mubr.bf16.mxu1 %v25574_v28  ;;  %7913 = vmatpush1.bf16.msra.mxu1 %v17594_v58 }
 0x3df   : > { %7914 = vmatprep.subr.bf16.mxu1 %v17599_v62  ;;  %v22367_v37 = vpop.f32.mrf.mxu1  ;;  %v17639_v62 = vld [vmem:[%s25349_s4 + $0x460] ss:$8 sps:$4 sm:$0xff]  }
 0x3e1   : > { %v22375_v46 = vpop.f32.mrf.mxu1 }
 0x3e2   : > { %7915 = vmatpush1.bf16.msra.mxu1 %v17597_v1  ;;  %v6126_v1 = vpop.f32.mrf.mxu0 }
 0x3e3   : > { %7916 = vmatprep.subr.bf16.mxu1 %v17602_v60  ;;  %v22383_v39 = vpop.f32.mrf.mxu1 }
 0x3e5   : > { %7821 = vmatmul.mubr.bf16.gmra.mxu1 %v25575_v21  ;;  %v22391_v56 = vpop.f32.mrf.mxu1 }
 0x3e6   : > { %7917 = vmatpush1.bf16.msra.mxu1 %v17600_v13  ;;  %7936 = vmatprep.mubr.bf16.mxu1 %v17605_v61  ;;  %v6111_v13 = vadd.f32 %v6110_v38, %v22332_v45  ;;  %v6117_v45 = vadd.f32 %v6116_v9, %v22350_v31  ;;  %v17650_v31 = vld [vmem:[%s25349_s4 + $0x434] ss:$8 sps:$4 sm:$0xff]   ;;  %v6121_v38 = vadd.f32 %v6120_v63, %v22367_v37  ;;  %v17653_v9 = vld [vmem:[%s25349_s4 + $0x424] ss:$8 sps:$4 sm:$0xff]  }
 0x3e7   : > { %7918 = vmatprep.subr.bf16.mxu1 %v17608_v32  ;;  %v22399_v18 = vpop.f32.mrf.mxu1  ;;  %v6127_v37 = vadd.f32 %v6126_v1, %v22383_v39 }
 0x3e9   : > { %v22409_v7 = vpop.f32.mrf.mxu1 }
 0x3ea   : > { %7919 = vmatpush1.bf16.msra.mxu1 %v17606_v24  ;;  %v17642_v24 = vld [vmem:[%s25349_s4 + $0x450] ss:$8 sps:$4 sm:$0xff]  }
 0x3eb   : > { %7920 = vmatprep.subr.bf16.mxu1 %v17611_v51  ;;  %v22417_v43 = vpop.f32.mrf.mxu1  ;;  %v6128_v51 = vpop.f32.mrf.mxu0 }
 0x3ed   : > { %v22425_v0 = vpop.f32.mrf.mxu1 }
 0x3ee   : > { %7921 = vmatpush2.bf16.msra.mxu1 %v17609_v19  ;;  %v17636_v19 = vld [vmem:[#allocation2 + $0x210] ss:$-104 sps:$4 sm:$0xff]  }
 0x3ef   : > { %7922 = vmatprep.subr.bf16.mxu1 %v17614_v57  ;;  %v22433_v5 = vpop.f32.mrf.mxu1 }
 0x3f1   : > { %v22443_v6 = vpop.f32.mrf.mxu1 }
 0x3f2   : > { %7923 = vmatpush2.bf16.msra.mxu1 %v17612_v17  ;;  %v17647_v17 = vld [vmem:[%s25349_s4 + $0x444] ss:$8 sps:$4 sm:$0xff]  }
 0x3f3   : > { %7924 = vmatprep.subr.bf16.mxu1 %v17617_v15  ;;  %v6119_v15 = vadd.f32 %v6118_v29, %v22358_v25 }
 0x3f6   : > { %7925 = vmatpush2.bf16.msra.mxu1 %v17615_v12 }
 0x3f7   : > { %7926 = vmatprep.subr.bf16.mxu1 %v17620_v11  ;;  %v6130_v11 = vpop.f32.mrf.mxu0 }
 0x3fa   : > { %7927 = vmatpush2.bf16.msra.mxu1 %v17618_v33 }
 0x3fb   : > { %7928 = vmatprep.subr.bf16.mxu1 %v17623_v30 }
 0x3fe   : > { %7929 = vmatpush2.bf16.msra.mxu1 %v17621_v52 }
 0x3ff   : > { %7930 = vmatprep.subr.bf16.mxu1 %v17626_v50  ;;  %v22490_v50 = vpop.f32.mrf.mxu0 }
 0x402   : > { %7931 = vmatpush2.bf16.msra.mxu1 %v17624_v40 }
 0x403   : > { %7932 = vmatprep.subr.bf16.mxu1 %v17629_v14  ;;  %v18622_v14 = vld [vmem:[#allocation2 + $0xa0] sm:$0xff] }
 0x406   : > { %7933 = vmatpush2.bf16.msra.mxu1 %v17627_v41  ;;  %v18623_v41 = vld [vmem:[#allocation2 + $0x310] sm:$0xff] }
 0x407   : > { %7934 = vmatprep.subr.bf16.mxu1 %v17632_v35  ;;  %v22498_v29 = vcombine.high %v18622_v14, %v18623_v41 }
 0x40a   : > { %7935 = vmatpush2.bf16.msra.mxu1 %v17630_v4  ;;  %v6129_v4 = vadd.f32 %v6128_v51, %v22391_v56 }
 0x40b   : > { %9037 = vmatprep.subr.bf16.mxu1 %v17635_v59  ;;  %v17651_v59 = vld [vmem:[%s25349_s4 + $0x420] ss:$8 sps:$4 sm:$0xff]  }
 0x40d   : > { %v6179_v49 = vpop.f32.mrf.mxu1  ;;  %7937 = vmatmul.mubr.bf16.vlgmr.msra.gmra.mxu1 %v17603_v2  ;;  %v17656_v2 = vld [vmem:[%s25349_s4 + $0x414] ss:$8 sps:$4 sm:$0xff]  }
 0x40e   : > { %v22450_v58 = vadd.f32 %v6179_v49, %v6107_v42  ;;  %7946 = vmatprep.mubr.bf16.mxu1 %v17638_v27  ;;  %9038 = vmatpush1.bf16.msra.mxu1 %v17633_v3  ;;  %v6136_v3 = vpop.f32.mrf.mxu0  ;;  %v17654_v27 = vld [vmem:[%s25349_s4 + $0x410] ss:$8 sps:$4 sm:$0xff]  }
 0x40f   : > { %v6181_v60 = vpop.f32.mrf.mxu1  ;;  %9039 = vmatprep.subr.bf16.mxu1 %v17641_v22  ;;  %v6137_v1 = vadd.f32 %v6136_v3, %v22417_v43  ;;  %v17665_v43 = vld [vmem:[%s25349_s4 + $0x4f4] ss:$8 sps:$4 sm:$0xff]  }
 0x410   : > { %v22459_v32 = vadd.f32 %v6181_v60, %v6109_v26  ;;  %v6138_v49 = vpop.f32.mrf.mxu0  ;;  %v22519_v26 = vcombine.low %v18622_v14, %v18623_v41  ;;  %v17659_v60 = vld [vmem:[#allocation2 + $0x28c] ss:$-360 sps:$4 sm:$0xff]   ;;  %v17677_v14 = vld [vmem:[%s25349_s4 + $0x4b4] ss:$8 sps:$4 sm:$0xff]   ;;  %v17675_v41 = vld [vmem:[%s25349_s4 + $0x4b0] ss:$8 sps:$4 sm:$0xff]  }
 0x411   : > { %v6183_v54 = vpop.f32.mrf.mxu1 }
 0x412   : > { %v22461_v61 = vadd.f32 %v6183_v54, %v6111_v13  ;;  %9040 = vmatpush1.bf16.msra.mxu1 %v17639_v62  ;;  %v6139_v13 = vadd.f32 %v6138_v49, %v22425_v0  ;;  %v6140_v51 = vpop.f32.mrf.mxu0 }
 0x413   : > { %v22466_v57 = vpop.f32.mrf.mxu1  ;;  %9041 = vmatprep.subr.bf16.mxu1 %v17644_v16 }
 0x415   : > { %v6189_v53 = vpop.f32.mrf.mxu1  ;;  %7947 = vmatmul.mubr.bf16.gmra.mxu1 %v17636_v19 }
 0x416   : > { %v22473_v12 = vadd.f32 %v6189_v53, %v6117_v45  ;;  %7956 = vmatprep.mubr.bf16.mxu1 %v25572_v36  ;;  %9042 = vmatpush1.bf16.msra.mxu1 %v17642_v24  ;;  %v17648_v36 = vld [vmem:[%s25349_s4 + $0x430] ss:$8 sps:$4 sm:$0xff]   ;;  %v17660_v24 = vld [vmem:[%s25349_s4 + $0x400] ss:$8 sps:$4 sm:$0xff]  }
 0x417   : > { %v6191_v33 = vpop.f32.mrf.mxu1  ;;  %9043 = vmatprep.subr.bf16.mxu1 %v17647_v17  ;;  %v6141_v17 = vadd.f32 %v6140_v51, %v22433_v5  ;;  %v17666_v5 = vld [vmem:[%s25349_s4 + $0x4e0] ss:$8 sps:$4 sm:$0xff]  }
 0x418   : > { %v22483_v30 = vadd.f32 %v6191_v33, %v6119_v15  ;;  %v17663_v15 = vld [vmem:[%s25349_s4 + $0x4f0] ss:$8 sps:$4 sm:$0xff]  }
 0x419   : > { %v6193_v25 = vpop.f32.mrf.mxu1 }
 0x41a   : > { %v22485_v52 = vadd.f32 %v6193_v25, %v6121_v38  ;;  %9044 = vmatpush1.bf16.msra.mxu1 %v17645_v8  ;;  %v17668_v8 = vld [vmem:[%s25349_s4 + $0x4e4] ss:$8 sps:$4 sm:$0xff]   ;;  %v17669_v38 = vld [vmem:[%s25349_s4 + $0x4d0] ss:$8 sps:$4 sm:$0xff]  }
 0x41b   : > { %v22492_v40 = vpop.f32.mrf.mxu1  ;;  %9045 = vmatprep.subr.bf16.mxu1 %v17650_v31  ;;  %v17671_v31 = vld [vmem:[%s25349_s4 + $0x4d4] ss:$8 sps:$4 sm:$0xff]  }
 0x41d   : > { %v6199_v35 = vpop.f32.mrf.mxu1  ;;  %7957 = vmatmul.mubr.bf16.gmra.mxu1 %v25573_v44  ;;  %v6131_v44 = vadd.f32 %v6130_v11, %v22399_v18  ;;  %v17662_v18 = vld [vmem:[%s25349_s4 + $0x404] ss:$8 sps:$4 sm:$0xff]   ;;  %v22548_v11 = vpop.f32.mrf.mxu0 }
 0x41e   : > { %v22502_v63 = vadd.f32 %v6199_v35, %v6127_v37  ;;  %7966 = vmatprep.mubr.bf16.mxu1 %v22498_v29  ;;  %9046 = vmatpush1.bf16.msra.mxu1 %v17648_v36  ;;  %v17674_v36 = vld [vmem:[%s25349_s4 + $0x4c4] ss:$8 sps:$4 sm:$0xff]  }
 0x41f   : > { %v6201_v39 = vpop.f32.mrf.mxu1  ;;  %9047 = vmatprep.subr.bf16.mxu1 %v17653_v9  ;;  %v6852_v33 = vpop.f32.mrf.mxu0  ;;  %v17672_v9 = vld [vmem:[%s25349_s4 + $0x4c0] ss:$8 sps:$4 sm:$0xff]  }
 0x420   : > { %v22512_v22 = vadd.f32 %v6201_v39, %v6129_v4  ;;  %v17680_v4 = vld [vmem:[%s25349_s4 + $0x4a4] ss:$8 sps:$4 sm:$0xff]   ;;  %v17683_v39 = vld [vmem:[%s25349_s4 + $0x494] ss:$8 sps:$4 sm:$0xff]   ;;  %v6853_v51 = vadd.f32 %v6852_v33, %v22450_v58 }
 0x421   : > { %v6203_v56 = vpop.f32.mrf.mxu1  ;;  %v6854_v25 = vpop.f32.mrf.mxu0  ;;  %v17698_v58 = vld [vmem:[%s25349_s4 + $0x54] ss:$8 sps:$4 sm:$0xff]  }
 0x422   : > { %v22514_v42 = vadd.f32 %v6203_v56, %v6131_v44  ;;  %9048 = vmatpush1.bf16.msra.mxu1 %v17651_v59  ;;  %v17678_v59 = vld [vmem:[%s25349_s4 + $0x4a0] ss:$8 sps:$4 sm:$0xff]   ;;  %v17686_v56 = vld [vmem:[%s25349_s4 + $0x484] ss:$8 sps:$4 sm:$0xff]  }
 0x423   : > { %v22521_v62 = vpop.f32.mrf.mxu1  ;;  %9049 = vmatprep.subr.bf16.mxu1 %v17656_v2  ;;  %v6856_v37 = vpop.f32.mrf.mxu0  ;;  %v17681_v2 = vld [vmem:[%s25349_s4 + $0x490] ss:$8 sps:$4 sm:$0xff]  }
 0x425   : > { %v6209_v16 = vpop.f32.mrf.mxu1  ;;  %7967 = vmatmul.mubr.bf16.gmra.mxu1 %v22519_v26  ;;  %v22571_v35 = vpop.f32.mrf.mxu0 }
 0x426   : > { %v22529_v54 = vadd.f32 %v6209_v16, %v6137_v1  ;;  %9050 = vmatpush1.bf16.msra.mxu1 %v17654_v27  ;;  %9069 = vmatprep.mubr.bf16.mxu1 %v17659_v60  ;;  %v17684_v27 = vld [vmem:[%s25349_s4 + $0x480] ss:$8 sps:$4 sm:$0xff]   ;;  %v17687_v1 = vld [vmem:[%s25349_s4 + $0x70] ss:$8 sps:$4 sm:$0xff]  }
 0x427   : > { %v6211_v19 = vpop.f32.mrf.mxu1  ;;  %9051 = vmatprep.subr.bf16.mxu1 %v17662_v18  ;;  %v6862_v3 = vpop.f32.mrf.mxu0  ;;  %v17689_v18 = vld [vmem:[%s25349_s4 + $0x74] ss:$8 sps:$4 sm:$0xff]   ;;  %v17657_v16 = vld [vmem:[#allocation2 + $0x288] ss:$-360 sps:$4 sm:$0xff]  }
 0x428   : > { %v22538_v45 = vadd.f32 %v6211_v19, %v6139_v13  ;;  %v17692_v19 = vld [vmem:[#allocation2 + $0x184] ss:$456 sps:$4 sm:$0xff]  }
 0x429   : > { %v6213_v0 = vpop.f32.mrf.mxu1  ;;  %v6864_v44 = vpop.f32.mrf.mxu0 }
 0x42a   : > { %v22540_v53 = vadd.f32 %v6213_v0, %v6141_v17  ;;  %9052 = vmatpush1.bf16.msra.mxu1 %v17660_v24  ;;  %v17695_v24 = vld [vmem:[%s25349_s4 + $0x64] ss:$8 sps:$4 sm:$0xff]   ;;  %v6855_v0 = vadd.f32 %v6854_v25, %v22459_v32  ;;  %v17696_v32 = vld [vmem:[%s25349_s4 + $0x50] ss:$8 sps:$4 sm:$0xff]  }
 0x42b   : > { %9053 = vmatprep.subr.bf16.mxu1 %v17665_v43  ;;  %v6866_v49 = vpop.f32.mrf.mxu0  ;;  %v22599_v13 = vpop.f32.mrf.mxu1 }
 0x42d   : > { %v22597_v60 = vpop.f32.mrf.mxu0 }
 0x42e   : > { %9054 = vmatpush2.bf16.msra.mxu1 %v17663_v15  ;;  %v17693_v15 = vld [vmem:[%s25349_s4 + $0x60] ss:$8 sps:$4 sm:$0xff]  }
 0x42f   : > { %9055 = vmatprep.subr.bf16.mxu1 %v17668_v8  ;;  %v6872_v8 = vpop.f32.mrf.mxu0 }
 0x431   : > { %v6874_v25 = vpop.f32.mrf.mxu0 }
 0x432   : > { %9056 = vmatpush2.bf16.msra.mxu1 %v17666_v5 }
 0x433   : > { %9057 = vmatprep.subr.bf16.mxu1 %v17671_v31  ;;  %v6857_v31 = vadd.f32 %v6856_v37, %v22461_v61  ;;  %v17701_v61 = vld [vmem:[#allocation2 + $0x2ec] ss:$-624 sps:$4 sm:$0xff]  }
 0x436   : > { %9058 = vmatpush2.bf16.msra.mxu1 %v17669_v38 }
 0x437   : > { %9059 = vmatprep.subr.bf16.mxu1 %v17674_v36 }
 0x43a   : > { %9060 = vmatpush2.bf16.msra.mxu1 %v17672_v9  ;;  %v17690_v9 = vld [vmem:[#allocation2 + $0x180] ss:$456 sps:$4 sm:$0xff]  }
 0x43b   : > { %9061 = vmatprep.subr.bf16.mxu1 %v17677_v14 }
 0x43e   : > { %9062 = vmatpush2.bf16.msra.mxu1 %v17675_v41  ;;  %v17704_v41 = vld [vmem:[%s25349_s4 + $0x44] ss:$8 sps:$4 sm:$0xff]  }
 0x43f   : > { %9063 = vmatprep.subr.bf16.mxu1 %v17680_v4  ;;  %v6863_v4 = vadd.f32 %v6862_v3, %v22473_v12  ;;  %v17707_v12 = vld [vmem:[%s25349_s4 + $0x34] ss:$8 sps:$4 sm:$0xff]  }
 0x442   : > { %9064 = vmatpush2.bf16.msra.mxu1 %v17678_v59 }
 0x443   : > { %9065 = vmatprep.subr.bf16.mxu1 %v17683_v39  ;;  %v6865_v39 = vadd.f32 %v6864_v44, %v22483_v30  ;;  %v17705_v30 = vld [vmem:[%s25349_s4 + $0x30] ss:$8 sps:$4 sm:$0xff]  }
 0x446   : > { %9066 = vmatpush2.bf16.msra.mxu1 %v17681_v2  ;;  %v17702_v2 = vld [vmem:[%s25349_s4 + $0x40] ss:$8 sps:$4 sm:$0xff]  }
 0x447   : > { %9067 = vmatprep.subr.bf16.mxu1 %v17686_v56  ;;  %v6876_v56 = vpop.f32.mrf.mxu0 }
 0x449   : > { %v22645_v44 = vpop.f32.mrf.mxu0 }
 0x44a   : > { %9068 = vmatpush2.bf16.msra.mxu1 %v17684_v27 }
 0x44b   : > { %9783 = vmatprep.subr.bf16.mxu1 %v17689_v18  ;;  %v6867_v18 = vadd.f32 %v6866_v49, %v22485_v52  ;;  %v6873_v52 = vadd.f32 %v6872_v8, %v22502_v63  ;;  %v17710_v49 = vld [vmem:[#allocation2 + $0x284] ss:$-624 sps:$4 sm:$0xff]  }
 0x44c   : > { %v17716_v63 = vld [vmem:[%s25349_s4 + $0x14] ss:$8 sps:$4 sm:$0xff]  }
 0x44d   : > { %v6925_v43 = vpop.f32.mrf.mxu1  ;;  %9070 = vmatmul.mubr.bf16.vlgmr.msra.gmra.mxu1 %v17657_v16 }
 0x44e   : > { %v22605_v17 = vadd.f32 %v6925_v43, %v6853_v51  ;;  %9079 = vmatprep.mubr.bf16.mxu1 %v17692_v19  ;;  %9784 = vmatpush1.bf16.msra.mxu1 %v17687_v1  ;;  %v17713_v19 = vld [vmem:[%s25349_s4 + $0x24] ss:$8 sps:$4 sm:$0xff]  }
 0x44f   : > { %v6927_v5 = vpop.f32.mrf.mxu1  ;;  %9785 = vmatprep.subr.bf16.mxu1 %v17695_v24  ;;  %v17699_v24 = vld [vmem:[#allocation2 + $0x2e8] ss:$-624 sps:$4 sm:$0xff]  }
 0x450   : > { %v22614_v33 = vadd.f32 %v6927_v5, %v6855_v0  ;;  %v17711_v5 = vld [vmem:[%s25349_s4 + $0x20] ss:$8 sps:$4 sm:$0xff]  }
 0x451   : > { %v6929_v38 = vpop.f32.mrf.mxu1 }
 0x452   : > { %v22617_v36 = vadd.f32 %v6929_v38, %v6857_v31  ;;  %9786 = vmatpush1.bf16.msra.mxu1 %v17693_v15  ;;  %v6875_v15 = vadd.f32 %v6874_v25, %v22512_v22  ;;  %v6877_v38 = vadd.f32 %v6876_v56, %v22514_v42  ;;  %v17714_v22 = vld [vmem:[%s25349_s4 + $0x10] ss:$8 sps:$4 sm:$0xff]   ;;  %v17719_v42 = vld [vmem:[#allocation2 + $0x11c] ss:$-80 sps:$4 sm:$0xff]  }
 0x453   : > { %v22622_v14 = vpop.f32.mrf.mxu1  ;;  %9787 = vmatprep.subr.bf16.mxu1 %v17698_v58  ;;  %v6882_v58 = vpop.f32.mrf.mxu0 }
 0x455   : > { %v6935_v37 = vpop.f32.mrf.mxu1  ;;  %9080 = vmatmul.mubr.bf16.gmra.mxu1 %v17690_v9  ;;  %v6884_v25 = vpop.f32.mrf.mxu0 }
 0x456   : > { %v22628_v59 = vadd.f32 %v6935_v37, %v6863_v4  ;;  %9089 = vmatprep.mubr.bf16.mxu1 %v17701_v61  ;;  %9788 = vmatpush1.bf16.msra.mxu1 %v17696_v32  ;;  %v17722_v61 = vld [vmem:[%s25349_s4 + $0x4] ss:$8 sps:$4 sm:$0xff]   ;;  %v6883_v37 = vadd.f32 %v6882_v58, %v22529_v54  ;;  %v6885_v56 = vadd.f32 %v6884_v25, %v22538_v45  ;;  %v17725_v54 = vld [vmem:[%s25349_s4 + $0xf4] ss:$8 sps:$4 sm:$0xff]  }
 0x457   : > { %v6937_v27 = vpop.f32.mrf.mxu1  ;;  %9789 = vmatprep.subr.bf16.mxu1 %v17704_v41  ;;  %v17708_v41 = vld [vmem:[#allocation2 + $0x280] ss:$-624 sps:$4 sm:$0xff]  }
 0x458   : > { %v22637_v3 = vadd.f32 %v6937_v27, %v6865_v39  ;;  %v17720_v27 = vld [vmem:[%s25349_s4] ss:$8 sps:$4 sm:$0xff]  }
 0x459   : > { %v6939_v1 = vpop.f32.mrf.mxu1 }
 0x45a   : > { %v22640_v16 = vadd.f32 %v6939_v1, %v6867_v18  ;;  %9790 = vmatpush1.bf16.msra.mxu1 %v17702_v2  ;;  %v17812_v1 = vld [vmem:[%s25349_s4 + $0x374] ss:$8 sps:$4 sm:$0xff]  }
 0x45b   : > { %v22647_v51 = vpop.f32.mrf.mxu1  ;;  %9791 = vmatprep.subr.bf16.mxu1 %v17707_v12  ;;  %v6886_v12 = vpop.f32.mrf.mxu0  ;;  %8964 = vmatprep.subr.bf16.mxu0 %v17812_v1  ;;  %v17749_v1 = vld [vmem:[%s25349_s4 + $0x274] ss:$8 sps:$4 sm:$0xff]  }
 0x45d   : > { %v6945_v43 = vpop.f32.mrf.mxu1  ;;  %9090 = vmatmul.mubr.bf16.gmra.mxu1 %v17699_v24  ;;  %v6887_v24 = vadd.f32 %v6886_v12, %v22540_v53  ;;  %v17726_v53 = vld [vmem:[%s25349_s4 + $0xe0] ss:$8 sps:$4 sm:$0xff]   ;;  %v17746_v12 = vld [vmem:[%s25349_s4 + $0x84] ss:$8 sps:$4 sm:$0xff]  }
 0x45e   : > { %v22653_v0 = vadd.f32 %v6945_v43, %v6873_v52  ;;  %9099 = vmatprep.mubr.bf16.mxu1 %v17710_v49  ;;  %9792 = vmatpush1.bf16.msra.mxu1 %v17705_v30  ;;  %v17723_v52 = vld [vmem:[%s25349_s4 + $0xf0] ss:$8 sps:$4 sm:$0xff]   ;;  %v17728_v49 = vld [vmem:[%s25349_s4 + $0xe4] ss:$8 sps:$4 sm:$0xff]   ;;  %v22699_v43 = vpop.f32.mrf.mxu0 }
 0x45f   : > { %v6947_v31 = vpop.f32.mrf.mxu1  ;;  %9793 = vmatprep.subr.bf16.mxu1 %v17713_v19 }
 0x460   : > { %v22662_v8 = vadd.f32 %v6947_v31, %v6875_v15  ;;  %v22701_v15 = vpop.f32.mrf.mxu0  ;;  %v17729_v31 = vld [vmem:[%s25349_s4 + $0xd0] ss:$8 sps:$4 sm:$0xff]  }
 0x461   : > { %v6949_v32 = vpop.f32.mrf.mxu1 }
 0x462   : > { %25576 = vst [vmem:[#allocation22_spill] sm:$0xff] %v22662_v8  ;;  %v22665_v9 = vadd.f32 %v6949_v32, %v6877_v38  ;;  %9794 = vmatpush1.bf16.msra.mxu1 %v17711_v5  ;;  %v17731_v5 = vld [vmem:[%s25349_s4 + $0xd4] ss:$8 sps:$4 sm:$0xff]   ;;  %v22709_v58 = vpop.f32.mrf.mxu0  ;;  %v17732_v32 = vld [vmem:[%s25349_s4 + $0xc0] ss:$8 sps:$4 sm:$0xff]  }
 0x463   : > { %v22670_v4 = vpop.f32.mrf.mxu1  ;;  %9795 = vmatprep.subr.bf16.mxu1 %v17716_v63  ;;  %v17734_v63 = vld [vmem:[%s25349_s4 + $0xc4] ss:$8 sps:$4 sm:$0xff]  }
 0x464   : > { %25577 = vst [vmem:[#allocation12_spill] sm:$0xff] %v22665_v9  ;;  %25578 = vst [vmem:[#allocation23_spill] sm:$0xff] %v22670_v4  ;;  %v22717_v38 = vpop.f32.mrf.mxu0 }
 0x465   : > { %v6955_v39 = vpop.f32.mrf.mxu1  ;;  %9100 = vmatmul.mubr.bf16.gmra.mxu1 %v17708_v41  ;;  %v17735_v41 = vld [vmem:[%s25349_s4 + $0xb0] ss:$8 sps:$4 sm:$0xff]  }
 0x466   : > { %v22676_v2 = vadd.f32 %v6955_v39, %v6883_v37  ;;  %9796 = vmatpush1.bf16.msra.mxu1 %v17714_v22  ;;  %9815 = vmatprep.mubr.bf16.mxu1 %v17719_v42  ;;  %v17737_v22 = vld [vmem:[%s25349_s4 + $0xb4] ss:$8 sps:$4 sm:$0xff]   ;;  %v22725_v25 = vpop.f32.mrf.mxu0  ;;  %v17738_v42 = vld [vmem:[%s25349_s4 + $0xa0] ss:$8 sps:$4 sm:$0xff]  }
 0x467   : > { %v6957_v18 = vpop.f32.mrf.mxu1  ;;  %9797 = vmatprep.subr.bf16.mxu1 %v17722_v61  ;;  %v17740_v61 = vld [vmem:[%s25349_s4 + $0xa4] ss:$8 sps:$4 sm:$0xff]   ;;  %v17743_v39 = vld [vmem:[%s25349_s4 + $0x94] ss:$8 sps:$4 sm:$0xff]  }
 0x468   : > { %25579 = vst [vmem:[#allocation25_spill] sm:$0xff] %v22676_v2  ;;  %v22688_v30 = vadd.f32 %v6957_v18, %v6885_v56  ;;  %v22733_v37 = vpop.f32.mrf.mxu0 }
 0x469   : > { %v6959_v45 = vpop.f32.mrf.mxu1 }
 0x46a   : > { %25580 = vst [vmem:[#allocation13_spill] sm:$0xff] %v22688_v30  ;;  %v22691_v19 = vadd.f32 %v6959_v45, %v6887_v24  ;;  %9798 = vmatpush1.bf16.msra.mxu1 %v17720_v27  ;;  %v22741_v56 = vpop.f32.mrf.mxu0  ;;  %v17741_v27 = vld [vmem:[%s25349_s4 + $0x90] ss:$8 sps:$4 sm:$0xff]  }
 0x46b   : > { %9799 = vmatprep.subr.bf16.mxu1 %v17725_v54  ;;  %v17744_v54 = vld [vmem:[%s25349_s4 + $0x80] ss:$8 sps:$4 sm:$0xff]   ;;  %v17747_v45 = vld [vmem:[%s25349_s4 + $0x270] ss:$8 sps:$4 sm:$0xff]  }
 0x46c   : > { %25581 = vst [vmem:[#allocation24_spill] sm:$0xff] %v22691_v19  ;;  %v22749_v18 = vpop.f32.mrf.mxu0 }
 0x46e   : > { %9800 = vmatpush2.bf16.msra.mxu1 %v17723_v52  ;;  %v22757_v24 = vpop.f32.mrf.mxu0  ;;  %v17717_v52 = vld [vmem:[#allocation2 + $0x118] ss:$-80 sps:$4 sm:$0xff]  }
 0x46f   : > { %9801 = vmatprep.subr.bf16.mxu1 %v17728_v49  ;;  %v17752_v49 = vld [vmem:[%s25349_s4 + $0x264] ss:$8 sps:$4 sm:$0xff]  }
 0x472   : > { %9802 = vmatpush2.bf16.msra.mxu1 %v17726_v53  ;;  %v22765_v53 = vpop.f32.mrf.mxu1 }
 0x473   : > { %9803 = vmatprep.subr.bf16.mxu1 %v17731_v5  ;;  %25582 = vst [vmem:[#allocation3_spill] sm:$0xff] %v22765_v53  ;;  %v22767_v5 = vpop.f32.mrf.mxu0 }
 0x476   : > { %9804 = vmatpush2.bf16.msra.mxu1 %v17729_v31  ;;  %v17750_v31 = vld [vmem:[%s25349_s4 + $0x260] ss:$8 sps:$4 sm:$0xff]  }
 0x477   : > { %9805 = vmatprep.subr.bf16.mxu1 %v17734_v63 }
 0x47a   : > { %9806 = vmatpush2.bf16.msra.mxu1 %v17732_v32  ;;  %v17755_v32 = vld [vmem:[%s25349_s4 + $0x254] ss:$8 sps:$4 sm:$0xff]  }
 0x47b   : > { %9807 = vmatprep.subr.bf16.mxu1 %v17737_v22  ;;  %v22778_v22 = vpop.f32.mrf.mxu0 }
 0x47c   : > { %25583 = vst [vmem:[#allocation11_spill] sm:$0xff] %v22778_v22 }
 0x47e   : > { %9808 = vmatpush2.bf16.msra.mxu1 %v17735_v41  ;;  %v17753_v41 = vld [vmem:[%s25349_s4 + $0x250] ss:$8 sps:$4 sm:$0xff]  }
 0x47f   : > { %9809 = vmatprep.subr.bf16.mxu1 %v17740_v61  ;;  %v17758_v61 = vld [vmem:[%s25349_s4 + $0x244] ss:$8 sps:$4 sm:$0xff]  }
 0x482   : > { %9810 = vmatpush2.bf16.msra.mxu1 %v17738_v42  ;;  %v18624_v42 = vld [vmem:[#allocation2 + $0x220] sm:$0xff] }
 0x483   : > { %9811 = vmatprep.subr.bf16.mxu1 %v17743_v39  ;;  %v18625_v39 = vld [vmem:[#allocation2 + $0x148] sm:$0xff] }
 0x486   : > { %9812 = vmatpush2.bf16.msra.mxu1 %v17741_v27  ;;  %v15573_v27 = vcombine.high %v18625_v39, %v18624_v42 }
 0x487   : > { %9813 = vmatprep.subr.bf16.mxu1 %v17746_v12  ;;  %v22789_v12 = vpop.f32.mrf.mxu0 }
 0x488   : > { %25584 = vst [vmem:[#allocation4_spill] sm:$0xff] %v22789_v12 }
 0x48a   : > { %9814 = vmatpush2.bf16.msra.mxu1 %v17744_v54  ;;  %v17756_v54 = vld [vmem:[%s25349_s4 + $0x240] ss:$8 sps:$4 sm:$0xff]  }
 0x48b   : > { %9929 = vmatprep.subr.bf16.mxu1 %v17749_v1 }
 0x48d   : > { %9816 = vmatmul.mubr.bf16.vlgmr.msra.gmra.mxu1 %v17717_v52  ;;  %v22773_v63 = vpop.f32.mrf.mxu1  ;;  %v22799_v52 = vpop.f32.mrf.mxu0 }
 0x48e   : > { %9825 = vmatprep.mubr.bf16.mxu1 %v25574_v28  ;;  %9930 = vmatpush1.bf16.msra.mxu1 %v17747_v45  ;;  %v17761_v45 = vld [vmem:[%s25349_s4 + $0x234] ss:$8 sps:$4 sm:$0xff]   ;;  %25585 = vst [vmem:[#allocation15_spill] sm:$0xff] %v22799_v52 }
 0x48f   : > { %9931 = vmatprep.subr.bf16.mxu1 %v17752_v49  ;;  %v22783_v28 = vpop.f32.mrf.mxu1  ;;  %v22809_v19 = vpop.f32.mrf.mxu0 }
 0x490   : > { %25586 = vst [vmem:[#allocation26_spill] sm:$0xff] %v22809_v19 }
 0x491   : > { %v22794_v1 = vpop.f32.mrf.mxu1 }
 0x492   : > { %9932 = vmatpush1.bf16.msra.mxu1 %v17750_v31  ;;  %v15572_v31 = vcombine.low %v18625_v39, %v18624_v42  ;;  %v17767_v42 = vld [vmem:[%s25349_s4 + $0x214] ss:$8 sps:$4 sm:$0xff]  }
 0x493   : > { %9933 = vmatprep.subr.bf16.mxu1 %v17755_v32  ;;  %v22804_v49 = vpop.f32.mrf.mxu1  ;;  %v17764_v32 = vld [vmem:[%s25349_s4 + $0x224] ss:$8 sps:$4 sm:$0xff]   ;;  %v22819_v39 = vld [vmem:[#allocation2 + $0x90] sm:$0xff] }
 0x495   : > { %9826 = vmatmul.mubr.bf16.gmra.mxu1 %v25575_v21  ;;  %v17759_v21 = vld [vmem:[%s25349_s4 + $0x230] ss:$8 sps:$4 sm:$0xff]   ;;  %v22814_v53 = vpop.f32.mrf.mxu1 }
 0x496   : > { %9835 = vmatprep.mubr.bf16.mxu1 %v15573_v27  ;;  %9934 = vmatpush1.bf16.msra.mxu1 %v17753_v41  ;;  %v18626_v41 = vld [vmem:[#allocation2 + $0x350] sm:$0xff] }
 0x497   : > { %9935 = vmatprep.subr.bf16.mxu1 %v17758_v61  ;;  %v18627_v61 = vld [vmem:[#allocation2 + $0xd0] sm:$0xff] }
 0x498   : > { %v15579_v27 = vcombine.high %v18627_v61, %v18626_v41  ;;  %v15578_v30 = vcombine.low %v18627_v61, %v18626_v41  ;;  %v17773_v41 = vld [vmem:[%s25349_s4 + $0x2f4] ss:$8 sps:$4 sm:$0xff]  }
 0x49a   : > { %9936 = vmatpush1.bf16.msra.mxu1 %v17756_v54  ;;  %v17762_v54 = vld [vmem:[%s25349_s4 + $0x220] ss:$8 sps:$4 sm:$0xff]  }
 0x49b   : > { %9937 = vmatprep.subr.bf16.mxu1 %v17761_v45  ;;  %v22821_v45 = vld [vmem:[#allocation2 + $0x250] sm:$0xff] }
 0x49c   : > { %v15565_v19 = vcombine.high %v22819_v39, %v22821_v45  ;;  %v15564_v8 = vcombine.low %v22819_v39, %v22821_v45  ;;  %v18628_v45 = vld [vmem:[#allocation2 + $0x1d0] sm:$0xff] }
 0x49d   : > { %9836 = vmatmul.mubr.bf16.gmra.mxu1 %v15572_v31  ;;  %v22823_v31 = vpop.f32.mrf.mxu0 }
 0x49e   : > { %9845 = vmatprep.mubr.bf16.mxu1 %v15579_v27  ;;  %9938 = vmatpush1.bf16.msra.mxu1 %v17759_v21  ;;  %25587 = vst [vmem:[#allocation37_spill] sm:$0xff] %v22823_v31  ;;  %v17765_v21 = vld [vmem:[%s25349_s4 + $0x210] ss:$8 sps:$4 sm:$0xff]   ;;  %v22828_v27 = vpop.f32.mrf.mxu1 }
 0x49f   : > { %9939 = vmatprep.subr.bf16.mxu1 %v17764_v32  ;;  %v17770_v32 = vld [vmem:[%s25349_s4 + $0x204] ss:$8 sps:$4 sm:$0xff]   ;;  %v22835_v2 = vpop.f32.mrf.mxu0 }
 0x4a0   : > { %25588 = vst [vmem:[#allocation14_spill] sm:$0xff] %v22835_v2  ;;  %v22840_v31 = vpop.f32.mrf.mxu1 }
 0x4a1   : > { %v22845_v61 = vpop.f32.mrf.mxu0 }
 0x4a2   : > { %9940 = vmatpush1.bf16.msra.mxu1 %v17762_v54  ;;  %v17768_v54 = vld [vmem:[%s25349_s4 + $0x200] ss:$8 sps:$4 sm:$0xff]   ;;  %25589 = vst [vmem:[#allocation18_spill] sm:$0xff] %v22845_v61 }
 0x4a3   : > { %9941 = vmatprep.subr.bf16.mxu1 %v17767_v42  ;;  %v22850_v42 = vpop.f32.mrf.mxu1 }
 0x4a4   : > { %25590 = vst [vmem:[#allocation27_spill] sm:$0xff] %v22850_v42 }
 0x4a5   : > { %9846 = vmatmul.mubr.bf16.gmra.mxu1 %v15578_v30  ;;  %v17771_v30 = vld [vmem:[%s25349_s4 + $0x2f0] ss:$8 sps:$4 sm:$0xff]   ;;  %v22858_v2 = vpop.f32.mrf.mxu1 }
 0x4a6   : > { %9942 = vmatpush1.bf16.msra.mxu1 %v17765_v21  ;;  %9961 = vmatprep.mubr.bf16.mxu1 %v15565_v19  ;;  %v17776_v19 = vld [vmem:[%s25349_s4 + $0x2e4] ss:$8 sps:$4 sm:$0xff]   ;;  %v7865_v21 = vpop.f32.mrf.mxu0  ;;  %25591 = vst [vmem:[#allocation32_spill] sm:$0xff] %v22858_v2 }
 0x4a7   : > { %9943 = vmatprep.subr.bf16.mxu1 %v17770_v32  ;;  %v17774_v32 = vld [vmem:[%s25349_s4 + $0x2e0] ss:$8 sps:$4 sm:$0xff]   ;;  %v22866_v52 = vpop.f32.mrf.mxu1 }
 0x4a8   : > { %v7867_v61 = vpop.f32.mrf.mxu0  ;;  %25592 = vst [vmem:[#allocation33_spill] sm:$0xff] %v22866_v52 }
 0x4a9   : > { %v22876_v2 = vpop.f32.mrf.mxu1 }
 0x4aa   : > { %9944 = vmatpush1.bf16.msra.mxu1 %v17768_v54  ;;  %v17779_v54 = vld [vmem:[%s25349_s4 + $0x2d4] ss:$8 sps:$4 sm:$0xff]   ;;  %v22871_v12 = vpop.f32.mrf.mxu0  ;;  %25593 = vst [vmem:[#allocation38_spill] sm:$0xff] %v22876_v2 }
 0x4ab   : > { %9945 = vmatprep.subr.bf16.mxu1 %v17773_v41  ;;  %v17777_v41 = vld [vmem:[%s25349_s4 + $0x2d0] ss:$8 sps:$4 sm:$0xff]   ;;  %v22886_v9 = vpop.f32.mrf.mxu1 }
 0x4ac   : > { %v22881_v52 = vpop.f32.mrf.mxu0  ;;  %25594 = vst [vmem:[#allocation28_spill] sm:$0xff] %v22886_v9 }
 0x4ad   : > { %v22896_v42 = vpop.f32.mrf.mxu1 }
 0x4ae   : > { %9946 = vmatpush2.bf16.msra.mxu1 %v17771_v30  ;;  %v17782_v30 = vld [vmem:[%s25349_s4 + $0x2c4] ss:$8 sps:$4 sm:$0xff]   ;;  %v22891_v2 = vpop.f32.mrf.mxu0  ;;  %25595 = vst [vmem:[#allocation34_spill] sm:$0xff] %v22896_v42 }
 0x4af   : > { %9947 = vmatprep.subr.bf16.mxu1 %v17776_v19  ;;  %v17780_v19 = vld [vmem:[%s25349_s4 + $0x2c0] ss:$8 sps:$4 sm:$0xff]   ;;  %v22906_v4 = vpop.f32.mrf.mxu1 }
 0x4b0   : > { %v22901_v9 = vpop.f32.mrf.mxu0  ;;  %25596 = vst [vmem:[#allocation39_spill] sm:$0xff] %v22906_v4 }
 0x4b1   : > { %v22918_v47 = vpop.f32.mrf.mxu1 }
 0x4b2   : > { %9948 = vmatpush2.bf16.msra.mxu1 %v17774_v32  ;;  %v17785_v32 = vld [vmem:[%s25349_s4 + $0x2b4] ss:$8 sps:$4 sm:$0xff]   ;;  %v22911_v42 = vpop.f32.mrf.mxu0  ;;  %25597 = vst [vmem:[#allocation29_spill] sm:$0xff] %v22918_v47  ;;  %v7866_v47 = vadd.f32 %v7865_v21, %v22773_v63  ;;  %v18631_v21 = vld [vmem:[#allocation2 + $0xe8] sm:$0xff] }
 0x4b3   : > { %9949 = vmatprep.subr.bf16.mxu1 %v17779_v54  ;;  %v17783_v54 = vld [vmem:[%s25349_s4 + $0x2b0] ss:$8 sps:$4 sm:$0xff]  }
 0x4b4   : > { %v22923_v4 = vpop.f32.mrf.mxu0 }
 0x4b5   : > { %25598 = vst [vmem:[#allocation16_spill] sm:$0xff] %v22923_v4  ;;  %v6999_v4 = vadd.f32 %v22701_v15, %v22605_v17  ;;  %v17803_v17 = vld [vmem:[%s25349_s4 + $0x754] ss:$8 sps:$4 sm:$0xff]  }
 0x4b6   : > { %9950 = vmatpush2.bf16.msra.mxu1 %v17777_v41  ;;  %v17788_v41 = vld [vmem:[%s25349_s4 + $0x2a4] ss:$8 sps:$4 sm:$0xff]  }
 0x4b7   : > { %9951 = vmatprep.subr.bf16.mxu1 %v17782_v30  ;;  %v17786_v30 = vld [vmem:[%s25349_s4 + $0x2a0] ss:$8 sps:$4 sm:$0xff]  }
 0x4ba   : > { %9952 = vmatpush2.bf16.msra.mxu1 %v17780_v19  ;;  %v17791_v19 = vld [vmem:[%s25349_s4 + $0x294] ss:$8 sps:$4 sm:$0xff]  }
 0x4bb   : > { %9953 = vmatprep.subr.bf16.mxu1 %v17785_v32  ;;  %v17789_v32 = vld [vmem:[%s25349_s4 + $0x290] ss:$8 sps:$4 sm:$0xff]  }
 0x4be   : > { %9954 = vmatpush2.bf16.msra.mxu1 %v17783_v54  ;;  %v17794_v54 = vld [vmem:[%s25349_s4 + $0x284] ss:$8 sps:$4 sm:$0xff]  }
 0x4bf   : > { %9955 = vmatprep.subr.bf16.mxu1 %v17788_v41  ;;  %v17792_v41 = vld [vmem:[%s25349_s4 + $0x280] ss:$8 sps:$4 sm:$0xff]  }
 0x4c2   : > { %9956 = vmatpush2.bf16.msra.mxu1 %v17786_v30  ;;  %v6113_v30 = vadd.f32 %v22407_v48, %v22340_v10  ;;  %v22931_v10 = vpop.f32.mrf.mxu1  ;;  %v17800_v48 = vld [vmem:[%s25349_s4 + $0x764] ss:$8 sps:$4 sm:$0xff]  }
 0x4c3   : > { %9957 = vmatprep.subr.bf16.mxu1 %v17791_v19  ;;  %v17797_v19 = vld [vmem:[%s25349_s4 + $0x774] ss:$8 sps:$4 sm:$0xff]   ;;  %25599 = vst [vmem:[#allocation40_spill] sm:$0xff] %v22931_v10 }
 0x4c4   : > { %v6186_v22 = vadd.f32 %v22466_v57, %v6113_v30  ;;  %v6123_v57 = vadd.f32 %v22441_v23, %v22375_v46  ;;  %v17798_v46 = vld [vmem:[%s25349_s4 + $0x760] ss:$8 sps:$4 sm:$0xff]  }
 0x4c6   : > { %9958 = vmatpush2.bf16.msra.mxu1 %v17789_v32  ;;  %v17795_v32 = vld [vmem:[%s25349_s4 + $0x770] ss:$8 sps:$4 sm:$0xff]   ;;  %v6859_v30 = vadd.f32 %v22571_v35, %v6186_v22  ;;  %v7003_v22 = vadd.f32 %v22717_v38, %v22617_v36 }
 0x4c7   : > { %9959 = vmatprep.subr.bf16.mxu1 %v17794_v54  ;;  %v22936_v54 = vpop.f32.mrf.mxu0 }
 0x4c8   : > { %25600 = vst [vmem:[#allocation41_spill] sm:$0xff] %v22936_v54  ;;  %v7868_v54 = vadd.f32 %v7867_v61, %v22783_v28  ;;  %v18630_v61 = vld [vmem:[#allocation2 + $0x138] sm:$0xff] }
 0x4ca   : > { %9960 = vmatpush2.bf16.msra.mxu1 %v17792_v41  ;;  %v6133_v41 = vadd.f32 %v22490_v50, %v22409_v7  ;;  %v6196_v7 = vadd.f32 %v22492_v40, %v6123_v57  ;;  %v6932_v50 = vadd.f32 %v22622_v14, %v6859_v30  ;;  %v7870_v40 = vadd.f32 %v22871_v12, %v22794_v1 }
 0x4cb   : > { %10796 = vmatprep.subr.bf16.mxu1 %v17797_v19  ;;  %v18629_v19 = vld [vmem:[#allocation2 + $0x140] sm:$0xff]  ;;  %v6143_v14 = vadd.f32 %v22548_v11, %v22443_v6  ;;  %v17801_v6 = vld [vmem:[%s25349_s4 + $0x750] ss:$8 sps:$4 sm:$0xff]   ;;  %v7009_v57 = vadd.f32 %v22733_v37, %v22628_v59 }
 0x4cc   : > { %v22944_v10 = vcombine.low %v18628_v45, %v18629_v19  ;;  %v6206_v23 = vadd.f32 %v22521_v62, %v6133_v41  ;;  %v7005_v36 = vadd.f32 %v22725_v25, %v6932_v50  ;;  %v6869_v38 = vadd.f32 %v22597_v60, %v6196_v7 }
 0x4cd   : > { %v7938_v39 = vpop.f32.mrf.mxu1  ;;  %9962 = vmatmul.mubr.bf16.vlgmr.msra.gmra.mxu1 %v15564_v8  ;;  %v7001_v8 = vadd.f32 %v22709_v58, %v22614_v33  ;;  %v7872_v33 = vadd.f32 %v22881_v52, %v22804_v49  ;;  %v6216_v11 = vadd.f32 %v22599_v13, %v6143_v14  ;;  %v17806_v52 = vld [vmem:[%s25349_s4 + $0x744] ss:$8 sps:$4 sm:$0xff]   ;;  %v7876_v13 = vadd.f32 %v22891_v2, %v22814_v53  ;;  %v17807_v14 = vld [vmem:[%s25349_s4 + $0x730] ss:$8 sps:$4 sm:$0xff]  }
 0x4ce   : > { %v7939_v63 = vadd.f32 %v7938_v39, %v7866_v47  ;;  %9971 = vmatprep.mubr.bf16.mxu1 %v22498_v29  ;;  %10797 = vmatpush1.bf16.msra.mxu1 %v17795_v32  ;;  %v22959_v47 = vcombine.high %v18628_v45, %v18629_v19  ;;  %v22961_v29 = vpop.f32.mrf.mxu0  ;;  %v22971_v32 = vcombine.low %v18630_v61, %v18631_v21 }
 0x4cf   : > { %v7940_v35 = vpop.f32.mrf.mxu1  ;;  %10798 = vmatprep.subr.bf16.mxu1 %v17800_v48  ;;  %v22973_v48 = vcombine.high %v18630_v61, %v18631_v21  ;;  %v6879_v1 = vadd.f32 %v22645_v44, %v6206_v23  ;;  %v6942_v60 = vadd.f32 %v22647_v51, %v6869_v38  ;;  %v7878_v44 = vadd.f32 %v22901_v9, %v22828_v27  ;;  %v17804_v51 = vld [vmem:[%s25349_s4 + $0x740] ss:$8 sps:$4 sm:$0xff]   ;;  %v25610_v38 = vld [vmem:[#allocation41_spill] sm:$0xff] }
 0x4d0   : > { %v7977_v15 = vadd.f32 %v7939_v63, %v6999_v4  ;;  %v7941_v62 = vadd.f32 %v7940_v35, %v7868_v54  ;;  %v22988_v49 = vpop.f32.mrf.mxu0  ;;  %v7011_v9 = vadd.f32 %v22741_v56, %v22637_v3  ;;  %v7013_v2 = vadd.f32 %v22749_v18, %v22640_v16  ;;  %v17809_v63 = vld [vmem:[%s25349_s4 + $0x734] ss:$8 sps:$4 sm:$0xff]   ;;  %v25606_v61 = vld [vmem:[#allocation16_spill] sm:$0xff] }
 0x4d1   : > { %v7942_v28 = vpop.f32.mrf.mxu1  ;;  %v23010_v53 = vadd.f32 %v22699_v43, %v6216_v11  ;;  %v7015_v16 = vadd.f32 %v22757_v24, %v6942_v60  ;;  %v7019_v43 = vadd.f32 %v22767_v5, %v22653_v0  ;;  %v25601_v18 = vld [vmem:[#allocation22_spill] sm:$0xff]  ;;  %v25603_v35 = vld [vmem:[#allocation9_spill] sm:$0xff] }
 0x4d2   : > { %v7993_v58 = vmul.f32 %v7977_v15, %v21613_v34  ;;  %v7978_v4 = vadd.f32 %v7941_v62, %v7001_v8  ;;  %v7943_v12 = vadd.f32 %v7942_v28, %v7870_v40  ;;  %10799 = vmatpush1.bf16.msra.mxu1 %v17798_v46  ;;  %v7891_v46 = vpop.f32.mrf.mxu0  ;;  %v25605_v28 = vld [vmem:[#allocation27_spill] sm:$0xff] }
 0x4d3   : > { %v7944_v54 = vpop.f32.mrf.mxu1  ;;  %10800 = vmatprep.subr.bf16.mxu1 %v17803_v17  ;;  %v7882_v0 = vadd.f32 %v25606_v61, %v25605_v28 }
 0x4d4   : > { %v7979_v41 = vadd.f32 %v7943_v12, %v7003_v22  ;;  %v7945_v25 = vadd.f32 %v7944_v54, %v7872_v33  ;;  %v8009_v30 = vadd.f32 %v7993_v58, %v21635_v20  ;;  %v7994_v39 = vmul.f32 %v7978_v4, %v21638_v55  ;;  %v25604_v22 = vld [vmem:[#allocation23_spill] sm:$0xff]  ;;  %v7895_v4 = vpop.f32.mrf.mxu0  ;;  %v25607_v12 = vld [vmem:[#allocation12_spill] sm:$0xff] }
 0x4d5   : > { %v7948_v45 = vpop.f32.mrf.mxu1  ;;  %9972 = vmatmul.mubr.bf16.gmra.mxu1 %v22519_v26  ;;  %v7880_v26 = vadd.f32 %v22911_v42, %v22840_v31  ;;  %v25602_v31 = vld [vmem:[#allocation11_spill] sm:$0xff]  ;;  %v6952_v24 = vadd.f32 %v25604_v22, %v6879_v1  ;;  %v25618_v22 = vld [vmem:[#allocation28_spill] sm:$0xff] }
 0x4d6   : > { %v7995_v19 = vmul.f32 %v7979_v41, %v21613_v34  ;;  %v7980_v59 = vadd.f32 %v7945_v25, %v7005_v36  ;;  %v7949_v37 = vadd.f32 %v7948_v45, %v7876_v13  ;;  %9981 = vmatprep.mubr.bf16.mxu1 %v22959_v47  ;;  %10801 = vmatpush1.bf16.msra.mxu1 %v17801_v6  ;;  %v8025_v8 = vmax.f32 %v8009_v30, 0.0  ;;  %v17815_v58 = vld [vmem:[%s25349_s4 + $0x724] ss:$8 sps:$4 sm:$0xff]  }
 0x4d7   : > { %v7950_v27 = vpop.f32.mrf.mxu1  ;;  %10802 = vmatprep.subr.bf16.mxu1 %v17806_v52  ;;  %v7021_v42 = vadd.f32 %v25602_v31, %v25601_v18  ;;  %v8010_v17 = vadd.f32 %v7994_v39, %v25603_v35  ;;  %v25608_v6 = vld [vmem:[#allocation4_spill] sm:$0xff]  ;;  %v25614_v31 = vld [vmem:[#allocation25_spill] sm:$0xff] }
 0x4d8   : > { %v8011_v7 = vadd.f32 %v7995_v19, %v21635_v20  ;;  %v7996_v3 = vmul.f32 %v7980_v59, %v21638_v55  ;;  %v7981_v56 = vadd.f32 %v7949_v37, %v7009_v57  ;;  %v7951_v23 = vadd.f32 %v7950_v27, %v7878_v44  ;;  %v25609_v36 = vld [vmem:[#allocation32_spill] sm:$0xff]  ;;  %v25611_v44 = vld [vmem:[#allocation33_spill] sm:$0xff]  ;;  %v25612_v59 = vld [vmem:[#allocation15_spill] sm:$0xff] }
 0x4d9   : > { %v7952_v50 = vpop.f32.mrf.mxu1  ;;  %v7023_v11 = vadd.f32 %v25608_v6, %v25607_v12  ;;  %v7886_v1 = vadd.f32 %v25610_v38, %v25609_v36  ;;  %v8026_v25 = vmax.f32 %v8010_v17, 0.0  ;;  %v7888_v30 = vadd.f32 %v22961_v29, %v25611_v44  ;;  %v17813_v19 = vld [vmem:[%s25349_s4 + $0x720] ss:$8 sps:$4 sm:$0xff]   ;;  %v17810_v29 = vld [vmem:[%s25349_s4 + $0x370] ss:$8 sps:$4 sm:$0xff]  }
 0x4da   : > { %v8027_v40 = vmax.f32 %v8011_v7, 0.0  ;;  %v7982_v15 = vadd.f32 %v7951_v23, %v7011_v9  ;;  %v7953_v62 = vadd.f32 %v7952_v50, %v7880_v26  ;;  %10803 = vmatpush1.bf16.msra.mxu1 %v17804_v51  ;;  %v7997_v5 = vmul.f32 %v7981_v56, %v21613_v34  ;;  %v17821_v27 = vld [vmem:[%s25349_s4 + $0x714] ss:$8 sps:$4 sm:$0xff]   ;;  %v17830_v6 = vld [vmem:[%s25349_s4 + $0x704] ss:$8 sps:$4 sm:$0xff]  }
 0x4db   : > { %v7954_v21 = vpop.f32.mrf.mxu1  ;;  %10804 = vmatprep.subr.bf16.mxu1 %v17809_v63  ;;  %v8012_v33 = vadd.f32 %v7996_v3, %v25603_v35  ;;  %v7025_v37 = vadd.f32 %v25612_v59, %v6952_v24  ;;  %v7897_v63 = vpop.f32.mrf.mxu0  ;;  %v25613_v7 = vld [vmem:[#allocation38_spill] sm:$0xff]  ;;  %v25622_v59 = vld [vmem:[#allocation29_spill] sm:$0xff] }
 0x4dc   : > { %v8041_v54 = vpack.c.bf16 %v8027_v40, %v8025_v8  ;;  %v7983_v52 = vadd.f32 %v7953_v62, %v7013_v2  ;;  %v7998_v57 = vmul.f32 %v7982_v15, %v21638_v55  ;;  %v7955_v13 = vadd.f32 %v7954_v21, %v7882_v0  ;;  %v25615_v50 = vld [vmem:[#allocation26_spill] sm:$0xff]  ;;  %v25616_v8 = vld [vmem:[#allocation13_spill] sm:$0xff] }
 0x4dd   : > { %v7958_v41 = vpop.f32.mrf.mxu1  ;;  %9982 = vmatmul.mubr.bf16.gmra.mxu1 %v22944_v10  ;;  %v8028_v60 = vmax.f32 %v8012_v33, 0.0  ;;  %v8013_v51 = vadd.f32 %v7997_v5, %v21635_v20  ;;  %v7890_v3 = vadd.f32 %v22988_v49, %v25613_v7  ;;  %v7029_v17 = vadd.f32 %v25615_v50, %v25614_v31  ;;  %v25617_v40 = vld [vmem:[#allocation37_spill] sm:$0xff]  ;;  %v25619_v5 = vld [vmem:[#allocation3_spill] sm:$0xff]  ;;  %v7899_v36 = vpop.f32.mrf.mxu0  ;;  %v25620_v38 = vld [vmem:[#allocation34_spill] sm:$0xff] }
 0x4de   : > { %v7999_v39 = vmul.f32 %v7983_v52, %v21613_v34  ;;  %v7959_v45 = vadd.f32 %v7958_v41, %v7886_v1  ;;  %9991 = vmatprep.mubr.bf16.mxu1 %v22973_v48  ;;  %10805 = vmatpush1.bf16.msra.mxu1 %v17807_v14  ;;  %v7984_v9 = vadd.f32 %v7955_v13, %v7015_v16  ;;  %v17818_v16 = vld [vmem:[%s25349_s4 + $0x364] ss:$8 sps:$4 sm:$0xff]   ;;  %v17819_v0 = vld [vmem:[%s25349_s4 + $0x710] ss:$8 sps:$4 sm:$0xff]   ;;  %v17827_v41 = vld [vmem:[%s25349_s4 + $0x354] ss:$8 sps:$4 sm:$0xff]  }
 0x4df   : > { %v7960_v2 = vpop.f32.mrf.mxu1  ;;  %v8042_v26 = vpack.c.bf16 %v8028_v60, %v8026_v25  ;;  %10806 = vmatprep.subr.bf16.mxu1 %v17815_v58  ;;  %v23067_v15 = vadd.f32 %v25617_v40, %v25616_v8  ;;  %v8014_v49 = vadd.f32 %v7998_v57, %v25603_v35  ;;  %v23077_v21 = vadd.f32 %v25619_v5, %v23010_v53  ;;  %v25621_v1 = vld [vmem:[#allocation39_spill] sm:$0xff]  ;;  %v25625_v50 = vld [vmem:[#allocation40_spill] sm:$0xff]  ;;  %v25626_v5 = vld [vmem:[#allocation18_spill] sm:$0xff] }
 0x4e0   : > { %v8015_v56 = vadd.f32 %v7999_v39, %v21635_v20  ;;  %v7985_v23 = vadd.f32 %v7959_v45, %v7019_v43  ;;  %v7961_v18 = vadd.f32 %v7960_v2, %v7888_v30  ;;  %v8000_v62 = vmul.f32 %v7984_v9, %v21638_v55  ;;  %v17824_v13 = vld [vmem:[#allocation2 + $0x184] ss:$456 sps:$4 sm:$0xff]  }
 0x4e1   : > { %8081 = vmatprep.mubr.bf16.mxu0 %v8042_v26  ;;  %v7962_v14 = vpop.f32.mrf.mxu1  ;;  %v7892_v43 = vadd.f32 %v7891_v46, %v25618_v22  ;;  %v8029_v33 = vmax.f32 %v8013_v51, 0.0  ;;  %v17816_v46 = vld [vmem:[%s25349_s4 + $0x360] ss:$8 sps:$4 sm:$0xff]   ;;  %v7896_v53 = vadd.f32 %v7895_v4, %v25620_v38  ;;  %v8030_v44 = vmax.f32 %v8014_v49, 0.0 }
 0x4e2   : > { %v8031_v24 = vmax.f32 %v8015_v56, 0.0  ;;  %v7986_v28 = vadd.f32 %v7961_v18, %v7021_v42  ;;  %v7963_v61 = vadd.f32 %v7962_v14, %v7890_v3  ;;  %8082 = vmatmul.mubr.bf16.vlgmr.msra.gmra.mxu0 %v8041_v54  ;;  %10807 = vmatpush1.bf16.msra.mxu1 %v17813_v19  ;;  %v8001_v58 = vmul.f32 %v7985_v23, %v21613_v34  ;;  %v17833_v23 = vld [vmem:[%s25349_s4 + $0x344] ss:$8 sps:$4 sm:$0xff]  }
 0x4e3   : > { %8965 = vmatpush1.bf16.msra.mxu0 %v17810_v29  ;;  %v7964_v12 = vpop.f32.mrf.mxu1  ;;  %10808 = vmatprep.subr.bf16.mxu1 %v17821_v27  ;;  %v8016_v42 = vadd.f32 %v8000_v62, %v25603_v35  ;;  %v7898_v54 = vadd.f32 %v7897_v63, %v25621_v1  ;;  %v7900_v51 = vadd.f32 %v7899_v36, %v25622_v59  ;;  %v17825_v29 = vld [vmem:[%s25349_s4 + $0x350] ss:$8 sps:$4 sm:$0xff]   ;;  %v7901_v27 = vpop.f32.mrf.mxu0  ;;  %v25623_v18 = vld [vmem:[#allocation24_spill] sm:$0xff] }
 0x4e4   : > { %v7987_v52 = vadd.f32 %v7963_v61, %v7023_v11  ;;  %v7965_v57 = vadd.f32 %v7964_v12, %v7892_v43  ;;  %8966 = vmatprep.subr.bf16.mxu0 %v17818_v16  ;;  %v8002_v25 = vmul.f32 %v7986_v28, %v21638_v55  ;;  %v8043_v39 = vpack.c.bf16 %v8031_v24, %v8029_v33  ;;  %v17828_v11 = vld [vmem:[%s25349_s4 + $0x700] ss:$8 sps:$4 sm:$0xff]   ;;  %v25624_v16 = vld [vmem:[#allocation14_spill] sm:$0xff] }
 0x4e5   : > { %v7968_v60 = vpop.f32.mrf.mxu1  ;;  %9992 = vmatmul.mubr.bf16.gmra.mxu1 %v22971_v32  ;;  %v8032_v30 = vmax.f32 %v8016_v42, 0.0  ;;  %v8017_v9 = vadd.f32 %v8001_v58, %v21635_v20  ;;  %v7033_v31 = vadd.f32 %v25624_v16, %v25623_v18  ;;  %v7902_v8 = vadd.f32 %v7901_v27, %v25625_v50  ;;  %v17834_v43 = vld [vmem:[%s25349_s4 + $0x7f0] ss:$8 sps:$4 sm:$0xff]   ;;  %v17831_v61 = vld [vmem:[%s25349_s4 + $0x340] ss:$8 sps:$4 sm:$0xff]  }
 0x4e6   : > { %v8003_v4 = vmul.f32 %v7987_v52, %v21613_v34  ;;  %v7988_v45 = vadd.f32 %v7965_v57, %v7025_v37  ;;  %v7969_v19 = vadd.f32 %v7968_v60, %v7896_v53  ;;  %10809 = vmatpush1.bf16.msra.mxu1 %v17819_v0  ;;  %10828 = vmatprep.mubr.bf16.mxu1 %v17824_v13  ;;  %v17836_v37 = vld [vmem:[%s25349_s4 + $0x7f4] ss:$8 sps:$4 sm:$0xff]   ;;  %v17837_v57 = vld [vmem:[%s25349_s4 + $0x330] ss:$8 sps:$4 sm:$0xff]   ;;  %v17845_v60 = vld [vmem:[%s25349_s4 + $0x324] ss:$8 sps:$4 sm:$0xff]  }
 0x4e7   : > { %8967 = vmatpush1.bf16.msra.mxu0 %v17816_v46  ;;  %v7970_v2 = vpop.f32.mrf.mxu1  ;;  %v8044_v26 = vpack.c.bf16 %v8032_v30, %v8030_v44  ;;  %10810 = vmatprep.subr.bf16.mxu1 %v17830_v6  ;;  %v8018_v62 = vadd.f32 %v8002_v25, %v25603_v35  ;;  %v8033_v24 = vmax.f32 %v8017_v9, 0.0  ;;  %v7035_v33 = vadd.f32 %v25626_v5, %v23077_v21  ;;  %v17839_v42 = vld [vmem:[%s25349_s4 + $0x334] ss:$8 sps:$4 sm:$0xff]   ;;  %v17840_v21 = vld [vmem:[%s25349_s4 + $0x7e0] ss:$8 sps:$4 sm:$0xff]  }
 0x4e8   : > { %v8019_v63 = vadd.f32 %v8003_v4, %v21635_v20  ;;  %v8004_v7 = vmul.f32 %v7988_v45, %v21638_v55  ;;  %v7989_v3 = vadd.f32 %v7969_v19, %v7029_v17  ;;  %v7971_v56 = vadd.f32 %v7970_v2, %v7898_v54  ;;  %8968 = vmatprep.subr.bf16.mxu0 %v17827_v41  ;;  %v17848_v13 = vld [vmem:[%s25349_s4 + $0x7d4] ss:$8 sps:$4 sm:$0xff]   ;;  %v17846_v4 = vld [vmem:[%s25349_s4 + $0x7d0] ss:$8 sps:$4 sm:$0xff]   ;;  %v17843_v19 = vld [vmem:[%s25349_s4 + $0x320] ss:$8 sps:$4 sm:$0xff]  }
 0x4e9   : > { %8089 = vmatprep.mubr.bf16.mxu0 %v8044_v26  ;;  %v7972_v40 = vpop.f32.mrf.mxu1  ;;  %v8034_v6 = vmax.f32 %v8018_v62, 0.0  ;;  %v17851_v9 = vld [vmem:[%s25349_s4 + $0x314] ss:$8 sps:$4 sm:$0xff]   ;;  %v17860_v27 = vld [vmem:[%s25349_s4 + $0x304] ss:$8 sps:$4 sm:$0xff]  }
 0x4ea   : > { %v8035_v14 = vmax.f32 %v8019_v63, 0.0  ;;  %v8005_v49 = vmul.f32 %v7989_v3, %v21613_v34  ;;  %v7990_v17 = vadd.f32 %v7971_v56, %v23067_v15  ;;  %v7973_v22 = vadd.f32 %v7972_v40, %v7900_v51  ;;  %8090 = vmatmul.mubr.bf16.gmra.mxu0 %v8043_v39  ;;  %10811 = vmatpush1.bf16.msra.mxu1 %v17828_v11  ;;  %v17842_v15 = vld [vmem:[%s25349_s4 + $0x7e4] ss:$8 sps:$4 sm:$0xff]   ;;  %v17863_v63 = vld [vmem:[%s25349_s4 + $0x7b4] ss:$8 sps:$4 sm:$0xff]  }
 0x4eb   : > { %8969 = vmatpush1.bf16.msra.mxu0 %v17825_v29  ;;  %v7974_v28 = vpop.f32.mrf.mxu1  ;;  %10812 = vmatprep.subr.bf16.mxu1 %v17836_v37  ;;  %v8020_v0 = vadd.f32 %v8004_v7, %v25603_v35  ;;  %v17854_v11 = vld [vmem:[%s25349_s4 + $0x7c4] ss:$8 sps:$4 sm:$0xff]   ;;  %v17852_v29 = vld [vmem:[%s25349_s4 + $0x7c0] ss:$8 sps:$4 sm:$0xff]   ;;  %v17849_v37 = vld [vmem:[%s25349_s4 + $0x310] ss:$8 sps:$4 sm:$0xff]  }
 0x4ec   : > { %v8006_v58 = vmul.f32 %v7990_v17, %v21638_v55  ;;  %v7991_v12 = vadd.f32 %v7973_v22, %v7033_v31  ;;  %v7975_v46 = vadd.f32 %v7974_v28, %v7902_v8  ;;  %8970 = vmatprep.subr.bf16.mxu0 %v17833_v23  ;;  %v8045_v38 = vpack.c.bf16 %v8035_v14, %v8033_v24  ;;  %v17857_v7 = vld [vmem:[#allocation2 + $0x74] ss:$144 sps:$4 sm:$0xff]   ;;  %v17861_v3 = vld [vmem:[%s25349_s4 + $0x7b0] ss:$8 sps:$4 sm:$0xff]   ;;  %v17858_v56 = vld [vmem:[%s25349_s4 + $0x300] ss:$8 sps:$4 sm:$0xff]  }
 0x4ed   : > { %v8036_v36 = vmax.f32 %v8020_v0, 0.0  ;;  %v8021_v53 = vadd.f32 %v8005_v49, %v21635_v20  ;;  %v17869_v23 = vld [vmem:[%s25349_s4 + $0x7a4] ss:$8 sps:$4 sm:$0xff]   ;;  %v17866_v18 = vld [vmem:[%s25349_s4 + $0x3f4] ss:$8 sps:$4 sm:$0xff]  }
 0x4ee   : > { %v8007_v1 = vmul.f32 %v7991_v12, %v21613_v34  ;;  %v7992_v54 = vadd.f32 %v7975_v46, %v7035_v33  ;;  %10813 = vmatpush2.bf16.msra.mxu1 %v17834_v43  ;;  %v8022_v44 = vadd.f32 %v8006_v58, %v25603_v35  ;;  %v17867_v16 = vld [vmem:[%s25349_s4 + $0x7a0] ss:$8 sps:$4 sm:$0xff]   ;;  %v17864_v31 = vld [vmem:[%s25349_s4 + $0x3f0] ss:$8 sps:$4 sm:$0xff]   ;;  %v17875_v50 = vld [vmem:[%s25349_s4 + $0x794] ss:$8 sps:$4 sm:$0xff]  }
 0x4ef   : > { %8971 = vmatpush1.bf16.msra.mxu0 %v17831_v61  ;;  %v8046_v52 = vpack.c.bf16 %v8036_v36, %v8034_v6  ;;  %10814 = vmatprep.subr.bf16.mxu1 %v17842_v15  ;;  %v8037_v30 = vmax.f32 %v8021_v53, 0.0  ;;  %v17872_v8 = vld [vmem:[%s25349_s4 + $0x3e4] ss:$8 sps:$4 sm:$0xff]   ;;  %v17873_v40 = vld [vmem:[%s25349_s4 + $0x790] ss:$8 sps:$4 sm:$0xff]  }
 0x4f0   : > { %v8023_v41 = vadd.f32 %v8007_v1, %v21635_v20  ;;  %v8008_v25 = vmul.f32 %v7992_v54, %v21638_v55  ;;  %8972 = vmatprep.subr.bf16.mxu0 %v17839_v42  ;;  %v8038_v59 = vmax.f32 %v8022_v44, 0.0  ;;  %v17870_v62 = vld [vmem:[%s25349_s4 + $0x3e0] ss:$8 sps:$4 sm:$0xff]   ;;  %v17881_v14 = vld [vmem:[%s25349_s4 + $0x784] ss:$8 sps:$4 sm:$0xff]   ;;  %v18632_v61 = vld [vmem:[%s25352_s7 + $0x78] sm:$0xff]  }
 0x4f1   : > { %8097 = vmatprep.mubr.bf16.mxu0 %v8046_v52  ;;  %v17878_v49 = vld [vmem:[%s25349_s4 + $0x3d4] ss:$8 sps:$4 sm:$0xff]   ;;  %v17879_v17 = vld [vmem:[%s25349_s4 + $0x780] ss:$8 sps:$4 sm:$0xff]   ;;  %v17876_v22 = vld [vmem:[%s25349_s4 + $0x3d0] ss:$8 sps:$4 sm:$0xff]  }
 0x4f2   : > { %v8039_v39 = vmax.f32 %v8023_v41, 0.0  ;;  %8098 = vmatmul.mubr.bf16.gmra.mxu0 %v8045_v38  ;;  %10815 = vmatpush2.bf16.msra.mxu1 %v17840_v21  ;;  %v8024_v45 = vadd.f32 %v8008_v25, %v25603_v35  ;;  %v17884_v43 = vld [vmem:[%s25349_s4 + $0x3c4] ss:$8 sps:$4 sm:$0xff]   ;;  %v17822_v24 = vld [vmem:[#allocation2 + $0x180] ss:$456 sps:$4 sm:$0xff]   ;;  %v18633_v5 = vld [vmem:[%s25352_s7 + $0x38] sm:$0xff]  }
 0x4f3   : > { %8973 = vmatpush1.bf16.msra.mxu0 %v17837_v57  ;;  %10816 = vmatprep.subr.bf16.mxu1 %v17848_v13  ;;  %v17882_v28 = vld [vmem:[%s25349_s4 + $0x3c0] ss:$8 sps:$4 sm:$0xff]   ;;  %v23226_v0 = vld [vmem:[#allocation2 + $0x2ec] ss:$-624 sps:$4 sm:$0xff]   ;;  %v17888_v33 = vld [vmem:[%s25349_s4 + $0x3b0] ss:$8 sps:$4 sm:$0xff]  }
 0x4f4   : > { %8974 = vmatprep.subr.bf16.mxu0 %v17845_v60  ;;  %v8040_v51 = vmax.f32 %v8024_v45, 0.0  ;;  %v8047_v2 = vpack.c.bf16 %v8039_v39, %v8037_v30  ;;  %v17890_v15 = vld [vmem:[%s25349_s4 + $0x3b4] ss:$8 sps:$4 sm:$0xff]   ;;  %v17893_v12 = vld [vmem:[%s25349_s4 + $0x3a4] ss:$8 sps:$4 sm:$0xff]  }
 0x4f5   : > { %v18634_v58 = vld [vmem:[%s25352_s7 + $0x70] sm:$0xff]   ;;  %v23247_v42 = vld [vmem:[#allocation2 + $0x2e8] ss:$-624 sps:$4 sm:$0xff]   ;;  %v18638_v21 = vld [vmem:[%s25352_s7 + $0x60] sm:$0xff]  }
 0x4f6   : > { %10817 = vmatpush2.bf16.msra.mxu1 %v17846_v4  ;;  %v8048_v26 = vpack.c.bf16 %v8040_v51, %v8038_v59  ;;  %v18635_v46 = vld [vmem:[%s25352_s7 + $0x30] sm:$0xff]   ;;  %v17891_v6 = vld [vmem:[%s25349_s4 + $0x3a0] ss:$8 sps:$4 sm:$0xff]   ;;  %v17902_v52 = vld [vmem:[%s25349_s4 + $0x384] ss:$8 sps:$4 sm:$0xff]  }
 0x4f7   : > { %8975 = vmatpush1.bf16.msra.mxu0 %v17843_v19  ;;  %10818 = vmatprep.subr.bf16.mxu1 %v17854_v11  ;;  %v18636_v36 = vld [vmem:[%s25352_s7 + $0x68] sm:$0xff]   ;;  %v17896_v38 = vld [vmem:[#allocation2 + $0x284] ss:$-624 sps:$4 sm:$0xff]   ;;  %v17897_v54 = vld [vmem:[%s25349_s4 + $0x390] ss:$8 sps:$4 sm:$0xff]  }
 0x4f8   : > { %8105 = vmatprep.mubr.bf16.mxu0 %v8048_v26  ;;  %8976 = vmatprep.subr.bf16.mxu0 %v17851_v9  ;;  %v17899_v53 = vld [vmem:[%s25349_s4 + $0x394] ss:$8 sps:$4 sm:$0xff]   ;;  %v18637_v1 = vld [vmem:[%s25352_s7 + $0x28] sm:$0xff]   ;;  %v18639_v57 = vld [vmem:[%s25352_s7 + $0x20] sm:$0xff]  }
 0x4f9   : > { %v17894_v13 = vld [vmem:[#allocation2 + $0x280] ss:$-624 sps:$4 sm:$0xff]   ;;  %v18640_v25 = vld [vmem:[%s25352_s7 + $0x58] sm:$0xff]   ;;  %v17914_v19 = vld [vmem:[%s25349_s4 + $0x564] ss:$8 sps:$4 sm:$0xff]  }
 0x4fa   : > { %8106 = vmatmul.mubr.bf16.gmra.mxu0 %v8047_v2  ;;  %10819 = vmatpush2.bf16.msra.mxu1 %v17852_v29  ;;  %v17900_v41 = vld [vmem:[%s25349_s4 + $0x380] ss:$8 sps:$4 sm:$0xff]   ;;  %v17905_v60 = vld [vmem:[#allocation2 + $0x154] ss:$424 sps:$4 sm:$0xff]   ;;  %v17906_v39 = vld [vmem:[%s25349_s4 + $0x570] ss:$8 sps:$4 sm:$0xff]  }
 0x4fb   : > { %8977 = vmatpush1.bf16.msra.mxu0 %v17849_v37  ;;  %8996 = vmatprep.mubr.bf16.mxu0 %v17857_v7  ;;  %v17908_v44 = vld [vmem:[%s25349_s4 + $0x574] ss:$8 sps:$4 sm:$0xff]   ;;  %v17855_v45 = vld [vmem:[#allocation2 + $0x70] ss:$144 sps:$4 sm:$0xff]   ;;  %v23295_v11 = vld [vmem:[#allocation2 + $0x14c] ss:$216 sps:$4 sm:$0xff]  }
 0x4fc   : > { %8978 = vmatprep.subr.bf16.mxu0 %v17860_v27  ;;  %10820 = vmatprep.subr.bf16.mxu1 %v17863_v63  ;;  %v18641_v30 = vld [vmem:[%s25352_s7 + $0x18] sm:$0xff]   ;;  %v18642_v4 = vld [vmem:[%s25352_s7 + $0x50] sm:$0xff]   ;;  %v17912_v9 = vld [vmem:[%s25349_s4 + $0x560] ss:$8 sps:$4 sm:$0xff]  }
 0x4fd   : > { %v18643_v59 = vld [vmem:[%s25352_s7 + $0x10] sm:$0xff]   ;;  %v18644_v26 = vld [vmem:[%s25352_s7 + $0x48] sm:$0xff]   ;;  %v18646_v7 = vld [vmem:[%s25352_s7 + $0x40] sm:$0xff]  }
 0x4fe   : > { %10821 = vmatpush2.bf16.msra.mxu1 %v17861_v3  ;;  %v17903_v51 = vld [vmem:[#allocation2 + $0x150] ss:$424 sps:$4 sm:$0xff]   ;;  %v17917_v2 = vld [vmem:[%s25349_s4 + $0x554] ss:$8 sps:$4 sm:$0xff]   ;;  %v18645_v27 = vld [vmem:[%s25352_s7 + $0x8] sm:$0xff]  }
 0x4ff   : > { %8979 = vmatpush1.bf16.msra.mxu0 %v17858_v56  ;;  %10822 = vmatprep.subr.bf16.mxu1 %v17869_v23  ;;  %v8256_v29 = vld [vmem:[#allocation2 + $0xd0] sm:$0xff]  ;;  %v23319_v3 = vld [vmem:[#allocation2 + $0x148] ss:$216 sps:$4 sm:$0xff]   ;;  %v17920_v56 = vld [vmem:[%s25349_s4 + $0x544] ss:$8 sps:$4 sm:$0xff]  }
 0x500   : > { %8980 = vmatprep.subr.bf16.mxu0 %v17866_v18  ;;  %v8259_v37 = vld [vmem:[#allocation2 + $0x350] sm:$0xff]  ;;  %v18647_v18 = vld [vmem:[%s25352_s7] sm:$0xff]  }
 0x501   : > { %v17915_v63 = vld [vmem:[%s25349_s4 + $0x550] ss:$8 sps:$4 sm:$0xff]   ;;  %v23324_v23 = vcombine.high %v8256_v29, %v8259_v37 }
 0x502   : > { %10823 = vmatpush2.bf16.msra.mxu1 %v17867_v16  ;;  %v17918_v16 = vld [vmem:[%s25349_s4 + $0x540] ss:$8 sps:$4 sm:$0xff]  }
 0x503   : > { %8981 = vmatpush2.bf16.msra.mxu0 %v17864_v31  ;;  %10824 = vmatprep.subr.bf16.mxu1 %v17875_v50  ;;  %v17923_v31 = vld [vmem:[%s25349_s4 + $0x534] ss:$8 sps:$4 sm:$0xff]   ;;  %v17921_v50 = vld [vmem:[%s25349_s4 + $0x530] ss:$8 sps:$4 sm:$0xff]  }
 0x504   : > { %8982 = vmatprep.subr.bf16.mxu0 %v17872_v8  ;;  %v23340_v8 = vcombine.low %v8256_v29, %v8259_v37  ;;  %v17980_v29 = vld [vmem:[%s25349_s4 + $0x114] ss:$8 sps:$4 sm:$0xff]   ;;  %v17978_v37 = vld [vmem:[%s25349_s4 + $0x110] ss:$8 sps:$4 sm:$0xff]  }
 0x505   : > { %v18245_v35 = vld [vmem:[#allocation2 + $0x60] ss:$408 sps:$4 sm:$0xff]  }
 0x506   : > { %10825 = vmatpush2.bf16.msra.mxu1 %v17873_v40  ;;  %v17926_v40 = vld [vmem:[%s25349_s4 + $0x524] ss:$8 sps:$4 sm:$0xff]  }
 0x507   : > { %8983 = vmatpush2.bf16.msra.mxu0 %v17870_v62  ;;  %10826 = vmatprep.subr.bf16.mxu1 %v17881_v14  ;;  %v18648_v62 = vld [vmem:[#allocation2 + $0x2b0] sm:$0xff] }
 0x508   : > { %8984 = vmatprep.subr.bf16.mxu0 %v17878_v49  ;;  %v18649_v14 = vld [vmem:[#allocation2 + $0x230] sm:$0xff] }
 0x509   : > { %v23345_v49 = vcombine.high %v18649_v14, %v18648_v62 }
 0x50a   : > { %10827 = vmatpush2.bf16.msra.mxu1 %v17879_v17  ;;  %v17924_v17 = vld [vmem:[%s25349_s4 + $0x520] ss:$8 sps:$4 sm:$0xff]  }
 0x50b   : > { %8985 = vmatpush2.bf16.msra.mxu0 %v17876_v22  ;;  %16580 = vmatprep.subr.bf16.mxu1 %v18632_v61  ;;  %v17929_v22 = vld [vmem:[%s25349_s4 + $0x514] ss:$8 sps:$4 sm:$0xff]  }
 0x50c   : > { %8986 = vmatprep.subr.bf16.mxu0 %v17884_v43  ;;  %v17927_v43 = vld [vmem:[%s25349_s4 + $0x510] ss:$8 sps:$4 sm:$0xff]   ;;  %v17932_v61 = vld [vmem:[#allocation2 + $0xa4] ss:$624 sps:$4 sm:$0xff]  }
 0x50d   : > { %10829 = vmatmul.mubr.bf16.vlgmr.msra.gmra.mxu1 %v17822_v24  ;;  %v23358_v24 = vcombine.low %v18649_v14, %v18648_v62  ;;  %v17998_v62 = vld [vmem:[%s25349_s4 + $0x1c4] ss:$8 sps:$4 sm:$0xff]   ;;  %v17996_v14 = vld [vmem:[%s25349_s4 + $0x1c0] ss:$8 sps:$4 sm:$0xff]  }
 0x50e   : > { %10838 = vmatprep.mubr.bf16.mxu1 %v23226_v0  ;;  %16581 = vmatpush3.bf16.msra.mxu1 %v18633_v5  ;;  %v17938_v5 = vld [vmem:[%s25349_s4 + $0x5f4] ss:$8 sps:$4 sm:$0xff]  }
 0x50f   : > { %8987 = vmatpush2.bf16.msra.mxu0 %v17882_v28  ;;  %16582 = vmatprep.subr.bf16.mxu1 %v18634_v58  ;;  %v17935_v28 = vld [vmem:[%s25349_s4 + $0x504] ss:$8 sps:$4 sm:$0xff]  }
 0x510   : > { %8988 = vmatprep.subr.bf16.mxu0 %v17890_v15  ;;  %v17933_v15 = vld [vmem:[%s25349_s4 + $0x500] ss:$8 sps:$4 sm:$0xff]   ;;  %v17941_v58 = vld [vmem:[%s25349_s4 + $0x5e4] ss:$8 sps:$4 sm:$0xff]  }
 0x512   : > { %16583 = vmatpush3.bf16.msra.mxu1 %v18635_v46  ;;  %v17944_v46 = vld [vmem:[%s25349_s4 + $0x5d4] ss:$8 sps:$4 sm:$0xff]  }
 0x513   : > { %8989 = vmatpush2.bf16.msra.mxu0 %v17888_v33  ;;  %16584 = vmatprep.subr.bf16.mxu1 %v18636_v36  ;;  %v17936_v33 = vld [vmem:[%s25349_s4 + $0x5f0] ss:$8 sps:$4 sm:$0xff]   ;;  %v17947_v36 = vld [vmem:[%s25349_s4 + $0x5c4] ss:$8 sps:$4 sm:$0xff]  }
 0x514   : > { %8990 = vmatprep.subr.bf16.mxu0 %v17893_v12  ;;  %v17939_v12 = vld [vmem:[%s25349_s4 + $0x5e0] ss:$8 sps:$4 sm:$0xff]  }
 0x515   : > { %10839 = vmatmul.mubr.bf16.gmra.mxu1 %v23247_v42 }
 0x516   : > { %10848 = vmatprep.mubr.bf16.mxu1 %v17896_v38  ;;  %16585 = vmatpush3.bf16.msra.mxu1 %v18637_v1  ;;  %v17945_v38 = vld [vmem:[%s25349_s4 + $0x5c0] ss:$8 sps:$4 sm:$0xff]   ;;  %v17948_v1 = vld [vmem:[%s25349_s4 + $0x5b0] ss:$8 sps:$4 sm:$0xff]  }
 0x517   : > { %8991 = vmatpush2.bf16.msra.mxu0 %v17891_v6  ;;  %16586 = vmatprep.subr.bf16.mxu1 %v18638_v21  ;;  %v17942_v6 = vld [vmem:[%s25349_s4 + $0x5d0] ss:$8 sps:$4 sm:$0xff]   ;;  %v17951_v21 = vld [vmem:[%s25349_s4 + $0x5a0] ss:$8 sps:$4 sm:$0xff]  }
 0x518   : > { %8992 = vmatprep.subr.bf16.mxu0 %v17899_v53  ;;  %v17950_v53 = vld [vmem:[%s25349_s4 + $0x5b4] ss:$8 sps:$4 sm:$0xff]  }
 0x51a   : > { %16587 = vmatpush3.bf16.msra.mxu1 %v18639_v57  ;;  %v17954_v57 = vld [vmem:[%s25349_s4 + $0x590] ss:$8 sps:$4 sm:$0xff]  }
 0x51b   : > { %8993 = vmatpush2.bf16.msra.mxu0 %v17897_v54  ;;  %16588 = vmatprep.subr.bf16.mxu1 %v18640_v25  ;;  %v17953_v54 = vld [vmem:[%s25349_s4 + $0x5a4] ss:$8 sps:$4 sm:$0xff]   ;;  %v17962_v25 = vld [vmem:[%s25349_s4 + $0x174] ss:$8 sps:$4 sm:$0xff]  }
 0x51c   : > { %8994 = vmatprep.subr.bf16.mxu0 %v17902_v52  ;;  %v17956_v52 = vld [vmem:[%s25349_s4 + $0x594] ss:$8 sps:$4 sm:$0xff]  }
 0x51d   : > { %10849 = vmatmul.mubr.bf16.gmra.mxu1 %v17894_v13  ;;  %v17959_v13 = vld [vmem:[%s25349_s4 + $0x584] ss:$8 sps:$4 sm:$0xff]  }
 0x51e   : > { %10858 = vmatprep.mubr.bf16.mxu1 %v17905_v60  ;;  %16589 = vmatpush3.bf16.msra.mxu1 %v18641_v30  ;;  %v17960_v60 = vld [vmem:[%s25349_s4 + $0x170] ss:$8 sps:$4 sm:$0xff]   ;;  %v17965_v30 = vld [vmem:[%s25349_s4 + $0x164] ss:$8 sps:$4 sm:$0xff]  }
 0x51f   : > { %8995 = vmatpush2.bf16.msra.mxu0 %v17900_v41  ;;  %16590 = vmatprep.subr.bf16.mxu1 %v18642_v4  ;;  %v17957_v41 = vld [vmem:[%s25349_s4 + $0x580] ss:$8 sps:$4 sm:$0xff]   ;;  %v17968_v4 = vld [vmem:[%s25349_s4 + $0x154] ss:$8 sps:$4 sm:$0xff]  }
 0x520   : > { %9110 = vmatprep.subr.bf16.mxu0 %v17908_v44  ;;  %v17930_v44 = vld [vmem:[#allocation2 + $0xa0] ss:$624 sps:$4 sm:$0xff]  }
 0x522   : > { %8997 = vmatmul.mubr.bf16.vlgmr.msra.gmra.mxu0 %v17855_v45  ;;  %16591 = vmatpush3.bf16.msra.mxu1 %v18643_v59  ;;  %v17966_v45 = vld [vmem:[%s25349_s4 + $0x150] ss:$8 sps:$4 sm:$0xff]   ;;  %v17974_v59 = vld [vmem:[%s25349_s4 + $0x134] ss:$8 sps:$4 sm:$0xff]  }
 0x523   : > { %9006 = vmatprep.mubr.bf16.mxu0 %v23295_v11  ;;  %9111 = vmatpush1.bf16.msra.mxu0 %v17906_v39  ;;  %v17963_v39 = vld [vmem:[%s25349_s4 + $0x160] ss:$8 sps:$4 sm:$0xff]  }
 0x524   : > { %9112 = vmatprep.subr.bf16.mxu0 %v17914_v19  ;;  %16592 = vmatprep.subr.bf16.mxu1 %v18644_v26  ;;  %v17969_v19 = vld [vmem:[%s25349_s4 + $0x140] ss:$8 sps:$4 sm:$0xff]  }
 0x525   : > { %10859 = vmatmul.mubr.bf16.gmra.mxu1 %v17903_v51  ;;  %v17972_v51 = vld [vmem:[%s25349_s4 + $0x130] ss:$8 sps:$4 sm:$0xff]   ;;  %v17975_v26 = vld [vmem:[%s25349_s4 + $0x120] ss:$8 sps:$4 sm:$0xff]  }
 0x526   : > { %16593 = vmatpush3.bf16.msra.mxu1 %v18645_v27 }
 0x527   : > { %9113 = vmatpush1.bf16.msra.mxu0 %v17912_v9  ;;  %16594 = vmatprep.subr.bf16.mxu1 %v18646_v7  ;;  %v18651_v9 = vld [vmem:[#allocation2 + $0x1f8] sm:$0xff]  ;;  %v17984_v7 = vld [vmem:[%s25349_s4 + $0x100] ss:$8 sps:$4 sm:$0xff]  }
 0x528   : > { %9114 = vmatprep.subr.bf16.mxu0 %v17917_v2 }
 0x52a   : > { %9007 = vmatmul.mubr.bf16.gmra.mxu0 %v23319_v3  ;;  %16595 = vmatpush3.bf16.msra.mxu1 %v18647_v18  ;;  %v17987_v18 = vld [vmem:[%s25349_s4 + $0x1f0] ss:$8 sps:$4 sm:$0xff]  }
 0x52b   : > { %9016 = vmatprep.mubr.bf16.mxu0 %v23324_v23  ;;  %9115 = vmatpush1.bf16.msra.mxu0 %v17915_v63  ;;  %v17983_v63 = vld [vmem:[#allocation2 + $0x194] ss:$-248 sps:$4 sm:$0xff]  }
 0x52c   : > { %9116 = vmatprep.subr.bf16.mxu0 %v17920_v56  ;;  %v17989_v56 = vld [vmem:[%s25349_s4 + $0x1f4] ss:$8 sps:$4 sm:$0xff]  }
 0x52f   : > { %9117 = vmatpush1.bf16.msra.mxu0 %v17918_v16  ;;  %v17992_v16 = vld [vmem:[%s25349_s4 + $0x1e4] ss:$8 sps:$4 sm:$0xff]  }
 0x530   : > { %9118 = vmatprep.subr.bf16.mxu0 %v17923_v31  ;;  %v17990_v31 = vld [vmem:[%s25349_s4 + $0x1e0] ss:$8 sps:$4 sm:$0xff]  }
 0x532   : > { %9017 = vmatmul.mubr.bf16.gmra.mxu0 %v23340_v8 }
 0x533   : > { %9026 = vmatprep.mubr.bf16.mxu0 %v23345_v49  ;;  %9119 = vmatpush1.bf16.msra.mxu0 %v17921_v50  ;;  %v17995_v50 = vld [vmem:[%s25349_s4 + $0x1d4] ss:$8 sps:$4 sm:$0xff]  }
 0x534   : > { %9120 = vmatprep.subr.bf16.mxu0 %v17926_v40  ;;  %v17993_v40 = vld [vmem:[%s25349_s4 + $0x1d0] ss:$8 sps:$4 sm:$0xff]  }
 0x537   : > { %9121 = vmatpush1.bf16.msra.mxu0 %v17924_v17  ;;  %v18001_v17 = vld [vmem:[%s25349_s4 + $0x1b4] ss:$8 sps:$4 sm:$0xff]  }
 0x538   : > { %9122 = vmatprep.subr.bf16.mxu0 %v17929_v22  ;;  %v17999_v22 = vld [vmem:[%s25349_s4 + $0x1b0] ss:$8 sps:$4 sm:$0xff]  }
 0x53a   : > { %9027 = vmatmul.mubr.bf16.gmra.mxu0 %v23358_v24 }
 0x53b   : > { %9123 = vmatpush1.bf16.msra.mxu0 %v17927_v43  ;;  %9142 = vmatprep.mubr.bf16.mxu0 %v17932_v61  ;;  %v18004_v43 = vld [vmem:[%s25349_s4 + $0x1a4] ss:$8 sps:$4 sm:$0xff]   ;;  %v18007_v61 = vld [vmem:[%s25349_s4 + $0x194] ss:$8 sps:$4 sm:$0xff]  }
 0x53c   : > { %9124 = vmatprep.subr.bf16.mxu0 %v17935_v28  ;;  %v18002_v28 = vld [vmem:[%s25349_s4 + $0x1a0] ss:$8 sps:$4 sm:$0xff]  }
 0x53f   : > { %9125 = vmatpush1.bf16.msra.mxu0 %v17933_v15  ;;  %v18005_v15 = vld [vmem:[%s25349_s4 + $0x190] ss:$8 sps:$4 sm:$0xff]  }
 0x540   : > { %9126 = vmatprep.subr.bf16.mxu0 %v17938_v5  ;;  %v18010_v5 = vld [vmem:[%s25349_s4 + $0x184] ss:$8 sps:$4 sm:$0xff]  }
 0x543   : > { %9127 = vmatpush2.bf16.msra.mxu0 %v17936_v33  ;;  %v18008_v33 = vld [vmem:[%s25349_s4 + $0x180] ss:$8 sps:$4 sm:$0xff]  }
 0x544   : > { %9128 = vmatprep.subr.bf16.mxu0 %v17941_v58  ;;  %v18013_v58 = vld [vmem:[%s25349_s4 + $0x674] ss:$8 sps:$4 sm:$0xff]  }
 0x547   : > { %9129 = vmatpush2.bf16.msra.mxu0 %v17939_v12  ;;  %v18011_v12 = vld [vmem:[%s25349_s4 + $0x670] ss:$8 sps:$4 sm:$0xff]  }
 0x548   : > { %9130 = vmatprep.subr.bf16.mxu0 %v17944_v46  ;;  %v17981_v46 = vld [vmem:[#allocation2 + $0x190] ss:$-248 sps:$4 sm:$0xff]  }
 0x54b   : > { %9131 = vmatpush2.bf16.msra.mxu0 %v17942_v6  ;;  %v18019_v6 = vld [vmem:[%s25349_s4 + $0x664] ss:$8 sps:$4 sm:$0xff]  }
 0x54c   : > { %9132 = vmatprep.subr.bf16.mxu0 %v17947_v36  ;;  %v18016_v36 = vld [vmem:[#allocation2 + $0x28c] ss:$-360 sps:$4 sm:$0xff]  }
 0x54f   : > { %9133 = vmatpush2.bf16.msra.mxu0 %v17945_v38 }
 0x550   : > { %9134 = vmatprep.subr.bf16.mxu0 %v17950_v53  ;;  %v18017_v53 = vld [vmem:[%s25349_s4 + $0x660] ss:$8 sps:$4 sm:$0xff]  }
 0x553   : > { %9135 = vmatpush2.bf16.msra.mxu0 %v17948_v1 }
 0x554   : > { %9136 = vmatprep.subr.bf16.mxu0 %v17953_v54  ;;  %v18022_v54 = vld [vmem:[%s25349_s4 + $0x654] ss:$8 sps:$4 sm:$0xff]  }
 0x557   : > { %9137 = vmatpush2.bf16.msra.mxu0 %v17951_v21 }
 0x558   : > { %9138 = vmatprep.subr.bf16.mxu0 %v17956_v52 }
 0x55b   : > { %9139 = vmatpush2.bf16.msra.mxu0 %v17954_v57  ;;  %v23539_v57 = vld [vmem:[%s25353_s8] ss:$0 sm:$0xff] }
 0x55c   : > { %9140 = vmatprep.subr.bf16.mxu0 %v17959_v13 }
 0x55f   : > { %9141 = vmatpush2.bf16.msra.mxu0 %v17957_v41  ;;  %v18020_v41 = vld [vmem:[%s25349_s4 + $0x650] ss:$8 sps:$4 sm:$0xff]  }
 0x560   : > { %9856 = vmatprep.subr.bf16.mxu0 %v17962_v25  ;;  %v18014_v25 = vld [vmem:[#allocation2 + $0x288] ss:$-360 sps:$4 sm:$0xff]  }
 0x562   : > { %9143 = vmatmul.mubr.bf16.vlgmr.msra.gmra.mxu0 %v17930_v44  ;;  %v18028_v44 = vld [vmem:[%s25349_s4 + $0x644] ss:$8 sps:$4 sm:$0xff]  }
 0x563   : > { %9152 = vmatprep.mubr.bf16.mxu0 %v22959_v47  ;;  %9857 = vmatpush1.bf16.msra.mxu0 %v17960_v60  ;;  %v17971_v47 = vld [vmem:[%s25349_s4 + $0x144] ss:$8 sps:$4 sm:$0xff]  }
 0x564   : > { %9858 = vmatprep.subr.bf16.mxu0 %v17965_v30 }
 0x567   : > { %9859 = vmatpush1.bf16.msra.mxu0 %v17963_v39  ;;  %v18025_v39 = vld [vmem:[#allocation2 + $0x184] ss:$456 sps:$4 sm:$0xff]  }
 0x568   : > { %9860 = vmatprep.subr.bf16.mxu0 %v17968_v4 }
 0x56a   : > { %9153 = vmatmul.mubr.bf16.gmra.mxu0 %v22944_v10  ;;  %v17977_v10 = vld [vmem:[%s25349_s4 + $0x124] ss:$8 sps:$4 sm:$0xff]  }
 0x56b   : > { %9162 = vmatprep.mubr.bf16.mxu0 %v22973_v48  ;;  %9861 = vmatpush1.bf16.msra.mxu0 %v17966_v45  ;;  %v18650_v48 = vld [vmem:[#allocation2 + $0x60] sm:$0xff] }
 0x56c   : > { %9862 = vmatprep.subr.bf16.mxu0 %v17971_v47  ;;  %v23451_v2 = vcombine.high %v18650_v48, %v18651_v9  ;;  %v23464_v27 = vcombine.low %v18650_v48, %v18651_v9  ;;  %v18026_v47 = vld [vmem:[%s25349_s4 + $0x640] ss:$8 sps:$4 sm:$0xff]   ;;  %v18029_v9 = vld [vmem:[%s25349_s4 + $0x630] ss:$8 sps:$4 sm:$0xff]  }
 0x56f   : > { %9863 = vmatpush1.bf16.msra.mxu0 %v17969_v19 }
 0x570   : > { %9864 = vmatprep.subr.bf16.mxu0 %v17974_v59  ;;  %v18031_v59 = vld [vmem:[%s25349_s4 + $0x634] ss:$8 sps:$4 sm:$0xff]  }
 0x572   : > { %9163 = vmatmul.mubr.bf16.gmra.mxu0 %v22971_v32  ;;  %v17986_v32 = vld [vmem:[%s25349_s4 + $0x104] ss:$8 sps:$4 sm:$0xff]  }
 0x573   : > { %9172 = vmatprep.mubr.bf16.mxu0 %v23451_v2  ;;  %9865 = vmatpush1.bf16.msra.mxu0 %v17972_v51 }
 0x574   : > { %9866 = vmatprep.subr.bf16.mxu0 %v17977_v10 }
 0x577   : > { %9867 = vmatpush1.bf16.msra.mxu0 %v17975_v26  ;;  %v18023_v26 = vld [vmem:[#allocation2 + $0x180] ss:$456 sps:$4 sm:$0xff]  }
 0x578   : > { %9868 = vmatprep.subr.bf16.mxu0 %v17980_v29 }
 0x57a   : > { %9173 = vmatmul.mubr.bf16.gmra.mxu0 %v23464_v27 }
 0x57b   : > { %9869 = vmatpush1.bf16.msra.mxu0 %v17978_v37  ;;  %9888 = vmatprep.mubr.bf16.mxu0 %v17983_v63  ;;  %v18034_v37 = vld [vmem:[%s25349_s4 + $0x624] ss:$8 sps:$4 sm:$0xff]  }
 0x57c   : > { %9870 = vmatprep.subr.bf16.mxu0 %v17986_v32 }
 0x57f   : > { %9871 = vmatpush1.bf16.msra.mxu0 %v17984_v7 }
 0x580   : > { %9872 = vmatprep.subr.bf16.mxu0 %v17989_v56  ;;  %v18032_v56 = vld [vmem:[%s25349_s4 + $0x620] ss:$8 sps:$4 sm:$0xff]  }
 0x583   : > { %9873 = vmatpush2.bf16.msra.mxu0 %v17987_v18 }
 0x584   : > { %9874 = vmatprep.subr.bf16.mxu0 %v17992_v16  ;;  %v18037_v16 = vld [vmem:[%s25349_s4 + $0x614] ss:$8 sps:$4 sm:$0xff]  }
 0x587   : > { %9875 = vmatpush2.bf16.msra.mxu0 %v17990_v31 }
 0x588   : > { %9876 = vmatprep.subr.bf16.mxu0 %v17995_v50 }
 0x58b   : > { %9877 = vmatpush2.bf16.msra.mxu0 %v17993_v40 }
 0x58c   : > { %9878 = vmatprep.subr.bf16.mxu0 %v17998_v62 }
 0x58f   : > { %9879 = vmatpush2.bf16.msra.mxu0 %v17996_v14  ;;  %v18040_v14 = vld [vmem:[%s25349_s4 + $0x604] ss:$8 sps:$4 sm:$0xff]  }
 0x590   : > { %9880 = vmatprep.subr.bf16.mxu0 %v18001_v17 }
 0x593   : > { %9881 = vmatpush2.bf16.msra.mxu0 %v17999_v22 }
 0x594   : > { %9882 = vmatprep.subr.bf16.mxu0 %v18004_v43 }
 0x597   : > { %9883 = vmatpush2.bf16.msra.mxu0 %v18002_v28  ;;  %v18038_v28 = vld [vmem:[%s25349_s4 + $0x600] ss:$8 sps:$4 sm:$0xff]  }
 0x598   : > { %9884 = vmatprep.subr.bf16.mxu0 %v18007_v61 }
 0x59b   : > { %9885 = vmatpush2.bf16.msra.mxu0 %v18005_v15  ;;  %v18043_v15 = vld [vmem:[%s25349_s4 + $0x6f4] ss:$8 sps:$4 sm:$0xff]  }
 0x59c   : > { %9886 = vmatprep.subr.bf16.mxu0 %v18010_v5 }
 0x59f   : > { %9887 = vmatpush2.bf16.msra.mxu0 %v18008_v33 }
 0x5a0   : > { %10723 = vmatprep.subr.bf16.mxu0 %v18013_v58 }
 0x5a2   : > { %9889 = vmatmul.mubr.bf16.vlgmr.msra.gmra.mxu0 %v17981_v46  ;;  %v16556_v38 = vpop.f32.mrf.mxu0 }
 0x5a3   : > { %9898 = vmatprep.mubr.bf16.mxu0 %v18016_v36  ;;  %10724 = vmatpush1.bf16.msra.mxu0 %v18011_v12  ;;  %v18046_v12 = vld [vmem:[%s25349_s4 + $0x6e4] ss:$8 sps:$4 sm:$0xff]   ;;  %v18044_v36 = vld [vmem:[%s25349_s4 + $0x6e0] ss:$8 sps:$4 sm:$0xff]  }
 0x5a4   : > { %v16557_v1 = vpop.f32.mrf.mxu0  ;;  %10725 = vmatprep.subr.bf16.mxu0 %v18019_v6 }
 0x5a5   : > { %v16558_v21 = vadd.f32 %v16557_v1, %v16556_v38  ;;  %v18049_v38 = vld [vmem:[%s25349_s4 + $0x6d4] ss:$8 sps:$4 sm:$0xff]   ;;  %v18052_v1 = vld [vmem:[%s25349_s4 + $0x6c4] ss:$8 sps:$4 sm:$0xff]  }
 0x5a6   : > { %v16559_v52 = vpop.f32.mrf.mxu0 }
 0x5a7   : > { %v8084_v13 = vadd.f32 %v23539_v57, %v16558_v21  ;;  %10726 = vmatpush1.bf16.msra.mxu0 %v18017_v53  ;;  %v18047_v53 = vld [vmem:[%s25349_s4 + $0x6d0] ss:$8 sps:$4 sm:$0xff]   ;;  %v18055_v21 = vld [vmem:[%s25349_s4 + $0x6b4] ss:$8 sps:$4 sm:$0xff]  }
 0x5a8   : > { %v16560_v60 = vpop.f32.mrf.mxu0  ;;  %10727 = vmatprep.subr.bf16.mxu0 %v18022_v54  ;;  %v18050_v54 = vld [vmem:[%s25349_s4 + $0x6c0] ss:$8 sps:$4 sm:$0xff]  }
 0x5a9   : > { %15336 = vst [vmem:[%s22198_s10 + $0x40] sm:$0xff] %v8084_v13  ;;  %v16561_v30 = vadd.f32 %v16560_v60, %v16559_v52  ;;  %v18053_v52 = vld [vmem:[%s25349_s4 + $0x6b0] ss:$8 sps:$4 sm:$0xff]   ;;  %v18056_v13 = vld [vmem:[%s25349_s4 + $0x6a0] ss:$8 sps:$4 sm:$0xff]  }
 0x5aa   : > { %9899 = vmatmul.mubr.bf16.gmra.mxu0 %v18014_v25  ;;  %v16562_v4 = vpop.f32.mrf.mxu0  ;;  %v18059_v25 = vld [vmem:[%s25349_s4 + $0x690] ss:$8 sps:$4 sm:$0xff]   ;;  %v18064_v60 = vld [vmem:[%s25349_s4 + $0x684] ss:$8 sps:$4 sm:$0xff]  }
 0x5ab   : > { %v8087_v45 = vadd.f32 %v23539_v57, %v16561_v30  ;;  %9908 = vmatprep.mubr.bf16.mxu0 %v18025_v39  ;;  %10728 = vmatpush1.bf16.msra.mxu0 %v18020_v41  ;;  %v18061_v41 = vld [vmem:[%s25349_s4 + $0x694] ss:$8 sps:$4 sm:$0xff]   ;;  %v18065_v39 = vld [vmem:[%s25349_s4 + $0x870] ss:$8 sps:$4 sm:$0xff]  }
 0x5ac   : > { %v16563_v19 = vpop.f32.mrf.mxu0  ;;  %10729 = vmatprep.subr.bf16.mxu0 %v18028_v44  ;;  %v18062_v44 = vld [vmem:[%s25349_s4 + $0x680] ss:$8 sps:$4 sm:$0xff]   ;;  %v18067_v30 = vld [vmem:[%s25349_s4 + $0x874] ss:$8 sps:$4 sm:$0xff]  }
 0x5ad   : > { %15337 = vst [vmem:[%s22198_s10 + $0x48] sm:$0xff] %v8087_v45  ;;  %v16564_v51 = vadd.f32 %v16563_v19, %v16562_v4  ;;  %v18070_v4 = vld [vmem:[%s25349_s4 + $0x864] ss:$8 sps:$4 sm:$0xff]   ;;  %v18068_v45 = vld [vmem:[%s25349_s4 + $0x860] ss:$8 sps:$4 sm:$0xff]  }
 0x5ae   : > { %v16565_v10 = vpop.f32.mrf.mxu0  ;;  %v18073_v19 = vld [vmem:[%s25349_s4 + $0x854] ss:$8 sps:$4 sm:$0xff]  }
 0x5af   : > { %v8092_v48 = vadd.f32 %v23539_v57, %v16564_v51  ;;  %10730 = vmatpush1.bf16.msra.mxu0 %v18026_v47  ;;  %v18074_v51 = vld [vmem:[%s25349_s4 + $0x840] ss:$8 sps:$4 sm:$0xff]  }
 0x5b0   : > { %v16566_v29 = vpop.f32.mrf.mxu0  ;;  %10731 = vmatprep.subr.bf16.mxu0 %v18031_v59  ;;  %v18071_v59 = vld [vmem:[%s25349_s4 + $0x850] ss:$8 sps:$4 sm:$0xff]  }
 0x5b1   : > { %15338 = vst [vmem:[%s22198_s10 + $0x50] sm:$0xff] %v8092_v48  ;;  %v16567_v32 = vadd.f32 %v16566_v29, %v16565_v10  ;;  %v18079_v48 = vld [vmem:[%s25349_s4 + $0x834] ss:$8 sps:$4 sm:$0xff]   ;;  %v18654_v29 = vld [vmem:[#allocation2 + $0xa8] sm:$0xff] }
 0x5b2   : > { %9909 = vmatmul.mubr.bf16.gmra.mxu0 %v18023_v26  ;;  %v16568_v63 = vpop.f32.mrf.mxu0  ;;  %v18653_v26 = vld [vmem:[#allocation2 + $0xf8] sm:$0xff] }
 0x5b3   : > { %v8095_v7 = vadd.f32 %v23539_v57, %v16567_v32  ;;  %9918 = vmatprep.mubr.bf16.mxu0 %v23226_v0  ;;  %10732 = vmatpush1.bf16.msra.mxu0 %v18029_v9  ;;  %v18035_v0 = vld [vmem:[%s25349_s4 + $0x610] ss:$8 sps:$4 sm:$0xff]   ;;  %v18080_v32 = vld [vmem:[%s25349_s4 + $0x820] ss:$8 sps:$4 sm:$0xff]  }
 0x5b4   : > { %v16569_v18 = vpop.f32.mrf.mxu0  ;;  %10733 = vmatprep.subr.bf16.mxu0 %v18034_v37  ;;  %v18077_v9 = vld [vmem:[%s25349_s4 + $0x830] ss:$8 sps:$4 sm:$0xff]   ;;  %v23686_v37 = vcombine.high %v18654_v29, %v18653_v26 }
 0x5b5   : > { %15339 = vst [vmem:[%s22198_s10 + $0x58] sm:$0xff] %v8095_v7  ;;  %v16570_v31 = vadd.f32 %v16569_v18, %v16568_v63  ;;  %v18085_v7 = vld [vmem:[%s25349_s4 + $0x814] ss:$8 sps:$4 sm:$0xff]   ;;  %v23703_v18 = vcombine.low %v18654_v29, %v18653_v26  ;;  %v18122_v29 = vld [vmem:[%s25349_s4 + $0x460] ss:$8 sps:$4 sm:$0xff]  }
 0x5b6   : > { %v16571_v50 = vpop.f32.mrf.mxu0 }
 0x5b7   : > { %v8100_v40 = vadd.f32 %v23539_v57, %v16570_v31  ;;  %10734 = vmatpush1.bf16.msra.mxu0 %v18032_v56  ;;  %v18083_v56 = vld [vmem:[%s25349_s4 + $0x810] ss:$8 sps:$4 sm:$0xff]   ;;  %v18088_v31 = vld [vmem:[#allocation2 + $0x1d4] ss:$-144 sps:$4 sm:$0xff]  }
 0x5b8   : > { %v16572_v62 = vpop.f32.mrf.mxu0  ;;  %10735 = vmatprep.subr.bf16.mxu0 %v18037_v16  ;;  %v18091_v16 = vld [vmem:[%s25349_s4 + $0x804] ss:$8 sps:$4 sm:$0xff]  }
 0x5b9   : > { %15340 = vst [vmem:[%s22198_s10 + $0x60] sm:$0xff] %v8100_v40  ;;  %v16573_v17 = vadd.f32 %v16572_v62, %v16571_v50  ;;  %v18089_v50 = vld [vmem:[%s25349_s4 + $0x800] ss:$8 sps:$4 sm:$0xff]   ;;  %v18092_v62 = vld [vmem:[%s25349_s4 + $0x8f0] ss:$8 sps:$4 sm:$0xff]  }
 0x5ba   : > { %9919 = vmatmul.mubr.bf16.gmra.mxu0 %v23247_v42  ;;  %v16574_v22 = vpop.f32.mrf.mxu0 }
 0x5bb   : > { %v8103_v43 = vadd.f32 %v23539_v57, %v16573_v17  ;;  %10736 = vmatpush1.bf16.msra.mxu0 %v18035_v0  ;;  %10755 = vmatprep.mubr.bf16.mxu0 %v23295_v11  ;;  %v18041_v11 = vld [vmem:[%s25349_s4 + $0x6f0] ss:$8 sps:$4 sm:$0xff]   ;;  %v18094_v0 = vld [vmem:[%s25349_s4 + $0x8f4] ss:$8 sps:$4 sm:$0xff]   ;;  %v18097_v17 = vld [vmem:[%s25349_s4 + $0x8e4] ss:$8 sps:$4 sm:$0xff]  }
 0x5bc   : > { %v16575_v61 = vpop.f32.mrf.mxu0  ;;  %10737 = vmatprep.subr.bf16.mxu0 %v18040_v14 }
 0x5bd   : > { %15341 = vst [vmem:[%s22198_s10 + $0x68] sm:$0xff] %v8103_v43  ;;  %v16576_v42 = vadd.f32 %v16575_v61, %v16574_v22  ;;  %v18095_v22 = vld [vmem:[%s25349_s4 + $0x8e0] ss:$8 sps:$4 sm:$0xff]   ;;  %v9071_v43 = vpop.f32.mrf.mxu1  ;;  %v18100_v61 = vld [vmem:[%s25349_s4 + $0x8d4] ss:$8 sps:$4 sm:$0xff]  }
 0x5be   : > { %v16577_v5 = vpop.f32.mrf.mxu0 }
 0x5bf   : > { %v8108_v33 = vadd.f32 %v23539_v57, %v16576_v42  ;;  %10738 = vmatpush1.bf16.msra.mxu0 %v18038_v28  ;;  %v9073_v42 = vpop.f32.mrf.mxu1 }
 0x5c0   : > { %v16578_v58 = vpop.f32.mrf.mxu0  ;;  %10739 = vmatprep.subr.bf16.mxu0 %v18043_v15  ;;  %v18098_v15 = vld [vmem:[%s25349_s4 + $0x8d0] ss:$8 sps:$4 sm:$0xff]  }
 0x5c1   : > { %15342 = vst [vmem:[%s22198_s10 + $0x70] sm:$0xff] %v8108_v33  ;;  %v16579_v46 = vadd.f32 %v16578_v58, %v16577_v5  ;;  %v18103_v33 = vld [vmem:[%s25349_s4 + $0x8c4] ss:$8 sps:$4 sm:$0xff]   ;;  %v9075_v58 = vpop.f32.mrf.mxu1 }
 0x5c3   : > { %v8111_v6 = vadd.f32 %v23539_v57, %v16579_v46  ;;  %10740 = vmatpush2.bf16.msra.mxu0 %v18041_v11  ;;  %v18058_v57 = vld [vmem:[%s25349_s4 + $0x6a4] ss:$8 sps:$4 sm:$0xff]   ;;  %v18101_v11 = vld [vmem:[%s25349_s4 + $0x8c0] ss:$8 sps:$4 sm:$0xff]   ;;  %v18106_v46 = vld [vmem:[%s25349_s4 + $0x8b4] ss:$8 sps:$4 sm:$0xff]  }
 0x5c4   : > { %10741 = vmatprep.subr.bf16.mxu0 %v18046_v12 }
 0x5c5   : > { %15343 = vst [vmem:[%s22198_s10 + $0x78] sm:$0xff] %v8111_v6  ;;  %v18104_v6 = vld [vmem:[%s25349_s4 + $0x8b0] ss:$8 sps:$4 sm:$0xff]  }
 0x5c7   : > { %10742 = vmatpush2.bf16.msra.mxu0 %v18044_v36  ;;  %v23752_v36 = vpop.f32.mrf.mxu1 }
 0x5c8   : > { %10743 = vmatprep.subr.bf16.mxu0 %v18049_v38 }
 0x5cb   : > { %10744 = vmatpush2.bf16.msra.mxu0 %v18047_v53  ;;  %v18109_v53 = vld [vmem:[%s25349_s4 + $0x8a4] ss:$8 sps:$4 sm:$0xff]  }
 0x5cc   : > { %10745 = vmatprep.subr.bf16.mxu0 %v18052_v1  ;;  %v18107_v1 = vld [vmem:[%s25349_s4 + $0x8a0] ss:$8 sps:$4 sm:$0xff]  }
 0x5cf   : > { %10746 = vmatpush2.bf16.msra.mxu0 %v18050_v54  ;;  %v9081_v54 = vpop.f32.mrf.mxu1 }
 0x5d0   : > { %10747 = vmatprep.subr.bf16.mxu0 %v18055_v21 }
 0x5d3   : > { %10748 = vmatpush2.bf16.msra.mxu0 %v18053_v52  ;;  %v18112_v52 = vld [vmem:[%s25349_s4 + $0x894] ss:$8 sps:$4 sm:$0xff]  }
 0x5d4   : > { %10749 = vmatprep.subr.bf16.mxu0 %v18058_v57  ;;  %v18110_v57 = vld [vmem:[%s25349_s4 + $0x890] ss:$8 sps:$4 sm:$0xff]  }
 0x5d7   : > { %10750 = vmatpush2.bf16.msra.mxu0 %v18056_v13  ;;  %v9083_v13 = vpop.f32.mrf.mxu1 }
 0x5d8   : > { %10751 = vmatprep.subr.bf16.mxu0 %v18061_v41 }
 0x5db   : > { %10752 = vmatpush2.bf16.msra.mxu0 %v18059_v25  ;;  %v18115_v25 = vld [vmem:[%s25349_s4 + $0x884] ss:$8 sps:$4 sm:$0xff]  }
 0x5dc   : > { %10753 = vmatprep.subr.bf16.mxu0 %v18064_v60  ;;  %v18113_v60 = vld [vmem:[%s25349_s4 + $0x880] ss:$8 sps:$4 sm:$0xff]  }
 0x5df   : > { %10754 = vmatpush2.bf16.msra.mxu0 %v18062_v44  ;;  %v9085_v44 = vpop.f32.mrf.mxu1 }
 0x5e0   : > { %10869 = vmatprep.subr.bf16.mxu0 %v18067_v30 }
 0x5e2   : > { %10756 = vmatmul.mubr.bf16.vlgmr.msra.gmra.mxu0 %v23319_v3  ;;  %v23655_v47 = vpop.f32.mrf.mxu0 }
 0x5e3   : > { %10765 = vmatprep.mubr.bf16.mxu0 %v23324_v23  ;;  %10870 = vmatpush1.bf16.msra.mxu0 %v18065_v39  ;;  %v18076_v23 = vld [vmem:[%s25349_s4 + $0x844] ss:$8 sps:$4 sm:$0xff]   ;;  %v18118_v39 = vld [vmem:[%s25349_s4 + $0x474] ss:$8 sps:$4 sm:$0xff]  }
 0x5e4   : > { %10871 = vmatprep.subr.bf16.mxu0 %v18070_v4  ;;  %v23663_v3 = vpop.f32.mrf.mxu0  ;;  %v18116_v4 = vld [vmem:[%s25349_s4 + $0x470] ss:$8 sps:$4 sm:$0xff]  }
 0x5e6   : > { %v23673_v10 = vpop.f32.mrf.mxu0 }
 0x5e7   : > { %10872 = vmatpush1.bf16.msra.mxu0 %v18068_v45  ;;  %v23786_v45 = vpop.f32.mrf.mxu1 }
 0x5e8   : > { %10873 = vmatprep.subr.bf16.mxu0 %v18073_v19  ;;  %v18086_v19 = vld [vmem:[#allocation2 + $0x1d0] ss:$-144 sps:$4 sm:$0xff]  }
 0x5ea   : > { %10766 = vmatmul.mubr.bf16.gmra.mxu0 %v23340_v8  ;;  %v23681_v8 = vpop.f32.mrf.mxu0 }
 0x5eb   : > { %10775 = vmatprep.mubr.bf16.mxu0 %v23345_v49  ;;  %10874 = vmatpush1.bf16.msra.mxu0 %v18071_v59  ;;  %v18082_v49 = vld [vmem:[%s25349_s4 + $0x824] ss:$8 sps:$4 sm:$0xff]  }
 0x5ec   : > { %10875 = vmatprep.subr.bf16.mxu0 %v18076_v23  ;;  %v23693_v63 = vpop.f32.mrf.mxu0  ;;  %v18124_v23 = vld [vmem:[%s25349_s4 + $0x464] ss:$8 sps:$4 sm:$0xff]  }
 0x5ef   : > { %10876 = vmatpush1.bf16.msra.mxu0 %v18074_v51  ;;  %v9072_v51 = vadd.f32 %v9071_v43, %v23655_v47  ;;  %v18127_v47 = vld [vmem:[%s25349_s4 + $0x454] ss:$8 sps:$4 sm:$0xff]  }
 0x5f0   : > { %10877 = vmatprep.subr.bf16.mxu0 %v18079_v48  ;;  %v18121_v48 = vld [vmem:[#allocation2 + $0x13c] ss:$-80 sps:$4 sm:$0xff]  }
 0x5f2   : > { %10776 = vmatmul.mubr.bf16.gmra.mxu0 %v23358_v24  ;;  %v23701_v24 = vpop.f32.mrf.mxu0 }
 0x5f3   : > { %10785 = vmatprep.mubr.bf16.mxu0 %v23686_v37  ;;  %10878 = vmatpush1.bf16.msra.mxu0 %v18077_v9 }
 0x5f4   : > { %10879 = vmatprep.subr.bf16.mxu0 %v18082_v49  ;;  %v23712_v40 = vpop.f32.mrf.mxu0  ;;  %v9074_v49 = vadd.f32 %v9073_v42, %v23663_v3  ;;  %v18128_v42 = vld [vmem:[%s25349_s4 + $0x440] ss:$8 sps:$4 sm:$0xff]  }
 0x5f6   : > { %v23720_v14 = vpop.f32.mrf.mxu0 }
 0x5f7   : > { %10880 = vmatpush1.bf16.msra.mxu0 %v18080_v32  ;;  %v9091_v32 = vpop.f32.mrf.mxu1 }
 0x5f8   : > { %10881 = vmatprep.subr.bf16.mxu0 %v18085_v7  ;;  %v23728_v28 = vpop.f32.mrf.mxu0 }
 0x5fa   : > { %10786 = vmatmul.mubr.bf16.gmra.mxu0 %v23703_v18  ;;  %v23736_v5 = vpop.f32.mrf.mxu0 }
 0x5fb   : > { %10882 = vmatpush1.bf16.msra.mxu0 %v18083_v56  ;;  %10901 = vmatprep.mubr.bf16.mxu0 %v18088_v31  ;;  %v9076_v56 = vadd.f32 %v9075_v58, %v23673_v10  ;;  %v9082_v10 = vadd.f32 %v9081_v54, %v23693_v63  ;;  %v18133_v63 = vld [vmem:[%s25349_s4 + $0x434] ss:$8 sps:$4 sm:$0xff]   ;;  %v9086_v58 = vadd.f32 %v9085_v44, %v23712_v40  ;;  %v18136_v54 = vld [vmem:[%s25349_s4 + $0x424] ss:$8 sps:$4 sm:$0xff]  }
 0x5fc   : > { %10883 = vmatprep.subr.bf16.mxu0 %v18091_v16  ;;  %v23744_v12 = vpop.f32.mrf.mxu0  ;;  %v9092_v40 = vadd.f32 %v9091_v32, %v23728_v28 }
 0x5fe   : > { %v23754_v38 = vpop.f32.mrf.mxu0 }
 0x5ff   : > { %10884 = vmatpush1.bf16.msra.mxu0 %v18089_v50  ;;  %v18125_v50 = vld [vmem:[%s25349_s4 + $0x450] ss:$8 sps:$4 sm:$0xff]  }
 0x600   : > { %10885 = vmatprep.subr.bf16.mxu0 %v18094_v0  ;;  %v23762_v21 = vpop.f32.mrf.mxu0  ;;  %v9093_v0 = vpop.f32.mrf.mxu1 }
 0x602   : > { %v23770_v41 = vpop.f32.mrf.mxu0 }
 0x603   : > { %10886 = vmatpush2.bf16.msra.mxu0 %v18092_v62  ;;  %v18119_v62 = vld [vmem:[#allocation2 + $0x138] ss:$-80 sps:$4 sm:$0xff]  }
 0x604   : > { %10887 = vmatprep.subr.bf16.mxu0 %v18097_v17  ;;  %v23778_v30 = vpop.f32.mrf.mxu0 }
 0x606   : > { %v23788_v59 = vpop.f32.mrf.mxu0 }
 0x607   : > { %10888 = vmatpush2.bf16.msra.mxu0 %v18095_v22  ;;  %v18130_v22 = vld [vmem:[%s25349_s4 + $0x444] ss:$8 sps:$4 sm:$0xff]  }
 0x608   : > { %10889 = vmatprep.subr.bf16.mxu0 %v18100_v61  ;;  %v9084_v61 = vadd.f32 %v9083_v13, %v23701_v24 }
 0x60b   : > { %10890 = vmatpush2.bf16.msra.mxu0 %v18098_v15 }
 0x60c   : > { %10891 = vmatprep.subr.bf16.mxu0 %v18103_v33  ;;  %v9095_v33 = vpop.f32.mrf.mxu1 }
 0x60f   : > { %10892 = vmatpush2.bf16.msra.mxu0 %v18101_v11 }
 0x610   : > { %10893 = vmatprep.subr.bf16.mxu0 %v18106_v46 }
 0x613   : > { %10894 = vmatpush2.bf16.msra.mxu0 %v18104_v6 }
 0x614   : > { %10895 = vmatprep.subr.bf16.mxu0 %v18109_v53  ;;  %v23835_v53 = vpop.f32.mrf.mxu1 }
 0x617   : > { %10896 = vmatpush2.bf16.msra.mxu0 %v18107_v1 }
 0x618   : > { %10897 = vmatprep.subr.bf16.mxu0 %v18112_v52  ;;  %v18655_v52 = vld [vmem:[#allocation2 + $0xb8] sm:$0xff] }
 0x61b   : > { %10898 = vmatpush2.bf16.msra.mxu0 %v18110_v57  ;;  %v18656_v57 = vld [vmem:[#allocation2 + $0x8] sm:$0xff] }
 0x61c   : > { %10899 = vmatprep.subr.bf16.mxu0 %v18115_v25  ;;  %v23843_v13 = vcombine.high %v18655_v52, %v18656_v57 }
 0x61f   : > { %10900 = vmatpush2.bf16.msra.mxu0 %v18113_v60  ;;  %v9094_v60 = vadd.f32 %v9093_v0, %v23736_v5 }
 0x620   : > { %12002 = vmatprep.subr.bf16.mxu0 %v18118_v39  ;;  %v18134_v39 = vld [vmem:[%s25349_s4 + $0x420] ss:$8 sps:$4 sm:$0xff]  }
 0x622   : > { %v9144_v9 = vpop.f32.mrf.mxu0  ;;  %10902 = vmatmul.mubr.bf16.vlgmr.msra.gmra.mxu0 %v18086_v19  ;;  %v18139_v19 = vld [vmem:[%s25349_s4 + $0x414] ss:$8 sps:$4 sm:$0xff]  }
 0x623   : > { %v23795_v26 = vadd.f32 %v9144_v9, %v9072_v51  ;;  %10911 = vmatprep.mubr.bf16.mxu0 %v18121_v48  ;;  %12003 = vmatpush1.bf16.msra.mxu0 %v18116_v4  ;;  %v9101_v4 = vpop.f32.mrf.mxu1  ;;  %v18137_v48 = vld [vmem:[%s25349_s4 + $0x410] ss:$8 sps:$4 sm:$0xff]  }
 0x624   : > { %v9146_v7 = vpop.f32.mrf.mxu0  ;;  %12004 = vmatprep.subr.bf16.mxu0 %v18124_v23  ;;  %v9102_v32 = vadd.f32 %v9101_v4, %v23762_v21  ;;  %v18148_v21 = vld [vmem:[%s25349_s4 + $0x4f4] ss:$8 sps:$4 sm:$0xff]  }
 0x625   : > { %v23804_v16 = vadd.f32 %v9146_v7, %v9074_v49  ;;  %v9103_v9 = vpop.f32.mrf.mxu1  ;;  %v23864_v49 = vcombine.low %v18655_v52, %v18656_v57  ;;  %v18142_v7 = vld [vmem:[#allocation2 + $0x154] ss:$424 sps:$4 sm:$0xff]   ;;  %v18158_v57 = vld [vmem:[%s25349_s4 + $0x4b0] ss:$8 sps:$4 sm:$0xff]  }
 0x626   : > { %v9148_v3 = vpop.f32.mrf.mxu0  ;;  %v18160_v52 = vld [vmem:[%s25349_s4 + $0x4b4] ss:$8 sps:$4 sm:$0xff]  }
 0x627   : > { %v23806_v31 = vadd.f32 %v9148_v3, %v9076_v56  ;;  %12005 = vmatpush1.bf16.msra.mxu0 %v18122_v29  ;;  %v9104_v56 = vadd.f32 %v9103_v9, %v23770_v41  ;;  %v9105_v0 = vpop.f32.mrf.mxu1 }
 0x628   : > { %v23811_v17 = vpop.f32.mrf.mxu0  ;;  %12006 = vmatprep.subr.bf16.mxu0 %v18127_v47 }
 0x62a   : > { %v9154_v43 = vpop.f32.mrf.mxu0  ;;  %10912 = vmatmul.mubr.bf16.gmra.mxu0 %v18119_v62 }
 0x62b   : > { %v23818_v15 = vadd.f32 %v9154_v43, %v9082_v10  ;;  %10921 = vmatprep.mubr.bf16.mxu0 %v23451_v2  ;;  %12007 = vmatpush1.bf16.msra.mxu0 %v18125_v50  ;;  %v18131_v2 = vld [vmem:[%s25349_s4 + $0x430] ss:$8 sps:$4 sm:$0xff]   ;;  %v18143_v50 = vld [vmem:[%s25349_s4 + $0x400] ss:$8 sps:$4 sm:$0xff]  }
 0x62c   : > { %v9156_v11 = vpop.f32.mrf.mxu0  ;;  %12008 = vmatprep.subr.bf16.mxu0 %v18130_v22  ;;  %v9106_v22 = vadd.f32 %v9105_v0, %v23778_v30  ;;  %v18149_v30 = vld [vmem:[%s25349_s4 + $0x4e0] ss:$8 sps:$4 sm:$0xff]  }
 0x62d   : > { %v23828_v46 = vadd.f32 %v9156_v11, %v9084_v61  ;;  %v18146_v61 = vld [vmem:[%s25349_s4 + $0x4f0] ss:$8 sps:$4 sm:$0xff]  }
 0x62e   : > { %v9158_v24 = vpop.f32.mrf.mxu0 }
 0x62f   : > { %v23830_v6 = vadd.f32 %v9158_v24, %v9086_v58  ;;  %12009 = vmatpush1.bf16.msra.mxu0 %v18128_v42  ;;  %v18151_v42 = vld [vmem:[%s25349_s4 + $0x4e4] ss:$8 sps:$4 sm:$0xff]   ;;  %v18152_v58 = vld [vmem:[%s25349_s4 + $0x4d0] ss:$8 sps:$4 sm:$0xff]  }
 0x630   : > { %v23837_v1 = vpop.f32.mrf.mxu0  ;;  %12010 = vmatprep.subr.bf16.mxu0 %v18133_v63  ;;  %v18154_v63 = vld [vmem:[%s25349_s4 + $0x4d4] ss:$8 sps:$4 sm:$0xff]  }
 0x632   : > { %v9164_v25 = vpop.f32.mrf.mxu0  ;;  %10922 = vmatmul.mubr.bf16.gmra.mxu0 %v23464_v27  ;;  %v9096_v27 = vadd.f32 %v9095_v33, %v23744_v12  ;;  %v18145_v12 = vld [vmem:[%s25349_s4 + $0x404] ss:$8 sps:$4 sm:$0xff]   ;;  %v23893_v33 = vpop.f32.mrf.mxu1 }
 0x633   : > { %v23847_v44 = vadd.f32 %v9164_v25, %v9092_v40  ;;  %10931 = vmatprep.mubr.bf16.mxu0 %v23843_v13  ;;  %12011 = vmatpush1.bf16.msra.mxu0 %v18131_v2  ;;  %v18157_v2 = vld [vmem:[%s25349_s4 + $0x4c4] ss:$8 sps:$4 sm:$0xff]  }
 0x634   : > { %v9166_v28 = vpop.f32.mrf.mxu0  ;;  %12012 = vmatprep.subr.bf16.mxu0 %v18136_v54  ;;  %v9817_v11 = vpop.f32.mrf.mxu1  ;;  %v18155_v54 = vld [vmem:[%s25349_s4 + $0x4c0] ss:$8 sps:$4 sm:$0xff]  }
 0x635   : > { %v23857_v23 = vadd.f32 %v9166_v28, %v9094_v60  ;;  %v18163_v60 = vld [vmem:[%s25349_s4 + $0x4a4] ss:$8 sps:$4 sm:$0xff]   ;;  %v18166_v28 = vld [vmem:[%s25349_s4 + $0x494] ss:$8 sps:$4 sm:$0xff]   ;;  %v9818_v0 = vadd.f32 %v9817_v11, %v23795_v26 }
 0x636   : > { %v9168_v5 = vpop.f32.mrf.mxu0  ;;  %v9819_v24 = vpop.f32.mrf.mxu1  ;;  %v18181_v26 = vld [vmem:[%s25349_s4 + $0x54] ss:$8 sps:$4 sm:$0xff]  }
 0x637   : > { %v23859_v51 = vadd.f32 %v9168_v5, %v9096_v27  ;;  %12013 = vmatpush1.bf16.msra.mxu0 %v18134_v39  ;;  %v18161_v39 = vld [vmem:[%s25349_s4 + $0x4a0] ss:$8 sps:$4 sm:$0xff]   ;;  %v18169_v5 = vld [vmem:[%s25349_s4 + $0x484] ss:$8 sps:$4 sm:$0xff]  }
 0x638   : > { %v23866_v29 = vpop.f32.mrf.mxu0  ;;  %12014 = vmatprep.subr.bf16.mxu0 %v18139_v19  ;;  %v9821_v40 = vpop.f32.mrf.mxu1  ;;  %v18164_v19 = vld [vmem:[%s25349_s4 + $0x490] ss:$8 sps:$4 sm:$0xff]  }
 0x63a   : > { %v9174_v47 = vpop.f32.mrf.mxu0  ;;  %10932 = vmatmul.mubr.bf16.gmra.mxu0 %v23864_v49  ;;  %v23916_v25 = vpop.f32.mrf.mxu1 }
 0x63b   : > { %v23874_v3 = vadd.f32 %v9174_v47, %v9102_v32  ;;  %12015 = vmatpush1.bf16.msra.mxu0 %v18137_v48  ;;  %12034 = vmatprep.mubr.bf16.mxu0 %v18142_v7  ;;  %v18167_v48 = vld [vmem:[%s25349_s4 + $0x480] ss:$8 sps:$4 sm:$0xff]   ;;  %v18170_v32 = vld [vmem:[%s25349_s4 + $0x70] ss:$8 sps:$4 sm:$0xff]  }
 0x63c   : > { %v9176_v62 = vpop.f32.mrf.mxu0  ;;  %12016 = vmatprep.subr.bf16.mxu0 %v18145_v12  ;;  %v9827_v4 = vpop.f32.mrf.mxu1  ;;  %v18172_v12 = vld [vmem:[%s25349_s4 + $0x74] ss:$8 sps:$4 sm:$0xff]   ;;  %v18140_v47 = vld [vmem:[#allocation2 + $0x150] ss:$424 sps:$4 sm:$0xff]  }
 0x63d   : > { %v23883_v10 = vadd.f32 %v9176_v62, %v9104_v56  ;;  %v18175_v62 = vld [vmem:[#allocation2 + $0x54] ss:$-48 sps:$4 sm:$0xff]  }
 0x63e   : > { %v9178_v41 = vpop.f32.mrf.mxu0  ;;  %v9829_v27 = vpop.f32.mrf.mxu1 }
 0x63f   : > { %v23885_v43 = vadd.f32 %v9178_v41, %v9106_v22  ;;  %12017 = vmatpush1.bf16.msra.mxu0 %v18143_v50  ;;  %v18178_v50 = vld [vmem:[%s25349_s4 + $0x64] ss:$8 sps:$4 sm:$0xff]   ;;  %v9820_v41 = vadd.f32 %v9819_v24, %v23804_v16  ;;  %v18179_v16 = vld [vmem:[%s25349_s4 + $0x50] ss:$8 sps:$4 sm:$0xff]  }
 0x640   : > { %12018 = vmatprep.subr.bf16.mxu0 %v18148_v21  ;;  %v9831_v9 = vpop.f32.mrf.mxu1  ;;  %v23944_v56 = vpop.f32.mrf.mxu0 }
 0x642   : > { %v23942_v7 = vpop.f32.mrf.mxu1 }
 0x643   : > { %12019 = vmatpush2.bf16.msra.mxu0 %v18146_v61  ;;  %v18176_v61 = vld [vmem:[%s25349_s4 + $0x60] ss:$8 sps:$4 sm:$0xff]  }
 0x644   : > { %12020 = vmatprep.subr.bf16.mxu0 %v18151_v42  ;;  %v9837_v42 = vpop.f32.mrf.mxu1 }
 0x646   : > { %v9839_v24 = vpop.f32.mrf.mxu1 }
 0x647   : > { %12021 = vmatpush2.bf16.msra.mxu0 %v18149_v30 }
 0x648   : > { %12022 = vmatprep.subr.bf16.mxu0 %v18154_v63  ;;  %v9822_v63 = vadd.f32 %v9821_v40, %v23806_v31  ;;  %v18184_v31 = vld [vmem:[#allocation2 + $0x304] ss:$-56 sps:$4 sm:$0xff]  }
 0x64b   : > { %12023 = vmatpush2.bf16.msra.mxu0 %v18152_v58 }
 0x64c   : > { %12024 = vmatprep.subr.bf16.mxu0 %v18157_v2 }
 0x64f   : > { %12025 = vmatpush2.bf16.msra.mxu0 %v18155_v54  ;;  %v18173_v54 = vld [vmem:[#allocation2 + $0x50] ss:$-48 sps:$4 sm:$0xff]  }
 0x650   : > { %12026 = vmatprep.subr.bf16.mxu0 %v18160_v52 }
 0x653   : > { %12027 = vmatpush2.bf16.msra.mxu0 %v18158_v57  ;;  %v18187_v57 = vld [vmem:[%s25349_s4 + $0x44] ss:$8 sps:$4 sm:$0xff]  }
 0x654   : > { %12028 = vmatprep.subr.bf16.mxu0 %v18163_v60  ;;  %v9828_v60 = vadd.f32 %v9827_v4, %v23818_v15  ;;  %v18190_v15 = vld [vmem:[%s25349_s4 + $0x34] ss:$8 sps:$4 sm:$0xff]  }
 0x657   : > { %12029 = vmatpush2.bf16.msra.mxu0 %v18161_v39 }
 0x658   : > { %12030 = vmatprep.subr.bf16.mxu0 %v18166_v28  ;;  %v9830_v28 = vadd.f32 %v9829_v27, %v23828_v46  ;;  %v18188_v46 = vld [vmem:[%s25349_s4 + $0x30] ss:$8 sps:$4 sm:$0xff]  }
 0x65b   : > { %12031 = vmatpush2.bf16.msra.mxu0 %v18164_v19  ;;  %v18185_v19 = vld [vmem:[%s25349_s4 + $0x40] ss:$8 sps:$4 sm:$0xff]  }
 0x65c   : > { %12032 = vmatprep.subr.bf16.mxu0 %v18169_v5  ;;  %v9841_v5 = vpop.f32.mrf.mxu1 }
 0x65e   : > { %v23990_v27 = vpop.f32.mrf.mxu1 }
 0x65f   : > { %12033 = vmatpush2.bf16.msra.mxu0 %v18167_v48 }
 0x660   : > { %12748 = vmatprep.subr.bf16.mxu0 %v18172_v12  ;;  %v9832_v12 = vadd.f32 %v9831_v9, %v23830_v6  ;;  %v18193_v6 = vld [vmem:[%s25349_s4 + $0x24] ss:$8 sps:$4 sm:$0xff]   ;;  %v9838_v9 = vadd.f32 %v9837_v42, %v23847_v44  ;;  %v18196_v44 = vld [vmem:[%s25349_s4 + $0x14] ss:$8 sps:$4 sm:$0xff]  }
 0x662   : > { %v9890_v21 = vpop.f32.mrf.mxu0  ;;  %12035 = vmatmul.mubr.bf16.vlgmr.msra.gmra.mxu0 %v18140_v47  ;;  %v11228_v47 = vld [vmem:[#allocation2 + $0x108] sm:$0xff] }
 0x663   : > { %v23950_v22 = vadd.f32 %v9890_v21, %v9818_v0  ;;  %12044 = vmatprep.mubr.bf16.mxu0 %v18175_v62  ;;  %12749 = vmatpush1.bf16.msra.mxu0 %v18170_v32  ;;  %v18182_v62 = vld [vmem:[#allocation2 + $0x300] ss:$-56 sps:$4 sm:$0xff]  }
 0x664   : > { %v9892_v30 = vpop.f32.mrf.mxu0  ;;  %12750 = vmatprep.subr.bf16.mxu0 %v18178_v50  ;;  %v11231_v50 = vld [vmem:[#allocation2 + $0x48] sm:$0xff] }
 0x665   : > { %v23959_v11 = vadd.f32 %v9892_v30, %v9820_v41  ;;  %v16021_v41 = vcombine.high %v11228_v47, %v11231_v50 }
 0x666   : > { %v9894_v58 = vpop.f32.mrf.mxu0 }
 0x667   : > { %v23962_v2 = vadd.f32 %v9894_v58, %v9822_v63  ;;  %12751 = vmatpush1.bf16.msra.mxu0 %v18176_v61  ;;  %v18191_v63 = vld [vmem:[%s25349_s4 + $0x20] ss:$8 sps:$4 sm:$0xff]   ;;  %v9847_v58 = vpop.f32.mrf.mxu1 }
 0x668   : > { %v23967_v52 = vpop.f32.mrf.mxu0  ;;  %12752 = vmatprep.subr.bf16.mxu0 %v18181_v26  ;;  %v9840_v26 = vadd.f32 %v9839_v24, %v23857_v23  ;;  %v18194_v24 = vld [vmem:[%s25349_s4 + $0x10] ss:$8 sps:$4 sm:$0xff]  }
 0x66a   : > { %v9900_v40 = vpop.f32.mrf.mxu0  ;;  %12045 = vmatmul.mubr.bf16.gmra.mxu0 %v18173_v54  ;;  %v9842_v54 = vadd.f32 %v9841_v5, %v23859_v51  ;;  %v18199_v51 = vld [vmem:[%s25349_s4 + $0x4] ss:$8 sps:$4 sm:$0xff]   ;;  %v9848_v5 = vadd.f32 %v9847_v58, %v23874_v3  ;;  %v18202_v3 = vld [vmem:[%s25349_s4 + $0xf4] ss:$8 sps:$4 sm:$0xff]  }
 0x66b   : > { %v23973_v39 = vadd.f32 %v9900_v40, %v9828_v60  ;;  %12054 = vmatprep.mubr.bf16.mxu0 %v18184_v31  ;;  %12753 = vmatpush1.bf16.msra.mxu0 %v18179_v16  ;;  %v24010_v60 = vld [vmem:[#allocation2 + $0x230] sm:$0xff]  ;;  %v9849_v40 = vpop.f32.mrf.mxu1 }
 0x66c   : > { %v9902_v48 = vpop.f32.mrf.mxu0  ;;  %12754 = vmatprep.subr.bf16.mxu0 %v18187_v57  ;;  %v24012_v31 = vld [vmem:[#allocation2 + $0x2b0] sm:$0xff] }
 0x66d   : > { %v23982_v4 = vadd.f32 %v9902_v48, %v9830_v28  ;;  %v16020_v28 = vcombine.low %v11228_v47, %v11231_v50  ;;  %v16121_v48 = vcombine.high %v24010_v60, %v24012_v31  ;;  %v18197_v47 = vld [vmem:[%s25349_s4] ss:$8 sps:$4 sm:$0xff]   ;;  %v9851_v50 = vpop.f32.mrf.mxu1 }
 0x66e   : > { %v9904_v32 = vpop.f32.mrf.mxu0 }
 0x66f   : > { %v23985_v0 = vadd.f32 %v9904_v32, %v9832_v12  ;;  %12755 = vmatpush1.bf16.msra.mxu0 %v18185_v19  ;;  %v9850_v32 = vadd.f32 %v9849_v40, %v23883_v10  ;;  %v18209_v40 = vld [vmem:[%s25349_s4 + $0xc0] ss:$8 sps:$4 sm:$0xff]  }
 0x670   : > { %v23992_v21 = vpop.f32.mrf.mxu0  ;;  %12756 = vmatprep.subr.bf16.mxu0 %v18190_v15 }
 0x672   : > { %v9910_v61 = vpop.f32.mrf.mxu0  ;;  %12055 = vmatmul.mubr.bf16.gmra.mxu0 %v18182_v62  ;;  %v18292_v62 = vld [vmem:[%s25349_s4 + $0x374] ss:$8 sps:$4 sm:$0xff]  }
 0x673   : > { %v23998_v30 = vadd.f32 %v9910_v61, %v9838_v9  ;;  %12064 = vmatprep.mubr.bf16.mxu0 %v16021_v41  ;;  %12757 = vmatpush1.bf16.msra.mxu0 %v18188_v46  ;;  %v9852_v9 = vadd.f32 %v9851_v50, %v23885_v43  ;;  %v18200_v61 = vld [vmem:[%s25349_s4 + $0xf0] ss:$8 sps:$4 sm:$0xff]   ;;  %v18203_v43 = vld [vmem:[%s25349_s4 + $0xe0] ss:$8 sps:$4 sm:$0xff]  }
 0x674   : > { %v9912_v16 = vpop.f32.mrf.mxu0  ;;  %12758 = vmatprep.subr.bf16.mxu0 %v18193_v6  ;;  %11929 = vmatprep.subr.bf16.mxu1 %v18292_v62 }
 0x675   : > { %v24007_v42 = vadd.f32 %v9912_v16, %v9840_v26  ;;  %v18205_v26 = vld [vmem:[%s25349_s4 + $0xe4] ss:$8 sps:$4 sm:$0xff]   ;;  %v18208_v16 = vld [vmem:[%s25349_s4 + $0xd4] ss:$8 sps:$4 sm:$0xff]  }
 0x676   : > { %v9914_v57 = vpop.f32.mrf.mxu0 }
 0x677   : > { %25627 = vst [vmem:[#allocation17_spill] sm:$0xff] %v24007_v42  ;;  %v24014_v23 = vadd.f32 %v9914_v57, %v9842_v54  ;;  %12759 = vmatpush1.bf16.msra.mxu0 %v18191_v63  ;;  %v24050_v63 = vpop.f32.mrf.mxu1  ;;  %v18206_v54 = vld [vmem:[%s25349_s4 + $0xd0] ss:$8 sps:$4 sm:$0xff]   ;;  %v18211_v57 = vld [vmem:[%s25349_s4 + $0xc4] ss:$8 sps:$4 sm:$0xff]  }
 0x678   : > { %v24019_v19 = vpop.f32.mrf.mxu0  ;;  %12760 = vmatprep.subr.bf16.mxu0 %v18196_v44 }
 0x679   : > { %25628 = vst [vmem:[#allocation31_spill] sm:$0xff] %v24014_v23  ;;  %25629 = vst [vmem:[#allocation21_spill] sm:$0xff] %v24019_v19  ;;  %v24052_v58 = vpop.f32.mrf.mxu1 }
 0x67a   : > { %v9920_v15 = vpop.f32.mrf.mxu0  ;;  %12065 = vmatmul.mubr.bf16.gmra.mxu0 %v16020_v28  ;;  %v18214_v28 = vld [vmem:[%s25349_s4 + $0xb4] ss:$8 sps:$4 sm:$0xff]   ;;  %v9964_v42 = vadd.f32 %v24052_v58, %v23950_v22 }
 0x67b   : > { %v24027_v12 = vadd.f32 %v9920_v15, %v9848_v5  ;;  %12761 = vmatpush1.bf16.msra.mxu0 %v18194_v24  ;;  %12780 = vmatprep.mubr.bf16.mxu0 %v16121_v48  ;;  %v24060_v44 = vpop.f32.mrf.mxu1  ;;  %v18212_v5 = vld [vmem:[%s25349_s4 + $0xb0] ss:$8 sps:$4 sm:$0xff]   ;;  %v18217_v48 = vld [vmem:[%s25349_s4 + $0xa4] ss:$8 sps:$4 sm:$0xff]  }
 0x67c   : > { %v9922_v46 = vpop.f32.mrf.mxu0  ;;  %12762 = vmatprep.subr.bf16.mxu0 %v18199_v51 }
 0x67d   : > { %25630 = vst [vmem:[#allocation30_spill] sm:$0xff] %v24027_v12  ;;  %v24039_v6 = vadd.f32 %v9922_v46, %v9850_v32  ;;  %v24068_v24 = vpop.f32.mrf.mxu1  ;;  %v18215_v32 = vld [vmem:[%s25349_s4 + $0xa0] ss:$8 sps:$4 sm:$0xff]   ;;  %v18218_v46 = vld [vmem:[%s25349_s4 + $0x90] ss:$8 sps:$4 sm:$0xff]  }
 0x67e   : > { %v9924_v10 = vpop.f32.mrf.mxu0 }
 0x67f   : > { %25631 = vst [vmem:[#allocation35_spill] sm:$0xff] %v24039_v6  ;;  %v24042_v41 = vadd.f32 %v9924_v10, %v9852_v9  ;;  %12763 = vmatpush1.bf16.msra.mxu0 %v18197_v47  ;;  %v24076_v51 = vpop.f32.mrf.mxu1  ;;  %v18220_v47 = vld [vmem:[%s25349_s4 + $0x94] ss:$8 sps:$4 sm:$0xff]   ;;  %v18221_v9 = vld [vmem:[%s25349_s4 + $0x80] ss:$8 sps:$4 sm:$0xff]  }
 0x680   : > { %12764 = vmatprep.subr.bf16.mxu0 %v18202_v3  ;;  %v18223_v3 = vld [vmem:[%s25349_s4 + $0x84] ss:$8 sps:$4 sm:$0xff]   ;;  %v18226_v10 = vld [vmem:[%s25349_s4 + $0x274] ss:$8 sps:$4 sm:$0xff]  }
 0x681   : > { %25632 = vst [vmem:[#allocation10_spill] sm:$0xff] %v24042_v41  ;;  %v24084_v15 = vpop.f32.mrf.mxu1 }
 0x683   : > { %12765 = vmatpush2.bf16.msra.mxu0 %v18200_v61  ;;  %v24092_v50 = vpop.f32.mrf.mxu1 }
 0x684   : > { %12766 = vmatprep.subr.bf16.mxu0 %v18205_v26  ;;  %v18224_v26 = vld [vmem:[%s25349_s4 + $0x270] ss:$8 sps:$4 sm:$0xff]  }
 0x685   : > { %v24100_v62 = vpop.f32.mrf.mxu1 }
 0x687   : > { %12767 = vmatpush2.bf16.msra.mxu0 %v18203_v43  ;;  %v24108_v61 = vpop.f32.mrf.mxu1  ;;  %v16120_v43 = vcombine.low %v24010_v60, %v24012_v31  ;;  %v18232_v60 = vld [vmem:[%s25349_s4 + $0x254] ss:$8 sps:$4 sm:$0xff]  }
 0x688   : > { %12768 = vmatprep.subr.bf16.mxu0 %v18208_v16  ;;  %v18229_v16 = vld [vmem:[%s25349_s4 + $0x264] ss:$8 sps:$4 sm:$0xff]  }
 0x68b   : > { %12769 = vmatpush2.bf16.msra.mxu0 %v18206_v54  ;;  %v24118_v54 = vpop.f32.mrf.mxu0 }
 0x68c   : > { %12770 = vmatprep.subr.bf16.mxu0 %v18211_v57  ;;  %25633 = vst [vmem:[#allocation36_spill] sm:$0xff] %v24118_v54  ;;  %v24120_v57 = vpop.f32.mrf.mxu1 }
 0x68e   : > { %v24131_v31 = vpop.f32.mrf.mxu1 }
 0x68f   : > { %12771 = vmatpush2.bf16.msra.mxu0 %v18209_v40  ;;  %v18227_v40 = vld [vmem:[%s25349_s4 + $0x260] ss:$8 sps:$4 sm:$0xff]   ;;  %25634 = vst [vmem:[#allocation6_spill] sm:$0xff] %v24131_v31 }
 0x690   : > { %12772 = vmatprep.subr.bf16.mxu0 %v18214_v28 }
 0x693   : > { %12773 = vmatpush2.bf16.msra.mxu0 %v18212_v5  ;;  %v18230_v5 = vld [vmem:[%s25349_s4 + $0x250] ss:$8 sps:$4 sm:$0xff]  }
 0x694   : > { %12774 = vmatprep.subr.bf16.mxu0 %v18217_v48  ;;  %v18235_v48 = vld [vmem:[%s25349_s4 + $0x244] ss:$8 sps:$4 sm:$0xff]  }
 0x697   : > { %12775 = vmatpush2.bf16.msra.mxu0 %v18215_v32  ;;  %v18657_v32 = vld [vmem:[#allocation2 + $0x240] sm:$0xff] }
 0x698   : > { %12776 = vmatprep.subr.bf16.mxu0 %v18220_v47  ;;  %v18658_v47 = vld [vmem:[#allocation2 + $0x218] sm:$0xff] }
 0x69b   : > { %12777 = vmatpush2.bf16.msra.mxu0 %v18218_v46  ;;  %v16133_v46 = vcombine.high %v18658_v47, %v18657_v32 }
 0x69c   : > { %12778 = vmatprep.subr.bf16.mxu0 %v18223_v3  ;;  %v24142_v3 = vpop.f32.mrf.mxu1 }
 0x69d   : > { %25635 = vst [vmem:[#allocation5_spill] sm:$0xff] %v24142_v3 }
 0x69f   : > { %12779 = vmatpush2.bf16.msra.mxu0 %v18221_v9  ;;  %v18233_v9 = vld [vmem:[%s25349_s4 + $0x240] ss:$8 sps:$4 sm:$0xff]  }
 0x6a0   : > { %12894 = vmatprep.subr.bf16.mxu0 %v18226_v10 }
 0x6a2   : > { %12781 = vmatmul.mubr.bf16.vlgmr.msra.gmra.mxu0 %v16120_v43  ;;  %v24126_v28 = vpop.f32.mrf.mxu0  ;;  %v24152_v43 = vpop.f32.mrf.mxu1 }
 0x6a3   : > { %12790 = vmatprep.mubr.bf16.mxu0 %v23686_v37  ;;  %12895 = vmatpush1.bf16.msra.mxu0 %v18224_v26  ;;  %v18238_v26 = vld [vmem:[%s25349_s4 + $0x234] ss:$8 sps:$4 sm:$0xff]   ;;  %25636 = vst [vmem:[#allocation20_spill] sm:$0xff] %v24152_v43 }
 0x6a4   : > { %12896 = vmatprep.subr.bf16.mxu0 %v18229_v16  ;;  %v24136_v37 = vpop.f32.mrf.mxu0  ;;  %v24162_v41 = vpop.f32.mrf.mxu1 }
 0x6a5   : > { %25637 = vst [vmem:[#allocation19_spill] sm:$0xff] %v24162_v41 }
 0x6a6   : > { %v24147_v10 = vpop.f32.mrf.mxu0 }
 0x6a7   : > { %12897 = vmatpush1.bf16.msra.mxu0 %v18227_v40  ;;  %v16132_v40 = vcombine.low %v18658_v47, %v18657_v32  ;;  %v18244_v32 = vld [vmem:[%s25349_s4 + $0x214] ss:$8 sps:$4 sm:$0xff]   ;;  %v24172_v47 = vpop.f32.mrf.mxu1 }
 0x6a8   : > { %12898 = vmatprep.subr.bf16.mxu0 %v18232_v60  ;;  %v24157_v16 = vpop.f32.mrf.mxu0  ;;  %v18241_v60 = vld [vmem:[%s25349_s4 + $0x224] ss:$8 sps:$4 sm:$0xff]   ;;  %25638 = vst [vmem:[#allocation8_spill] sm:$0xff] %v24172_v47 }
 0x6a9   : > { %v24182_v6 = vpop.f32.mrf.mxu1 }
 0x6aa   : > { %12791 = vmatmul.mubr.bf16.gmra.mxu0 %v23703_v18  ;;  %v18236_v18 = vld [vmem:[%s25349_s4 + $0x230] ss:$8 sps:$4 sm:$0xff]   ;;  %v24167_v54 = vpop.f32.mrf.mxu0  ;;  %25639 = vst [vmem:[#allocation7_spill] sm:$0xff] %v24182_v6 }
 0x6ab   : > { %12800 = vmatprep.mubr.bf16.mxu0 %v16133_v46  ;;  %12899 = vmatpush1.bf16.msra.mxu0 %v18230_v5  ;;  %v18659_v5 = vld [vmem:[#allocation2 + $0x1b0] sm:$0xff] }
 0x6ac   : > { %12900 = vmatprep.subr.bf16.mxu0 %v18235_v48  ;;  %v18660_v48 = vld [vmem:[#allocation2 + $0x2d8] sm:$0xff] }
 0x6ad   : > { %v16139_v46 = vcombine.high %v18660_v48, %v18659_v5 }
 0x6af   : > { %12901 = vmatpush1.bf16.msra.mxu0 %v18233_v9  ;;  %v18239_v9 = vld [vmem:[%s25349_s4 + $0x220] ss:$8 sps:$4 sm:$0xff]  }
 0x6b0   : > { %12902 = vmatprep.subr.bf16.mxu0 %v18238_v26  ;;  %v18242_v26 = vld [vmem:[%s25349_s4 + $0x210] ss:$8 sps:$4 sm:$0xff]  }
 0x6b2   : > { %12801 = vmatmul.mubr.bf16.gmra.mxu0 %v16132_v40  ;;  %v24177_v40 = vpop.f32.mrf.mxu0 }
 0x6b3   : > { %12810 = vmatprep.mubr.bf16.mxu0 %v16139_v46  ;;  %12903 = vmatpush1.bf16.msra.mxu0 %v18236_v18  ;;  %v16138_v18 = vcombine.low %v18660_v48, %v18659_v5  ;;  %v18250_v46 = vld [vmem:[%s25349_s4 + $0x204] ss:$8 sps:$4 sm:$0xff]   ;;  %v18253_v5 = vld [vmem:[%s25349_s4 + $0x2f4] ss:$8 sps:$4 sm:$0xff]   ;;  %v24192_v48 = vpop.f32.mrf.mxu1 }
 0x6b4   : > { %12904 = vmatprep.subr.bf16.mxu0 %v18241_v60  ;;  %v18247_v60 = vld [vmem:[#allocation2 + $0x64] ss:$408 sps:$4 sm:$0xff]   ;;  %v24187_v47 = vpop.f32.mrf.mxu0  ;;  %25640 = vst [vmem:[#allocation22_spill] sm:$0xff] %v24192_v48 }
 0x6b7   : > { %12905 = vmatpush1.bf16.msra.mxu0 %v18239_v9  ;;  %v18248_v9 = vld [vmem:[%s25349_s4 + $0x200] ss:$8 sps:$4 sm:$0xff]  }
 0x6b8   : > { %12906 = vmatprep.subr.bf16.mxu0 %v18244_v32  ;;  %v18251_v32 = vld [vmem:[%s25349_s4 + $0x2f0] ss:$8 sps:$4 sm:$0xff]  }
 0x6ba   : > { %12811 = vmatmul.mubr.bf16.gmra.mxu0 %v16138_v18  ;;  %v18256_v18 = vld [vmem:[%s25349_s4 + $0x2e4] ss:$8 sps:$4 sm:$0xff]  }
 0x6bb   : > { %12907 = vmatpush1.bf16.msra.mxu0 %v18242_v26  ;;  %12926 = vmatprep.mubr.bf16.mxu0 %v18247_v60  ;;  %v24197_v26 = vpop.f32.mrf.mxu0  ;;  %v10830_v60 = vpop.f32.mrf.mxu1 }
 0x6bc   : > { %12908 = vmatprep.subr.bf16.mxu0 %v18250_v46  ;;  %25641 = vst [vmem:[#allocation11_spill] sm:$0xff] %v24197_v26  ;;  %v18254_v46 = vld [vmem:[%s25349_s4 + $0x2e0] ss:$8 sps:$4 sm:$0xff]  }
 0x6bd   : > { %v24205_v6 = vpop.f32.mrf.mxu0  ;;  %v10832_v48 = vpop.f32.mrf.mxu1 }
 0x6be   : > { %25642 = vst [vmem:[#allocation23_spill] sm:$0xff] %v24205_v6 }
 0x6bf   : > { %12909 = vmatpush1.bf16.msra.mxu0 %v18248_v9  ;;  %v18259_v9 = vld [vmem:[%s25349_s4 + $0x2d4] ss:$8 sps:$4 sm:$0xff]   ;;  %v24213_v41 = vpop.f32.mrf.mxu0  ;;  %v24218_v12 = vpop.f32.mrf.mxu1 }
 0x6c0   : > { %12910 = vmatprep.subr.bf16.mxu0 %v18253_v5  ;;  %v18257_v5 = vld [vmem:[%s25349_s4 + $0x2d0] ss:$8 sps:$4 sm:$0xff]   ;;  %25643 = vst [vmem:[#allocation27_spill] sm:$0xff] %v24213_v41 }
 0x6c1   : > { %v24223_v43 = vpop.f32.mrf.mxu0  ;;  %v24228_v41 = vpop.f32.mrf.mxu1 }
 0x6c2   : > { %25644 = vst [vmem:[#allocation16_spill] sm:$0xff] %v24223_v43 }
 0x6c3   : > { %12911 = vmatpush2.bf16.msra.mxu0 %v18251_v32  ;;  %v18262_v32 = vld [vmem:[%s25349_s4 + $0x2c4] ss:$8 sps:$4 sm:$0xff]   ;;  %v24233_v6 = vpop.f32.mrf.mxu0  ;;  %v24238_v43 = vpop.f32.mrf.mxu1 }
 0x6c4   : > { %12912 = vmatprep.subr.bf16.mxu0 %v18256_v18  ;;  %v18260_v18 = vld [vmem:[%s25349_s4 + $0x2c0] ss:$8 sps:$4 sm:$0xff]   ;;  %25645 = vst [vmem:[#allocation12_spill] sm:$0xff] %v24233_v6 }
 0x6c5   : > { %v24243_v3 = vpop.f32.mrf.mxu0  ;;  %v24248_v6 = vpop.f32.mrf.mxu1 }
 0x6c6   : > { %25646 = vst [vmem:[#allocation4_spill] sm:$0xff] %v24243_v3 }
 0x6c7   : > { %12913 = vmatpush2.bf16.msra.mxu0 %v18254_v46  ;;  %v18265_v46 = vld [vmem:[%s25349_s4 + $0x2b4] ss:$8 sps:$4 sm:$0xff]   ;;  %v24253_v23 = vpop.f32.mrf.mxu0  ;;  %v24258_v3 = vpop.f32.mrf.mxu1 }
 0x6c8   : > { %12914 = vmatprep.subr.bf16.mxu0 %v18259_v9  ;;  %v18263_v9 = vld [vmem:[%s25349_s4 + $0x2b0] ss:$8 sps:$4 sm:$0xff]   ;;  %25647 = vst [vmem:[#allocation32_spill] sm:$0xff] %v24253_v23 }
 0x6c9   : > { %v24265_v26 = vpop.f32.mrf.mxu0  ;;  %v24270_v23 = vpop.f32.mrf.mxu1 }
 0x6ca   : > { %25648 = vst [vmem:[#allocation41_spill] sm:$0xff] %v24265_v26  ;;  %25649 = vst [vmem:[#allocation33_spill] sm:$0xff] %v24270_v23 }
 0x6cb   : > { %12915 = vmatpush2.bf16.msra.mxu0 %v18257_v5  ;;  %v18268_v5 = vld [vmem:[%s25349_s4 + $0x2a4] ss:$8 sps:$4 sm:$0xff]   ;;  %v24276_v31 = vpop.f32.mrf.mxu0 }
 0x6cc   : > { %12916 = vmatprep.subr.bf16.mxu0 %v18262_v32  ;;  %v18266_v32 = vld [vmem:[%s25349_s4 + $0x2a0] ss:$8 sps:$4 sm:$0xff]   ;;  %25650 = vst [vmem:[#allocation15_spill] sm:$0xff] %v24276_v31 }
 0x6cd   : > { %v18661_v31 = vld [vmem:[#allocation2 + $0x268] sm:$0xff] }
 0x6cf   : > { %12917 = vmatpush2.bf16.msra.mxu0 %v18260_v18  ;;  %v18271_v18 = vld [vmem:[%s25349_s4 + $0x294] ss:$8 sps:$4 sm:$0xff]  }
 0x6d0   : > { %12918 = vmatprep.subr.bf16.mxu0 %v18265_v46  ;;  %v18269_v46 = vld [vmem:[%s25349_s4 + $0x290] ss:$8 sps:$4 sm:$0xff]  }
 0x6d3   : > { %12919 = vmatpush2.bf16.msra.mxu0 %v18263_v9  ;;  %v18274_v9 = vld [vmem:[%s25349_s4 + $0x284] ss:$8 sps:$4 sm:$0xff]  }
 0x6d4   : > { %12920 = vmatprep.subr.bf16.mxu0 %v18268_v5  ;;  %v18272_v5 = vld [vmem:[%s25349_s4 + $0x280] ss:$8 sps:$4 sm:$0xff]  }
 0x6d7   : > { %12921 = vmatpush2.bf16.msra.mxu0 %v18266_v32  ;;  %v9078_v32 = vadd.f32 %v23752_v36, %v23681_v8  ;;  %v18280_v8 = vld [vmem:[%s25349_s4 + $0x764] ss:$8 sps:$4 sm:$0xff]   ;;  %v24281_v36 = vpop.f32.mrf.mxu1 }
 0x6d8   : > { %12922 = vmatprep.subr.bf16.mxu0 %v18271_v18  ;;  %v18277_v18 = vld [vmem:[%s25349_s4 + $0x774] ss:$8 sps:$4 sm:$0xff]   ;;  %25651 = vst [vmem:[#allocation38_spill] sm:$0xff] %v24281_v36  ;;  %v10833_v36 = vadd.f32 %v10832_v48, %v24136_v37  ;;  %v9968_v37 = vadd.f32 %v24068_v24, %v23962_v2 }
 0x6d9   : > { %v9151_v19 = vadd.f32 %v23811_v17, %v9078_v32  ;;  %v9088_v17 = vadd.f32 %v23786_v45, %v23720_v14  ;;  %v18278_v14 = vld [vmem:[%s25349_s4 + $0x760] ss:$8 sps:$4 sm:$0xff]  }
 0x6db   : > { %12923 = vmatpush2.bf16.msra.mxu0 %v18269_v46  ;;  %v18275_v46 = vld [vmem:[%s25349_s4 + $0x770] ss:$8 sps:$4 sm:$0xff]   ;;  %v9824_v32 = vadd.f32 %v23916_v25, %v9151_v19  ;;  %v18283_v25 = vld [vmem:[%s25349_s4 + $0x754] ss:$8 sps:$4 sm:$0xff]   ;;  %v9966_v19 = vadd.f32 %v24060_v44, %v23959_v11  ;;  %v10837_v11 = vadd.f32 %v24228_v41, %v24157_v16  ;;  %v18286_v41 = vld [vmem:[%s25349_s4 + $0x744] ss:$8 sps:$4 sm:$0xff]  }
 0x6dc   : > { %12924 = vmatprep.subr.bf16.mxu0 %v18274_v9  ;;  %v10831_v9 = vadd.f32 %v10830_v60, %v24126_v28 }
 0x6dd   : > { %v9897_v45 = vadd.f32 %v23967_v52, %v9824_v32  ;;  %v9108_v52 = vadd.f32 %v23893_v33, %v23788_v59  ;;  %v18281_v59 = vld [vmem:[%s25349_s4 + $0x750] ss:$8 sps:$4 sm:$0xff]  }
 0x6df   : > { %12925 = vmatpush2.bf16.msra.mxu0 %v18272_v5  ;;  %v9098_v5 = vadd.f32 %v23835_v53, %v23754_v38  ;;  %v9161_v38 = vadd.f32 %v23837_v1, %v9088_v17  ;;  %v10835_v1 = vadd.f32 %v24218_v12, %v24147_v10  ;;  %v9181_v33 = vadd.f32 %v23944_v56, %v9108_v52  ;;  %v18287_v52 = vld [vmem:[%s25349_s4 + $0x730] ss:$8 sps:$4 sm:$0xff]  }
 0x6e0   : > { %13761 = vmatprep.subr.bf16.mxu0 %v18277_v18  ;;  %v18662_v18 = vld [vmem:[#allocation2 + $0x28] sm:$0xff]  ;;  %v9970_v2 = vadd.f32 %v24076_v51, %v9897_v45  ;;  %v10841_v56 = vadd.f32 %v24238_v43, %v24167_v54  ;;  %v9978_v54 = vadd.f32 %v24100_v62, %v23985_v0  ;;  %v25652_v62 = vld [vmem:[#allocation17_spill] sm:$0xff] }
 0x6e1   : > { %v24289_v23 = vcombine.low %v18661_v31, %v18662_v18  ;;  %v24304_v22 = vcombine.high %v18661_v31, %v18662_v18  ;;  %v18664_v31 = vld [vmem:[#allocation2 + $0x18] sm:$0xff]  ;;  %v9834_v24 = vadd.f32 %v23942_v7, %v9161_v38  ;;  %v24355_v43 = vadd.f32 %v24050_v63, %v9181_v33 }
 0x6e2   : > { %v10903_v26 = vpop.f32.mrf.mxu0  ;;  %12927 = vmatmul.mubr.bf16.vlgmr.msra.gmra.mxu0 %v18245_v35  ;;  %v9171_v35 = vadd.f32 %v23866_v29, %v9098_v5  ;;  %v9984_v63 = vadd.f32 %v24120_v57, %v23998_v30 }
 0x6e3   : > { %v10904_v28 = vadd.f32 %v10903_v26, %v10831_v9  ;;  %12936 = vmatprep.mubr.bf16.mxu0 %v23843_v13  ;;  %13762 = vmatpush1.bf16.msra.mxu0 %v18275_v46  ;;  %v24306_v13 = vpop.f32.mrf.mxu1  ;;  %v18663_v26 = vld [vmem:[#allocation2 + $0x330] sm:$0xff]  ;;  %v9907_v7 = vadd.f32 %v23992_v21, %v9834_v24  ;;  %v18284_v21 = vld [vmem:[%s25349_s4 + $0x740] ss:$8 sps:$4 sm:$0xff]   ;;  %v25661_v24 = vld [vmem:[#allocation38_spill] sm:$0xff] }
 0x6e4   : > { %v10905_v53 = vpop.f32.mrf.mxu0  ;;  %13763 = vmatprep.subr.bf16.mxu0 %v18280_v8  ;;  %v24316_v60 = vcombine.low %v18663_v26, %v18664_v31  ;;  %v24318_v46 = vcombine.high %v18663_v26, %v18664_v31  ;;  %v9844_v10 = vadd.f32 %v23990_v27, %v9171_v35  ;;  %v10843_v27 = vadd.f32 %v24248_v6, %v24177_v40  ;;  %v25657_v26 = vld [vmem:[#allocation33_spill] sm:$0xff] }
 0x6e5   : > { %v10942_v58 = vadd.f32 %v10904_v28, %v9964_v42  ;;  %v10906_v29 = vadd.f32 %v10905_v53, %v10833_v36  ;;  %v24333_v16 = vpop.f32.mrf.mxu1  ;;  %v9974_v36 = vadd.f32 %v24084_v15, %v23973_v39  ;;  %v9976_v6 = vadd.f32 %v24092_v50, %v23982_v4  ;;  %v18289_v28 = vld [vmem:[%s25349_s4 + $0x734] ss:$8 sps:$4 sm:$0xff]  }
 0x6e6   : > { %v10907_v48 = vpop.f32.mrf.mxu0  ;;  %v9980_v0 = vadd.f32 %v24108_v61, %v9907_v7  ;;  %v25654_v53 = vld [vmem:[#allocation9_spill] sm:$0xff] }
 0x6e7   : > { %v10958_v12 = vmul.f32 %v10942_v58, %v21613_v34  ;;  %v10943_v42 = vadd.f32 %v10906_v29, %v9966_v19  ;;  %v10908_v44 = vadd.f32 %v10907_v48, %v10835_v1  ;;  %13764 = vmatpush1.bf16.msra.mxu0 %v18278_v14  ;;  %v10856_v14 = vpop.f32.mrf.mxu1  ;;  %v25656_v48 = vld [vmem:[#allocation11_spill] sm:$0xff] }
 0x6e8   : > { %v10909_v8 = vpop.f32.mrf.mxu0  ;;  %13765 = vmatprep.subr.bf16.mxu0 %v18283_v25  ;;  %v10847_v30 = vadd.f32 %v25657_v26, %v25656_v48 }
 0x6e9   : > { %v10944_v9 = vadd.f32 %v10908_v44, %v9968_v37  ;;  %v10910_v51 = vadd.f32 %v10909_v8, %v10837_v11  ;;  %v10974_v17 = vadd.f32 %v10958_v12, %v21635_v20  ;;  %v10959_v5 = vmul.f32 %v10943_v42, %v21638_v55  ;;  %v25655_v37 = vld [vmem:[#allocation21_spill] sm:$0xff]  ;;  %v18295_v12 = vld [vmem:[%s25349_s4 + $0x724] ss:$8 sps:$4 sm:$0xff]   ;;  %v10860_v42 = vpop.f32.mrf.mxu1 }
 0x6ea   : > { %v10913_v32 = vpop.f32.mrf.mxu0  ;;  %12937 = vmatmul.mubr.bf16.gmra.mxu0 %v23864_v49  ;;  %v10845_v49 = vadd.f32 %v24258_v3, %v24187_v47  ;;  %v25653_v3 = vld [vmem:[#allocation6_spill] sm:$0xff]  ;;  %v9917_v61 = vadd.f32 %v25655_v37, %v9844_v10  ;;  %v25658_v44 = vld [vmem:[#allocation31_spill] sm:$0xff]  ;;  %v25669_v37 = vld [vmem:[#allocation12_spill] sm:$0xff] }
 0x6eb   : > { %v10960_v18 = vmul.f32 %v10944_v9, %v21613_v34  ;;  %v10945_v39 = vadd.f32 %v10910_v51, %v9970_v2  ;;  %v10914_v15 = vadd.f32 %v10913_v32, %v10841_v56  ;;  %12946 = vmatprep.mubr.bf16.mxu0 %v24304_v22  ;;  %13766 = vmatpush1.bf16.msra.mxu0 %v18281_v59  ;;  %v10990_v19 = vmax.f32 %v10974_v17, 0.0  ;;  %v25659_v59 = vld [vmem:[#allocation5_spill] sm:$0xff]  ;;  %v25660_v2 = vld [vmem:[#allocation23_spill] sm:$0xff] }
 0x6ec   : > { %v10915_v40 = vpop.f32.mrf.mxu0  ;;  %13767 = vmatprep.subr.bf16.mxu0 %v18286_v41  ;;  %v9986_v47 = vadd.f32 %v25653_v3, %v25652_v62  ;;  %v10975_v25 = vadd.f32 %v10959_v5, %v25654_v53  ;;  %v9988_v33 = vadd.f32 %v25659_v59, %v25658_v44  ;;  %v10851_v10 = vadd.f32 %v25661_v24, %v25660_v2  ;;  %v25665_v3 = vld [vmem:[#allocation30_spill] sm:$0xff]  ;;  %v18310_v59 = vld [vmem:[%s25349_s4 + $0x704] ss:$8 sps:$4 sm:$0xff]  }
 0x6ed   : > { %v10976_v38 = vadd.f32 %v10960_v18, %v21635_v20  ;;  %v10961_v4 = vmul.f32 %v10945_v39, %v21638_v55  ;;  %v10946_v50 = vadd.f32 %v10914_v15, %v9974_v36  ;;  %v10916_v35 = vadd.f32 %v10915_v40, %v10843_v27  ;;  %v25662_v27 = vld [vmem:[#allocation27_spill] sm:$0xff]  ;;  %v25663_v39 = vld [vmem:[#allocation20_spill] sm:$0xff]  ;;  %v18301_v40 = vld [vmem:[%s25349_s4 + $0x714] ss:$8 sps:$4 sm:$0xff]  }
 0x6ee   : > { %v10917_v45 = vpop.f32.mrf.mxu0  ;;  %v10991_v51 = vmax.f32 %v10975_v25, 0.0  ;;  %v10853_v17 = vadd.f32 %v24306_v13, %v25662_v27  ;;  %v18293_v18 = vld [vmem:[%s25349_s4 + $0x720] ss:$8 sps:$4 sm:$0xff]   ;;  %v9990_v15 = vadd.f32 %v25663_v39, %v9917_v61  ;;  %v18290_v13 = vld [vmem:[%s25349_s4 + $0x370] ss:$8 sps:$4 sm:$0xff]  }
 0x6ef   : > { %v10992_v1 = vmax.f32 %v10976_v38, 0.0  ;;  %v10947_v58 = vadd.f32 %v10916_v35, %v9976_v6  ;;  %v10918_v29 = vadd.f32 %v10917_v45, %v10845_v49  ;;  %13768 = vmatpush1.bf16.msra.mxu0 %v18284_v21  ;;  %v10962_v57 = vmul.f32 %v10946_v50, %v21613_v34  ;;  %v25664_v38 = vld [vmem:[#allocation16_spill] sm:$0xff]  ;;  %v25666_v45 = vld [vmem:[#allocation19_spill] sm:$0xff]  ;;  %v25673_v39 = vld [vmem:[#allocation41_spill] sm:$0xff] }
 0x6f0   : > { %v10919_v31 = vpop.f32.mrf.mxu0  ;;  %13769 = vmatprep.subr.bf16.mxu0 %v18289_v28  ;;  %v10977_v11 = vadd.f32 %v10961_v4, %v25654_v53  ;;  %v10862_v28 = vpop.f32.mrf.mxu1  ;;  %v10855_v4 = vadd.f32 %v24333_v16, %v25664_v38  ;;  %v9994_v25 = vadd.f32 %v25666_v45, %v25665_v3  ;;  %v25671_v24 = vld [vmem:[#allocation4_spill] sm:$0xff]  ;;  %v25676_v45 = vld [vmem:[#allocation15_spill] sm:$0xff] }
 0x6f1   : > { %v11006_v8 = vpack.c.bf16 %v10992_v1, %v10990_v19  ;;  %v10948_v41 = vadd.f32 %v10918_v29, %v9978_v54  ;;  %v10963_v36 = vmul.f32 %v10947_v58, %v21638_v55  ;;  %v10920_v56 = vadd.f32 %v10919_v31, %v10847_v30  ;;  %v25667_v19 = vld [vmem:[#allocation35_spill] sm:$0xff]  ;;  %v25668_v1 = vld [vmem:[#allocation8_spill] sm:$0xff]  ;;  %v18299_v30 = vld [vmem:[%s25349_s4 + $0x710] ss:$8 sps:$4 sm:$0xff]  }
 0x6f2   : > { %v10923_v9 = vpop.f32.mrf.mxu0  ;;  %12947 = vmatmul.mubr.bf16.gmra.mxu0 %v24289_v23  ;;  %v10993_v7 = vmax.f32 %v10977_v11, 0.0  ;;  %v10978_v21 = vadd.f32 %v10962_v57, %v21635_v20  ;;  %v24412_v58 = vadd.f32 %v25668_v1, %v25667_v19  ;;  %v25670_v57 = vld [vmem:[#allocation36_spill] sm:$0xff]  ;;  %v10864_v2 = vpop.f32.mrf.mxu1 }
 0x6f3   : > { %v10964_v5 = vmul.f32 %v10948_v41, %v21613_v34  ;;  %v10924_v32 = vadd.f32 %v10923_v9, %v10851_v10  ;;  %12956 = vmatprep.mubr.bf16.mxu0 %v24318_v46  ;;  %13770 = vmatpush1.bf16.msra.mxu0 %v18287_v52  ;;  %v10949_v6 = vadd.f32 %v10920_v56, %v9980_v0  ;;  %v18298_v0 = vld [vmem:[%s25349_s4 + $0x364] ss:$8 sps:$4 sm:$0xff]   ;;  %v18307_v9 = vld [vmem:[%s25349_s4 + $0x354] ss:$8 sps:$4 sm:$0xff]  }
 0x6f4   : > { %v10925_v54 = vpop.f32.mrf.mxu0  ;;  %v11007_v49 = vpack.c.bf16 %v10993_v7, %v10991_v51  ;;  %13771 = vmatprep.subr.bf16.mxu0 %v18295_v12  ;;  %v10979_v16 = vadd.f32 %v10963_v36, %v25654_v53  ;;  %v24422_v31 = vadd.f32 %v25670_v57, %v24355_v43  ;;  %v10994_v11 = vmax.f32 %v10978_v21, 0.0  ;;  %v25672_v10 = vld [vmem:[#allocation32_spill] sm:$0xff]  ;;  %v18304_v56 = vld [vmem:[#allocation2 + $0x54] ss:$-48 sps:$4 sm:$0xff]   ;;  %v25677_v57 = vld [vmem:[#allocation22_spill] sm:$0xff] }
 0x6f5   : > { %v10980_v50 = vadd.f32 %v10964_v5, %v21635_v20  ;;  %v10950_v35 = vadd.f32 %v10924_v32, %v9984_v63  ;;  %v10926_v62 = vadd.f32 %v10925_v54, %v10853_v17  ;;  %v10965_v29 = vmul.f32 %v10949_v6, %v21638_v55 }
 0x6f6   : > { %11046 = vmatprep.mubr.bf16.mxu1 %v11007_v49  ;;  %v10927_v52 = vpop.f32.mrf.mxu0  ;;  %v10857_v63 = vadd.f32 %v10856_v14, %v25669_v37  ;;  %v18296_v14 = vld [vmem:[%s25349_s4 + $0x360] ss:$8 sps:$4 sm:$0xff]   ;;  %v10861_v43 = vadd.f32 %v10860_v42, %v25671_v24  ;;  %v10995_v27 = vmax.f32 %v10979_v16, 0.0  ;;  %v10865_v21 = vadd.f32 %v10864_v2, %v25673_v39 }
 0x6f7   : > { %v10996_v61 = vmax.f32 %v10980_v50, 0.0  ;;  %v10951_v48 = vadd.f32 %v10926_v62, %v9986_v47  ;;  %v10928_v26 = vadd.f32 %v10927_v52, %v10855_v4  ;;  %11047 = vmatmul.mubr.bf16.vlgmr.msra.gmra.mxu1 %v11006_v8  ;;  %13772 = vmatpush1.bf16.msra.mxu0 %v18293_v18  ;;  %v10966_v12 = vmul.f32 %v10950_v35, %v21613_v34  ;;  %v18313_v35 = vld [vmem:[%s25349_s4 + $0x344] ss:$8 sps:$4 sm:$0xff]   ;;  %v25674_v62 = vld [vmem:[#allocation10_spill] sm:$0xff] }
 0x6f8   : > { %11930 = vmatpush1.bf16.msra.mxu1 %v18290_v13  ;;  %v10929_v44 = vpop.f32.mrf.mxu0  ;;  %13773 = vmatprep.subr.bf16.mxu0 %v18301_v40  ;;  %v10981_v47 = vadd.f32 %v10965_v29, %v25654_v53  ;;  %v10863_v8 = vadd.f32 %v10862_v28, %v25672_v10  ;;  %v18305_v13 = vld [vmem:[%s25349_s4 + $0x350] ss:$8 sps:$4 sm:$0xff]   ;;  %v10866_v40 = vpop.f32.mrf.mxu1 }
 0x6f9   : > { %v10952_v41 = vadd.f32 %v10928_v26, %v9988_v33  ;;  %v10930_v36 = vadd.f32 %v10929_v44, %v10857_v63  ;;  %11931 = vmatprep.subr.bf16.mxu1 %v18298_v0  ;;  %v10967_v51 = vmul.f32 %v10951_v48, %v21638_v55  ;;  %v11008_v5 = vpack.c.bf16 %v10996_v61, %v10994_v11  ;;  %v18308_v33 = vld [vmem:[%s25349_s4 + $0x700] ss:$8 sps:$4 sm:$0xff]   ;;  %v18314_v63 = vld [vmem:[%s25349_s4 + $0x7f0] ss:$8 sps:$4 sm:$0xff]  }
 0x6fa   : > { %v10933_v7 = vpop.f32.mrf.mxu0  ;;  %12957 = vmatmul.mubr.bf16.gmra.mxu0 %v24316_v60  ;;  %v10997_v17 = vmax.f32 %v10981_v47, 0.0  ;;  %v10982_v6 = vadd.f32 %v10966_v12, %v21635_v20  ;;  %v25675_v0 = vld [vmem:[#allocation7_spill] sm:$0xff]  ;;  %v10867_v19 = vadd.f32 %v10866_v40, %v25676_v45  ;;  %v10000_v11 = vadd.f32 %v25677_v57, %v24422_v31  ;;  %v18319_v47 = vld [vmem:[%s25349_s4 + $0x334] ss:$8 sps:$4 sm:$0xff]  }
 0x6fb   : > { %v10968_v42 = vmul.f32 %v10952_v41, %v21613_v34  ;;  %v10953_v32 = vadd.f32 %v10930_v36, %v9990_v15  ;;  %v10934_v18 = vadd.f32 %v10933_v7, %v10861_v43  ;;  %13774 = vmatpush1.bf16.msra.mxu0 %v18299_v30  ;;  %13793 = vmatprep.mubr.bf16.mxu0 %v18304_v56  ;;  %v18316_v15 = vld [vmem:[%s25349_s4 + $0x7f4] ss:$8 sps:$4 sm:$0xff]   ;;  %v18311_v26 = vld [vmem:[%s25349_s4 + $0x340] ss:$8 sps:$4 sm:$0xff]   ;;  %v18317_v36 = vld [vmem:[%s25349_s4 + $0x330] ss:$8 sps:$4 sm:$0xff]  }
 0x6fc   : > { %11932 = vmatpush1.bf16.msra.mxu1 %v18296_v14  ;;  %v10935_v54 = vpop.f32.mrf.mxu0  ;;  %v11009_v49 = vpack.c.bf16 %v10997_v17, %v10995_v27  ;;  %13775 = vmatprep.subr.bf16.mxu0 %v18310_v59  ;;  %v9998_v3 = vadd.f32 %v25675_v0, %v25674_v62  ;;  %v10983_v29 = vadd.f32 %v10967_v51, %v25654_v53  ;;  %v10998_v61 = vmax.f32 %v10982_v6, 0.0  ;;  %v18320_v31 = vld [vmem:[%s25349_s4 + $0x7e0] ss:$8 sps:$4 sm:$0xff]   ;;  %v18328_v56 = vld [vmem:[%s25349_s4 + $0x7d4] ss:$8 sps:$4 sm:$0xff]  }
 0x6fd   : > { %v10984_v28 = vadd.f32 %v10968_v42, %v21635_v20  ;;  %v10969_v38 = vmul.f32 %v10953_v32, %v21638_v55  ;;  %v10954_v4 = vadd.f32 %v10934_v18, %v9994_v25  ;;  %v10936_v50 = vadd.f32 %v10935_v54, %v10863_v8  ;;  %11933 = vmatprep.subr.bf16.mxu1 %v18307_v9  ;;  %v18325_v7 = vld [vmem:[%s25349_s4 + $0x324] ss:$8 sps:$4 sm:$0xff]   ;;  %v18326_v42 = vld [vmem:[%s25349_s4 + $0x7d0] ss:$8 sps:$4 sm:$0xff]   ;;  %v18323_v18 = vld [vmem:[%s25349_s4 + $0x320] ss:$8 sps:$4 sm:$0xff]  }
 0x6fe   : > { %11054 = vmatprep.mubr.bf16.mxu1 %v11009_v49  ;;  %v10937_v1 = vpop.f32.mrf.mxu0  ;;  %v10999_v59 = vmax.f32 %v10983_v29, 0.0  ;;  %v18331_v6 = vld [vmem:[%s25349_s4 + $0x314] ss:$8 sps:$4 sm:$0xff]   ;;  %v18340_v40 = vld [vmem:[%s25349_s4 + $0x304] ss:$8 sps:$4 sm:$0xff]  }
 0x6ff   : > { %v11000_v52 = vmax.f32 %v10984_v28, 0.0  ;;  %v10970_v16 = vmul.f32 %v10954_v4, %v21613_v34  ;;  %v10955_v25 = vadd.f32 %v10936_v50, %v24412_v58  ;;  %v10938_v37 = vadd.f32 %v10937_v1, %v10865_v21  ;;  %11055 = vmatmul.mubr.bf16.gmra.mxu1 %v11008_v5  ;;  %13776 = vmatpush1.bf16.msra.mxu0 %v18308_v33  ;;  %v18322_v58 = vld [vmem:[%s25349_s4 + $0x7e4] ss:$8 sps:$4 sm:$0xff]   ;;  %v18343_v28 = vld [vmem:[%s25349_s4 + $0x7b4] ss:$8 sps:$4 sm:$0xff]  }
 0x700   : > { %11934 = vmatpush1.bf16.msra.mxu1 %v18305_v13  ;;  %v10939_v48 = vpop.f32.mrf.mxu0  ;;  %13777 = vmatprep.subr.bf16.mxu0 %v18316_v15  ;;  %v10985_v30 = vadd.f32 %v10969_v38, %v25654_v53  ;;  %v18334_v33 = vld [vmem:[%s25349_s4 + $0x7c4] ss:$8 sps:$4 sm:$0xff]   ;;  %v18332_v13 = vld [vmem:[%s25349_s4 + $0x7c0] ss:$8 sps:$4 sm:$0xff]   ;;  %v18329_v15 = vld [vmem:[%s25349_s4 + $0x310] ss:$8 sps:$4 sm:$0xff]  }
 0x701   : > { %v10971_v12 = vmul.f32 %v10955_v25, %v21638_v55  ;;  %v10956_v44 = vadd.f32 %v10938_v37, %v9998_v3  ;;  %v10940_v14 = vadd.f32 %v10939_v48, %v10867_v19  ;;  %11935 = vmatprep.subr.bf16.mxu1 %v18313_v35  ;;  %v11010_v24 = vpack.c.bf16 %v11000_v52, %v10998_v61  ;;  %v18337_v38 = vld [vmem:[#allocation2 + $0xac] ss:$80 sps:$4 sm:$0xff]   ;;  %v18341_v4 = vld [vmem:[%s25349_s4 + $0x7b0] ss:$8 sps:$4 sm:$0xff]   ;;  %v18338_v50 = vld [vmem:[%s25349_s4 + $0x300] ss:$8 sps:$4 sm:$0xff]  }
 0x702   : > { %v11001_v2 = vmax.f32 %v10985_v30, 0.0  ;;  %v10986_v43 = vadd.f32 %v10970_v16, %v21635_v20  ;;  %v18349_v35 = vld [vmem:[%s25349_s4 + $0x7a4] ss:$8 sps:$4 sm:$0xff]   ;;  %v18346_v62 = vld [vmem:[%s25349_s4 + $0x3f4] ss:$8 sps:$4 sm:$0xff]  }
 0x703   : > { %v10972_v10 = vmul.f32 %v10956_v44, %v21613_v34  ;;  %v10957_v8 = vadd.f32 %v10940_v14, %v10000_v11  ;;  %13778 = vmatpush2.bf16.msra.mxu0 %v18314_v63  ;;  %v10987_v27 = vadd.f32 %v10971_v12, %v25654_v53  ;;  %v18347_v0 = vld [vmem:[%s25349_s4 + $0x7a0] ss:$8 sps:$4 sm:$0xff]   ;;  %v18344_v3 = vld [vmem:[%s25349_s4 + $0x3f0] ss:$8 sps:$4 sm:$0xff]   ;;  %v18355_v45 = vld [vmem:[%s25349_s4 + $0x794] ss:$8 sps:$4 sm:$0xff]  }
 0x704   : > { %11936 = vmatpush1.bf16.msra.mxu1 %v18311_v26  ;;  %v11011_v41 = vpack.c.bf16 %v11001_v2, %v10999_v59  ;;  %13779 = vmatprep.subr.bf16.mxu0 %v18322_v58  ;;  %v11002_v17 = vmax.f32 %v10986_v43, 0.0  ;;  %v18352_v19 = vld [vmem:[%s25349_s4 + $0x3e4] ss:$8 sps:$4 sm:$0xff]   ;;  %v18353_v1 = vld [vmem:[%s25349_s4 + $0x790] ss:$8 sps:$4 sm:$0xff]  }
 0x705   : > { %v10988_v9 = vadd.f32 %v10972_v10, %v21635_v20  ;;  %v10973_v51 = vmul.f32 %v10957_v8, %v21638_v55  ;;  %11937 = vmatprep.subr.bf16.mxu1 %v18319_v47  ;;  %v11003_v39 = vmax.f32 %v10987_v27, 0.0  ;;  %v18350_v29 = vld [vmem:[%s25349_s4 + $0x3e0] ss:$8 sps:$4 sm:$0xff]   ;;  %v18361_v52 = vld [vmem:[%s25349_s4 + $0x784] ss:$8 sps:$4 sm:$0xff]   ;;  %v18665_v26 = vld [vmem:[%s25352_s7 + $0x78] sm:$0xff]  }
 0x706   : > { %11062 = vmatprep.mubr.bf16.mxu1 %v11011_v41  ;;  %v18358_v16 = vld [vmem:[%s25349_s4 + $0x3d4] ss:$8 sps:$4 sm:$0xff]   ;;  %v18359_v25 = vld [vmem:[%s25349_s4 + $0x780] ss:$8 sps:$4 sm:$0xff]   ;;  %v18356_v37 = vld [vmem:[%s25349_s4 + $0x3d0] ss:$8 sps:$4 sm:$0xff]  }
 0x707   : > { %v11004_v5 = vmax.f32 %v10988_v9, 0.0  ;;  %11063 = vmatmul.mubr.bf16.gmra.mxu1 %v11010_v24  ;;  %13780 = vmatpush2.bf16.msra.mxu0 %v18320_v31  ;;  %v10989_v32 = vadd.f32 %v10973_v51, %v25654_v53  ;;  %v18364_v63 = vld [vmem:[%s25349_s4 + $0x3c4] ss:$8 sps:$4 sm:$0xff]   ;;  %v18302_v61 = vld [vmem:[#allocation2 + $0x50] ss:$-48 sps:$4 sm:$0xff]   ;;  %v18666_v57 = vld [vmem:[%s25352_s7 + $0x38] sm:$0xff]  }
 0x708   : > { %11938 = vmatpush1.bf16.msra.mxu1 %v18317_v36  ;;  %13781 = vmatprep.subr.bf16.mxu0 %v18328_v56  ;;  %v18362_v48 = vld [vmem:[%s25349_s4 + $0x3c0] ss:$8 sps:$4 sm:$0xff]   ;;  %v24571_v30 = vld [vmem:[#allocation2 + $0x304] ss:$-56 sps:$4 sm:$0xff]   ;;  %v18370_v58 = vld [vmem:[%s25349_s4 + $0x3b4] ss:$8 sps:$4 sm:$0xff]  }
 0x709   : > { %11939 = vmatprep.subr.bf16.mxu1 %v18325_v7  ;;  %v11005_v21 = vmax.f32 %v10989_v32, 0.0  ;;  %v11012_v54 = vpack.c.bf16 %v11004_v5, %v11002_v17  ;;  %v18368_v11 = vld [vmem:[%s25349_s4 + $0x3b0] ss:$8 sps:$4 sm:$0xff]   ;;  %v18373_v44 = vld [vmem:[%s25349_s4 + $0x3a4] ss:$8 sps:$4 sm:$0xff]  }
 0x70a   : > { %v18667_v12 = vld [vmem:[%s25352_s7 + $0x70] sm:$0xff]   ;;  %v12981_v14 = vld [vmem:[#allocation2 + $0x108] sm:$0xff]  ;;  %v18671_v36 = vld [vmem:[%s25352_s7 + $0x60] sm:$0xff]  }
 0x70b   : > { %13782 = vmatpush2.bf16.msra.mxu0 %v18326_v42  ;;  %v11013_v49 = vpack.c.bf16 %v11005_v21, %v11003_v39  ;;  %v12984_v47 = vld [vmem:[#allocation2 + $0x48] sm:$0xff]  ;;  %v18668_v59 = vld [vmem:[%s25352_s7 + $0x30] sm:$0xff]   ;;  %v18672_v9 = vld [vmem:[%s25352_s7 + $0x20] sm:$0xff]  }
 0x70c   : > { %11940 = vmatpush1.bf16.msra.mxu1 %v18323_v18  ;;  %13783 = vmatprep.subr.bf16.mxu0 %v18334_v33  ;;  %v24592_v2 = vld [vmem:[#allocation2 + $0x300] ss:$-56 sps:$4 sm:$0xff]   ;;  %v16351_v10 = vcombine.high %v12981_v14, %v12984_v47  ;;  %v18376_v8 = vld [vmem:[%s25349_s4 + $0x394] ss:$8 sps:$4 sm:$0xff]   ;;  %v18374_v41 = vld [vmem:[%s25349_s4 + $0x390] ss:$8 sps:$4 sm:$0xff]   ;;  %v16350_v51 = vcombine.low %v12981_v14, %v12984_v47 }
 0x70d   : > { %11070 = vmatprep.mubr.bf16.mxu1 %v11013_v49  ;;  %11941 = vmatprep.subr.bf16.mxu1 %v18331_v6  ;;  %v18371_v24 = vld [vmem:[%s25349_s4 + $0x3a0] ss:$8 sps:$4 sm:$0xff]   ;;  %v18379_v56 = vld [vmem:[%s25349_s4 + $0x384] ss:$8 sps:$4 sm:$0xff]   ;;  %v18673_v27 = vld [vmem:[%s25352_s7 + $0x58] sm:$0xff]  }
 0x70e   : > { %v18669_v43 = vld [vmem:[%s25352_s7 + $0x68] sm:$0xff]   ;;  %v18382_v17 = vld [vmem:[%s25349_s4 + $0x574] ss:$8 sps:$4 sm:$0xff]   ;;  %v18380_v42 = vld [vmem:[%s25349_s4 + $0x570] ss:$8 sps:$4 sm:$0xff]  }
 0x70f   : > { %11071 = vmatmul.mubr.bf16.gmra.mxu1 %v11012_v54  ;;  %13784 = vmatpush2.bf16.msra.mxu0 %v18332_v13  ;;  %v18670_v31 = vld [vmem:[%s25352_s7 + $0x28] sm:$0xff]   ;;  %v18674_v5 = vld [vmem:[%s25352_s7 + $0x18] sm:$0xff]   ;;  %v18675_v32 = vld [vmem:[%s25352_s7 + $0x50] sm:$0xff]  }
 0x710   : > { %11942 = vmatpush1.bf16.msra.mxu1 %v18329_v15  ;;  %11961 = vmatprep.mubr.bf16.mxu1 %v18337_v38  ;;  %v18377_v7 = vld [vmem:[%s25349_s4 + $0x380] ss:$8 sps:$4 sm:$0xff]   ;;  %v18388_v33 = vld [vmem:[%s25349_s4 + $0x564] ss:$8 sps:$4 sm:$0xff]   ;;  %v18676_v21 = vld [vmem:[%s25352_s7 + $0x10] sm:$0xff]  }
 0x711   : > { %11943 = vmatprep.subr.bf16.mxu1 %v18340_v40  ;;  %13785 = vmatprep.subr.bf16.mxu0 %v18343_v28  ;;  %v18335_v18 = vld [vmem:[#allocation2 + $0xa8] ss:$80 sps:$4 sm:$0xff]   ;;  %v24640_v39 = vld [vmem:[#allocation2 + $0x21c] ss:$40 sps:$4 sm:$0xff]  }
 0x712   : > { %v18386_v6 = vld [vmem:[%s25349_s4 + $0x560] ss:$8 sps:$4 sm:$0xff]   ;;  %v18391_v54 = vld [vmem:[%s25349_s4 + $0x554] ss:$8 sps:$4 sm:$0xff]   ;;  %v18389_v15 = vld [vmem:[%s25349_s4 + $0x550] ss:$8 sps:$4 sm:$0xff]  }
 0x713   : > { %13786 = vmatpush2.bf16.msra.mxu0 %v18341_v4  ;;  %v18677_v49 = vld [vmem:[%s25352_s7 + $0x48] sm:$0xff]   ;;  %v18679_v40 = vld [vmem:[%s25352_s7 + $0x40] sm:$0xff]   ;;  %v24669_v4 = vld [vmem:[#allocation2 + $0x2dc] ss:$-296 sps:$4 sm:$0xff]  }
 0x714   : > { %11944 = vmatpush1.bf16.msra.mxu1 %v18338_v50  ;;  %13787 = vmatprep.subr.bf16.mxu0 %v18349_v35  ;;  %v18678_v13 = vld [vmem:[%s25352_s7 + $0x8] sm:$0xff]   ;;  %v24664_v28 = vld [vmem:[#allocation2 + $0x218] ss:$40 sps:$4 sm:$0xff]  }
 0x715   : > { %11945 = vmatprep.subr.bf16.mxu1 %v18346_v62  ;;  %v18397_v38 = vld [vmem:[%s25349_s4 + $0x544] ss:$8 sps:$4 sm:$0xff]   ;;  %v18395_v35 = vld [vmem:[%s25349_s4 + $0x540] ss:$8 sps:$4 sm:$0xff]   ;;  %v18400_v62 = vld [vmem:[%s25349_s4 + $0x534] ss:$8 sps:$4 sm:$0xff]  }
 0x716   : > { %v18680_v50 = vld [vmem:[%s25352_s7] sm:$0xff]  }
 0x717   : > { %13788 = vmatpush2.bf16.msra.mxu0 %v18347_v0  ;;  %v18398_v0 = vld [vmem:[%s25349_s4 + $0x530] ss:$8 sps:$4 sm:$0xff]   ;;  %v18424_v14 = vld [vmem:[%s25349_s4 + $0x5c4] ss:$8 sps:$4 sm:$0xff]   ;;  %v18422_v47 = vld [vmem:[%s25349_s4 + $0x5c0] ss:$8 sps:$4 sm:$0xff]  }
 0x718   : > { %11946 = vmatpush2.bf16.msra.mxu1 %v18344_v3  ;;  %13789 = vmatprep.subr.bf16.mxu0 %v18355_v45  ;;  %v24685_v3 = vld [vmem:[#allocation2 + $0x2d8] ss:$-296 sps:$4 sm:$0xff]   ;;  %v18403_v45 = vld [vmem:[%s25349_s4 + $0x524] ss:$8 sps:$4 sm:$0xff]  }
 0x719   : > { %11947 = vmatprep.subr.bf16.mxu1 %v18352_v19  ;;  %v18681_v19 = vld [vmem:[#allocation2 + $0x290] sm:$0xff] }
 0x71b   : > { %13790 = vmatpush2.bf16.msra.mxu0 %v18353_v1  ;;  %v18682_v1 = vld [vmem:[#allocation2 + $0x38] sm:$0xff] }
 0x71c   : > { %11948 = vmatpush2.bf16.msra.mxu1 %v18350_v29  ;;  %13791 = vmatprep.subr.bf16.mxu0 %v18361_v52  ;;  %v24690_v29 = vcombine.high %v18682_v1, %v18681_v19  ;;  %v18401_v52 = vld [vmem:[%s25349_s4 + $0x520] ss:$8 sps:$4 sm:$0xff]  }
 0x71d   : > { %11949 = vmatprep.subr.bf16.mxu1 %v18358_v16  ;;  %v18406_v16 = vld [vmem:[%s25349_s4 + $0x514] ss:$8 sps:$4 sm:$0xff]  }
 0x71f   : > { %13792 = vmatpush2.bf16.msra.mxu0 %v18359_v25  ;;  %v18404_v25 = vld [vmem:[%s25349_s4 + $0x510] ss:$8 sps:$4 sm:$0xff]  }
 0x720   : > { %11950 = vmatpush2.bf16.msra.mxu1 %v18356_v37  ;;  %16620 = vmatprep.subr.bf16.mxu0 %v18665_v26  ;;  %v24703_v37 = vcombine.low %v18682_v1, %v18681_v19  ;;  %v18415_v26 = vld [vmem:[%s25349_s4 + $0x5f4] ss:$8 sps:$4 sm:$0xff]   ;;  %v18467_v19 = vld [vmem:[%s25349_s4 + $0x1e0] ss:$8 sps:$4 sm:$0xff]  }
 0x721   : > { %11951 = vmatprep.subr.bf16.mxu1 %v18364_v63  ;;  %v18412_v63 = vld [vmem:[%s25349_s4 + $0x504] ss:$8 sps:$4 sm:$0xff]   ;;  %v18472_v1 = vld [vmem:[%s25349_s4 + $0x1d4] ss:$8 sps:$4 sm:$0xff]  }
 0x722   : > { %13794 = vmatmul.mubr.bf16.vlgmr.msra.gmra.mxu0 %v18302_v61  ;;  %v18409_v61 = vld [vmem:[#allocation2 + $0xbc] ss:$-176 sps:$4 sm:$0xff]  }
 0x723   : > { %13803 = vmatprep.mubr.bf16.mxu0 %v24571_v30  ;;  %16621 = vmatpush3.bf16.msra.mxu0 %v18666_v57  ;;  %v18418_v57 = vld [vmem:[%s25349_s4 + $0x5e4] ss:$8 sps:$4 sm:$0xff]  }
 0x724   : > { %11952 = vmatpush2.bf16.msra.mxu1 %v18362_v48  ;;  %16622 = vmatprep.subr.bf16.mxu0 %v18667_v12  ;;  %v18410_v48 = vld [vmem:[%s25349_s4 + $0x500] ss:$8 sps:$4 sm:$0xff]   ;;  %v18421_v12 = vld [vmem:[%s25349_s4 + $0x5d4] ss:$8 sps:$4 sm:$0xff]  }
 0x725   : > { %11953 = vmatprep.subr.bf16.mxu1 %v18370_v58  ;;  %v18413_v58 = vld [vmem:[%s25349_s4 + $0x5f0] ss:$8 sps:$4 sm:$0xff]  }
 0x727   : > { %16623 = vmatpush3.bf16.msra.mxu0 %v18668_v59  ;;  %v18427_v59 = vld [vmem:[%s25349_s4 + $0x5b4] ss:$8 sps:$4 sm:$0xff]  }
 0x728   : > { %11954 = vmatpush2.bf16.msra.mxu1 %v18368_v11  ;;  %16624 = vmatprep.subr.bf16.mxu0 %v18669_v43  ;;  %v18416_v11 = vld [vmem:[%s25349_s4 + $0x5e0] ss:$8 sps:$4 sm:$0xff]   ;;  %v18430_v43 = vld [vmem:[%s25349_s4 + $0x5a4] ss:$8 sps:$4 sm:$0xff]  }
 0x729   : > { %11955 = vmatprep.subr.bf16.mxu1 %v18373_v44  ;;  %v18419_v44 = vld [vmem:[%s25349_s4 + $0x5d0] ss:$8 sps:$4 sm:$0xff]  }
 0x72a   : > { %13804 = vmatmul.mubr.bf16.gmra.mxu0 %v24592_v2 }
 0x72b   : > { %13813 = vmatprep.mubr.bf16.mxu0 %v16351_v10  ;;  %16625 = vmatpush3.bf16.msra.mxu0 %v18670_v31  ;;  %v18428_v10 = vld [vmem:[%s25349_s4 + $0x5a0] ss:$8 sps:$4 sm:$0xff]   ;;  %v18431_v31 = vld [vmem:[%s25349_s4 + $0x590] ss:$8 sps:$4 sm:$0xff]  }
 0x72c   : > { %11956 = vmatpush2.bf16.msra.mxu1 %v18371_v24  ;;  %16626 = vmatprep.subr.bf16.mxu0 %v18671_v36  ;;  %v18425_v24 = vld [vmem:[%s25349_s4 + $0x5b0] ss:$8 sps:$4 sm:$0xff]   ;;  %v18434_v36 = vld [vmem:[%s25349_s4 + $0x580] ss:$8 sps:$4 sm:$0xff]  }
 0x72d   : > { %11957 = vmatprep.subr.bf16.mxu1 %v18376_v8  ;;  %v18433_v8 = vld [vmem:[%s25349_s4 + $0x594] ss:$8 sps:$4 sm:$0xff]  }
 0x72f   : > { %16627 = vmatpush3.bf16.msra.mxu0 %v18672_v9  ;;  %v18437_v9 = vld [vmem:[%s25349_s4 + $0x170] ss:$8 sps:$4 sm:$0xff]  }
 0x730   : > { %11958 = vmatpush2.bf16.msra.mxu1 %v18374_v41  ;;  %16628 = vmatprep.subr.bf16.mxu0 %v18673_v27  ;;  %v18436_v41 = vld [vmem:[%s25349_s4 + $0x584] ss:$8 sps:$4 sm:$0xff]   ;;  %v18440_v27 = vld [vmem:[%s25349_s4 + $0x160] ss:$8 sps:$4 sm:$0xff]  }
 0x731   : > { %11959 = vmatprep.subr.bf16.mxu1 %v18379_v56  ;;  %v18439_v56 = vld [vmem:[%s25349_s4 + $0x174] ss:$8 sps:$4 sm:$0xff]  }
 0x732   : > { %13814 = vmatmul.mubr.bf16.gmra.mxu0 %v16350_v51  ;;  %v18407_v51 = vld [vmem:[#allocation2 + $0xb8] ss:$-176 sps:$4 sm:$0xff]  }
 0x733   : > { %16629 = vmatpush3.bf16.msra.mxu0 %v18674_v5  ;;  %v18443_v5 = vld [vmem:[%s25349_s4 + $0x150] ss:$8 sps:$4 sm:$0xff]  }
 0x734   : > { %11960 = vmatpush2.bf16.msra.mxu1 %v18377_v7  ;;  %16630 = vmatprep.subr.bf16.mxu0 %v18675_v32  ;;  %v18442_v7 = vld [vmem:[%s25349_s4 + $0x164] ss:$8 sps:$4 sm:$0xff]   ;;  %v18451_v32 = vld [vmem:[%s25349_s4 + $0x134] ss:$8 sps:$4 sm:$0xff]  }
 0x735   : > { %12075 = vmatprep.subr.bf16.mxu1 %v18382_v17  ;;  %v18445_v17 = vld [vmem:[%s25349_s4 + $0x154] ss:$8 sps:$4 sm:$0xff]  }
 0x737   : > { %11962 = vmatmul.mubr.bf16.vlgmr.msra.gmra.mxu1 %v18335_v18  ;;  %16631 = vmatpush3.bf16.msra.mxu0 %v18676_v21  ;;  %v18449_v18 = vld [vmem:[%s25349_s4 + $0x130] ss:$8 sps:$4 sm:$0xff]  }
 0x738   : > { %11971 = vmatprep.mubr.bf16.mxu1 %v24640_v39  ;;  %12076 = vmatpush1.bf16.msra.mxu1 %v18380_v42  ;;  %v18446_v42 = vld [vmem:[%s25349_s4 + $0x140] ss:$8 sps:$4 sm:$0xff]  }
 0x739   : > { %12077 = vmatprep.subr.bf16.mxu1 %v18388_v33  ;;  %16632 = vmatprep.subr.bf16.mxu0 %v18677_v49  ;;  %v18684_v33 = vld [vmem:[#allocation2 + $0x200] sm:$0xff]  ;;  %v18455_v49 = vld [vmem:[%s25349_s4 + $0x110] ss:$8 sps:$4 sm:$0xff]  }
 0x73b   : > { %16633 = vmatpush3.bf16.msra.mxu0 %v18678_v13 }
 0x73c   : > { %12078 = vmatpush1.bf16.msra.mxu1 %v18386_v6  ;;  %16634 = vmatprep.subr.bf16.mxu0 %v18679_v40  ;;  %v18452_v6 = vld [vmem:[%s25349_s4 + $0x120] ss:$8 sps:$4 sm:$0xff]   ;;  %v18685_v40 = vld [vmem:[#allocation2 + $0x358] sm:$0xff] }
 0x73d   : > { %12079 = vmatprep.subr.bf16.mxu1 %v18391_v54  ;;  %v18457_v54 = vld [vmem:[%s25349_s4 + $0x114] ss:$8 sps:$4 sm:$0xff]  }
 0x73f   : > { %11972 = vmatmul.mubr.bf16.gmra.mxu1 %v24664_v28  ;;  %16635 = vmatpush3.bf16.msra.mxu0 %v18680_v50  ;;  %v18461_v50 = vld [vmem:[%s25349_s4 + $0x100] ss:$8 sps:$4 sm:$0xff]  }
 0x740   : > { %11981 = vmatprep.mubr.bf16.mxu1 %v24669_v4  ;;  %12080 = vmatpush1.bf16.msra.mxu1 %v18389_v15  ;;  %v18460_v15 = vld [vmem:[#allocation2 + $0x284] ss:$-624 sps:$4 sm:$0xff]  }
 0x741   : > { %12081 = vmatprep.subr.bf16.mxu1 %v18397_v38  ;;  %v24815_v38 = vcombine.high %v18685_v40, %v18685_v40 }
 0x743   : > { %13823 = vmatprep.mubr.bf16.mxu0 %v24815_v38 }
 0x744   : > { %12082 = vmatpush1.bf16.msra.mxu1 %v18395_v35  ;;  %v24820_v35 = vcombine.low %v18685_v40, %v18685_v40  ;;  %v18511_v40 = vld [vmem:[%s25349_s4 + $0x624] ss:$8 sps:$4 sm:$0xff]  }
 0x745   : > { %12083 = vmatprep.subr.bf16.mxu1 %v18400_v62  ;;  %v18466_v62 = vld [vmem:[%s25349_s4 + $0x1f4] ss:$8 sps:$4 sm:$0xff]  }
 0x746   : > { %13824 = vmatmul.mubr.bf16.gmra.mxu0 %v24820_v35 }
 0x747   : > { %11982 = vmatmul.mubr.bf16.gmra.mxu1 %v24685_v3 }
 0x748   : > { %11991 = vmatprep.mubr.bf16.mxu1 %v24690_v29  ;;  %12084 = vmatpush1.bf16.msra.mxu1 %v18398_v0  ;;  %v18464_v0 = vld [vmem:[%s25349_s4 + $0x1f0] ss:$8 sps:$4 sm:$0xff]  }
 0x749   : > { %12085 = vmatprep.subr.bf16.mxu1 %v18403_v45  ;;  %v18469_v45 = vld [vmem:[%s25349_s4 + $0x1e4] ss:$8 sps:$4 sm:$0xff]  }
 0x74c   : > { %12086 = vmatpush1.bf16.msra.mxu1 %v18401_v52  ;;  %v18470_v52 = vld [vmem:[%s25349_s4 + $0x1d0] ss:$8 sps:$4 sm:$0xff]  }
 0x74d   : > { %12087 = vmatprep.subr.bf16.mxu1 %v18406_v16  ;;  %v18475_v16 = vld [vmem:[%s25349_s4 + $0x1c4] ss:$8 sps:$4 sm:$0xff]  }
 0x74f   : > { %11992 = vmatmul.mubr.bf16.gmra.mxu1 %v24703_v37 }
 0x750   : > { %12088 = vmatpush1.bf16.msra.mxu1 %v18404_v25  ;;  %12107 = vmatprep.mubr.bf16.mxu1 %v18409_v61  ;;  %v18473_v25 = vld [vmem:[%s25349_s4 + $0x1c0] ss:$8 sps:$4 sm:$0xff]   ;;  %v18476_v61 = vld [vmem:[%s25349_s4 + $0x1b0] ss:$8 sps:$4 sm:$0xff]  }
 0x751   : > { %12089 = vmatprep.subr.bf16.mxu1 %v18412_v63  ;;  %v18478_v63 = vld [vmem:[%s25349_s4 + $0x1b4] ss:$8 sps:$4 sm:$0xff]  }
 0x754   : > { %12090 = vmatpush1.bf16.msra.mxu1 %v18410_v48  ;;  %v18481_v48 = vld [vmem:[%s25349_s4 + $0x1a4] ss:$8 sps:$4 sm:$0xff]  }
 0x755   : > { %12091 = vmatprep.subr.bf16.mxu1 %v18415_v26  ;;  %v18479_v26 = vld [vmem:[%s25349_s4 + $0x1a0] ss:$8 sps:$4 sm:$0xff]  }
 0x758   : > { %12092 = vmatpush2.bf16.msra.mxu1 %v18413_v58  ;;  %v18484_v58 = vld [vmem:[%s25349_s4 + $0x194] ss:$8 sps:$4 sm:$0xff]  }
 0x759   : > { %12093 = vmatprep.subr.bf16.mxu1 %v18418_v57  ;;  %v18482_v57 = vld [vmem:[%s25349_s4 + $0x190] ss:$8 sps:$4 sm:$0xff]  }
 0x75c   : > { %12094 = vmatpush2.bf16.msra.mxu1 %v18416_v11  ;;  %v18487_v11 = vld [vmem:[%s25349_s4 + $0x184] ss:$8 sps:$4 sm:$0xff]  }
 0x75d   : > { %12095 = vmatprep.subr.bf16.mxu1 %v18421_v12  ;;  %v18485_v12 = vld [vmem:[%s25349_s4 + $0x180] ss:$8 sps:$4 sm:$0xff]  }
 0x760   : > { %12096 = vmatpush2.bf16.msra.mxu1 %v18419_v44  ;;  %v18490_v44 = vld [vmem:[%s25349_s4 + $0x674] ss:$8 sps:$4 sm:$0xff]  }
 0x761   : > { %12097 = vmatprep.subr.bf16.mxu1 %v18424_v14  ;;  %v18488_v14 = vld [vmem:[%s25349_s4 + $0x670] ss:$8 sps:$4 sm:$0xff]  }
 0x764   : > { %12098 = vmatpush2.bf16.msra.mxu1 %v18422_v47  ;;  %v18458_v47 = vld [vmem:[#allocation2 + $0x280] ss:$-624 sps:$4 sm:$0xff]  }
 0x765   : > { %12099 = vmatprep.subr.bf16.mxu1 %v18427_v59  ;;  %v18496_v59 = vld [vmem:[%s25349_s4 + $0x664] ss:$8 sps:$4 sm:$0xff]  }
 0x768   : > { %12100 = vmatpush2.bf16.msra.mxu1 %v18425_v24  ;;  %v18493_v24 = vld [vmem:[#allocation2 + $0x154] ss:$424 sps:$4 sm:$0xff]  }
 0x769   : > { %12101 = vmatprep.subr.bf16.mxu1 %v18430_v43 }
 0x76c   : > { %12102 = vmatpush2.bf16.msra.mxu1 %v18428_v10  ;;  %v18494_v10 = vld [vmem:[%s25349_s4 + $0x660] ss:$8 sps:$4 sm:$0xff]  }
 0x76d   : > { %12103 = vmatprep.subr.bf16.mxu1 %v18433_v8 }
 0x770   : > { %12104 = vmatpush2.bf16.msra.mxu1 %v18431_v31  ;;  %v18499_v31 = vld [vmem:[%s25349_s4 + $0x654] ss:$8 sps:$4 sm:$0xff]  }
 0x771   : > { %12105 = vmatprep.subr.bf16.mxu1 %v18436_v41 }
 0x774   : > { %12106 = vmatpush2.bf16.msra.mxu1 %v18434_v36 }
 0x775   : > { %12821 = vmatprep.subr.bf16.mxu1 %v18439_v56  ;;  %v24890_v56 = vld [vmem:[%s25353_s8] ss:$0 sm:$0xff] }
 0x777   : > { %12108 = vmatmul.mubr.bf16.vlgmr.msra.gmra.mxu1 %v18407_v51  ;;  %v18497_v51 = vld [vmem:[%s25349_s4 + $0x650] ss:$8 sps:$4 sm:$0xff]  }
 0x778   : > { %12117 = vmatprep.mubr.bf16.mxu1 %v24304_v22  ;;  %12822 = vmatpush1.bf16.msra.mxu1 %v18437_v9  ;;  %v18448_v22 = vld [vmem:[%s25349_s4 + $0x144] ss:$8 sps:$4 sm:$0xff]  }
 0x779   : > { %12823 = vmatprep.subr.bf16.mxu1 %v18442_v7  ;;  %v18491_v7 = vld [vmem:[#allocation2 + $0x150] ss:$424 sps:$4 sm:$0xff]  }
 0x77c   : > { %12824 = vmatpush1.bf16.msra.mxu1 %v18440_v27 }
 0x77d   : > { %12825 = vmatprep.subr.bf16.mxu1 %v18445_v17  ;;  %v18505_v17 = vld [vmem:[%s25349_s4 + $0x644] ss:$8 sps:$4 sm:$0xff]  }
 0x77f   : > { %12118 = vmatmul.mubr.bf16.gmra.mxu1 %v24289_v23  ;;  %v18454_v23 = vld [vmem:[%s25349_s4 + $0x124] ss:$8 sps:$4 sm:$0xff]  }
 0x780   : > { %12127 = vmatprep.mubr.bf16.mxu1 %v24318_v46  ;;  %12826 = vmatpush1.bf16.msra.mxu1 %v18443_v5  ;;  %v18683_v46 = vld [vmem:[#allocation2 + $0x178] sm:$0xff] }
 0x781   : > { %12827 = vmatprep.subr.bf16.mxu1 %v18448_v22  ;;  %v24796_v21 = vcombine.high %v18683_v46, %v18684_v33  ;;  %v24809_v13 = vcombine.low %v18683_v46, %v18684_v33  ;;  %v18502_v22 = vld [vmem:[#allocation2 + $0x54] ss:$-48 sps:$4 sm:$0xff]  }
 0x782   : > { %v18508_v46 = vld [vmem:[%s25349_s4 + $0x634] ss:$8 sps:$4 sm:$0xff]  }
 0x784   : > { %12828 = vmatpush1.bf16.msra.mxu1 %v18446_v42 }
 0x785   : > { %12829 = vmatprep.subr.bf16.mxu1 %v18451_v32 }
 0x787   : > { %12128 = vmatmul.mubr.bf16.gmra.mxu1 %v24316_v60  ;;  %v18463_v60 = vld [vmem:[%s25349_s4 + $0x104] ss:$8 sps:$4 sm:$0xff]  }
 0x788   : > { %12137 = vmatprep.mubr.bf16.mxu1 %v24796_v21  ;;  %12830 = vmatpush1.bf16.msra.mxu1 %v18449_v18  ;;  %v18503_v18 = vld [vmem:[%s25349_s4 + $0x640] ss:$8 sps:$4 sm:$0xff]  }
 0x789   : > { %12831 = vmatprep.subr.bf16.mxu1 %v18454_v23 }
 0x78c   : > { %12832 = vmatpush1.bf16.msra.mxu1 %v18452_v6 }
 0x78d   : > { %12833 = vmatprep.subr.bf16.mxu1 %v18457_v54 }
 0x78f   : > { %12138 = vmatmul.mubr.bf16.gmra.mxu1 %v24809_v13 }
 0x790   : > { %12834 = vmatpush1.bf16.msra.mxu1 %v18455_v49  ;;  %12853 = vmatprep.mubr.bf16.mxu1 %v18460_v15  ;;  %v18506_v49 = vld [vmem:[%s25349_s4 + $0x630] ss:$8 sps:$4 sm:$0xff]  }
 0x791   : > { %12835 = vmatprep.subr.bf16.mxu1 %v18463_v60  ;;  %v18500_v60 = vld [vmem:[#allocation2 + $0x50] ss:$-48 sps:$4 sm:$0xff]  }
 0x794   : > { %12836 = vmatpush1.bf16.msra.mxu1 %v18461_v50 }
 0x795   : > { %12837 = vmatprep.subr.bf16.mxu1 %v18466_v62 }
 0x798   : > { %12838 = vmatpush2.bf16.msra.mxu1 %v18464_v0 }
 0x799   : > { %12839 = vmatprep.subr.bf16.mxu1 %v18469_v45  ;;  %v18509_v45 = vld [vmem:[%s25349_s4 + $0x620] ss:$8 sps:$4 sm:$0xff]  }
 0x79c   : > { %12840 = vmatpush2.bf16.msra.mxu1 %v18467_v19 }
 0x79d   : > { %12841 = vmatprep.subr.bf16.mxu1 %v18472_v1  ;;  %v18514_v1 = vld [vmem:[%s25349_s4 + $0x614] ss:$8 sps:$4 sm:$0xff]  }
 0x7a0   : > { %12842 = vmatpush2.bf16.msra.mxu1 %v18470_v52 }
 0x7a1   : > { %12843 = vmatprep.subr.bf16.mxu1 %v18475_v16 }
 0x7a4   : > { %12844 = vmatpush2.bf16.msra.mxu1 %v18473_v25 }
 0x7a5   : > { %12845 = vmatprep.subr.bf16.mxu1 %v18478_v63 }
 0x7a8   : > { %12846 = vmatpush2.bf16.msra.mxu1 %v18476_v61  ;;  %v18517_v61 = vld [vmem:[%s25349_s4 + $0x604] ss:$8 sps:$4 sm:$0xff]  }
 0x7a9   : > { %12847 = vmatprep.subr.bf16.mxu1 %v18481_v48 }
 0x7ac   : > { %12848 = vmatpush2.bf16.msra.mxu1 %v18479_v26 }
 0x7ad   : > { %12849 = vmatprep.subr.bf16.mxu1 %v18484_v58 }
 0x7b0   : > { %12850 = vmatpush2.bf16.msra.mxu1 %v18482_v57  ;;  %v18515_v57 = vld [vmem:[%s25349_s4 + $0x600] ss:$8 sps:$4 sm:$0xff]  }
 0x7b1   : > { %12851 = vmatprep.subr.bf16.mxu1 %v18487_v11 }
 0x7b4   : > { %12852 = vmatpush2.bf16.msra.mxu1 %v18485_v12  ;;  %v18520_v12 = vld [vmem:[%s25349_s4 + $0x6f4] ss:$8 sps:$4 sm:$0xff]  }
 0x7b5   : > { %13688 = vmatprep.subr.bf16.mxu1 %v18490_v44 }
 0x7b7   : > { %12854 = vmatmul.mubr.bf16.vlgmr.msra.gmra.mxu1 %v18458_v47  ;;  %v16596_v43 = vpop.f32.mrf.mxu1 }
 0x7b8   : > { %12863 = vmatprep.mubr.bf16.mxu1 %v18493_v24  ;;  %13689 = vmatpush1.bf16.msra.mxu1 %v18488_v14 }
 0x7b9   : > { %v16597_v8 = vpop.f32.mrf.mxu1  ;;  %13690 = vmatprep.subr.bf16.mxu1 %v18496_v59  ;;  %v18523_v59 = vld [vmem:[%s25349_s4 + $0x6e4] ss:$8 sps:$4 sm:$0xff]  }
 0x7ba   : > { %v16598_v41 = vadd.f32 %v16597_v8, %v16596_v43  ;;  %v18526_v8 = vld [vmem:[%s25349_s4 + $0x6d4] ss:$8 sps:$4 sm:$0xff]  }
 0x7bb   : > { %v16599_v36 = vpop.f32.mrf.mxu1 }
 0x7bc   : > { %v11049_v9 = vadd.f32 %v24890_v56, %v16598_v41  ;;  %13691 = vmatpush1.bf16.msra.mxu1 %v18494_v10  ;;  %v18521_v10 = vld [vmem:[%s25349_s4 + $0x6e0] ss:$8 sps:$4 sm:$0xff]   ;;  %v18529_v41 = vld [vmem:[%s25349_s4 + $0x6c4] ss:$8 sps:$4 sm:$0xff]  }
 0x7bd   : > { %v16600_v27 = vpop.f32.mrf.mxu1  ;;  %13692 = vmatprep.subr.bf16.mxu1 %v18499_v31  ;;  %v18524_v31 = vld [vmem:[%s25349_s4 + $0x6d0] ss:$8 sps:$4 sm:$0xff]  }
 0x7be   : > { %15896 = vst [vmem:[%s22198_s10 + $0x80] sm:$0xff] %v11049_v9  ;;  %v16601_v5 = vadd.f32 %v16600_v27, %v16599_v36  ;;  %v18527_v36 = vld [vmem:[%s25349_s4 + $0x6c0] ss:$8 sps:$4 sm:$0xff]   ;;  %v18530_v9 = vld [vmem:[%s25349_s4 + $0x6b0] ss:$8 sps:$4 sm:$0xff]  }
 0x7bf   : > { %12864 = vmatmul.mubr.bf16.gmra.mxu1 %v18491_v7  ;;  %v16602_v42 = vpop.f32.mrf.mxu1  ;;  %v18533_v7 = vld [vmem:[%s25349_s4 + $0x6a0] ss:$8 sps:$4 sm:$0xff]   ;;  %v18538_v27 = vld [vmem:[%s25349_s4 + $0x694] ss:$8 sps:$4 sm:$0xff]  }
 0x7c0   : > { %v11052_v32 = vadd.f32 %v24890_v56, %v16601_v5  ;;  %12873 = vmatprep.mubr.bf16.mxu1 %v18502_v22  ;;  %13693 = vmatpush1.bf16.msra.mxu1 %v18497_v51  ;;  %v18535_v51 = vld [vmem:[%s25349_s4 + $0x6a4] ss:$8 sps:$4 sm:$0xff]   ;;  %v18539_v22 = vld [vmem:[%s25349_s4 + $0x680] ss:$8 sps:$4 sm:$0xff]  }
 0x7c1   : > { %v16603_v23 = vpop.f32.mrf.mxu1  ;;  %13694 = vmatprep.subr.bf16.mxu1 %v18505_v17  ;;  %v18536_v17 = vld [vmem:[%s25349_s4 + $0x690] ss:$8 sps:$4 sm:$0xff]   ;;  %v18541_v5 = vld [vmem:[%s25349_s4 + $0x684] ss:$8 sps:$4 sm:$0xff]  }
 0x7c2   : > { %15897 = vst [vmem:[%s22198_s10 + $0x88] sm:$0xff] %v11052_v32  ;;  %v16604_v33 = vadd.f32 %v16603_v23, %v16602_v42  ;;  %v18544_v42 = vld [vmem:[%s25349_s4 + $0x874] ss:$8 sps:$4 sm:$0xff]   ;;  %v18542_v32 = vld [vmem:[%s25349_s4 + $0x870] ss:$8 sps:$4 sm:$0xff]  }
 0x7c3   : > { %v16605_v6 = vpop.f32.mrf.mxu1  ;;  %v18545_v23 = vld [vmem:[%s25349_s4 + $0x860] ss:$8 sps:$4 sm:$0xff]  }
 0x7c4   : > { %v11057_v54 = vadd.f32 %v24890_v56, %v16604_v33  ;;  %13695 = vmatpush1.bf16.msra.mxu1 %v18503_v18  ;;  %v18547_v18 = vld [vmem:[%s25349_s4 + $0x864] ss:$8 sps:$4 sm:$0xff]   ;;  %v18550_v33 = vld [vmem:[%s25349_s4 + $0x854] ss:$8 sps:$4 sm:$0xff]  }
 0x7c5   : > { %v16606_v15 = vpop.f32.mrf.mxu1  ;;  %13696 = vmatprep.subr.bf16.mxu1 %v18508_v46 }
 0x7c6   : > { %15898 = vst [vmem:[%s22198_s10 + $0x90] sm:$0xff] %v11057_v54  ;;  %v16607_v50 = vadd.f32 %v16606_v15, %v16605_v6  ;;  %v18548_v6 = vld [vmem:[%s25349_s4 + $0x850] ss:$8 sps:$4 sm:$0xff]   ;;  %v18551_v54 = vld [vmem:[%s25349_s4 + $0x840] ss:$8 sps:$4 sm:$0xff]  }
 0x7c7   : > { %12874 = vmatmul.mubr.bf16.gmra.mxu1 %v18500_v60  ;;  %v16608_v62 = vpop.f32.mrf.mxu1  ;;  %v18556_v60 = vld [vmem:[%s25349_s4 + $0x834] ss:$8 sps:$4 sm:$0xff]   ;;  %v18554_v15 = vld [vmem:[%s25349_s4 + $0x830] ss:$8 sps:$4 sm:$0xff]  }
 0x7c8   : > { %v11060_v0 = vadd.f32 %v24890_v56, %v16607_v50  ;;  %12883 = vmatprep.mubr.bf16.mxu1 %v24571_v30  ;;  %13697 = vmatpush1.bf16.msra.mxu1 %v18506_v49  ;;  %v18512_v30 = vld [vmem:[%s25349_s4 + $0x610] ss:$8 sps:$4 sm:$0xff]  }
 0x7c9   : > { %v16609_v19 = vpop.f32.mrf.mxu1  ;;  %13698 = vmatprep.subr.bf16.mxu1 %v18511_v40  ;;  %v18557_v40 = vld [vmem:[%s25349_s4 + $0x820] ss:$8 sps:$4 sm:$0xff]  }
 0x7ca   : > { %15899 = vst [vmem:[%s22198_s10 + $0x98] sm:$0xff] %v11060_v0  ;;  %v16610_v52 = vadd.f32 %v16609_v19, %v16608_v62  ;;  %v18562_v62 = vld [vmem:[%s25349_s4 + $0x814] ss:$8 sps:$4 sm:$0xff]   ;;  %v25047_v0 = vld [vmem:[#allocation2 + $0x268] sm:$0xff] }
 0x7cb   : > { %v16611_v16 = vpop.f32.mrf.mxu1 }
 0x7cc   : > { %v11065_v25 = vadd.f32 %v24890_v56, %v16610_v52  ;;  %13699 = vmatpush1.bf16.msra.mxu1 %v18509_v45  ;;  %v25049_v45 = vld [vmem:[#allocation2 + $0x28] sm:$0xff] }
 0x7cd   : > { %v16612_v63 = vpop.f32.mrf.mxu1  ;;  %13700 = vmatprep.subr.bf16.mxu1 %v18514_v1  ;;  %v18565_v1 = vld [vmem:[%s25349_s4 + $0x804] ss:$8 sps:$4 sm:$0xff]   ;;  %v16341_v52 = vcombine.high %v25047_v0, %v25049_v45 }
 0x7ce   : > { %15900 = vst [vmem:[%s22198_s10 + $0xa0] sm:$0xff] %v11065_v25  ;;  %v16613_v48 = vadd.f32 %v16612_v63, %v16611_v16  ;;  %v18563_v16 = vld [vmem:[%s25349_s4 + $0x800] ss:$8 sps:$4 sm:$0xff]   ;;  %v18566_v63 = vld [vmem:[%s25349_s4 + $0x8f0] ss:$8 sps:$4 sm:$0xff]  }
 0x7cf   : > { %12884 = vmatmul.mubr.bf16.gmra.mxu1 %v24592_v2  ;;  %v16614_v26 = vpop.f32.mrf.mxu1 }
 0x7d0   : > { %v11068_v58 = vadd.f32 %v24890_v56, %v16613_v48  ;;  %13701 = vmatpush1.bf16.msra.mxu1 %v18512_v30  ;;  %13720 = vmatprep.mubr.bf16.mxu1 %v24640_v39  ;;  %v18518_v39 = vld [vmem:[%s25349_s4 + $0x6f0] ss:$8 sps:$4 sm:$0xff]   ;;  %v18568_v30 = vld [vmem:[%s25349_s4 + $0x8f4] ss:$8 sps:$4 sm:$0xff]   ;;  %v18571_v48 = vld [vmem:[%s25349_s4 + $0x8e4] ss:$8 sps:$4 sm:$0xff]  }
 0x7d1   : > { %v16615_v11 = vpop.f32.mrf.mxu1  ;;  %13702 = vmatprep.subr.bf16.mxu1 %v18517_v61 }
 0x7d2   : > { %15901 = vst [vmem:[%s22198_s10 + $0xa8] sm:$0xff] %v11068_v58  ;;  %v16616_v2 = vadd.f32 %v16615_v11, %v16614_v26  ;;  %v12036_v26 = vpop.f32.mrf.mxu0  ;;  %v18569_v58 = vld [vmem:[%s25349_s4 + $0x8e0] ss:$8 sps:$4 sm:$0xff]   ;;  %v18574_v11 = vld [vmem:[%s25349_s4 + $0x8d4] ss:$8 sps:$4 sm:$0xff]  }
 0x7d3   : > { %v16617_v44 = vpop.f32.mrf.mxu1 }
 0x7d4   : > { %v11073_v14 = vadd.f32 %v24890_v56, %v16616_v2  ;;  %13703 = vmatpush1.bf16.msra.mxu1 %v18515_v57  ;;  %v18572_v2 = vld [vmem:[%s25349_s4 + $0x8d0] ss:$8 sps:$4 sm:$0xff]  }
 0x7d5   : > { %v16618_v47 = vpop.f32.mrf.mxu1  ;;  %13704 = vmatprep.subr.bf16.mxu1 %v18520_v12  ;;  %v12038_v12 = vpop.f32.mrf.mxu0 }
 0x7d6   : > { %15902 = vst [vmem:[%s22198_s10 + $0xb0] sm:$0xff] %v11073_v14  ;;  %v16619_v24 = vadd.f32 %v16618_v47, %v16617_v44  ;;  %v18577_v14 = vld [vmem:[%s25349_s4 + $0x8c4] ss:$8 sps:$4 sm:$0xff]   ;;  %v18575_v47 = vld [vmem:[%s25349_s4 + $0x8c0] ss:$8 sps:$4 sm:$0xff]  }
 0x7d8   : > { %v11076_v43 = vadd.f32 %v24890_v56, %v16619_v24  ;;  %13705 = vmatpush2.bf16.msra.mxu1 %v18518_v39  ;;  %v18532_v56 = vld [vmem:[%s25349_s4 + $0x6b4] ss:$8 sps:$4 sm:$0xff]   ;;  %v12040_v39 = vpop.f32.mrf.mxu0 }
 0x7d9   : > { %13706 = vmatprep.subr.bf16.mxu1 %v18523_v59  ;;  %v18580_v24 = vld [vmem:[%s25349_s4 + $0x8b4] ss:$8 sps:$4 sm:$0xff]  }
 0x7da   : > { %15903 = vst [vmem:[%s22198_s10 + $0xb8] sm:$0xff] %v11076_v43  ;;  %v12042_v43 = vpop.f32.mrf.mxu0 }
 0x7dc   : > { %13707 = vmatpush2.bf16.msra.mxu1 %v18521_v10  ;;  %v18578_v10 = vld [vmem:[%s25349_s4 + $0x8b0] ss:$8 sps:$4 sm:$0xff]  }
 0x7dd   : > { %13708 = vmatprep.subr.bf16.mxu1 %v18526_v8 }
 0x7e0   : > { %13709 = vmatpush2.bf16.msra.mxu1 %v18524_v31  ;;  %v18583_v31 = vld [vmem:[%s25349_s4 + $0x8a4] ss:$8 sps:$4 sm:$0xff]  }
 0x7e1   : > { %13710 = vmatprep.subr.bf16.mxu1 %v18529_v41  ;;  %v12046_v41 = vpop.f32.mrf.mxu0 }
 0x7e4   : > { %13711 = vmatpush2.bf16.msra.mxu1 %v18527_v36  ;;  %v18581_v36 = vld [vmem:[%s25349_s4 + $0x8a0] ss:$8 sps:$4 sm:$0xff]  }
 0x7e5   : > { %13712 = vmatprep.subr.bf16.mxu1 %v18532_v56 }
 0x7e8   : > { %13713 = vmatpush2.bf16.msra.mxu1 %v18530_v9  ;;  %v18586_v9 = vld [vmem:[%s25349_s4 + $0x894] ss:$8 sps:$4 sm:$0xff]  }
 0x7e9   : > { %13714 = vmatprep.subr.bf16.mxu1 %v18535_v51  ;;  %v12048_v51 = vpop.f32.mrf.mxu0 }
 0x7ec   : > { %13715 = vmatpush2.bf16.msra.mxu1 %v18533_v7  ;;  %v18584_v7 = vld [vmem:[%s25349_s4 + $0x890] ss:$8 sps:$4 sm:$0xff]  }
 0x7ed   : > { %13716 = vmatprep.subr.bf16.mxu1 %v18538_v27 }
 0x7f0   : > { %13717 = vmatpush2.bf16.msra.mxu1 %v18536_v17  ;;  %v18589_v17 = vld [vmem:[%s25349_s4 + $0x884] ss:$8 sps:$4 sm:$0xff]  }
 0x7f1   : > { %13718 = vmatprep.subr.bf16.mxu1 %v18541_v5  ;;  %v12050_v5 = vpop.f32.mrf.mxu0 }
 0x7f4   : > { %13719 = vmatpush2.bf16.msra.mxu1 %v18539_v22  ;;  %v18587_v22 = vld [vmem:[%s25349_s4 + $0x880] ss:$8 sps:$4 sm:$0xff]  }
 0x7f5   : > { %13834 = vmatprep.subr.bf16.mxu1 %v18544_v42 }
 0x7f7   : > { %13721 = vmatmul.mubr.bf16.vlgmr.msra.gmra.mxu1 %v24664_v28  ;;  %v25006_v46 = vpop.f32.mrf.mxu1 }
 0x7f8   : > { %13730 = vmatprep.mubr.bf16.mxu1 %v24669_v4  ;;  %13835 = vmatpush1.bf16.msra.mxu1 %v18542_v32  ;;  %v18553_v4 = vld [vmem:[%s25349_s4 + $0x844] ss:$8 sps:$4 sm:$0xff]   ;;  %v12052_v32 = vpop.f32.mrf.mxu0 }
 0x7f9   : > { %13836 = vmatprep.subr.bf16.mxu1 %v18547_v18  ;;  %v25014_v28 = vpop.f32.mrf.mxu1  ;;  %v16340_v18 = vcombine.low %v25047_v0, %v25049_v45 }
 0x7fb   : > { %v25024_v49 = vpop.f32.mrf.mxu1 }
 0x7fc   : > { %13837 = vmatpush1.bf16.msra.mxu1 %v18545_v23 }
 0x7fd   : > { %13838 = vmatprep.subr.bf16.mxu1 %v18550_v33  ;;  %v12037_v33 = vadd.f32 %v12036_v26, %v25006_v46  ;;  %v18590_v46 = vld [vmem:[#allocation2 + $0x330] ss:$-792 sps:$4 sm:$0xff]  }
 0x7ff   : > { %13731 = vmatmul.mubr.bf16.gmra.mxu1 %v24685_v3  ;;  %v25032_v3 = vpop.f32.mrf.mxu1 }
 0x800   : > { %13740 = vmatprep.mubr.bf16.mxu1 %v24690_v29  ;;  %13839 = vmatpush1.bf16.msra.mxu1 %v18548_v6  ;;  %v18559_v29 = vld [vmem:[%s25349_s4 + $0x824] ss:$8 sps:$4 sm:$0xff]   ;;  %v18592_v6 = vld [vmem:[#allocation2 + $0x334] ss:$-792 sps:$4 sm:$0xff]   ;;  %v12043_v0 = vadd.f32 %v12042_v43, %v25032_v3 }
 0x801   : > { %13840 = vmatprep.subr.bf16.mxu1 %v18553_v4  ;;  %v25042_v50 = vpop.f32.mrf.mxu1  ;;  %v12056_v4 = vpop.f32.mrf.mxu0 }
 0x803   : > { %v25054_v19 = vpop.f32.mrf.mxu1 }
 0x804   : > { %13841 = vmatpush1.bf16.msra.mxu1 %v18551_v54 }
 0x805   : > { %13842 = vmatprep.subr.bf16.mxu1 %v18556_v60  ;;  %v25065_v25 = vpop.f32.mrf.mxu1  ;;  %v12039_v60 = vadd.f32 %v12038_v12, %v25014_v28 }
 0x807   : > { %13741 = vmatmul.mubr.bf16.gmra.mxu1 %v24703_v37  ;;  %v18560_v37 = vld [vmem:[%s25349_s4 + $0x810] ss:$8 sps:$4 sm:$0xff]   ;;  %v25073_v61 = vpop.f32.mrf.mxu1 }
 0x808   : > { %13843 = vmatpush1.bf16.msra.mxu1 %v18554_v15  ;;  %13750 = vmatprep.mubr.bf16.mxu1 %v24815_v38 }
 0x809   : > { %13844 = vmatprep.subr.bf16.mxu1 %v18559_v29  ;;  %v25081_v57 = vpop.f32.mrf.mxu1 }
 0x80b   : > { %v25089_v44 = vpop.f32.mrf.mxu1 }
 0x80c   : > { %13845 = vmatpush1.bf16.msra.mxu1 %v18557_v40  ;;  %v12041_v40 = vadd.f32 %v12040_v39, %v25024_v49  ;;  %v12057_v39 = vadd.f32 %v12056_v4, %v25081_v57 }
 0x80d   : > { %13846 = vmatprep.subr.bf16.mxu1 %v18562_v62  ;;  %v25097_v59 = vpop.f32.mrf.mxu1 }
 0x80f   : > { %13751 = vmatmul.mubr.bf16.gmra.mxu1 %v24820_v35  ;;  %v25105_v8 = vpop.f32.mrf.mxu1 }
 0x810   : > { %13847 = vmatpush1.bf16.msra.mxu1 %v18560_v37  ;;  %13866 = vmatprep.mubr.bf16.mxu1 %v16341_v52  ;;  %v12058_v37 = vpop.f32.mrf.mxu0 }
 0x811   : > { %13848 = vmatprep.subr.bf16.mxu1 %v18565_v1  ;;  %v25113_v56 = vpop.f32.mrf.mxu1 }
 0x812   : > { %v12060_v28 = vpop.f32.mrf.mxu0 }
 0x813   : > { %v25121_v27 = vpop.f32.mrf.mxu1 }
 0x814   : > { %13849 = vmatpush1.bf16.msra.mxu1 %v18563_v16  ;;  %v12047_v16 = vadd.f32 %v12046_v41, %v25042_v50 }
 0x815   : > { %13850 = vmatprep.subr.bf16.mxu1 %v18568_v30  ;;  %v25129_v42 = vpop.f32.mrf.mxu1 }
 0x817   : > { %v11999_v23 = vpop.f32.mrf.mxu1 }
 0x818   : > { %13851 = vmatpush2.bf16.msra.mxu1 %v18566_v63 }
 0x819   : > { %13852 = vmatprep.subr.bf16.mxu1 %v18571_v48  ;;  %v12049_v48 = vadd.f32 %v12048_v51, %v25054_v19 }
 0x81c   : > { %13853 = vmatpush2.bf16.msra.mxu1 %v18569_v58  ;;  %v12051_v58 = vadd.f32 %v12050_v5, %v25065_v25 }
 0x81d   : > { %13854 = vmatprep.subr.bf16.mxu1 %v18574_v11  ;;  %v12062_v11 = vpop.f32.mrf.mxu0 }
 0x820   : > { %13855 = vmatpush2.bf16.msra.mxu1 %v18572_v2  ;;  %v12053_v2 = vadd.f32 %v12052_v32, %v25073_v61 }
 0x821   : > { %13856 = vmatprep.subr.bf16.mxu1 %v18577_v14 }
 0x824   : > { %13857 = vmatpush2.bf16.msra.mxu1 %v18575_v47 }
 0x825   : > { %13858 = vmatprep.subr.bf16.mxu1 %v18580_v24  ;;  %v12066_v24 = vpop.f32.mrf.mxu0 }
 0x826   : > { %v12067_v51 = vadd.f32 %v12066_v24, %v25113_v56 }
 0x827   : > { %v12068_v61 = vpop.f32.mrf.mxu0 }
 0x828   : > { %13859 = vmatpush2.bf16.msra.mxu1 %v18578_v10  ;;  %v12061_v10 = vadd.f32 %v12060_v28, %v25097_v59 }
 0x829   : > { %13860 = vmatprep.subr.bf16.mxu1 %v18583_v31 }
 0x82c   : > { %13861 = vmatpush2.bf16.msra.mxu1 %v18581_v36  ;;  %v12063_v36 = vadd.f32 %v12062_v11, %v25105_v8 }
 0x82d   : > { %13862 = vmatprep.subr.bf16.mxu1 %v18586_v9 }
 0x830   : > { %13863 = vmatpush2.bf16.msra.mxu1 %v18584_v7 }
 0x831   : > { %13864 = vmatprep.subr.bf16.mxu1 %v18589_v17 }
 0x834   : > { %13865 = vmatpush2.bf16.msra.mxu1 %v18587_v22 }
 0x837   : > { %v12109_v54 = vpop.f32.mrf.mxu1  ;;  %13867 = vmatmul.mubr.bf16.vlgmr.msra.gmra.mxu1 %v16340_v18 }
 0x838   : > { %v25135_v15 = vadd.f32 %v12109_v54, %v12037_v33  ;;  %13876 = vmatprep.mubr.bf16.mxu1 %v18592_v6 }
 0x839   : > { %v12111_v29 = vpop.f32.mrf.mxu1 }
 0x83a   : > { %v25138_v62 = vadd.f32 %v12111_v29, %v12039_v60 }
 0x83b   : > { %v12113_v1 = vpop.f32.mrf.mxu1 }
 0x83c   : > { %v25141_v45 = vadd.f32 %v12113_v1, %v12041_v40 }
 0x83d   : > { %v12115_v52 = vpop.f32.mrf.mxu1 }
 0x83e   : > { %v25144_v30 = vadd.f32 %v12115_v52, %v12043_v0 }
 0x83f   : > { %v12119_v63 = vpop.f32.mrf.mxu1  ;;  %13877 = vmatmul.mubr.bf16.gmra.mxu1 %v18590_v46 }
 0x840   : > { %v12120_v49 = vadd.f32 %v12119_v63, %v12047_v16  ;;  %13886 = vmatprep.mubr.bf16.mxu1 %v24796_v21  ;;  %v12059_v21 = vadd.f32 %v12058_v37, %v25089_v44 }
 0x841   : > { %v12121_v26 = vpop.f32.mrf.mxu1 }
 0x842   : > { %v12122_v3 = vadd.f32 %v12121_v26, %v12049_v48 }
 0x843   : > { %v12123_v12 = vpop.f32.mrf.mxu1 }
 0x844   : > { %v12124_v14 = vadd.f32 %v12123_v12, %v12051_v58 }
 0x845   : > { %v12125_v50 = vpop.f32.mrf.mxu1 }
 0x846   : > { %v25151_v47 = vadd.f32 %v12125_v50, %v12053_v2 }
 0x847   : > { %v12129_v43 = vpop.f32.mrf.mxu1  ;;  %13887 = vmatmul.mubr.bf16.gmra.mxu1 %v24809_v13  ;;  %v12070_v13 = vpop.f32.mrf.mxu0 }
 0x848   : > { %v12130_v19 = vadd.f32 %v12129_v43, %v12057_v39  ;;  %13896 = vmatprep.mubr.bf16.mxu1 %v24815_v38  ;;  %v12069_v38 = vadd.f32 %v12068_v61, %v25121_v27  ;;  %v12071_v59 = vadd.f32 %v12070_v13, %v25129_v42 }
 0x849   : > { %v12131_v25 = vpop.f32.mrf.mxu1  ;;  %v12072_v32 = vpop.f32.mrf.mxu0 }
 0x84a   : > { %v12132_v31 = vadd.f32 %v12131_v25, %v12059_v21  ;;  %v12073_v8 = vadd.f32 %v12072_v32, %v11999_v23 }
 0x84b   : > { %v12133_v41 = vpop.f32.mrf.mxu1  ;;  %v12782_v56 = vpop.f32.mrf.mxu0 }
 0x84c   : > { %v12134_v57 = vadd.f32 %v12133_v41, %v12061_v10  ;;  %v12783_v42 = vadd.f32 %v12782_v56, %v25135_v15 }
 0x84d   : > { %v12135_v9 = vpop.f32.mrf.mxu1  ;;  %v12784_v54 = vpop.f32.mrf.mxu0 }
 0x84e   : > { %v25159_v7 = vadd.f32 %v12135_v9, %v12063_v36  ;;  %v12785_v23 = vadd.f32 %v12784_v54, %v25138_v62 }
 0x84f   : > { %v12139_v17 = vpop.f32.mrf.mxu1  ;;  %13897 = vmatmul.mubr.bf16.gmra.mxu1 %v24820_v35  ;;  %v12786_v60 = vpop.f32.mrf.mxu0 }
 0x850   : > { %v12140_v44 = vadd.f32 %v12139_v17, %v12067_v51  ;;  %v12787_v28 = vadd.f32 %v12786_v60, %v25141_v45 }
 0x851   : > { %v12141_v5 = vpop.f32.mrf.mxu1  ;;  %v25166_v29 = vpop.f32.mrf.mxu0 }
 0x852   : > { %v12142_v22 = vadd.f32 %v12141_v5, %v12069_v38 }
 0x853   : > { %v12143_v18 = vpop.f32.mrf.mxu1  ;;  %v12792_v35 = vpop.f32.mrf.mxu0 }
 0x854   : > { %v12144_v33 = vadd.f32 %v12143_v18, %v12071_v59  ;;  %v12793_v11 = vadd.f32 %v12792_v35, %v12120_v49 }
 0x855   : > { %v12145_v6 = vpop.f32.mrf.mxu1  ;;  %v12794_v40 = vpop.f32.mrf.mxu0 }
 0x856   : > { %v25164_v4 = vadd.f32 %v12145_v6, %v12073_v8  ;;  %v12795_v2 = vadd.f32 %v12794_v40, %v12122_v3 }
 0x857   : > { %v12796_v27 = vpop.f32.mrf.mxu0 }
 0x858   : > { %v12797_v24 = vadd.f32 %v12796_v27, %v12124_v14 }
 0x859   : > { %v25168_v37 = vpop.f32.mrf.mxu0 }
 0x85b   : > { %v12802_v46 = vpop.f32.mrf.mxu0 }
 0x85c   : > { %v12803_v10 = vadd.f32 %v12802_v46, %v12130_v19 }
 0x85d   : > { %v12804_v26 = vpop.f32.mrf.mxu0 }
 0x85e   : > { %v12805_v49 = vadd.f32 %v12804_v26, %v12132_v31 }
 0x85f   : > { %v12806_v50 = vpop.f32.mrf.mxu0 }
 0x860   : > { %v12807_v51 = vadd.f32 %v12806_v50, %v12134_v57 }
 0x861   : > { %v25187_v45 = vpop.f32.mrf.mxu0 }
 0x863   : > { %v12812_v36 = vpop.f32.mrf.mxu0 }
 0x864   : > { %v12813_v5 = vadd.f32 %v12812_v36, %v12140_v44 }
 0x865   : > { %v12814_v14 = vpop.f32.mrf.mxu0 }
 0x866   : > { %v12815_v19 = vadd.f32 %v12814_v14, %v12142_v22 }
 0x867   : > { %v12816_v18 = vpop.f32.mrf.mxu0 }
 0x868   : > { %v12817_v31 = vadd.f32 %v12816_v18, %v12144_v33 }
 0x869   : > { %v25205_v57 = vpop.f32.mrf.mxu0 }
 0x86b   : > { %v12928_v60 = vpop.f32.mrf.mxu0 }
 0x86d   : > { %v12930_v35 = vpop.f32.mrf.mxu0 }
 0x86f   : > { %v12932_v40 = vpop.f32.mrf.mxu0 }
 0x871   : > { %v12934_v27 = vpop.f32.mrf.mxu0 }
 0x877   : > { %v12855_v1 = vpop.f32.mrf.mxu1 }
 0x878   : > { %v25171_v0 = vadd.f32 %v12855_v1, %v12783_v42  ;;  %v25207_v42 = vpop.f32.mrf.mxu0 }
 0x879   : > { %v12857_v52 = vpop.f32.mrf.mxu1 }
 0x87a   : > { %v25174_v16 = vadd.f32 %v12857_v52, %v12785_v23  ;;  %v25209_v44 = vpop.f32.mrf.mxu0 }
 0x87b   : > { %v12859_v63 = vpop.f32.mrf.mxu1 }
 0x87c   : > { %v25177_v48 = vadd.f32 %v12859_v63, %v12787_v28  ;;  %v25211_v1 = vpop.f32.mrf.mxu0 }
 0x87d   : > { %v25179_v58 = vpop.f32.mrf.mxu1 }
 0x87e   : > { %v25213_v22 = vpop.f32.mrf.mxu0 }
 0x87f   : > { %v12865_v12 = vpop.f32.mrf.mxu1 }
 0x880   : > { %v25181_v15 = vadd.f32 %v12865_v12, %v12793_v11  ;;  %v25215_v23 = vpop.f32.mrf.mxu0 }
 0x881   : > { %v12867_v39 = vpop.f32.mrf.mxu1 }
 0x882   : > { %v25183_v62 = vadd.f32 %v12867_v39, %v12795_v2  ;;  %v25219_v52 = vpop.f32.mrf.mxu0 }
 0x883   : > { %v12869_v43 = vpop.f32.mrf.mxu1  ;;  %25684 = vst [vmem:[#allocation34_spill] sm:$0xff] %v25219_v52 }
 0x884   : > { %v25185_v21 = vadd.f32 %v12869_v43, %v12797_v24  ;;  %v25221_v63 = vpop.f32.mrf.mxu0 }
 0x885   : > { %v25189_v25 = vpop.f32.mrf.mxu1  ;;  %25685 = vst [vmem:[#allocation39_spill] sm:$0xff] %v25221_v63 }
 0x886   : > { %v25223_v11 = vpop.f32.mrf.mxu0 }
 0x887   : > { %v12875_v61 = vpop.f32.mrf.mxu1  ;;  %25686 = vst [vmem:[#allocation29_spill] sm:$0xff] %v25223_v11  ;;  %v12789_v11 = vadd.f32 %v25166_v29, %v25144_v30 }
 0x888   : > { %v25191_v41 = vadd.f32 %v12875_v61, %v12803_v10  ;;  %v25225_v2 = vpop.f32.mrf.mxu0 }
 0x889   : > { %v12877_v9 = vpop.f32.mrf.mxu1  ;;  %25687 = vst [vmem:[#allocation24_spill] sm:$0xff] %v25225_v2 }
 0x88a   : > { %v25193_v3 = vadd.f32 %v12877_v9, %v12805_v49  ;;  %v25227_v39 = vpop.f32.mrf.mxu0 }
 0x88b   : > { %v12879_v13 = vpop.f32.mrf.mxu1  ;;  %25688 = vst [vmem:[#allocation14_spill] sm:$0xff] %v25227_v39 }
 0x88c   : > { %25678 = vst [vmem:[#allocation25_spill] sm:$0xff] %v25193_v3  ;;  %v25195_v17 = vadd.f32 %v12879_v13, %v12807_v51  ;;  %v25229_v43 = vpop.f32.mrf.mxu0 }
 0x88d   : > { %v25197_v38 = vpop.f32.mrf.mxu1  ;;  %25689 = vst [vmem:[#allocation40_spill] sm:$0xff] %v25229_v43 }
 0x88e   : > { %25679 = vst [vmem:[#allocation26_spill] sm:$0xff] %v25195_v17  ;;  %v25231_v61 = vpop.f32.mrf.mxu0 }
 0x88f   : > { %v12885_v59 = vpop.f32.mrf.mxu1  ;;  %25690 = vst [vmem:[#allocation18_spill] sm:$0xff] %v25231_v61 }
 0x890   : > { %v25199_v32 = vadd.f32 %v12885_v59, %v12813_v5  ;;  %v13795_v49 = vpop.f32.mrf.mxu0 }
 0x891   : > { %v12887_v8 = vpop.f32.mrf.mxu1 }
 0x892   : > { %25680 = vst [vmem:[#allocation13_spill] sm:$0xff] %v25199_v32  ;;  %v25201_v6 = vadd.f32 %v12887_v8, %v12815_v19  ;;  %v13797_v9 = vpop.f32.mrf.mxu0  ;;  %v12929_v32 = vadd.f32 %v12928_v60, %v25171_v0 }
 0x893   : > { %v12889_v56 = vpop.f32.mrf.mxu1 }
 0x894   : > { %25681 = vst [vmem:[#allocation37_spill] sm:$0xff] %v25201_v6  ;;  %v25203_v54 = vadd.f32 %v12889_v56, %v12817_v31  ;;  %v13799_v13 = vpop.f32.mrf.mxu0 }
 0x895   : > { %v25217_v33 = vpop.f32.mrf.mxu1 }
 0x896   : > { %25682 = vst [vmem:[#allocation28_spill] sm:$0xff] %v25203_v54  ;;  %25683 = vst [vmem:[#allocation3_spill] sm:$0xff] %v25217_v33  ;;  %v13801_v5 = vpop.f32.mrf.mxu0 }
 0x898   : > { %v13805_v19 = vpop.f32.mrf.mxu0 }
 0x89a   : > { %v13807_v31 = vpop.f32.mrf.mxu0 }
 0x89c   : > { %v13809_v61 = vpop.f32.mrf.mxu0 }
 0x89e   : > { %v13811_v54 = vpop.f32.mrf.mxu0 }
 0x8a0   : > { %v13815_v39 = vpop.f32.mrf.mxu0 }
 0x8b7   : > { %v13722_v46 = vpop.f32.mrf.mxu1 }
 0x8b8   : > { %v13796_v6 = vadd.f32 %v13795_v49, %v13722_v46 }
 0x8b9   : > { %v13724_v28 = vpop.f32.mrf.mxu1 }
 0x8bb   : > { %v13726_v26 = vpop.f32.mrf.mxu1 }
 0x8bd   : > { %v13728_v12 = vpop.f32.mrf.mxu1 }
 0x8be   : > { %v13802_v49 = vadd.f32 %v13801_v5, %v13728_v12 }
 0x8bf   : > { %v13732_v50 = vpop.f32.mrf.mxu1 }
 0x8c1   : > { %v13734_v24 = vpop.f32.mrf.mxu1 }
 0x8c3   : > { %v13736_v10 = vpop.f32.mrf.mxu1 }
 0x8c5   : > { %v25233_v36 = vpop.f32.mrf.mxu1 }
 0x8c6   : > { %v13812_v5 = vadd.f32 %v13811_v54, %v25233_v36  ;;  %v12949_v54 = vadd.f32 %v25215_v23, %v25191_v41  ;;  %v25702_v23 = vld [vmem:[#allocation26_spill] sm:$0xff] }
 0x8c7   : > { %v25235_v51 = vpop.f32.mrf.mxu1 }
 0x8c9   : > { %v25237_v14 = vpop.f32.mrf.mxu1 }
 0x8ca   : > { %25691 = vst [vmem:[#allocation17_spill] sm:$0xff] %v25237_v14 }
 0x8cb   : > { %v25239_v59 = vpop.f32.mrf.mxu1 }
 0x8cc   : > { %25692 = vst [vmem:[#allocation6_spill] sm:$0xff] %v25239_v59  ;;  %v12862_v59 = vadd.f32 %v25179_v58, %v12789_v11  ;;  %v12939_v58 = vadd.f32 %v25207_v42, %v25181_v15  ;;  %v13810_v11 = vadd.f32 %v13809_v61, %v13736_v10 }
 0x8cd   : > { %v25241_v18 = vpop.f32.mrf.mxu1 }
 0x8ce   : > { %25693 = vst [vmem:[#allocation9_spill] sm:$0xff] %v25241_v18  ;;  %v13798_v18 = vadd.f32 %v13797_v9, %v13724_v28  ;;  %v13806_v28 = vadd.f32 %v13805_v19, %v13732_v50  ;;  %v12943_v50 = vadd.f32 %v25211_v1, %v25185_v21 }
 0x8cf   : > { %v25243_v8 = vpop.f32.mrf.mxu1 }
 0x8d0   : > { %25694 = vst [vmem:[#allocation21_spill] sm:$0xff] %v25243_v8  ;;  %v12931_v8 = vadd.f32 %v12930_v35, %v25174_v16 }
 0x8d1   : > { %v25245_v56 = vpop.f32.mrf.mxu1 }
 0x8d2   : > { %25695 = vst [vmem:[#allocation11_spill] sm:$0xff] %v25245_v56  ;;  %v13817_v56 = vpop.f32.mrf.mxu0 }
 0x8d3   : > { %v25247_v43 = vpop.f32.mrf.mxu1 }
 0x8d4   : > { %25696 = vst [vmem:[#allocation33_spill] sm:$0xff] %v25247_v43  ;;  %v13800_v43 = vadd.f32 %v13799_v13, %v13726_v26  ;;  %v13819_v29 = vpop.f32.mrf.mxu0 }
 0x8d5   : > { %v25249_v33 = vpop.f32.mrf.mxu1 }
 0x8d6   : > { %25697 = vst [vmem:[#allocation31_spill] sm:$0xff] %v25249_v33  ;;  %v12933_v33 = vadd.f32 %v12932_v40, %v25177_v48  ;;  %v13821_v42 = vpop.f32.mrf.mxu0 }
 0x8f7   : > { %v13868_v2 = vpop.f32.mrf.mxu1 }
 0x8f8   : > { %v13869_v63 = vadd.f32 %v13868_v2, %v13796_v6  ;;  %v12935_v6 = vadd.f32 %v12934_v27, %v12862_v59  ;;  %v12941_v27 = vadd.f32 %v25209_v44, %v25183_v62  ;;  %v25276_v62 = vadd.f32 %v25205_v57, %v25164_v4 }
 0x8f9   : > { %v13870_v17 = vpop.f32.mrf.mxu1 }
 0x8fa   : > { %v13907_v52 = vadd.f32 %v13869_v63, %v12929_v32  ;;  %v13871_v3 = vadd.f32 %v13870_v17, %v13798_v18  ;;  %v12799_v17 = vadd.f32 %v25168_v37, %v25151_v47  ;;  %v13808_v32 = vadd.f32 %v13807_v31, %v13734_v24 }
 0x8fb   : > { %v13872_v46 = vpop.f32.mrf.mxu1  ;;  %v12809_v24 = vadd.f32 %v25187_v45, %v25159_v7  ;;  %v13816_v45 = vadd.f32 %v13815_v39, %v25235_v51 }
 0x8fc   : > { %v13923_v0 = vmul.f32 %v13907_v52, %v21613_v34  ;;  %v13908_v60 = vadd.f32 %v13871_v3, %v12931_v8  ;;  %v13873_v14 = vadd.f32 %v13872_v46, %v13800_v43  ;;  %v13825_v43 = vpop.f32.mrf.mxu0 }
 0x8fd   : > { %v13874_v30 = vpop.f32.mrf.mxu1  ;;  %v12882_v4 = vadd.f32 %v25197_v38, %v12809_v24  ;;  %v25699_v38 = vld [vmem:[#allocation25_spill] sm:$0xff] }
 0x8fe   : > { %v13909_v16 = vadd.f32 %v13873_v14, %v12933_v33  ;;  %v13875_v35 = vadd.f32 %v13874_v30, %v13802_v49  ;;  %v13924_v48 = vmul.f32 %v13908_v60, %v21638_v55  ;;  %v13939_v52 = vadd.f32 %v13923_v0, %v21635_v20  ;;  %v13827_v49 = vpop.f32.mrf.mxu0  ;;  %v25700_v30 = vld [vmem:[#allocation34_spill] sm:$0xff] }
 0x8ff   : > { %v13878_v40 = vpop.f32.mrf.mxu1  ;;  %v12872_v33 = vadd.f32 %v25189_v25, %v12799_v17  ;;  %v12951_v39 = vadd.f32 %v25700_v30, %v25699_v38 }
 0x900   : > { %v13925_v3 = vmul.f32 %v13909_v16, %v21613_v34  ;;  %v13910_v63 = vadd.f32 %v13875_v35, %v12935_v6  ;;  %v13879_v26 = vadd.f32 %v13878_v40, %v13806_v28  ;;  %v13940_v44 = vadd.f32 %v13924_v48, %v25654_v53  ;;  %v25701_v35 = vld [vmem:[#allocation6_spill] sm:$0xff]  ;;  %v25704_v40 = vld [vmem:[#allocation29_spill] sm:$0xff] }
 0x901   : > { %v13880_v15 = vpop.f32.mrf.mxu1  ;;  %v13955_v10 = vmax.f32 %v13939_v52, 0.0  ;;  %v12945_v14 = vadd.f32 %v25213_v22, %v12872_v33  ;;  %v25698_v22 = vld [vmem:[#allocation17_spill] sm:$0xff]  ;;  %v12955_v52 = vadd.f32 %v25704_v40, %v12882_v4 }
 0x902   : > { %v13941_v47 = vadd.f32 %v13925_v3, %v21635_v20  ;;  %v13926_v37 = vmul.f32 %v13910_v63, %v21638_v55  ;;  %v13911_v12 = vadd.f32 %v13879_v26, %v12939_v58  ;;  %v13881_v2 = vadd.f32 %v13880_v15, %v13808_v32 }
 0x903   : > { %v13882_v25 = vpop.f32.mrf.mxu1  ;;  %v13956_v31 = vmax.f32 %v13940_v44, 0.0  ;;  %v13818_v36 = vadd.f32 %v13817_v56, %v25698_v22  ;;  %v13820_v58 = vadd.f32 %v13819_v29, %v25701_v35  ;;  %v25703_v56 = vld [vmem:[#allocation39_spill] sm:$0xff]  ;;  %v25713_v22 = vld [vmem:[#allocation33_spill] sm:$0xff] }
 0x904   : > { %v13957_v61 = vmax.f32 %v13941_v47, 0.0  ;;  %v13912_v9 = vadd.f32 %v13881_v2, %v12941_v27  ;;  %v13883_v13 = vadd.f32 %v13882_v25, %v13810_v11  ;;  %v13927_v21 = vmul.f32 %v13911_v12, %v21613_v34  ;;  %v25705_v27 = vld [vmem:[#allocation9_spill] sm:$0xff]  ;;  %v13829_v11 = vpop.f32.mrf.mxu0  ;;  %v25707_v12 = vld [vmem:[#allocation24_spill] sm:$0xff] }
 0x905   : > { %v13884_v1 = vpop.f32.mrf.mxu1  ;;  %v13942_v7 = vadd.f32 %v13926_v37, %v25654_v53  ;;  %v12953_v48 = vadd.f32 %v25703_v56, %v25702_v23  ;;  %v13822_v33 = vadd.f32 %v13821_v42, %v25705_v27  ;;  %v25706_v37 = vld [vmem:[#allocation13_spill] sm:$0xff] }
 0x906   : > { %v13971_v57 = vpack.c.bf16 %v13957_v61, %v13955_v10  ;;  %v13913_v59 = vadd.f32 %v13883_v13, %v12943_v50  ;;  %v13928_v19 = vmul.f32 %v13912_v9, %v21638_v55  ;;  %v13885_v18 = vadd.f32 %v13884_v1, %v13812_v5  ;;  %v25708_v10 = vld [vmem:[#allocation37_spill] sm:$0xff]  ;;  %v25709_v61 = vld [vmem:[#allocation14_spill] sm:$0xff] }
 0x907   : > { %v13888_v8 = vpop.f32.mrf.mxu1  ;;  %v13958_v46 = vmax.f32 %v13942_v7, 0.0  ;;  %v13943_v51 = vadd.f32 %v13927_v21, %v21635_v20  ;;  %v12959_v2 = vadd.f32 %v25707_v12, %v25706_v37  ;;  %v12961_v9 = vadd.f32 %v25709_v61, %v25708_v10  ;;  %v25710_v13 = vld [vmem:[#allocation21_spill] sm:$0xff] }
 0x908   : > { %v13929_v0 = vmul.f32 %v13913_v59, %v21613_v34  ;;  %v13889_v60 = vadd.f32 %v13888_v8, %v13816_v45  ;;  %v13914_v6 = vadd.f32 %v13885_v18, %v12945_v14  ;;  %v13944_v26 = vadd.f32 %v13928_v19, %v25654_v53  ;;  %v13831_v19 = vpop.f32.mrf.mxu0 }
 0x909   : > { %v13890_v28 = vpop.f32.mrf.mxu1  ;;  %v13972_v16 = vpack.c.bf16 %v13958_v46, %v13956_v31  ;;  %v13959_v50 = vmax.f32 %v13943_v51, 0.0  ;;  %v13826_v14 = vadd.f32 %v13825_v43, %v25710_v13  ;;  %v25712_v46 = vld [vmem:[#allocation3_spill] sm:$0xff]  ;;  %v13830_v43 = vadd.f32 %v13829_v11, %v25713_v22  ;;  %v25714_v51 = vld [vmem:[#allocation28_spill] sm:$0xff] }
 0x90a   : > { %v13945_v17 = vadd.f32 %v13929_v0, %v21635_v20  ;;  %v13915_v32 = vadd.f32 %v13889_v60, %v12949_v54  ;;  %v13891_v41 = vadd.f32 %v13890_v28, %v13818_v36  ;;  %v13930_v3 = vmul.f32 %v13914_v6, %v21638_v55  ;;  %v25715_v6 = vld [vmem:[#allocation40_spill] sm:$0xff] }
 0x90b   : > { %14011 = vmatprep.mubr.bf16.mxu0 %v13972_v16  ;;  %v13892_v63 = vpop.f32.mrf.mxu1  ;;  %v13960_v7 = vmax.f32 %v13944_v26, 0.0  ;;  %v12892_v54 = vadd.f32 %v25712_v46, %v25276_v62  ;;  %v12963_v28 = vadd.f32 %v25715_v6, %v25714_v51  ;;  %v25716_v16 = vld [vmem:[#allocation31_spill] sm:$0xff] }
 0x90c   : > { %v13961_v15 = vmax.f32 %v13945_v17, 0.0  ;;  %v13916_v29 = vadd.f32 %v13891_v41, %v12951_v39  ;;  %v13893_v47 = vadd.f32 %v13892_v63, %v13820_v58  ;;  %14012 = vmatmul.mubr.bf16.vlgmr.msra.gmra.mxu0 %v13971_v57  ;;  %v13931_v24 = vmul.f32 %v13915_v32, %v21613_v34  ;;  %v25711_v57 = vld [vmem:[#allocation11_spill] sm:$0xff] }
 0x90d   : > { %v13894_v25 = vpop.f32.mrf.mxu1  ;;  %v13946_v44 = vadd.f32 %v13930_v3, %v25654_v53  ;;  %v13828_v59 = vadd.f32 %v13827_v49, %v25711_v57  ;;  %v13832_v35 = vadd.f32 %v13831_v19, %v25716_v16 }
 0x90e   : > { %v13917_v42 = vadd.f32 %v13893_v47, %v12953_v48  ;;  %v13895_v5 = vadd.f32 %v13894_v25, %v13822_v33  ;;  %v13932_v21 = vmul.f32 %v13916_v29, %v21638_v55  ;;  %v13973_v45 = vpack.c.bf16 %v13961_v15, %v13959_v50 }
 0x90f   : > { %v13898_v1 = vpop.f32.mrf.mxu1  ;;  %v13962_v4 = vmax.f32 %v13946_v44, 0.0  ;;  %v13947_v36 = vadd.f32 %v13931_v24, %v21635_v20 }
 0x910   : > { %v13933_v18 = vmul.f32 %v13917_v42, %v21613_v34  ;;  %v13918_v8 = vadd.f32 %v13895_v5, %v12955_v52  ;;  %v13899_v31 = vadd.f32 %v13898_v1, %v13826_v14  ;;  %v13948_v62 = vadd.f32 %v13932_v21, %v25654_v53  ;;  %v25717_v52 = vld [vmem:[#allocation18_spill] sm:$0xff]  ;;  %v18687_v5 = vld [vmem:[%s25353_s8] ss:$0 sm:$0xff] }
 0x911   : > { %v13900_v0 = vpop.f32.mrf.mxu1  ;;  %v13974_v60 = vpack.c.bf16 %v13962_v4, %v13960_v7  ;;  %v13963_v56 = vmax.f32 %v13947_v36, 0.0  ;;  %v12965_v3 = vadd.f32 %v25717_v52, %v12892_v54 }
 0x912   : > { %v13949_v38 = vadd.f32 %v13933_v18, %v21635_v20  ;;  %v13934_v30 = vmul.f32 %v13918_v8, %v21638_v55  ;;  %v13919_v39 = vadd.f32 %v13899_v31, %v12959_v2  ;;  %v13901_v49 = vadd.f32 %v13900_v0, %v13828_v59 }
 0x913   : > { %14019 = vmatprep.mubr.bf16.mxu0 %v13974_v60  ;;  %v13902_v58 = vpop.f32.mrf.mxu1  ;;  %v13964_v33 = vmax.f32 %v13948_v62, 0.0 }
 0x914   : > { %v13965_v17 = vmax.f32 %v13949_v38, 0.0  ;;  %v13935_v32 = vmul.f32 %v13919_v39, %v21613_v34  ;;  %v13920_v41 = vadd.f32 %v13901_v49, %v12961_v9  ;;  %v13903_v23 = vadd.f32 %v13902_v58, %v13830_v43  ;;  %14020 = vmatmul.mubr.bf16.gmra.mxu0 %v13973_v45 }
 0x915   : > { %v13904_v48 = vpop.f32.mrf.mxu1  ;;  %v13950_v40 = vadd.f32 %v13934_v30, %v25654_v53 }
 0x916   : > { %v13936_v63 = vmul.f32 %v13920_v41, %v21638_v55  ;;  %v13921_v26 = vadd.f32 %v13903_v23, %v12963_v28  ;;  %v13905_v27 = vadd.f32 %v13904_v48, %v13832_v35  ;;  %v13975_v15 = vpack.c.bf16 %v13965_v17, %v13963_v56 }
 0x917   : > { %v13966_v11 = vmax.f32 %v13950_v40, 0.0  ;;  %v13951_v29 = vadd.f32 %v13935_v32, %v21635_v20 }
 0x918   : > { %v13937_v47 = vmul.f32 %v13921_v26, %v21613_v34  ;;  %v13922_v37 = vadd.f32 %v13905_v27, %v12965_v3  ;;  %v13952_v24 = vadd.f32 %v13936_v63, %v25654_v53 }
 0x919   : > { %v13976_v12 = vpack.c.bf16 %v13966_v11, %v13964_v33  ;;  %v13967_v25 = vmax.f32 %v13951_v29, 0.0 }
 0x91a   : > { %v13953_v2 = vadd.f32 %v13937_v47, %v21635_v20  ;;  %v13938_v50 = vmul.f32 %v13922_v37, %v21638_v55  ;;  %v13968_v61 = vmax.f32 %v13952_v24, 0.0 }
 0x91b   : > { %14027 = vmatprep.mubr.bf16.mxu0 %v13976_v12 }
 0x91c   : > { %v13969_v44 = vmax.f32 %v13953_v2, 0.0  ;;  %14028 = vmatmul.mubr.bf16.gmra.mxu0 %v13975_v15  ;;  %v13954_v10 = vadd.f32 %v13938_v50, %v25654_v53 }
 0x91e   : > { %v13970_v9 = vmax.f32 %v13954_v10, 0.0  ;;  %v13977_v13 = vpack.c.bf16 %v13969_v44, %v13967_v25 }
 0x920   : > { %v13978_v34 = vpack.c.bf16 %v13970_v9, %v13968_v61 }
 0x922   : > { %14035 = vmatprep.mubr.bf16.mxu0 %v13978_v34 }
 0x924   : > { %14036 = vmatmul.mubr.bf16.gmra.mxu0 %v13977_v13 }
 0x9cc   : > { %v16636_v14 = vpop.f32.mrf.mxu0 }
 0x9ce   : > { %v16637_v20 = vpop.f32.mrf.mxu0 }
 0x9cf   : > { %v16638_v55 = vadd.f32 %v16637_v20, %v16636_v14 }
 0x9d0   : > { %v16639_v42 = vpop.f32.mrf.mxu0 }
 0x9d1   : > { %v14014_v21 = vadd.f32 %v18687_v5, %v16638_v55 }
 0x9d2   : > { %v16640_v1 = vpop.f32.mrf.mxu0 }
 0x9d3   : > { %16456 = vst [vmem:[%s22198_s10 + $0xc0] sm:$0xff] %v14014_v21  ;;  %v16641_v53 = vadd.f32 %v16640_v1, %v16639_v42 }
 0x9d4   : > { %v16642_v7 = vpop.f32.mrf.mxu0 }
 0x9d5   : > { %v14017_v4 = vadd.f32 %v18687_v5, %v16641_v53 }
 0x9d6   : > { %v16643_v45 = vpop.f32.mrf.mxu0 }
 0x9d7   : > { %16457 = vst [vmem:[%s22198_s10 + $0xc8] sm:$0xff] %v14017_v4  ;;  %v16644_v57 = vadd.f32 %v16643_v45, %v16642_v7 }
 0x9d8   : > { %v16645_v59 = vpop.f32.mrf.mxu0 }
 0x9d9   : > { %v14022_v19 = vadd.f32 %v18687_v5, %v16644_v57 }
 0x9da   : > { %v16646_v18 = vpop.f32.mrf.mxu0 }
 0x9db   : > { %16458 = vst [vmem:[%s22198_s10 + $0xd0] sm:$0xff] %v14022_v19  ;;  %v16647_v8 = vadd.f32 %v16646_v18, %v16645_v59 }
 0x9dc   : > { %v16648_v31 = vpop.f32.mrf.mxu0 }
 0x9dd   : > { %v14025_v46 = vadd.f32 %v18687_v5, %v16647_v8 }
 0x9de   : > { %v16649_v54 = vpop.f32.mrf.mxu0 }
 0x9df   : > { %16459 = vst [vmem:[%s22198_s10 + $0xd8] sm:$0xff] %v14025_v46  ;;  %v16650_v22 = vadd.f32 %v16649_v54, %v16648_v31 }
 0x9e0   : > { %v16651_v43 = vpop.f32.mrf.mxu0 }
 0x9e1   : > { %v14030_v36 = vadd.f32 %v18687_v5, %v16650_v22 }
 0x9e2   : > { %v16652_v0 = vpop.f32.mrf.mxu0 }
 0x9e3   : > { %16460 = vst [vmem:[%s22198_s10 + $0xe0] sm:$0xff] %v14030_v36  ;;  %v16653_v60 = vadd.f32 %v16652_v0, %v16651_v43 }
 0x9e4   : > { %v16654_v38 = vpop.f32.mrf.mxu0 }
 0x9e5   : > { %v14033_v30 = vadd.f32 %v18687_v5, %v16653_v60 }
 0x9e6   : > { %v16655_v39 = vpop.f32.mrf.mxu0 }
 0x9e7   : > { %16461 = vst [vmem:[%s22198_s10 + $0xe8] sm:$0xff] %v14033_v30  ;;  %v16656_v49 = vadd.f32 %v16655_v39, %v16654_v38 }
 0x9e8   : > { %v16657_v51 = vpop.f32.mrf.mxu0 }
 0x9e9   : > { %v14038_v6 = vadd.f32 %v18687_v5, %v16656_v49 }
 0x9ea   : > { %v16658_v28 = vpop.f32.mrf.mxu0 }
 0x9eb   : > { %16462 = vst [vmem:[%s22198_s10 + $0xf0] sm:$0xff] %v14038_v6  ;;  %v16659_v16 = vadd.f32 %v16658_v28, %v16657_v51 }
 0x9ed   : > { %v14041_v35 = vadd.f32 %v18687_v5, %v16659_v16 }
 0x9ef   : > { %16463 = vst [vmem:[%s22198_s10 + $0xf8] sm:$0xff] %v14041_v35 }
 0x9f0 PF: > { %s19_s30 = sadd.s32 1, %s18702_s30  }
 0x9f1   : > { %p16_p4 = scmp.ge.s32.totalorder %s19_s30, 4  }
 0x9f3   :  { %18 = sbr.rel (!%p16_p4) target bundleno = 1 (0x1), region = 106 }

</bundles_post_ra>
